<compile_context>
chip_gen: v5e
topology: v5e:2x2
jax: 0.10.0
libtpu: 0.0.40
codegen_flags: <defaults>
</compile_context>

<pallas_src>
import numpy as np
import jax
import jax.numpy as jnp
from jax.experimental import pallas as pl
from jax.experimental.pallas import tpu as pltpu

BN_EPS = 1e-5
LEAKY_SLOPE = 0.05


def _bilinear_matrix(size_in):
    """(2*size_in, size_in) matrix reproducing nn.Upsample(scale_factor=2,
    mode='bilinear', align_corners=False) along one axis."""
    size_out = 2 * size_in
    a = np.zeros((size_out, size_in), dtype=np.float32)
    for o in range(size_out):
        src = (o + 0.5) / 2.0 - 0.5
        src = max(src, 0.0)
        i0 = min(int(np.floor(src)), size_in - 1)
        i1 = min(i0 + 1, size_in - 1)
        w1 = src - i0
        a[o, i0] += 1.0 - w1
        a[o, i1] += w1
    return a


# ----------------------------------------------------------------------------
# Fused whole-network kernel (single invocation, everything resident in VMEM,
# structured weights prefetched from HBM and overlapped with compute).
# ----------------------------------------------------------------------------
def _make_decoder_kernel(n_layers, slope, eps):
    n_hbm = 2 * n_layers + 1          # kc_i, kw_i per layer + kc_last
    n_vmem = 5 * n_layers             # ah, sel, selt, gamma, beta per layer

    def kernel(*refs):
        x_ref = refs[0]
        hbm = refs[1:1 + n_hbm]
        vmem = refs[1 + n_hbm:1 + n_hbm + n_vmem]
        out_ref = refs[1 + n_hbm + n_vmem]
        bufs = refs[2 + n_hbm + n_vmem:2 + n_hbm + n_vmem + n_hbm]
        sem = refs[2 + n_hbm + n_vmem + n_hbm]

        # Prefetch chain: issue every structured-weight DMA now, wait on each
        # copy right before its first use.  Layer i+1's kc/kw stream over HBM
        # while layer i's matmuls run; only the first copy's latency is exposed.
        copies = []
        for j in range(n_hbm):
            cp = pltpu.make_async_copy(hbm[j], bufs[j], sem.at[j])
            cp.start()
            copies.append(cp)

        h = x_ref[...]                                           # (N*H, Cin*W)
        for i in range(n_layers):
            ah_ref, sel_ref, selt_ref, g_ref, b_ref = vmem[5 * i:5 * i + 5]
            kc_buf, kw_buf = bufs[2 * i], bufs[2 * i + 1]

            # 1x1 conv (channel mixing folded into lane blocks) + activation.
            copies[2 * i].wait()
            y = jnp.dot(h, kc_buf[...], preferred_element_type=jnp.float32)
            if slope == 0.0:
                y = jnp.maximum(y, 0.0)                          # ReLU
            else:
                y = jnp.maximum(y, slope * y)                    # LeakyReLU(0.05)

            # Separable bilinear 2x upsample: W direction (block-diag right
            # matmul over lane blocks), then H direction (block-diag-over-batch
            # left matmul over rows).  Result stays lane-dense.
            copies[2 * i + 1].wait()
            y = jnp.dot(y, kw_buf[...], preferred_element_type=jnp.float32)
            y = jnp.dot(ah_ref[...], y, preferred_element_type=jnp.float32)

            # BatchNorm2d (training-mode batch stats, biased one-pass variance).
            # sel is pre-scaled by 1/(N*2H*2W) on the host, so the selector
            # matmuls yield E[x] / E[x^2] per channel directly.
            col_sum = jnp.sum(y, axis=0, keepdims=True)                  # (1, L)
            col_sq = jnp.sum(y * y, axis=0, keepdims=True)               # (1, L)
            mean_c = jnp.dot(col_sum, sel_ref[...],
                             preferred_element_type=jnp.float32)         # (1, C)
            ex2_c = jnp.dot(col_sq, sel_ref[...],
                            preferred_element_type=jnp.float32)          # (1, C)
            var_c = ex2_c - mean_c * mean_c
            s_c = g_ref[...] * jax.lax.rsqrt(var_c + eps)                # (1, C)
            t_c = b_ref[...] - mean_c * s_c                              # (1, C)
            s_l = jnp.dot(s_c, selt_ref[...],
                          preferred_element_type=jnp.float32)            # (1, L)
            t_l = jnp.dot(t_c, selt_ref[...],
                          preferred_element_type=jnp.float32)            # (1, L)
            h = y * s_l + t_l                                            # fused apply

        # Final 1x1 conv (output channels zero-padded to lane-dense) + sigmoid.
        copies[n_hbm - 1].wait()
        z = jnp.dot(h, bufs[n_hbm - 1][...], preferred_element_type=jnp.float32)
        out_ref[...] = jax.nn.sigmoid(z).astype(out_ref.dtype)

    return kernel


# ----------------------------------------------------------------------------
# Host-side weight preprocessing (built once per (params, N, H, W)).
# ----------------------------------------------------------------------------
def prepare_decoder(params, n_batch, height, width):
    """Returns (hbm_consts, vmem_consts, meta).

    hbm_consts : large structured matrices [kc_0, kw_0, ..., kc_last] the kernel
                 prefetches from HBM into VMEM scratch itself (overlapped).
    vmem_consts: small per-layer constants [ah, sel, selt, gamma, beta]*L that
                 Pallas copies to VMEM automatically.
    In-kernel activation layout is (N*H, C*W): rows = (batch, height),
    lanes = (channel, width).  For best performance C*W / C*2W should be a
    multiple of 128 at every stage (true for the shipped sizes); other shapes
    still work but fall back to masked vector ops.
    """
    conv_w = params["conv_w"]            # list of (Cin, Cout) = torch w[:, :, 0, 0].T
    n_layers = len(conv_w) - 1
    hbm_consts, vmem_consts = [], []
    h_i, w_i = height, width
    for i in range(n_layers):
        cin, cout = conv_w[i].shape
        # conv 1x1 in lane space: (Cin*W, Cout*W)
        kc = jnp.kron(conv_w[i].astype(jnp.float32),
                      jnp.eye(w_i, dtype=jnp.float32))
        # W-direction bilinear 2x upsample, block-diag over channels: (Cout*W, Cout*2W)
        kw = jnp.kron(jnp.eye(cout, dtype=jnp.float32),
                      jnp.asarray(_bilinear_matrix(w_i).T))
        # H-direction upsample, block-diag over batch (rows are (n, h)): (N*2H, N*H)
        ah = jnp.kron(jnp.eye(n_batch, dtype=jnp.float32),
                      jnp.asarray(_bilinear_matrix(h_i)))
        rep = 2 * w_i
        inv_count = 1.0 / float(n_batch * 2 * h_i * 2 * w_i)
        # lane -> channel selector, pre-scaled by 1/count: (Cout*2W, Cout)
        sel = jnp.kron(jnp.eye(cout, dtype=jnp.float32),
                       jnp.full((rep, 1), inv_count, dtype=jnp.float32))
        # channel -> lane broadcast: (Cout, Cout*2W)
        selt = jnp.kron(jnp.eye(cout, dtype=jnp.float32),
                        jnp.ones((1, rep), dtype=jnp.float32))
        g = params["bn_gamma"][i].astype(jnp.float32)[None, :]
        b = params["bn_beta"][i].astype(jnp.float32)[None, :]
        hbm_consts += [kc, kw]
        vmem_consts += [ah, sel, selt, g, b]
        h_i, w_i = 2 * h_i, 2 * w_i

    cin_last, c_out = conv_w[-1].shape
    # Pad output channels so the final matmul / output store are lane-dense.
    c_pad = c_out
    if (c_out * w_i) % 128 != 0:
        for extra in range(1, 129):
            if ((c_out + extra) * w_i) % 128 == 0:
                c_pad = c_out + extra
                break
    w_last = conv_w[-1].astype(jnp.float32)
    if c_pad > c_out:
        w_last = jnp.concatenate(
            [w_last, jnp.zeros((cin_last, c_pad - c_out), jnp.float32)], axis=1)
    kc_last = jnp.kron(w_last, jnp.eye(w_i, dtype=jnp.float32))  # (Clast*Wf, Cpad*Wf)
    hbm_consts.append(kc_last)
    meta = dict(n_layers=n_layers, out_h=h_i, out_w=w_i,
                c_out=c_out, c_out_padded=c_pad)
    return hbm_consts, vmem_consts, meta


def decoder_apply(x_nchw, prepared, leakyrelu_flag=False):
    hbm_consts, vmem_consts, meta = prepared
    n, c0, hh, ww = x_nchw.shape
    nl, hf, wf = meta["n_layers"], meta["out_h"], meta["out_w"]
    c_out, c_pad = meta["c_out"], meta["c_out_padded"]
    slope = LEAKY_SLOPE if leakyrelu_flag else 0.0

    # NCHW -> (N*H, C*W): one small XLA transpose in, one out; rest is fused.
    x2d = jnp.transpose(x_nchw, (0, 2, 1, 3)).reshape(n * hh, c0 * ww)

    kernel = _make_decoder_kernel(nl, slope, BN_EPS)
    n_hbm = len(hbm_consts)
    in_specs = ([pl.BlockSpec(memory_space=pltpu.MemorySpace.VMEM)]
                + [pl.BlockSpec(memory_space=pl.ANY)] * n_hbm
                + [pl.BlockSpec(memory_space=pltpu.MemorySpace.VMEM)] * len(vmem_consts))
    scratch_shapes = ([pltpu.VMEM(c.shape, jnp.float32) for c in hbm_consts]
                      + [pltpu.SemaphoreType.DMA((n_hbm,))])

    out2d = pl.pallas_call(
        kernel,
        out_shape=jax.ShapeDtypeStruct((n * hf, c_pad * wf), jnp.float32),
        in_specs=in_specs,
        out_specs=pl.BlockSpec(memory_space=pltpu.MemorySpace.VMEM),
        scratch_shapes=scratch_shapes,
        compiler_params=pltpu.CompilerParams(vmem_limit_bytes=32 * 1024 * 1024),
    )(x2d, *hbm_consts, *vmem_consts)

    # (N*Hf, [Cpad, Wf]) -> NCHW, dropping the zero pad channels.
    out = out2d.reshape(n, hf, c_pad, wf).transpose(0, 2, 1, 3)[:, :c_out]
    return out.astype(x_nchw.dtype)


_PREPARED_CACHE = {}


def decoder_net_forward(x_nchw, params, leakyrelu_flag=False):
    """Convenience wrapper; caches prepare_decoder() across calls (keyed by the
    params-dict identity and input geometry)."""
    n, _, hh, ww = x_nchw.shape
    key = (id(params), n, hh, ww)
    prepared = _PREPARED_CACHE.get(key)
    if prepared is None:
        prepared = prepare_decoder(params, n, hh, ww)
        _PREPARED_CACHE[key] = prepared
    return decoder_apply(x_nchw, prepared, leakyrelu_flag)


# ----------------------------------------------------------------------------
# Deterministic synthetic parameters and a pure-JAX reference for checking.
# ----------------------------------------------------------------------------
def init_params(key, num_output_channels, num_channels_up):
    chans = list(num_channels_up) + [num_output_channels]
    conv_w, gammas, betas = [], [], []
    for i in range(len(chans) - 1):
        key, kw, kg, kb = jax.random.split(key, 4)
        cin, cout = chans[i], chans[i + 1]
        conv_w.append(jax.random.normal(kw, (cin, cout), jnp.float32) * (2.0 / cin) ** 0.5)
        if i < len(num_channels_up) - 1:
            gammas.append(1.0 + 0.1 * jax.random.normal(kg, (cout,), jnp.float32))
            betas.append(0.1 * jax.random.normal(kb, (cout,), jnp.float32))
    return {"conv_w": conv_w, "bn_gamma": gammas, "bn_beta": betas}


def decoder_net_reference(x_nchw, params, leakyrelu_flag=False):
    h = x_nchw
    slope = LEAKY_SLOPE if leakyrelu_flag else 0.0
    n_layers = len(params["conv_w"]) - 1
    for i in range(n_layers):
        h = jnp.einsum("nchw,cd->ndhw", h, params["conv_w"][i])
        h = jnp.where(h >= 0.0, h, slope * h)
        a_h = jnp.asarray(_bilinear_matrix(h.shape[2]))
        a_w = jnp.asarray(_bilinear_matrix(h.shape[3]))
        h = jnp.einsum("oh,nchw->ncow", a_h, h)
        h = jnp.einsum("pw,nchw->nchp", a_w, h)
        mean = h.mean(axis=(0, 2, 3), keepdims=True)
        var = h.var(axis=(0, 2, 3), keepdims=True)  # biased (training-mode BN)
        g = params["bn_gamma"][i].reshape(1, -1, 1, 1)
        b = params["bn_beta"][i].reshape(1, -1, 1, 1)
        h = (h - mean) / jnp.sqrt(var + BN_EPS) * g + b
    h = jnp.einsum("nchw,cd->ndhw", h, params["conv_w"][-1])
    return jax.nn.sigmoid(h)


if __name__ == "__main__":
    key = jax.random.PRNGKey(0)
    num_channels_up = [32, 16, 8]
    num_output_channels = 3
    N, H, W = 2, 16, 16

    k_x, k_p = jax.random.split(key)
    x = jax.random.normal(k_x, (N, num_channels_up[0], H, W), jnp.float32)
    params = init_params(k_p, num_output_channels, num_channels_up)

    prepared = prepare_decoder(params, N, H, W)   # built once, reused

    # ReLU variant
    out = decoder_apply(x, prepared, leakyrelu_flag=False)
    out = jax.block_until_ready(out)
    assert out.shape == (N, num_output_channels, 4 * H, 4 * W), out.shape
    ref = decoder_net_reference(x, params, leakyrelu_flag=False)
    np.testing.assert_allclose(np.asarray(out), np.asarray(ref), rtol=1e-3, atol=1e-3)

    # LeakyReLU variant (goes through the caching wrapper)
    out_l = decoder_net_forward(x, params, leakyrelu_flag=True)
    out_l = jax.block_until_ready(out_l)
    ref_l = decoder_net_reference(x, params, leakyrelu_flag=True)
    np.testing.assert_allclose(np.asarray(out_l), np.asarray(ref_l), rtol=1e-3, atol=1e-3)

    print("KERNEL_OK")
</pallas_src>

<mosaic_0001>
module attributes {stable_mosaic.version = 11 : i64} {
  func.func @kernel(%arg0: memref<32x512xf32, #tpu.memory_space<vmem>>, %arg1: memref<512x256xf32, #tpu.memory_space<any>>, %arg2: memref<256x512xf32, #tpu.memory_space<any>>, %arg3: memref<512x256xf32, #tpu.memory_space<any>>, %arg4: memref<256x512xf32, #tpu.memory_space<any>>, %arg5: memref<512x256xf32, #tpu.memory_space<any>>, %arg6: memref<64x32xf32, #tpu.memory_space<vmem>>, %arg7: memref<512x16xf32, #tpu.memory_space<vmem>>, %arg8: memref<16x512xf32, #tpu.memory_space<vmem>>, %arg9: memref<1x16xf32, #tpu.memory_space<vmem>>, %arg10: memref<1x16xf32, #tpu.memory_space<vmem>>, %arg11: memref<128x64xf32, #tpu.memory_space<vmem>>, %arg12: memref<512x8xf32, #tpu.memory_space<vmem>>, %arg13: memref<8x512xf32, #tpu.memory_space<vmem>>, %arg14: memref<1x8xf32, #tpu.memory_space<vmem>>, %arg15: memref<1x8xf32, #tpu.memory_space<vmem>>, %arg16: memref<128x256xf32, #tpu.memory_space<vmem>>, %arg17: memref<512x256xf32, #tpu.memory_space<vmem>>, %arg18: memref<256x512xf32, #tpu.memory_space<vmem>>, %arg19: memref<512x256xf32, #tpu.memory_space<vmem>>, %arg20: memref<256x512xf32, #tpu.memory_space<vmem>>, %arg21: memref<512x256xf32, #tpu.memory_space<vmem>>, %arg22: memref<5x!tpu.dma_semaphore, #tpu.memory_space<semaphore_mem>>) attributes {dimension_semantics = [], scalar_prefetch = 0 : i64, scratch_operands = 6 : i64, tpu.core_type = #tpu.core_type<tc>} {
    %c0_i32 = arith.constant 0 : i32
    %0 = tpu.memref_slice %arg22[%c0_i32] : memref<5x!tpu.dma_semaphore, #tpu.memory_space<semaphore_mem>> -> memref<1x!tpu.dma_semaphore, #tpu.memory_space<semaphore_mem>>
    %1 = tpu.memref_squeeze %0 : memref<1x!tpu.dma_semaphore, #tpu.memory_space<semaphore_mem>> -> memref<!tpu.dma_semaphore, #tpu.memory_space<semaphore_mem>>
    tpu.enqueue_dma source(%arg1 : memref<512x256xf32, #tpu.memory_space<any>>) target(%arg17 : memref<512x256xf32, #tpu.memory_space<vmem>>) target_semaphore(%1 : memref<!tpu.dma_semaphore, #tpu.memory_space<semaphore_mem>>)
    %c1_i32 = arith.constant 1 : i32
    %2 = tpu.memref_slice %arg22[%c1_i32] : memref<5x!tpu.dma_semaphore, #tpu.memory_space<semaphore_mem>> -> memref<1x!tpu.dma_semaphore, #tpu.memory_space<semaphore_mem>>
    %3 = tpu.memref_squeeze %2 : memref<1x!tpu.dma_semaphore, #tpu.memory_space<semaphore_mem>> -> memref<!tpu.dma_semaphore, #tpu.memory_space<semaphore_mem>>
    tpu.enqueue_dma source(%arg2 : memref<256x512xf32, #tpu.memory_space<any>>) target(%arg18 : memref<256x512xf32, #tpu.memory_space<vmem>>) target_semaphore(%3 : memref<!tpu.dma_semaphore, #tpu.memory_space<semaphore_mem>>)
    %c2_i32 = arith.constant 2 : i32
    %4 = tpu.memref_slice %arg22[%c2_i32] : memref<5x!tpu.dma_semaphore, #tpu.memory_space<semaphore_mem>> -> memref<1x!tpu.dma_semaphore, #tpu.memory_space<semaphore_mem>>
    %5 = tpu.memref_squeeze %4 : memref<1x!tpu.dma_semaphore, #tpu.memory_space<semaphore_mem>> -> memref<!tpu.dma_semaphore, #tpu.memory_space<semaphore_mem>>
    tpu.enqueue_dma source(%arg3 : memref<512x256xf32, #tpu.memory_space<any>>) target(%arg19 : memref<512x256xf32, #tpu.memory_space<vmem>>) target_semaphore(%5 : memref<!tpu.dma_semaphore, #tpu.memory_space<semaphore_mem>>)
    %c3_i32 = arith.constant 3 : i32
    %6 = tpu.memref_slice %arg22[%c3_i32] : memref<5x!tpu.dma_semaphore, #tpu.memory_space<semaphore_mem>> -> memref<1x!tpu.dma_semaphore, #tpu.memory_space<semaphore_mem>>
    %7 = tpu.memref_squeeze %6 : memref<1x!tpu.dma_semaphore, #tpu.memory_space<semaphore_mem>> -> memref<!tpu.dma_semaphore, #tpu.memory_space<semaphore_mem>>
    tpu.enqueue_dma source(%arg4 : memref<256x512xf32, #tpu.memory_space<any>>) target(%arg20 : memref<256x512xf32, #tpu.memory_space<vmem>>) target_semaphore(%7 : memref<!tpu.dma_semaphore, #tpu.memory_space<semaphore_mem>>)
    %c4_i32 = arith.constant 4 : i32
    %8 = tpu.memref_slice %arg22[%c4_i32] : memref<5x!tpu.dma_semaphore, #tpu.memory_space<semaphore_mem>> -> memref<1x!tpu.dma_semaphore, #tpu.memory_space<semaphore_mem>>
    %9 = tpu.memref_squeeze %8 : memref<1x!tpu.dma_semaphore, #tpu.memory_space<semaphore_mem>> -> memref<!tpu.dma_semaphore, #tpu.memory_space<semaphore_mem>>
    tpu.enqueue_dma source(%arg5 : memref<512x256xf32, #tpu.memory_space<any>>) target(%arg21 : memref<512x256xf32, #tpu.memory_space<vmem>>) target_semaphore(%9 : memref<!tpu.dma_semaphore, #tpu.memory_space<semaphore_mem>>)
    %c0 = arith.constant 0 : index
    %c0_0 = arith.constant 0 : index
    %10 = vector.load %arg0[%c0, %c0_0] : memref<32x512xf32, #tpu.memory_space<vmem>>, vector<32x512xf32>
    %c0_i32_1 = arith.constant 0 : i32
    %11 = tpu.memref_slice %arg22[%c0_i32_1] : memref<5x!tpu.dma_semaphore, #tpu.memory_space<semaphore_mem>> -> memref<1x!tpu.dma_semaphore, #tpu.memory_space<semaphore_mem>>
    %12 = tpu.memref_squeeze %11 : memref<1x!tpu.dma_semaphore, #tpu.memory_space<semaphore_mem>> -> memref<!tpu.dma_semaphore, #tpu.memory_space<semaphore_mem>>
    tpu.wait_dma2 semaphore(%12 : memref<!tpu.dma_semaphore, #tpu.memory_space<semaphore_mem>>) src(%arg1 : memref<512x256xf32, #tpu.memory_space<any>>) dst(%arg17 : memref<512x256xf32, #tpu.memory_space<vmem>>)
    %c0_2 = arith.constant 0 : index
    %c0_3 = arith.constant 0 : index
    %13 = vector.load %arg17[%c0_2, %c0_3] : memref<512x256xf32, #tpu.memory_space<vmem>>, vector<512x256xf32>
    %cst = arith.constant dense<0.000000e+00> : vector<32x256xf32>
    %14 = tpu.matmul %10, %13, %cst {dimension_numbers = #tpu.dot_dimension_numbers<[1], [0], [0], [1], [0, 0, 1, 1], [], []>} : vector<32x512xf32>, vector<512x256xf32>, vector<32x256xf32> -> vector<32x256xf32>
    %cst_4 = arith.constant 0.000000e+00 : f32
    %15 = vector.broadcast %cst_4 : f32 to vector<32x256xf32>
    %16 = arith.maximumf %14, %15 : vector<32x256xf32>
    %c1_i32_5 = arith.constant 1 : i32
    %17 = tpu.memref_slice %arg22[%c1_i32_5] : memref<5x!tpu.dma_semaphore, #tpu.memory_space<semaphore_mem>> -> memref<1x!tpu.dma_semaphore, #tpu.memory_space<semaphore_mem>>
    %18 = tpu.memref_squeeze %17 : memref<1x!tpu.dma_semaphore, #tpu.memory_space<semaphore_mem>> -> memref<!tpu.dma_semaphore, #tpu.memory_space<semaphore_mem>>
    tpu.wait_dma2 semaphore(%18 : memref<!tpu.dma_semaphore, #tpu.memory_space<semaphore_mem>>) src(%arg2 : memref<256x512xf32, #tpu.memory_space<any>>) dst(%arg18 : memref<256x512xf32, #tpu.memory_space<vmem>>)
    %c0_6 = arith.constant 0 : index
    %c0_7 = arith.constant 0 : index
    %19 = vector.load %arg18[%c0_6, %c0_7] : memref<256x512xf32, #tpu.memory_space<vmem>>, vector<256x512xf32>
    %cst_8 = arith.constant dense<0.000000e+00> : vector<32x512xf32>
    %20 = tpu.matmul %16, %19, %cst_8 {dimension_numbers = #tpu.dot_dimension_numbers<[1], [0], [0], [1], [0, 0, 1, 1], [], []>} : vector<32x256xf32>, vector<256x512xf32>, vector<32x512xf32> -> vector<32x512xf32>
    %c0_9 = arith.constant 0 : index
    %c0_10 = arith.constant 0 : index
    %21 = vector.load %arg6[%c0_9, %c0_10] : memref<64x32xf32, #tpu.memory_space<vmem>>, vector<64x32xf32>
    %cst_11 = arith.constant dense<0.000000e+00> : vector<64x512xf32>
    %22 = tpu.matmul %21, %20, %cst_11 {dimension_numbers = #tpu.dot_dimension_numbers<[1], [0], [0], [1], [0, 0, 1, 1], [], []>} : vector<64x32xf32>, vector<32x512xf32>, vector<64x512xf32> -> vector<64x512xf32>
    %cst_12 = arith.constant dense<0.000000e+00> : vector<512xf32>
    %23 = vector.multi_reduction <add>, %22, %cst_12 [0] : vector<64x512xf32> to vector<512xf32>
    %24 = vector.shape_cast %23 : vector<512xf32> to vector<1x512xf32>
    %25 = arith.mulf %22, %22 : vector<64x512xf32>
    %cst_13 = arith.constant dense<0.000000e+00> : vector<512xf32>
    %26 = vector.multi_reduction <add>, %25, %cst_13 [0] : vector<64x512xf32> to vector<512xf32>
    %27 = vector.shape_cast %26 : vector<512xf32> to vector<1x512xf32>
    %c0_14 = arith.constant 0 : index
    %c0_15 = arith.constant 0 : index
    %28 = vector.load %arg7[%c0_14, %c0_15] : memref<512x16xf32, #tpu.memory_space<vmem>>, vector<512x16xf32>
    %cst_16 = arith.constant dense<0.000000e+00> : vector<1x16xf32>
    %29 = tpu.matmul %24, %28, %cst_16 {dimension_numbers = #tpu.dot_dimension_numbers<[1], [0], [0], [1], [0, 0, 1, 1], [], []>} : vector<1x512xf32>, vector<512x16xf32>, vector<1x16xf32> -> vector<1x16xf32>
    %c0_17 = arith.constant 0 : index
    %c0_18 = arith.constant 0 : index
    %30 = vector.load %arg7[%c0_17, %c0_18] : memref<512x16xf32, #tpu.memory_space<vmem>>, vector<512x16xf32>
    %cst_19 = arith.constant dense<0.000000e+00> : vector<1x16xf32>
    %31 = tpu.matmul %27, %30, %cst_19 {dimension_numbers = #tpu.dot_dimension_numbers<[1], [0], [0], [1], [0, 0, 1, 1], [], []>} : vector<1x512xf32>, vector<512x16xf32>, vector<1x16xf32> -> vector<1x16xf32>
    %32 = arith.mulf %29, %29 : vector<1x16xf32>
    %33 = arith.subf %31, %32 : vector<1x16xf32>
    %c0_20 = arith.constant 0 : index
    %c0_21 = arith.constant 0 : index
    %34 = vector.load %arg9[%c0_20, %c0_21] : memref<1x16xf32, #tpu.memory_space<vmem>>, vector<1x16xf32>
    %cst_22 = arith.constant 9.99999974E-6 : f32
    %35 = vector.broadcast %cst_22 : f32 to vector<1x16xf32>
    %36 = arith.addf %33, %35 : vector<1x16xf32>
    %37 = math.rsqrt %36 : vector<1x16xf32>
    %38 = arith.mulf %34, %37 : vector<1x16xf32>
    %c0_23 = arith.constant 0 : index
    %c0_24 = arith.constant 0 : index
    %39 = vector.load %arg10[%c0_23, %c0_24] : memref<1x16xf32, #tpu.memory_space<vmem>>, vector<1x16xf32>
    %40 = arith.mulf %29, %38 : vector<1x16xf32>
    %41 = arith.subf %39, %40 : vector<1x16xf32>
    %c0_25 = arith.constant 0 : index
    %c0_26 = arith.constant 0 : index
    %42 = vector.load %arg8[%c0_25, %c0_26] : memref<16x512xf32, #tpu.memory_space<vmem>>, vector<16x512xf32>
    %cst_27 = arith.constant dense<0.000000e+00> : vector<1x512xf32>
    %43 = tpu.matmul %38, %42, %cst_27 {dimension_numbers = #tpu.dot_dimension_numbers<[1], [0], [0], [1], [0, 0, 1, 1], [], []>} : vector<1x16xf32>, vector<16x512xf32>, vector<1x512xf32> -> vector<1x512xf32>
    %c0_28 = arith.constant 0 : index
    %c0_29 = arith.constant 0 : index
    %44 = vector.load %arg8[%c0_28, %c0_29] : memref<16x512xf32, #tpu.memory_space<vmem>>, vector<16x512xf32>
    %cst_30 = arith.constant dense<0.000000e+00> : vector<1x512xf32>
    %45 = tpu.matmul %41, %44, %cst_30 {dimension_numbers = #tpu.dot_dimension_numbers<[1], [0], [0], [1], [0, 0, 1, 1], [], []>} : vector<1x16xf32>, vector<16x512xf32>, vector<1x512xf32> -> vector<1x512xf32>
    %46 = vector.broadcast %43 : vector<1x512xf32> to vector<64x512xf32>
    %47 = arith.mulf %22, %46 : vector<64x512xf32>
    %48 = vector.broadcast %45 : vector<1x512xf32> to vector<64x512xf32>
    %49 = arith.addf %47, %48 : vector<64x512xf32>
    %c2_i32_31 = arith.constant 2 : i32
    %50 = tpu.memref_slice %arg22[%c2_i32_31] : memref<5x!tpu.dma_semaphore, #tpu.memory_space<semaphore_mem>> -> memref<1x!tpu.dma_semaphore, #tpu.memory_space<semaphore_mem>>
    %51 = tpu.memref_squeeze %50 : memref<1x!tpu.dma_semaphore, #tpu.memory_space<semaphore_mem>> -> memref<!tpu.dma_semaphore, #tpu.memory_space<semaphore_mem>>
    tpu.wait_dma2 semaphore(%51 : memref<!tpu.dma_semaphore, #tpu.memory_space<semaphore_mem>>) src(%arg3 : memref<512x256xf32, #tpu.memory_space<any>>) dst(%arg19 : memref<512x256xf32, #tpu.memory_space<vmem>>)
    %c0_32 = arith.constant 0 : index
    %c0_33 = arith.constant 0 : index
    %52 = vector.load %arg19[%c0_32, %c0_33] : memref<512x256xf32, #tpu.memory_space<vmem>>, vector<512x256xf32>
    %cst_34 = arith.constant dense<0.000000e+00> : vector<64x256xf32>
    %53 = tpu.matmul %49, %52, %cst_34 {dimension_numbers = #tpu.dot_dimension_numbers<[1], [0], [0], [1], [0, 0, 1, 1], [], []>} : vector<64x512xf32>, vector<512x256xf32>, vector<64x256xf32> -> vector<64x256xf32>
    %cst_35 = arith.constant 0.000000e+00 : f32
    %54 = vector.broadcast %cst_35 : f32 to vector<64x256xf32>
    %55 = arith.maximumf %53, %54 : vector<64x256xf32>
    %c3_i32_36 = arith.constant 3 : i32
    %56 = tpu.memref_slice %arg22[%c3_i32_36] : memref<5x!tpu.dma_semaphore, #tpu.memory_space<semaphore_mem>> -> memref<1x!tpu.dma_semaphore, #tpu.memory_space<semaphore_mem>>
    %57 = tpu.memref_squeeze %56 : memref<1x!tpu.dma_semaphore, #tpu.memory_space<semaphore_mem>> -> memref<!tpu.dma_semaphore, #tpu.memory_space<semaphore_mem>>
    tpu.wait_dma2 semaphore(%57 : memref<!tpu.dma_semaphore, #tpu.memory_space<semaphore_mem>>) src(%arg4 : memref<256x512xf32, #tpu.memory_space<any>>) dst(%arg20 : memref<256x512xf32, #tpu.memory_space<vmem>>)
    %c0_37 = arith.constant 0 : index
    %c0_38 = arith.constant 0 : index
    %58 = vector.load %arg20[%c0_37, %c0_38] : memref<256x512xf32, #tpu.memory_space<vmem>>, vector<256x512xf32>
    %cst_39 = arith.constant dense<0.000000e+00> : vector<64x512xf32>
    %59 = tpu.matmul %55, %58, %cst_39 {dimension_numbers = #tpu.dot_dimension_numbers<[1], [0], [0], [1], [0, 0, 1, 1], [], []>} : vector<64x256xf32>, vector<256x512xf32>, vector<64x512xf32> -> vector<64x512xf32>
    %c0_40 = arith.constant 0 : index
    %c0_41 = arith.constant 0 : index
    %60 = vector.load %arg11[%c0_40, %c0_41] : memref<128x64xf32, #tpu.memory_space<vmem>>, vector<128x64xf32>
    %cst_42 = arith.constant dense<0.000000e+00> : vector<128x512xf32>
    %61 = tpu.matmul %60, %59, %cst_42 {dimension_numbers = #tpu.dot_dimension_numbers<[1], [0], [0], [1], [0, 0, 1, 1], [], []>} : vector<128x64xf32>, vector<64x512xf32>, vector<128x512xf32> -> vector<128x512xf32>
    %cst_43 = arith.constant dense<0.000000e+00> : vector<512xf32>
    %62 = vector.multi_reduction <add>, %61, %cst_43 [0] : vector<128x512xf32> to vector<512xf32>
    %63 = vector.shape_cast %62 : vector<512xf32> to vector<1x512xf32>
    %64 = arith.mulf %61, %61 : vector<128x512xf32>
    %cst_44 = arith.constant dense<0.000000e+00> : vector<512xf32>
    %65 = vector.multi_reduction <add>, %64, %cst_44 [0] : vector<128x512xf32> to vector<512xf32>
    %66 = vector.shape_cast %65 : vector<512xf32> to vector<1x512xf32>
    %c0_45 = arith.constant 0 : index
    %c0_46 = arith.constant 0 : index
    %67 = vector.load %arg12[%c0_45, %c0_46] : memref<512x8xf32, #tpu.memory_space<vmem>>, vector<512x8xf32>
    %cst_47 = arith.constant dense<0.000000e+00> : vector<1x8xf32>
    %68 = tpu.matmul %63, %67, %cst_47 {dimension_numbers = #tpu.dot_dimension_numbers<[1], [0], [0], [1], [0, 0, 1, 1], [], []>} : vector<1x512xf32>, vector<512x8xf32>, vector<1x8xf32> -> vector<1x8xf32>
    %c0_48 = arith.constant 0 : index
    %c0_49 = arith.constant 0 : index
    %69 = vector.load %arg12[%c0_48, %c0_49] : memref<512x8xf32, #tpu.memory_space<vmem>>, vector<512x8xf32>
    %cst_50 = arith.constant dense<0.000000e+00> : vector<1x8xf32>
    %70 = tpu.matmul %66, %69, %cst_50 {dimension_numbers = #tpu.dot_dimension_numbers<[1], [0], [0], [1], [0, 0, 1, 1], [], []>} : vector<1x512xf32>, vector<512x8xf32>, vector<1x8xf32> -> vector<1x8xf32>
    %71 = arith.mulf %68, %68 : vector<1x8xf32>
    %72 = arith.subf %70, %71 : vector<1x8xf32>
    %c0_51 = arith.constant 0 : index
    %c0_52 = arith.constant 0 : index
    %73 = vector.load %arg14[%c0_51, %c0_52] : memref<1x8xf32, #tpu.memory_space<vmem>>, vector<1x8xf32>
    %cst_53 = arith.constant 9.99999974E-6 : f32
    %74 = vector.broadcast %cst_53 : f32 to vector<1x8xf32>
    %75 = arith.addf %72, %74 : vector<1x8xf32>
    %76 = math.rsqrt %75 : vector<1x8xf32>
    %77 = arith.mulf %73, %76 : vector<1x8xf32>
    %c0_54 = arith.constant 0 : index
    %c0_55 = arith.constant 0 : index
    %78 = vector.load %arg15[%c0_54, %c0_55] : memref<1x8xf32, #tpu.memory_space<vmem>>, vector<1x8xf32>
    %79 = arith.mulf %68, %77 : vector<1x8xf32>
    %80 = arith.subf %78, %79 : vector<1x8xf32>
    %c0_56 = arith.constant 0 : index
    %c0_57 = arith.constant 0 : index
    %81 = vector.load %arg13[%c0_56, %c0_57] : memref<8x512xf32, #tpu.memory_space<vmem>>, vector<8x512xf32>
    %cst_58 = arith.constant dense<0.000000e+00> : vector<1x512xf32>
    %82 = tpu.matmul %77, %81, %cst_58 {dimension_numbers = #tpu.dot_dimension_numbers<[1], [0], [0], [1], [0, 0, 1, 1], [], []>} : vector<1x8xf32>, vector<8x512xf32>, vector<1x512xf32> -> vector<1x512xf32>
    %c0_59 = arith.constant 0 : index
    %c0_60 = arith.constant 0 : index
    %83 = vector.load %arg13[%c0_59, %c0_60] : memref<8x512xf32, #tpu.memory_space<vmem>>, vector<8x512xf32>
    %cst_61 = arith.constant dense<0.000000e+00> : vector<1x512xf32>
    %84 = tpu.matmul %80, %83, %cst_61 {dimension_numbers = #tpu.dot_dimension_numbers<[1], [0], [0], [1], [0, 0, 1, 1], [], []>} : vector<1x8xf32>, vector<8x512xf32>, vector<1x512xf32> -> vector<1x512xf32>
    %85 = vector.broadcast %82 : vector<1x512xf32> to vector<128x512xf32>
    %86 = arith.mulf %61, %85 : vector<128x512xf32>
    %87 = vector.broadcast %84 : vector<1x512xf32> to vector<128x512xf32>
    %88 = arith.addf %86, %87 : vector<128x512xf32>
    %c4_i32_62 = arith.constant 4 : i32
    %89 = tpu.memref_slice %arg22[%c4_i32_62] : memref<5x!tpu.dma_semaphore, #tpu.memory_space<semaphore_mem>> -> memref<1x!tpu.dma_semaphore, #tpu.memory_space<semaphore_mem>>
    %90 = tpu.memref_squeeze %89 : memref<1x!tpu.dma_semaphore, #tpu.memory_space<semaphore_mem>> -> memref<!tpu.dma_semaphore, #tpu.memory_space<semaphore_mem>>
    tpu.wait_dma2 semaphore(%90 : memref<!tpu.dma_semaphore, #tpu.memory_space<semaphore_mem>>) src(%arg5 : memref<512x256xf32, #tpu.memory_space<any>>) dst(%arg21 : memref<512x256xf32, #tpu.memory_space<vmem>>)
    %c0_63 = arith.constant 0 : index
    %c0_64 = arith.constant 0 : index
    %91 = vector.load %arg21[%c0_63, %c0_64] : memref<512x256xf32, #tpu.memory_space<vmem>>, vector<512x256xf32>
    %cst_65 = arith.constant dense<0.000000e+00> : vector<128x256xf32>
    %92 = tpu.matmul %88, %91, %cst_65 {dimension_numbers = #tpu.dot_dimension_numbers<[1], [0], [0], [1], [0, 0, 1, 1], [], []>} : vector<128x512xf32>, vector<512x256xf32>, vector<128x256xf32> -> vector<128x256xf32>
    %93 = arith.negf %92 : vector<128x256xf32>
    %94 = math.exp %93 : vector<128x256xf32>
    %cst_66 = arith.constant 1.000000e+00 : f32
    %95 = vector.broadcast %cst_66 : f32 to vector<128x256xf32>
    %96 = arith.addf %95, %94 : vector<128x256xf32>
    %97 = arith.divf %95, %96 : vector<128x256xf32>
    %c0_67 = arith.constant 0 : index
    %c0_68 = arith.constant 0 : index
    %98 = vector.load %arg16[%c0_67, %c0_68] : memref<128x256xf32, #tpu.memory_space<vmem>>, vector<128x256xf32>
    tpu.vector_store %arg16[%c0_67, %c0_68], %97 {strides = array<i32>} : memref<128x256xf32, #tpu.memory_space<vmem>>, vector<128x256xf32>,
    return
  }
}

</mosaic_0001>

<bundles_post_ra>
// kernel: tpu_custom_call.1
= control target key start
LH: loop header
LB: loop body
LE: loop exit
PB: predicated region body
PF: predicated region fallthrough
CT: control target
= control target key end

     0   :  { %s9294_s0 = inlined_call_operand.vmem [shape: f32[32,512], index: 0, kind: input, shape index: {}]   ;;  %s9295_s1 = inlined_call_operand.vmem [shape: f32[512,256], index: 1, kind: input, shape index: {}]   ;;  %s9296_s2 = inlined_call_operand.hbm [shape: f32[256,512], index: 2, kind: input, shape index: {}]   ;;  %s9297_s3 = inlined_call_operand.hbm [shape: f32[512,256], index: 3, kind: input, shape index: {}]   ;;  %s9298_s4 = inlined_call_operand.hbm [shape: f32[256,512], index: 4, kind: input, shape index: {}]   ;;  %s9299_s5 = inlined_call_operand.hbm [shape: f32[512,256], index: 5, kind: input, shape index: {}]   ;;  %s9300_s6 = inlined_call_operand.vmem [shape: f32[64,32], index: 6, kind: input, shape index: {}]   ;;  %s9301_s7 = inlined_call_operand.vmem [shape: f32[512,16], index: 7, kind: input, shape index: {}]   ;;  %s9302_s8 = inlined_call_operand.vmem [shape: f32[16,512], index: 8, kind: input, shape index: {}]   ;;  %s9303_s9 = inlined_call_operand.vmem [shape: f32[1,16], index: 9, kind: input, shape index: {}]   ;;  %s9304_s10 = inlined_call_operand.vmem [shape: f32[1,16], index: 10, kind: input, shape index: {}]   ;;  %s9305_s11 = inlined_call_operand.vmem [shape: f32[128,64], index: 11, kind: input, shape index: {}]   ;;  %s9306_s12 = inlined_call_operand.vmem [shape: f32[512,8], index: 12, kind: input, shape index: {}]   ;;  %s9307_s13 = inlined_call_operand.vmem [shape: f32[8,512], index: 13, kind: input, shape index: {}]   ;;  %s9308_s14 = inlined_call_operand.vmem [shape: f32[1,8], index: 14, kind: input, shape index: {}]   ;;  %s9309_s15 = inlined_call_operand.vmem [shape: f32[1,8], index: 15, kind: input, shape index: {}]   ;;  %s9310_s16 = inlined_call_operand.hbm [shape: f32[128,256], index: 16, kind: output, shape index: {}]  }
   0x1   :  { %9376 = sst [smem:[#allocation107_spill]] %s9294_s0 }
   0x2   :  { %21 = vsyncpa [#allocation9], 0  ;;  %v5845_v0 = vld [vmem:[%s9295_s1] sm:$0xff]  ;;  %v5850_v1 = vld [vmem:[%s9295_s1 + $0x8] sm:$0xff] }
   0x3   :  { %9377 = vst [vmem:[#allocation27_spill] sm:$0xff] %v5845_v0  ;;  %v5855_v2 = vld [vmem:[%s9295_s1 + $0x10] sm:$0xff]  ;;  %v5860_v3 = vld [vmem:[%s9295_s1 + $0x18] sm:$0xff]  ;;  %v5865_v4 = vld [vmem:[%s9295_s1 + $0x20] sm:$0xff] }
   0x4   :  { %9378 = vst [vmem:[#allocation28_spill] sm:$0xff] %v5850_v1  ;;  %v5870_v5 = vld [vmem:[%s9295_s1 + $0x28] sm:$0xff]  ;;  %v5875_v6 = vld [vmem:[%s9295_s1 + $0x30] sm:$0xff]  ;;  %v5880_v7 = vld [vmem:[%s9295_s1 + $0x38] sm:$0xff] }
   0x5   :  { %9379 = vst [vmem:[#allocation29_spill] sm:$0xff] %v5860_v3  ;;  %v5885_v8 = vld [vmem:[%s9295_s1 + $0x40] sm:$0xff]  ;;  %v5890_v9 = vld [vmem:[%s9295_s1 + $0x48] sm:$0xff]  ;;  %v5895_v10 = vld [vmem:[%s9295_s1 + $0x50] sm:$0xff] }
   0x6   :  { %9380 = vst [vmem:[#allocation30_spill] sm:$0xff] %v5870_v5  ;;  %v5900_v11 = vld [vmem:[%s9295_s1 + $0x58] sm:$0xff]  ;;  %v5905_v12 = vld [vmem:[%s9295_s1 + $0x60] sm:$0xff]  ;;  %v5910_v13 = vld [vmem:[%s9295_s1 + $0x68] sm:$0xff] }
   0x7   :  { %9381 = vst [vmem:[#allocation31_spill] sm:$0xff] %v5880_v7  ;;  %v5915_v14 = vld [vmem:[%s9295_s1 + $0x70] sm:$0xff]  ;;  %v5920_v15 = vld [vmem:[%s9295_s1 + $0x78] sm:$0xff]  ;;  %v5925_v16 = vld [vmem:[%s9295_s1 + $0x80] sm:$0xff] }
   0x8   :  { %9382 = vst [vmem:[#allocation32_spill] sm:$0xff] %v5890_v9  ;;  %v5930_v17 = vld [vmem:[%s9295_s1 + $0x88] sm:$0xff]  ;;  %v5935_v18 = vld [vmem:[%s9295_s1 + $0x90] sm:$0xff]  ;;  %v5940_v19 = vld [vmem:[%s9295_s1 + $0x98] sm:$0xff] }
   0x9   :  { %9383 = vst [vmem:[#allocation33_spill] sm:$0xff] %v5900_v11  ;;  %v5945_v20 = vld [vmem:[%s9295_s1 + $0xa0] sm:$0xff]  ;;  %v5950_v21 = vld [vmem:[%s9295_s1 + $0xa8] sm:$0xff]  ;;  %v5955_v22 = vld [vmem:[%s9295_s1 + $0xb0] sm:$0xff] }
   0xa   :  { %9384 = vst [vmem:[#allocation34_spill] sm:$0xff] %v5910_v13  ;;  %v5960_v23 = vld [vmem:[%s9295_s1 + $0xb8] sm:$0xff]  ;;  %v5965_v24 = vld [vmem:[%s9295_s1 + $0xc0] sm:$0xff]  ;;  %v5970_v25 = vld [vmem:[%s9295_s1 + $0xc8] sm:$0xff] }
   0xb   :  { %9385 = vst [vmem:[#allocation35_spill] sm:$0xff] %v5920_v15  ;;  %v5975_v26 = vld [vmem:[%s9295_s1 + $0xd0] sm:$0xff]  ;;  %v5980_v27 = vld [vmem:[%s9295_s1 + $0xd8] sm:$0xff]  ;;  %v5985_v28 = vld [vmem:[%s9295_s1 + $0xe0] sm:$0xff] }
   0xc   :  { %9386 = vst [vmem:[#allocation36_spill] sm:$0xff] %v5930_v17  ;;  %v5990_v29 = vld [vmem:[%s9295_s1 + $0xe8] sm:$0xff]  ;;  %v5995_v30 = vld [vmem:[%s9295_s1 + $0xf0] sm:$0xff]  ;;  %v6000_v31 = vld [vmem:[%s9295_s1 + $0xf8] sm:$0xff] }
   0xd   :  { %9387 = vst [vmem:[#allocation37_spill] sm:$0xff] %v5940_v19  ;;  %v6005_v32 = vld [vmem:[%s9295_s1 + $0x100] sm:$0xff]  ;;  %v6010_v33 = vld [vmem:[%s9295_s1 + $0x108] sm:$0xff]  ;;  %v6015_v34 = vld [vmem:[%s9295_s1 + $0x110] sm:$0xff] }
   0xe   :  { %9388 = vst [vmem:[#allocation38_spill] sm:$0xff] %v5950_v21  ;;  %v6020_v35 = vld [vmem:[%s9295_s1 + $0x118] sm:$0xff]  ;;  %v6025_v36 = vld [vmem:[%s9295_s1 + $0x120] sm:$0xff]  ;;  %v6030_v37 = vld [vmem:[%s9295_s1 + $0x128] sm:$0xff] }
   0xf   :  { %9389 = vst [vmem:[#allocation39_spill] sm:$0xff] %v5960_v23  ;;  %v6035_v38 = vld [vmem:[%s9295_s1 + $0x130] sm:$0xff]  ;;  %v6040_v39 = vld [vmem:[%s9295_s1 + $0x138] sm:$0xff]  ;;  %v6045_v40 = vld [vmem:[%s9295_s1 + $0x140] sm:$0xff] }
  0x10   :  { %9390 = vst [vmem:[#allocation40_spill] sm:$0xff] %v5970_v25  ;;  %v6050_v41 = vld [vmem:[%s9295_s1 + $0x148] sm:$0xff]  ;;  %v6055_v42 = vld [vmem:[%s9295_s1 + $0x150] sm:$0xff]  ;;  %v6060_v43 = vld [vmem:[%s9295_s1 + $0x158] sm:$0xff] }
  0x11   :  { %9391 = vst [vmem:[#allocation41_spill] sm:$0xff] %v5980_v27  ;;  %v6065_v44 = vld [vmem:[%s9295_s1 + $0x160] sm:$0xff]  ;;  %v6070_v45 = vld [vmem:[%s9295_s1 + $0x168] sm:$0xff]  ;;  %v6075_v46 = vld [vmem:[%s9295_s1 + $0x170] sm:$0xff] }
  0x12   :  { %9392 = vst [vmem:[#allocation42_spill] sm:$0xff] %v5990_v29  ;;  %v6080_v47 = vld [vmem:[%s9295_s1 + $0x178] sm:$0xff]  ;;  %v6085_v48 = vld [vmem:[%s9295_s1 + $0x180] sm:$0xff]  ;;  %v6090_v49 = vld [vmem:[%s9295_s1 + $0x188] sm:$0xff] }
  0x13   :  { %9393 = vst [vmem:[#allocation43_spill] sm:$0xff] %v6000_v31  ;;  %v6095_v50 = vld [vmem:[%s9295_s1 + $0x190] sm:$0xff]  ;;  %v6100_v51 = vld [vmem:[%s9295_s1 + $0x198] sm:$0xff]  ;;  %v6105_v52 = vld [vmem:[%s9295_s1 + $0x1a0] sm:$0xff] }
  0x14   :  { %9394 = vst [vmem:[#allocation44_spill] sm:$0xff] %v6005_v32  ;;  %v6110_v53 = vld [vmem:[%s9295_s1 + $0x1a8] sm:$0xff]  ;;  %v6115_v54 = vld [vmem:[%s9295_s1 + $0x1b0] sm:$0xff]  ;;  %v6120_v55 = vld [vmem:[%s9295_s1 + $0x1b8] sm:$0xff] }
  0x15   :  { %9395 = vst [vmem:[#allocation45_spill] sm:$0xff] %v6010_v33  ;;  %v6125_v56 = vld [vmem:[%s9295_s1 + $0x1c0] sm:$0xff]  ;;  %v6130_v57 = vld [vmem:[%s9295_s1 + $0x1c8] sm:$0xff]  ;;  %v6135_v58 = vld [vmem:[%s9295_s1 + $0x1d0] sm:$0xff] }
  0x16   :  { %9396 = vst [vmem:[#allocation46_spill] sm:$0xff] %v6020_v35  ;;  %v6140_v59 = vld [vmem:[%s9295_s1 + $0x1d8] sm:$0xff]  ;;  %v6145_v60 = vld [vmem:[%s9295_s1 + $0x1e0] sm:$0xff]  ;;  %v6150_v61 = vld [vmem:[%s9295_s1 + $0x1e8] sm:$0xff] }
  0x17   :  { %9397 = vst [vmem:[#allocation47_spill] sm:$0xff] %v6030_v37  ;;  %v6155_v62 = vld [vmem:[%s9295_s1 + $0x1f0] sm:$0xff]  ;;  %v6160_v63 = vld [vmem:[%s9295_s1 + $0x1f8] sm:$0xff]  ;;  %v6165_v33 = vld [vmem:[%s9295_s1 + $0x200] sm:$0xff] }
  0x18   :  { %9398 = vst [vmem:[#allocation48_spill] sm:$0xff] %v6040_v39  ;;  %v6170_v1 = vld [vmem:[%s9295_s1 + $0x208] sm:$0xff]  ;;  %v6175_v35 = vld [vmem:[%s9295_s1 + $0x210] sm:$0xff]  ;;  %v6180_v3 = vld [vmem:[%s9295_s1 + $0x218] sm:$0xff] }
  0x19   :  { %9399 = vst [vmem:[#allocation49_spill] sm:$0xff] %v6050_v41  ;;  %v6185_v37 = vld [vmem:[%s9295_s1 + $0x220] sm:$0xff]  ;;  %v6190_v5 = vld [vmem:[%s9295_s1 + $0x228] sm:$0xff]  ;;  %v6200_v39 = vld [vmem:[%s9295_s1 + $0x238] sm:$0xff] }
  0x1a   :  { %9400 = vst [vmem:[#allocation50_spill] sm:$0xff] %v6060_v43  ;;  %v6210_v7 = vld [vmem:[%s9295_s1 + $0x248] sm:$0xff]  ;;  %v6220_v41 = vld [vmem:[%s9295_s1 + $0x258] sm:$0xff]  ;;  %v6225_v9 = vld [vmem:[%s9295_s1 + $0x260] sm:$0xff] }
  0x1b   :  { %9401 = vst [vmem:[#allocation51_spill] sm:$0xff] %v6070_v45  ;;  %v6235_v43 = vld [vmem:[%s9295_s1 + $0x270] sm:$0xff]  ;;  %v6240_v11 = vld [vmem:[%s9295_s1 + $0x278] sm:$0xff]  ;;  %v6250_v45 = vld [vmem:[%s9295_s1 + $0x288] sm:$0xff] }
  0x1c   :  { %9402 = vst [vmem:[#allocation52_spill] sm:$0xff] %v6080_v47  ;;  %v6255_v13 = vld [vmem:[%s9295_s1 + $0x290] sm:$0xff]  ;;  %v6265_v47 = vld [vmem:[%s9295_s1 + $0x2a0] sm:$0xff]  ;;  %v6270_v15 = vld [vmem:[%s9295_s1 + $0x2a8] sm:$0xff] }
  0x1d   :  { %9403 = vst [vmem:[#allocation53_spill] sm:$0xff] %v6090_v49  ;;  %v6280_v49 = vld [vmem:[%s9295_s1 + $0x2b8] sm:$0xff]  ;;  %v6285_v17 = vld [vmem:[%s9295_s1 + $0x2c0] sm:$0xff]  ;;  %v6315_v21 = vld [vmem:[%s9295_s1 + $0x2f0] sm:$0xff] }
  0x1e   :  { %9404 = vst [vmem:[#allocation54_spill] sm:$0xff] %v6100_v51  ;;  %v6295_v51 = vld [vmem:[%s9295_s1 + $0x2d0] sm:$0xff]  ;;  %v6300_v19 = vld [vmem:[%s9295_s1 + $0x2d8] sm:$0xff]  ;;  %v6330_v23 = vld [vmem:[%s9295_s1 + $0x308] sm:$0xff] }
  0x1f   :  { %9405 = vst [vmem:[#allocation55_spill] sm:$0xff] %v6110_v53  ;;  %v6310_v53 = vld [vmem:[%s9295_s1 + $0x2e8] sm:$0xff]  ;;  %v6345_v25 = vld [vmem:[%s9295_s1 + $0x320] sm:$0xff]  ;;  %v6400_v29 = vld [vmem:[%s9295_s1 + $0x378] sm:$0xff] }
  0x20   :  { %9406 = vst [vmem:[#allocation56_spill] sm:$0xff] %v6120_v55  ;;  %v6325_v55 = vld [vmem:[%s9295_s1 + $0x300] sm:$0xff]  ;;  %v6370_v27 = vld [vmem:[%s9295_s1 + $0x348] sm:$0xff]  ;;  %v6458_v0 = vld [vmem:[%s9295_s1 + $0x3d8] sm:$0xff] }
  0x21   :  { %9407 = vst [vmem:[#allocation57_spill] sm:$0xff] %v6130_v57  ;;  %v6340_v57 = vld [vmem:[%s9295_s1 + $0x318] sm:$0xff]  ;;  %v6430_v31 = vld [vmem:[%s9295_s1 + $0x3a8] sm:$0xff] }
  0x22   :  { %9408 = vst [vmem:[#allocation58_spill] sm:$0xff] %v6140_v59  ;;  %v6360_v59 = vld [vmem:[%s9295_s1 + $0x338] sm:$0xff]  ;;  %v6450_v32 = vld [vmem:[%s9295_s1 + $0x3c8] sm:$0xff] }
  0x23   :  { %9409 = vst [vmem:[#allocation59_spill] sm:$0xff] %v6150_v61  ;;  %v6390_v61 = vld [vmem:[%s9295_s1 + $0x368] sm:$0xff] }
  0x24   :  { %9410 = vst [vmem:[#allocation60_spill] sm:$0xff] %v6160_v63  ;;  %v6420_v63 = vld [vmem:[%s9295_s1 + $0x398] sm:$0xff] }
  0x25   :  { %9411 = vst [vmem:[#allocation61_spill] sm:$0xff] %v6165_v33 }
  0x26   :  { %9412 = vst [vmem:[#allocation62_spill] sm:$0xff] %v6170_v1  ;;  %v6195_v1 = vld [vmem:[%s9295_s1 + $0x230] sm:$0xff] }
  0x27   :  { %9413 = vst [vmem:[#allocation63_spill] sm:$0xff] %v6180_v3  ;;  %v6205_v3 = vld [vmem:[%s9295_s1 + $0x240] sm:$0xff] }
  0x28   :  { %9414 = vst [vmem:[#allocation64_spill] sm:$0xff] %v6190_v5  ;;  %v6215_v5 = vld [vmem:[%s9295_s1 + $0x250] sm:$0xff] }
  0x29   :  { %9415 = vst [vmem:[#allocation65_spill] sm:$0xff] %v6200_v39  ;;  %v6230_v39 = vld [vmem:[%s9295_s1 + $0x268] sm:$0xff] }
  0x2a   :  { %9416 = vst [vmem:[#allocation66_spill] sm:$0xff] %v6210_v7  ;;  %v6245_v7 = vld [vmem:[%s9295_s1 + $0x280] sm:$0xff] }
  0x2b   :  { %9417 = vst [vmem:[#allocation67_spill] sm:$0xff] %v6220_v41  ;;  %v6260_v41 = vld [vmem:[%s9295_s1 + $0x298] sm:$0xff] }
  0x2c   :  { %9418 = vst [vmem:[#allocation68_spill] sm:$0xff] %v6230_v39  ;;  %v6275_v39 = vld [vmem:[%s9295_s1 + $0x2b0] sm:$0xff] }
  0x2d   :  { %9419 = vst [vmem:[#allocation69_spill] sm:$0xff] %v6240_v11  ;;  %v6290_v11 = vld [vmem:[%s9295_s1 + $0x2c8] sm:$0xff] }
  0x2e   :  { %9420 = vst [vmem:[#allocation70_spill] sm:$0xff] %v6250_v45  ;;  %v6305_v45 = vld [vmem:[%s9295_s1 + $0x2e0] sm:$0xff] }
  0x2f   :  { %9421 = vst [vmem:[#allocation71_spill] sm:$0xff] %v6260_v41  ;;  %v6320_v41 = vld [vmem:[%s9295_s1 + $0x2f8] sm:$0xff] }
  0x30   :  { %9422 = vst [vmem:[#allocation72_spill] sm:$0xff] %v6270_v15  ;;  %v6335_v15 = vld [vmem:[%s9295_s1 + $0x310] sm:$0xff] }
  0x31   :  { %9423 = vst [vmem:[#allocation73_spill] sm:$0xff] %v6280_v49  ;;  %v6350_v49 = vld [vmem:[%s9295_s1 + $0x328] sm:$0xff] }
  0x32   :  { %9424 = vst [vmem:[#allocation74_spill] sm:$0xff] %v6290_v11  ;;  %v6380_v11 = vld [vmem:[%s9295_s1 + $0x358] sm:$0xff] }
  0x33   :  { %9425 = vst [vmem:[#allocation75_spill] sm:$0xff] %v6300_v19  ;;  %v6410_v19 = vld [vmem:[%s9295_s1 + $0x388] sm:$0xff] }
  0x34   :  { %9426 = vst [vmem:[#allocation76_spill] sm:$0xff] %v6310_v53  ;;  %v6440_v53 = vld [vmem:[%s9295_s1 + $0x3b8] sm:$0xff] }
  0x35   :  { %9427 = vst [vmem:[#allocation77_spill] sm:$0xff] %v6320_v41  ;;  %v6466_v41 = vld [vmem:[%s9295_s1 + $0x3e8] sm:$0xff] }
  0x36   :  { %9428 = vst [vmem:[#allocation78_spill] sm:$0xff] %v6325_v55  ;;  %v6474_v55 = vld [vmem:[%s9295_s1 + $0x3f8] sm:$0xff] }
  0x37   :  { %9429 = vst [vmem:[#allocation79_spill] sm:$0xff] %v6330_v23  ;;  %v6355_v23 = vld [vmem:[%s9295_s1 + $0x330] sm:$0xff] }
  0x38   :  { %9430 = vst [vmem:[#allocation80_spill] sm:$0xff] %v6340_v57  ;;  %v6365_v57 = vld [vmem:[%s9295_s1 + $0x340] sm:$0xff] }
  0x39   :  { %9431 = vst [vmem:[#allocation81_spill] sm:$0xff] %v6350_v49  ;;  %v6375_v49 = vld [vmem:[%s9295_s1 + $0x350] sm:$0xff] }
  0x3a   :  { %9432 = vst [vmem:[#allocation82_spill] sm:$0xff] %v6360_v59  ;;  %v6385_v59 = vld [vmem:[%s9295_s1 + $0x360] sm:$0xff] }
  0x3b   :  { %9433 = vst [vmem:[#allocation83_spill] sm:$0xff] %v6370_v27  ;;  %v6395_v27 = vld [vmem:[%s9295_s1 + $0x370] sm:$0xff] }
  0x3c   :  { %9434 = vst [vmem:[#allocation84_spill] sm:$0xff] %v6380_v11  ;;  %v6405_v11 = vld [vmem:[%s9295_s1 + $0x380] sm:$0xff] }
  0x3d   :  { %9435 = vst [vmem:[#allocation85_spill] sm:$0xff] %v6390_v61  ;;  %v6415_v61 = vld [vmem:[%s9295_s1 + $0x390] sm:$0xff] }
  0x3e   :  { %9436 = vst [vmem:[#allocation86_spill] sm:$0xff] %v6400_v29  ;;  %v6425_v29 = vld [vmem:[%s9295_s1 + $0x3a0] sm:$0xff] }
  0x3f   :  { %9437 = vst [vmem:[#allocation87_spill] sm:$0xff] %v6410_v19  ;;  %v6435_v19 = vld [vmem:[%s9295_s1 + $0x3b0] sm:$0xff] }
  0x40   :  { %9438 = vst [vmem:[#allocation88_spill] sm:$0xff] %v6420_v63  ;;  %v6445_v63 = vld [vmem:[%s9295_s1 + $0x3c0] sm:$0xff] }
  0x41   :  { %9439 = vst [vmem:[#allocation89_spill] sm:$0xff] %v6430_v31  ;;  %v298_v31 = vld [vmem:[%s9295_s1 + $0x3d0] sm:$0xff] }
  0x42   :  { %9440 = vst [vmem:[#allocation90_spill] sm:$0xff] %v6440_v53  ;;  %v302_v53 = vld [vmem:[%s9295_s1 + $0x3e0] sm:$0xff] }
  0x43   :  { %9441 = vst [vmem:[#allocation91_spill] sm:$0xff] %v6450_v32  ;;  %v306_v32 = vld [vmem:[%s9295_s1 + $0x3f0] sm:$0xff] }
  0x44   :  { %9442 = vst [vmem:[#allocation92_spill] sm:$0xff] %v6458_v0 }
  0x45   :  { %9443 = vst [vmem:[#allocation93_spill] sm:$0xff] %v6466_v41 }
  0x46   :  { %9444 = vst [vmem:[#allocation94_spill] sm:$0xff] %v6474_v55 }
  0x47   :  { %315 = vsyncadd [#allocation7], 16384  ;;  %s324_s24 = sshll.u32 %s9296_s2, 4  ;;  %s9445_s27 = sld [smem:[#allocation107_spill]]  ;;  %578 = vmatpush.msra.mxu2 %v6315_v21  ;;  %607 = vmatpush.msra.mxu3 %v306_v32  ;;  %s325_s24 = int_to_ptr.hbm [resolvable:$true] %s324_s24 }
  0x48   :  { %s5750_s30 = smov [#allocation3]   ;;  %s338_s23 = sshll.u32 %s9297_s3, 4  ;;  %s339_s23 = int_to_ptr.hbm [resolvable:$true] %s338_s23 }
  0x49   :  { %s326_s0 = sshll.u32 %s5750_s30, 4  ;;  %s5751_s28 = smov [#allocation4]   ;;  %s327_s0 = int_to_ptr.vmem [resolvable:$true] %s326_s0 }
  0x4a   :  { %329 = dma.hbm_to_vmem [thread:$0]  %s325_s24, 16384, %s327_s0, [#allocation7 + $0x1] }
  0x4b   :  { %s340_s29 = sshll.u32 %s5751_s28, 4  ;;  %s352_s17 = sshll.u32 %s9298_s4, 4  ;;  %s341_s29 = int_to_ptr.vmem [resolvable:$true] %s340_s29  ;;  %s353_s17 = int_to_ptr.hbm [resolvable:$true] %s352_s17 }
  0x4c   :  { %343 = dma.hbm_to_vmem [thread:$0]  %s339_s23, 16384, %s341_s29, [#allocation7 + $0x2] }
  0x4d   :  { %v6482_v0 = vld [vmem:[%s9445_s27] sm:$0xff]  ;;  %v6487_v41 = vld [vmem:[%s9445_s27 + $0x8] sm:$0xff]  ;;  %v6492_v55 = vld [vmem:[%s9445_s27 + $0x10] sm:$0xff]  ;;  %s366_s22 = sshll.u32 %s9299_s5, 4  ;;  %s5752_s24 = smov [#allocation5]   ;;  %s367_s22 = int_to_ptr.hbm [resolvable:$true] %s366_s22 }
  0x4e   :  { %9446 = vst [vmem:[#allocation95_spill] sm:$0xff] %v6482_v0  ;;  %v6497_v33 = vld [vmem:[%s9445_s27 + $0x18] sm:$0xff]  ;;  %v6502_v0 = vld [vmem:[%s9445_s27 + $0x20] sm:$0xff]  ;;  %s354_s0 = sshll.u32 %s5752_s24, 4  ;;  %s5753_s4 = smov [#allocation6]   ;;  %s355_s0 = int_to_ptr.vmem [resolvable:$true] %s354_s0 }
  0x4f   :  { %9447 = vst [vmem:[#allocation96_spill] sm:$0xff] %v6487_v41  ;;  %v6510_v41 = vld [vmem:[%s9445_s27 + $0x28] sm:$0xff]  ;;  %357 = dma.hbm_to_vmem [thread:$0]  %s353_s17, 16384, %s355_s0, [#allocation7 + $0x3] }
  0x50   :  { %9448 = vst [vmem:[#allocation97_spill] sm:$0xff] %v6492_v55  ;;  %v6515_v55 = vld [vmem:[%s9445_s27 + $0x30] sm:$0xff]  ;;  %s368_s25 = sshll.u32 %s5753_s4, 4  ;;  %s369_s25 = int_to_ptr.vmem [resolvable:$true] %s368_s25 }
  0x51   :  { %9449 = vst [vmem:[#allocation98_spill] sm:$0xff] %v6497_v33  ;;  %v6520_v33 = vld [vmem:[%s9445_s27 + $0x38] sm:$0xff]  ;;  %371 = dma.hbm_to_vmem [thread:$0]  %s367_s22, 16384, %s369_s25, [#allocation7 + $0x4] }
  0x52   :  { %9450 = vst [vmem:[#allocation99_spill] sm:$0xff] %v6502_v0  ;;  %v6525_v0 = vld [vmem:[%s9445_s27 + $0x40] sm:$0xff] }
  0x53   :  { %9451 = vst [vmem:[#allocation100_spill] sm:$0xff] %v6510_v41  ;;  %v6530_v41 = vld [vmem:[%s9445_s27 + $0x48] sm:$0xff] }
  0x54   :  { %9452 = vst [vmem:[#allocation101_spill] sm:$0xff] %v6515_v55  ;;  %v6535_v55 = vld [vmem:[%s9445_s27 + $0x50] sm:$0xff] }
  0x55   :  { %9453 = vst [vmem:[#allocation102_spill] sm:$0xff] %v6520_v33  ;;  %v6540_v33 = vld [vmem:[%s9445_s27 + $0x58] sm:$0xff] }
  0x56   :  { %9454 = vst [vmem:[#allocation103_spill] sm:$0xff] %v6525_v0  ;;  %v6545_v0 = vld [vmem:[%s9445_s27 + $0x60] sm:$0xff] }
  0x57   :  { %9455 = vst [vmem:[#allocation104_spill] sm:$0xff] %v6530_v41  ;;  %v6550_v41 = vld [vmem:[%s9445_s27 + $0x68] sm:$0xff] }
  0x58   :  { %9456 = vst [vmem:[#allocation105_spill] sm:$0xff] %v6540_v33  ;;  %v6558_v33 = vld [vmem:[%s9445_s27 + $0x70] sm:$0xff] }
  0x59   :  { %9457 = vst [vmem:[#allocation106_spill] sm:$0xff] %v6545_v0  ;;  %v6563_v0 = vld [vmem:[%s9445_s27 + $0x78] sm:$0xff] }
  0x5a   :  { %5738 = dma.done.wait [#allocation7], 16384 }
  0x5b   :  { %5739 = vsyncadd [#allocation7], 4294950912  ;;  %520 = vmatpush.msra.mxu0 %v5995_v30  ;;  %549 = vmatpush.msra.mxu1 %v6155_v62  ;;  %v9478_v21 = vld [vmem:[#allocation41_spill] sm:$0xff]  ;;  %v9487_v30 = vld [vmem:[#allocation99_spill] sm:$0xff] }
  0x5c   :  { %579 = vmatpush.msra.mxu2 %v6305_v45  ;;  %608 = vmatpush.msra.mxu3 %v302_v53  ;;  %v9489_v32 = vld [vmem:[#allocation39_spill] sm:$0xff]  ;;  %v9516_v62 = vld [vmem:[#allocation33_spill] sm:$0xff] }
  0x5d   :  { %521 = vmatpush.msra.mxu0 %v5985_v28  ;;  %550 = vmatpush.msra.mxu1 %v6145_v60  ;;  %v9485_v28 = vld [vmem:[#allocation72_spill] sm:$0xff]  ;;  %v9500_v45 = vld [vmem:[#allocation87_spill] sm:$0xff]  ;;  %v9514_v60 = vld [vmem:[#allocation66_spill] sm:$0xff] }
  0x5e   :  { %580 = vmatpush.msra.mxu2 %v6295_v51  ;;  %609 = vmatpush.msra.mxu3 %v298_v31  ;;  %v9488_v31 = vld [vmem:[#allocation100_spill] sm:$0xff]  ;;  %v9506_v51 = vld [vmem:[#allocation103_spill] sm:$0xff] }
  0x5f   :  { %522 = vmatpush.msra.mxu0 %v5975_v26  ;;  %551 = vmatpush.msra.mxu1 %v6135_v58  ;;  %v9483_v26 = vld [vmem:[#allocation40_spill] sm:$0xff]  ;;  %v9508_v53 = vld [vmem:[#allocation35_spill] sm:$0xff]  ;;  %v9512_v58 = vld [vmem:[#allocation34_spill] sm:$0xff] }
  0x60   :  { %581 = vmatpush.msra.mxu2 %v6285_v17  ;;  %610 = vmatpush.msra.mxu3 %v6445_v63  ;;  %v9474_v17 = vld [vmem:[#allocation59_spill] sm:$0xff]  ;;  %v9517_v63 = vld [vmem:[#allocation50_spill] sm:$0xff] }
  0x61   :  { %523 = vmatpush.msra.mxu0 %v5965_v24  ;;  %552 = vmatpush.msra.mxu1 %v6125_v56  ;;  %v9481_v24 = vld [vmem:[#allocation91_spill] sm:$0xff] }
  0x62   :  { %582 = vmatpush.msra.mxu2 %v6275_v39  ;;  %611 = vmatpush.msra.mxu3 %v6435_v19  ;;  %v9476_v19 = vld [vmem:[#allocation92_spill] sm:$0xff]  ;;  %v9495_v39 = vld [vmem:[#allocation70_spill] sm:$0xff]  ;;  %v9510_v56 = vld [vmem:[#allocation67_spill] sm:$0xff] }
  0x63   :  { %524 = vmatpush.msra.mxu0 %v5955_v22  ;;  %553 = vmatpush.msra.mxu1 %v6115_v54  ;;  %v9479_v22 = vld [vmem:[#allocation58_spill] sm:$0xff]  ;;  %v9509_v54 = vld [vmem:[#allocation52_spill] sm:$0xff] }
  0x64   :  { %583 = vmatpush.msra.mxu2 %v6265_v47  ;;  %612 = vmatpush.msra.mxu3 %v6425_v29  ;;  %v9486_v29 = vld [vmem:[#allocation90_spill] sm:$0xff]  ;;  %v9502_v47 = vld [vmem:[#allocation36_spill] sm:$0xff] }
  0x65   :  { %525 = vmatpush.msra.mxu0 %v5945_v20  ;;  %554 = vmatpush.msra.mxu1 %v6105_v52  ;;  %v9477_v20 = vld [vmem:[#allocation101_spill] sm:$0xff]  ;;  %v9507_v52 = vld [vmem:[#allocation104_spill] sm:$0xff] }
  0x66   :  { %584 = vmatpush.msra.mxu2 %v6255_v13  ;;  %613 = vmatpush.msra.mxu3 %v6415_v61  ;;  %v9470_v13 = vld [vmem:[#allocation60_spill] sm:$0xff] }
  0x67   :  { %526 = vmatpush.msra.mxu0 %v5935_v18  ;;  %555 = vmatpush.msra.mxu1 %v6095_v50  ;;  %v9475_v18 = vld [vmem:[#allocation74_spill] sm:$0xff]  ;;  %v9515_v61 = vld [vmem:[#allocation84_spill] sm:$0xff] }
  0x68   :  { %585 = vmatpush.msra.mxu2 %v6245_v7  ;;  %614 = vmatpush.msra.mxu3 %v6405_v11  ;;  %v9462_v7 = vld [vmem:[#allocation77_spill] sm:$0xff]  ;;  %v9468_v11 = vld [vmem:[#allocation96_spill] sm:$0xff]  ;;  %v9505_v50 = vld [vmem:[#allocation86_spill] sm:$0xff] }
  0x69   :  { %527 = vmatpush.msra.mxu0 %v5925_v16  ;;  %556 = vmatpush.msra.mxu1 %v6085_v48  ;;  %v9473_v16 = vld [vmem:[#allocation42_spill] sm:$0xff]  ;;  %v9503_v48 = vld [vmem:[#allocation53_spill] sm:$0xff] }
  0x6a   :  { %586 = vmatpush.msra.mxu2 %v6235_v43  ;;  %615 = vmatpush.msra.mxu3 %v6395_v27  ;;  %v9484_v27 = vld [vmem:[#allocation57_spill] sm:$0xff]  ;;  %v9498_v43 = vld [vmem:[#allocation54_spill] sm:$0xff] }
  0x6b   :  { %528 = vmatpush.msra.mxu0 %v5915_v14  ;;  %557 = vmatpush.msra.mxu1 %v6075_v46  ;;  %v9471_v14 = vld [vmem:[#allocation75_spill] sm:$0xff]  ;;  %v9501_v46 = vld [vmem:[#allocation105_spill] sm:$0xff] }
  0x6c   :  { %587 = vmatpush.msra.mxu2 %v6225_v9  ;;  %616 = vmatpush.msra.mxu3 %v6385_v59  ;;  %v9465_v9 = vld [vmem:[#allocation44_spill] sm:$0xff]  ;;  %v9513_v59 = vld [vmem:[#allocation51_spill] sm:$0xff] }
  0x6d   :  { %529 = vmatpush.msra.mxu0 %v5905_v12  ;;  %558 = vmatpush.msra.mxu1 %v6065_v44  ;;  %v9469_v12 = vld [vmem:[#allocation43_spill] sm:$0xff]  ;;  %v9499_v44 = vld [vmem:[#allocation69_spill] sm:$0xff] }
  0x6e   :  { %588 = vmatpush.msra.mxu2 %v6215_v5  ;;  %617 = vmatpush.msra.mxu3 %v6375_v49  ;;  %v9460_v5 = vld [vmem:[#allocation97_spill] sm:$0xff]  ;;  %v9504_v49 = vld [vmem:[#allocation68_spill] sm:$0xff] }
  0x6f   :  { %530 = vmatpush.msra.mxu0 %v5895_v10  ;;  %559 = vmatpush.msra.mxu1 %v6055_v42  ;;  %v9466_v10 = vld [vmem:[#allocation76_spill] sm:$0xff]  ;;  %v9497_v42 = vld [vmem:[#allocation37_spill] sm:$0xff] }
  0x70   :  { %589 = vmatpush.msra.mxu2 %v6205_v3  ;;  %618 = vmatpush.msra.mxu3 %v6365_v57  ;;  %v9459_v3 = vld [vmem:[#allocation78_spill] sm:$0xff]  ;;  %v9511_v57 = vld [vmem:[#allocation85_spill] sm:$0xff] }
  0x71   :  { %531 = vmatpush.msra.mxu0 %v5885_v8  ;;  %560 = vmatpush.msra.mxu1 %v6045_v40  ;;  %v9464_v8 = vld [vmem:[#allocation27_spill] sm:$0xff]  ;;  %v9496_v40 = vld [vmem:[#allocation88_spill] sm:$0xff] }
  0x72   :  { %590 = vmatpush.msra.mxu2 %v6195_v1  ;;  %619 = vmatpush.msra.mxu3 %v6355_v23  ;;  %v9458_v1 = vld [vmem:[#allocation61_spill] sm:$0xff] }
  0x73   :  { %532 = vmatpush.msra.mxu0 %v5875_v6  ;;  %561 = vmatpush.msra.mxu1 %v6035_v38  ;;  %v9461_v6 = vld [vmem:[#allocation98_spill] sm:$0xff]  ;;  %v9480_v23 = vld [vmem:[#allocation73_spill] sm:$0xff]  ;;  %v9494_v38 = vld [vmem:[#allocation55_spill] sm:$0xff] }
  0x74   :  { %591 = vmatpush.msra.mxu2 %v6185_v37  ;;  %620 = vmatpush.msra.mxu3 %v6345_v25  ;;  %v9482_v25 = vld [vmem:[#allocation102_spill] sm:$0xff] }
  0x75   :  { %533 = vmatpush.msra.mxu0 %v5865_v4  ;;  %562 = vmatpush.msra.mxu1 %v6025_v36  ;;  %v9463_v4 = vld [vmem:[#allocation94_spill] sm:$0xff]  ;;  %v9492_v36 = vld [vmem:[#allocation89_spill] sm:$0xff] }
  0x76   :  { %592 = vmatpush.msra.mxu2 %v6175_v35  ;;  %621 = vmatpush.msra.mxu3 %v6335_v15  ;;  %v9472_v15 = vld [vmem:[#allocation93_spill] sm:$0xff]  ;;  %v9491_v35 = vld [vmem:[#allocation71_spill] sm:$0xff]  ;;  %v9493_v37 = vld [vmem:[#allocation38_spill] sm:$0xff] }
  0x77   :  { %534 = vmatpush.msra.mxu0 %v5855_v2  ;;  %563 = vmatpush.msra.mxu1 %v6015_v34  ;;  %v9467_v2 = vld [vmem:[#allocation95_spill] sm:$0xff]  ;;  %v9490_v34 = vld [vmem:[#allocation56_spill] sm:$0xff] }
  0x78   :  { %593 = vmatpush.msra.mxu2 %v9458_v1  ;;  %622 = vmatpush.msra.mxu3 %v9459_v3  ;;  %v9518_v1 = vld [vmem:[#allocation65_spill] sm:$0xff]  ;;  %v9519_v3 = vld [vmem:[#allocation83_spill] sm:$0xff] }
  0x79   :  { %594 = vmatmul.f32.vlgmr.msra.gmra.mxu2 %v9460_v5  ;;  %623 = vmatmul.f32.vlgmr.msra.gmra.mxu3 %v9461_v6 }
  0x7a   :  { %694 = vmatpush.msrb.mxu2 %v9462_v7  ;;  %723 = vmatpush.msrb.mxu3 %v9463_v4  ;;  %v9520_v7 = vld [vmem:[#allocation32_spill] sm:$0xff]  ;;  %v9521_v4 = vld [vmem:[#allocation49_spill] sm:$0xff] }
  0x7b   :  { %535 = vmatpush.msra.mxu0 %v9464_v8  ;;  %564 = vmatpush.msra.mxu1 %v9465_v9  ;;  %v9522_v8 = vld [vmem:[#allocation64_spill] sm:$0xff]  ;;  %v9523_v9 = vld [vmem:[#allocation82_spill] sm:$0xff] }
  0x7c   :  { %695 = vmatpush.msrb.mxu2 %v9466_v10  ;;  %536 = vmatmul.f32.vlgmr.msra.gmra.mxu0 %v9467_v2  ;;  %v9524_v10 = vld [vmem:[#allocation106_spill] sm:$0xff] }
  0x7d   :  { %565 = vmatmul.f32.vlgmr.msra.gmra.mxu1 %v9468_v11  ;;  %636 = vmatpush.msrb.mxu0 %v9469_v12  ;;  %v9525_v12 = vld [vmem:[#allocation31_spill] sm:$0xff] }
  0x7e   :  { %665 = vmatpush.msrb.mxu1 %v9470_v13  ;;  %696 = vmatpush.msrb.mxu2 %v9471_v14  ;;  %v9526_v13 = vld [vmem:[#allocation48_spill] sm:$0xff]  ;;  %v9527_v14 = vld [vmem:[#allocation63_spill] sm:$0xff] }
  0x7f   :  { %724 = vmatpush.msrb.mxu3 %v9472_v15  ;;  %637 = vmatpush.msrb.mxu0 %v9473_v16  ;;  %v9528_v15 = vld [vmem:[#allocation81_spill] sm:$0xff]  ;;  %v9529_v16 = vld [vmem:[#allocation30_spill] sm:$0xff] }
  0x80   :  { %666 = vmatpush.msrb.mxu1 %v9474_v17  ;;  %697 = vmatpush.msrb.mxu2 %v9475_v18  ;;  %v9530_v17 = vld [vmem:[#allocation47_spill] sm:$0xff]  ;;  %v9531_v18 = vld [vmem:[#allocation62_spill] sm:$0xff] }
  0x81   :  { %725 = vmatpush.msrb.mxu3 %v9476_v19  ;;  %597 = vmatmul.f32.gmra.mxu2 %v9477_v20  ;;  %v9532_v19 = vld [vmem:[#allocation80_spill] sm:$0xff] }
  0x82   :  { %638 = vmatpush.msrb.mxu0 %v9478_v21  ;;  %667 = vmatpush.msrb.mxu1 %v9479_v22  ;;  %v9533_v21 = vld [vmem:[#allocation29_spill] sm:$0xff]  ;;  %v9534_v22 = vld [vmem:[#allocation46_spill] sm:$0xff] }
  0x83   :  { %698 = vmatpush.msrb.mxu2 %v9480_v23  ;;  %726 = vmatpush.msrb.mxu3 %v9481_v24  ;;  %v9535_v23 = vld [vmem:[#allocation79_spill] sm:$0xff]  ;;  %v9536_v24 = vld [vmem:[#allocation28_spill] sm:$0xff] }
  0x84   :  { %626 = vmatmul.f32.gmra.mxu3 %v9482_v25  ;;  %639 = vmatpush.msrb.mxu0 %v9483_v26  ;;  %v9537_v26 = vld [vmem:[#allocation45_spill] sm:$0xff] }
  0x85   :  { %668 = vmatpush.msrb.mxu1 %v9484_v27  ;;  %699 = vmatpush.msrb.mxu2 %v9485_v28 }
  0x86   :  { %727 = vmatpush.msrb.mxu3 %v9486_v29  ;;  %539 = vmatmul.f32.gmra.mxu0 %v9487_v30 }
  0x87   :  { %568 = vmatmul.f32.gmra.mxu1 %v9488_v31  ;;  %640 = vmatpush.msrb.mxu0 %v9489_v32 }
  0x88   :  { %669 = vmatpush.msrb.mxu1 %v9490_v34  ;;  %700 = vmatpush.msrb.mxu2 %v9491_v35 }
  0x89   :  { %728 = vmatpush.msrb.mxu3 %v9492_v36  ;;  %641 = vmatpush.msrb.mxu0 %v9493_v37 }
  0x8a   :  { %670 = vmatpush.msrb.mxu1 %v9494_v38  ;;  %701 = vmatpush.msrb.mxu2 %v9495_v39 }
  0x8b   :  { %729 = vmatpush.msrb.mxu3 %v9496_v40  ;;  %600 = vmatmul.f32.gmra.mxu2 %v6535_v55 }
  0x8c   :  { %642 = vmatpush.msrb.mxu0 %v9497_v42  ;;  %671 = vmatpush.msrb.mxu1 %v9498_v43 }
  0x8d   :  { %702 = vmatpush.msrb.mxu2 %v9499_v44  ;;  %730 = vmatpush.msrb.mxu3 %v9500_v45 }
  0x8e   :  { %629 = vmatmul.f32.gmra.mxu3 %v9501_v46  ;;  %643 = vmatpush.msrb.mxu0 %v9502_v47 }
  0x8f   :  { %672 = vmatpush.msrb.mxu1 %v9503_v48  ;;  %703 = vmatpush.msrb.mxu2 %v9504_v49 }
  0x90   :  { %731 = vmatpush.msrb.mxu3 %v9505_v50  ;;  %542 = vmatmul.f32.gmra.mxu0 %v9506_v51 }
  0x91   :  { %571 = vmatmul.f32.gmra.mxu1 %v9507_v52  ;;  %644 = vmatpush.msrb.mxu0 %v9508_v53 }
  0x92   :  { %673 = vmatpush.msrb.mxu1 %v9509_v54  ;;  %704 = vmatpush.msrb.mxu2 %v9510_v56 }
  0x93   :  { %732 = vmatpush.msrb.mxu3 %v9511_v57  ;;  %645 = vmatpush.msrb.mxu0 %v9512_v58 }
  0x94   :  { %674 = vmatpush.msrb.mxu1 %v9513_v59  ;;  %705 = vmatpush.msrb.mxu2 %v9514_v60 }
  0x95   :  { %733 = vmatpush.msrb.mxu3 %v9515_v61  ;;  %603 = vmatmul.f32.gmra.mxu2 %v6558_v33 }
  0x96   :  { %646 = vmatpush.msrb.mxu0 %v9516_v62  ;;  %675 = vmatpush.msrb.mxu1 %v9517_v63 }
  0x97   :  { %706 = vmatpush.msrb.mxu2 %v9518_v1  ;;  %734 = vmatpush.msrb.mxu3 %v9519_v3 }
  0x98   :  { %632 = vmatmul.f32.gmra.mxu3 %v6563_v0  ;;  %647 = vmatpush.msrb.mxu0 %v9520_v7 }
  0x99   :  { %676 = vmatpush.msrb.mxu1 %v9521_v4  ;;  %707 = vmatpush.msrb.mxu2 %v9522_v8 }
  0x9a   :  { %735 = vmatpush.msrb.mxu3 %v9523_v9  ;;  %545 = vmatmul.f32.gmra.mxu0 %v9524_v10 }
  0x9b   :  { %574 = vmatmul.f32.gmra.mxu1 %v6550_v41  ;;  %648 = vmatpush.msrb.mxu0 %v9525_v12 }
  0x9c   :  { %677 = vmatpush.msrb.mxu1 %v9526_v13  ;;  %708 = vmatpush.msrb.mxu2 %v9527_v14 }
  0x9d   :  { %736 = vmatpush.msrb.mxu3 %v9528_v15  ;;  %649 = vmatpush.msrb.mxu0 %v9529_v16 }
  0x9e   :  { %678 = vmatpush.msrb.mxu1 %v9530_v17  ;;  %709 = vmatpush.msrb.mxu2 %v9531_v18 }
  0x9f   :  { %737 = vmatpush.msrb.mxu3 %v9532_v19  ;;  %650 = vmatpush.msrb.mxu0 %v9533_v21 }
  0xa0   :  { %679 = vmatpush.msrb.mxu1 %v9534_v22  ;;  %710 = vmatmul.f32.vlgmr.msrb.gmra.mxu2 %v9460_v5 }
  0xa1   :  { %738 = vmatpush.msrb.mxu3 %v9535_v23  ;;  %651 = vmatpush.msrb.mxu0 %v9536_v24 }
  0xa2   :  { %680 = vmatpush.msrb.mxu1 %v9537_v26  ;;  %739 = vmatmul.f32.vlgmr.msrb.gmra.mxu3 %v9461_v6 }
  0xa3   :  { %652 = vmatmul.f32.vlgmr.msrb.gmra.mxu0 %v9467_v2  ;;  %681 = vmatmul.f32.vlgmr.msrb.gmra.mxu1 %v9468_v11 }
  0xa8   :  { %713 = vmatmul.f32.gmra.mxu2 %v9477_v20 }
  0xaa   :  { %742 = vmatmul.f32.gmra.mxu3 %v9482_v25 }
  0xab   :  { %655 = vmatmul.f32.gmra.mxu0 %v9487_v30  ;;  %684 = vmatmul.f32.gmra.mxu1 %v9488_v31 }
  0xb0   :  { %716 = vmatmul.f32.gmra.mxu2 %v6535_v55 }
  0xb2   :  { %745 = vmatmul.f32.gmra.mxu3 %v9501_v46 }
  0xb3   :  { %658 = vmatmul.f32.gmra.mxu0 %v9506_v51  ;;  %687 = vmatmul.f32.gmra.mxu1 %v9507_v52 }
  0xb8   :  { %719 = vmatmul.f32.gmra.mxu2 %v6558_v33 }
  0xba   :  { %748 = vmatmul.f32.gmra.mxu3 %v6563_v0 }
  0xbb   :  { %661 = vmatmul.f32.gmra.mxu0 %v9524_v10  ;;  %690 = vmatmul.f32.gmra.mxu1 %v6550_v41 }
  0xf9   :  { %v537_v5 = vpop.f32.mrf.mxu0 }
  0xfa   :  { %v566_v6 = vpop.f32.mrf.mxu1 }
  0xfb   :  { %v567_v2 = vadd.f32 %v566_v6, %v537_v5 }
  0xfc   :  { %v595_v11 = vpop.f32.mrf.mxu2  ;;  %v624_v20 = vpop.f32.mrf.mxu3 }
  0xfd   :  { %v596_v55 = vadd.f32 %v595_v11, %v567_v2 }
  0xff   :  { %v625_v25 = vadd.f32 %v624_v20, %v596_v55 }
 0x101   :  { %v6725_v27 = vmax.f32 %v625_v25, 0.0 }
 0x103   :  { %v540_v28 = vpop.f32.mrf.mxu0 }
 0x104   :  { %v569_v29 = vpop.f32.mrf.mxu1  ;;  %v598_v30 = vpop.f32.mrf.mxu2 }
 0x105   :  { %v570_v31 = vadd.f32 %v569_v29, %v540_v28 }
 0x107   :  { %v599_v33 = vadd.f32 %v598_v30, %v570_v31  ;;  %v627_v32 = vpop.f32.mrf.mxu3 }
 0x109   :  { %v628_v0 = vadd.f32 %v627_v32, %v599_v33 }
 0x10b   :  { %v6727_v34 = vmax.f32 %v628_v0, 0.0 }
 0x10d   :  { %v543_v35 = vpop.f32.mrf.mxu0 }
 0x10e   :  { %v572_v41 = vpop.f32.mrf.mxu1  ;;  %v601_v36 = vpop.f32.mrf.mxu2 }
 0x10f   :  { %v573_v37 = vadd.f32 %v572_v41, %v543_v35 }
 0x111   :  { %v602_v38 = vadd.f32 %v601_v36, %v573_v37  ;;  %v630_v39 = vpop.f32.mrf.mxu3 }
 0x113   :  { %v631_v40 = vadd.f32 %v630_v39, %v602_v38 }
 0x115   :  { %v6729_v42 = vmax.f32 %v631_v40, 0.0 }
 0x117   :  { %v546_v43 = vpop.f32.mrf.mxu0 }
 0x118   :  { %v575_v44 = vpop.f32.mrf.mxu1  ;;  %v604_v45 = vpop.f32.mrf.mxu2 }
 0x119   :  { %v576_v46 = vadd.f32 %v575_v44, %v546_v43 }
 0x11b   :  { %v605_v47 = vadd.f32 %v604_v45, %v576_v46  ;;  %v633_v48 = vpop.f32.mrf.mxu3 }
 0x11d   :  { %v634_v49 = vadd.f32 %v633_v48, %v605_v47 }
 0x11f   :  { %v6731_v50 = vmax.f32 %v634_v49, 0.0 }
 0x120   :  { %v653_v51 = vpop.f32.mrf.mxu0  ;;  %v682_v52 = vpop.f32.mrf.mxu1 }
 0x121   :  { %v683_v53 = vadd.f32 %v682_v52, %v653_v51 }
 0x123   :  { %v711_v54 = vpop.f32.mrf.mxu2 }
 0x124   :  { %v712_v56 = vadd.f32 %v711_v54, %v683_v53 }
 0x125   :  { %v740_v57 = vpop.f32.mrf.mxu3 }
 0x126   :  { %v741_v58 = vadd.f32 %v740_v57, %v712_v56 }
 0x128   :  { %v6733_v59 = vmax.f32 %v741_v58, 0.0  ;;  %v656_v60 = vpop.f32.mrf.mxu0  ;;  %v685_v61 = vpop.f32.mrf.mxu1 }
 0x129   :  { %v686_v62 = vadd.f32 %v685_v61, %v656_v60 }
 0x12b   :  { %v714_v63 = vpop.f32.mrf.mxu2 }
 0x12c   :  { %v715_v1 = vadd.f32 %v714_v63, %v686_v62 }
 0x12d   :  { %v743_v3 = vpop.f32.mrf.mxu3 }
 0x12e   :  { %v744_v7 = vadd.f32 %v743_v3, %v715_v1 }
 0x130   :  { %v6735_v4 = vmax.f32 %v744_v7, 0.0  ;;  %v659_v8 = vpop.f32.mrf.mxu0  ;;  %v688_v9 = vpop.f32.mrf.mxu1 }
 0x131   :  { %v689_v10 = vadd.f32 %v688_v9, %v659_v8 }
 0x133   :  { %v717_v12 = vpop.f32.mrf.mxu2 }
 0x134   :  { %v718_v13 = vadd.f32 %v717_v12, %v689_v10 }
 0x135   :  { %v746_v14 = vpop.f32.mrf.mxu3 }
 0x136   :  { %v747_v15 = vadd.f32 %v746_v14, %v718_v13 }
 0x138   :  { %v6737_v16 = vmax.f32 %v747_v15, 0.0  ;;  %v662_v17 = vpop.f32.mrf.mxu0  ;;  %v691_v18 = vpop.f32.mrf.mxu1 }
 0x139   :  { %v692_v19 = vadd.f32 %v691_v18, %v662_v17 }
 0x13b   :  { %v720_v21 = vpop.f32.mrf.mxu2 }
 0x13c   :  { %v721_v22 = vadd.f32 %v720_v21, %v692_v19 }
 0x13d   :  { %v749_v23 = vpop.f32.mrf.mxu3 }
 0x13e   :  { %v750_v24 = vadd.f32 %v749_v23, %v721_v22 }
 0x140   :  { %v6739_v26 = vmax.f32 %v750_v24, 0.0 }
 0x141   :  { %5740 = dma.done.wait [#allocation7 + $0x1], 16384 }
 0x142   :  { %5741 = vsyncadd [#allocation7 + $0x1], 4294950912  ;;  %v824_v5 = vld [vmem:[#allocation3 + $0x1e0] sm:$0xff]  ;;  %v825_v2 = vld [vmem:[#allocation3 + $0x1e8] sm:$0xff]  ;;  %vm1132_vm0 = vcmask 261120   ;;  %vm1707_vm4 = vcmask 130048  }
 0x143   :  { %v888_v6 = vld [vmem:[#allocation3 + $0x3e0] sm:$0xff]  ;;  %892 = vmatpush.msra.mxu0 %v824_v5  ;;  %v889_v11 = vld [vmem:[#allocation3 + $0x3e8] sm:$0xff]  ;;  %950 = vmatpush.msra.mxu2 %v825_v2 }
 0x144   :  { %921 = vmatpush.msra.mxu1 %v888_v6  ;;  %v820_v20 = vld [vmem:[#allocation3 + $0x1c0] sm:$0xff]  ;;  %979 = vmatpush.msra.mxu3 %v889_v11  ;;  %v821_v25 = vld [vmem:[#allocation3 + $0x1c8] sm:$0xff] }
 0x145   :  { %v884_v55 = vld [vmem:[#allocation3 + $0x3c0] sm:$0xff]  ;;  %v885_v28 = vld [vmem:[#allocation3 + $0x3c8] sm:$0xff]  ;;  %893 = vmatpush.msra.mxu0 %v820_v20  ;;  %951 = vmatpush.msra.mxu2 %v821_v25 }
 0x146   :  { %v816_v29 = vld [vmem:[#allocation3 + $0x1a0] sm:$0xff]  ;;  %922 = vmatpush.msra.mxu1 %v884_v55  ;;  %v817_v31 = vld [vmem:[#allocation3 + $0x1a8] sm:$0xff]  ;;  %980 = vmatpush.msra.mxu3 %v885_v28 }
 0x147   :  { %v880_v30 = vld [vmem:[#allocation3 + $0x3a0] sm:$0xff]  ;;  %v881_v33 = vld [vmem:[#allocation3 + $0x3a8] sm:$0xff]  ;;  %894 = vmatpush.msra.mxu0 %v816_v29  ;;  %952 = vmatpush.msra.mxu2 %v817_v31  ;;  %v826_v29 = vld [vmem:[#allocation3 + $0x1f0] sm:$0xff] }
 0x148   :  { %v812_v32 = vld [vmem:[#allocation3 + $0x180] sm:$0xff]  ;;  %923 = vmatpush.msra.mxu1 %v880_v30  ;;  %v813_v35 = vld [vmem:[#allocation3 + $0x188] sm:$0xff]  ;;  %981 = vmatpush.msra.mxu3 %v881_v33  ;;  %v890_v30 = vld [vmem:[#allocation3 + $0x3f0] sm:$0xff] }
 0x149   :  { %v876_v0 = vld [vmem:[#allocation3 + $0x380] sm:$0xff]  ;;  %v877_v41 = vld [vmem:[#allocation3 + $0x388] sm:$0xff]  ;;  %895 = vmatpush.msra.mxu0 %v812_v32  ;;  %953 = vmatpush.msra.mxu2 %v813_v35  ;;  %v827_v31 = vld [vmem:[#allocation3 + $0x1f8] sm:$0xff] }
 0x14a   :  { %v808_v36 = vld [vmem:[#allocation3 + $0x160] sm:$0xff]  ;;  %924 = vmatpush.msra.mxu1 %v876_v0  ;;  %v809_v38 = vld [vmem:[#allocation3 + $0x168] sm:$0xff]  ;;  %982 = vmatpush.msra.mxu3 %v877_v41  ;;  %v891_v33 = vld [vmem:[#allocation3 + $0x3f8] sm:$0xff] }
 0x14b   :  { %v872_v37 = vld [vmem:[#allocation3 + $0x360] sm:$0xff]  ;;  %v873_v39 = vld [vmem:[#allocation3 + $0x368] sm:$0xff]  ;;  %896 = vmatpush.msra.mxu0 %v808_v36  ;;  %954 = vmatpush.msra.mxu2 %v809_v38  ;;  %v822_v32 = vld [vmem:[#allocation3 + $0x1d0] sm:$0xff] }
 0x14c   :  { %v804_v40 = vld [vmem:[#allocation3 + $0x140] sm:$0xff]  ;;  %925 = vmatpush.msra.mxu1 %v872_v37  ;;  %v805_v44 = vld [vmem:[#allocation3 + $0x148] sm:$0xff]  ;;  %983 = vmatpush.msra.mxu3 %v873_v39  ;;  %v886_v0 = vld [vmem:[#allocation3 + $0x3d0] sm:$0xff] }
 0x14d   :  { %v868_v43 = vld [vmem:[#allocation3 + $0x340] sm:$0xff]  ;;  %v869_v45 = vld [vmem:[#allocation3 + $0x348] sm:$0xff]  ;;  %897 = vmatpush.msra.mxu0 %v804_v40  ;;  %955 = vmatpush.msra.mxu2 %v805_v44  ;;  %v823_v35 = vld [vmem:[#allocation3 + $0x1d8] sm:$0xff] }
 0x14e   :  { %v800_v46 = vld [vmem:[#allocation3 + $0x120] sm:$0xff]  ;;  %926 = vmatpush.msra.mxu1 %v868_v43  ;;  %v801_v48 = vld [vmem:[#allocation3 + $0x128] sm:$0xff]  ;;  %984 = vmatpush.msra.mxu3 %v869_v45  ;;  %v887_v41 = vld [vmem:[#allocation3 + $0x3d8] sm:$0xff] }
 0x14f   :  { %v864_v47 = vld [vmem:[#allocation3 + $0x320] sm:$0xff]  ;;  %v865_v49 = vld [vmem:[#allocation3 + $0x328] sm:$0xff]  ;;  %898 = vmatpush.msra.mxu0 %v800_v46  ;;  %956 = vmatpush.msra.mxu2 %v801_v48  ;;  %v818_v36 = vld [vmem:[#allocation3 + $0x1b0] sm:$0xff] }
 0x150   :  { %v796_v51 = vld [vmem:[#allocation3 + $0x100] sm:$0xff]  ;;  %927 = vmatpush.msra.mxu1 %v864_v47  ;;  %v797_v53 = vld [vmem:[#allocation3 + $0x108] sm:$0xff]  ;;  %985 = vmatpush.msra.mxu3 %v865_v49  ;;  %v882_v37 = vld [vmem:[#allocation3 + $0x3b0] sm:$0xff] }
 0x151   :  { %v860_v52 = vld [vmem:[#allocation3 + $0x300] sm:$0xff]  ;;  %v861_v54 = vld [vmem:[#allocation3 + $0x308] sm:$0xff]  ;;  %899 = vmatpush.msra.mxu0 %v796_v51  ;;  %957 = vmatpush.msra.mxu2 %v797_v53  ;;  %v819_v38 = vld [vmem:[#allocation3 + $0x1b8] sm:$0xff] }
 0x152   :  { %v792_v56 = vld [vmem:[#allocation3 + $0xe0] sm:$0xff]  ;;  %928 = vmatpush.msra.mxu1 %v860_v52  ;;  %v793_v58 = vld [vmem:[#allocation3 + $0xe8] sm:$0xff]  ;;  %986 = vmatpush.msra.mxu3 %v861_v54  ;;  %v883_v39 = vld [vmem:[#allocation3 + $0x3b8] sm:$0xff] }
 0x153   :  { %v856_v57 = vld [vmem:[#allocation3 + $0x2e0] sm:$0xff]  ;;  %v857_v60 = vld [vmem:[#allocation3 + $0x2e8] sm:$0xff]  ;;  %900 = vmatpush.msra.mxu0 %v792_v56  ;;  %958 = vmatpush.msra.mxu2 %v793_v58  ;;  %v814_v40 = vld [vmem:[#allocation3 + $0x190] sm:$0xff] }
 0x154   :  { %v788_v61 = vld [vmem:[#allocation3 + $0xc0] sm:$0xff]  ;;  %929 = vmatpush.msra.mxu1 %v856_v57  ;;  %v789_v63 = vld [vmem:[#allocation3 + $0xc8] sm:$0xff]  ;;  %987 = vmatpush.msra.mxu3 %v857_v60  ;;  %v878_v43 = vld [vmem:[#allocation3 + $0x390] sm:$0xff] }
 0x155   :  { %v852_v62 = vld [vmem:[#allocation3 + $0x2c0] sm:$0xff]  ;;  %v853_v1 = vld [vmem:[#allocation3 + $0x2c8] sm:$0xff]  ;;  %901 = vmatpush.msra.mxu0 %v788_v61  ;;  %959 = vmatpush.msra.mxu2 %v789_v63  ;;  %v815_v44 = vld [vmem:[#allocation3 + $0x198] sm:$0xff] }
 0x156   :  { %v784_v3 = vld [vmem:[#allocation3 + $0xa0] sm:$0xff]  ;;  %930 = vmatpush.msra.mxu1 %v852_v62  ;;  %v785_v8 = vld [vmem:[#allocation3 + $0xa8] sm:$0xff]  ;;  %988 = vmatpush.msra.mxu3 %v853_v1  ;;  %v879_v45 = vld [vmem:[#allocation3 + $0x398] sm:$0xff] }
 0x157   :  { %v848_v7 = vld [vmem:[#allocation3 + $0x2a0] sm:$0xff]  ;;  %v849_v9 = vld [vmem:[#allocation3 + $0x2a8] sm:$0xff]  ;;  %902 = vmatpush.msra.mxu0 %v784_v3  ;;  %960 = vmatpush.msra.mxu2 %v785_v8  ;;  %v810_v46 = vld [vmem:[#allocation3 + $0x170] sm:$0xff] }
 0x158   :  { %v780_v10 = vld [vmem:[#allocation3 + $0x80] sm:$0xff]  ;;  %931 = vmatpush.msra.mxu1 %v848_v7  ;;  %v781_v13 = vld [vmem:[#allocation3 + $0x88] sm:$0xff]  ;;  %989 = vmatpush.msra.mxu3 %v849_v9  ;;  %v874_v47 = vld [vmem:[#allocation3 + $0x370] sm:$0xff] }
 0x159   :  { %v844_v12 = vld [vmem:[#allocation3 + $0x280] sm:$0xff]  ;;  %v845_v14 = vld [vmem:[#allocation3 + $0x288] sm:$0xff]  ;;  %903 = vmatpush.msra.mxu0 %v780_v10  ;;  %961 = vmatpush.msra.mxu2 %v781_v13  ;;  %v811_v48 = vld [vmem:[#allocation3 + $0x178] sm:$0xff] }
 0x15a   :  { %v776_v15 = vld [vmem:[#allocation3 + $0x60] sm:$0xff]  ;;  %932 = vmatpush.msra.mxu1 %v844_v12  ;;  %v777_v18 = vld [vmem:[#allocation3 + $0x68] sm:$0xff]  ;;  %990 = vmatpush.msra.mxu3 %v845_v14  ;;  %v875_v49 = vld [vmem:[#allocation3 + $0x378] sm:$0xff] }
 0x15b   :  { %v840_v17 = vld [vmem:[#allocation3 + $0x260] sm:$0xff]  ;;  %v841_v19 = vld [vmem:[#allocation3 + $0x268] sm:$0xff]  ;;  %904 = vmatpush.msra.mxu0 %v776_v15  ;;  %962 = vmatpush.msra.mxu2 %v777_v18  ;;  %v806_v51 = vld [vmem:[#allocation3 + $0x150] sm:$0xff] }
 0x15c   :  { %v772_v21 = vld [vmem:[#allocation3 + $0x40] sm:$0xff]  ;;  %933 = vmatpush.msra.mxu1 %v840_v17  ;;  %v773_v23 = vld [vmem:[#allocation3 + $0x48] sm:$0xff]  ;;  %991 = vmatpush.msra.mxu3 %v841_v19  ;;  %v870_v52 = vld [vmem:[#allocation3 + $0x350] sm:$0xff] }
 0x15d   :  { %v836_v22 = vld [vmem:[#allocation3 + $0x240] sm:$0xff]  ;;  %v837_v24 = vld [vmem:[#allocation3 + $0x248] sm:$0xff]  ;;  %905 = vmatpush.msra.mxu0 %v772_v21  ;;  %963 = vmatpush.msra.mxu2 %v773_v23  ;;  %v807_v53 = vld [vmem:[#allocation3 + $0x158] sm:$0xff] }
 0x15e   :  { %v768_v5 = vld [vmem:[#allocation3 + $0x20] sm:$0xff]  ;;  %934 = vmatpush.msra.mxu1 %v836_v22  ;;  %v769_v2 = vld [vmem:[#allocation3 + $0x28] sm:$0xff]  ;;  %992 = vmatpush.msra.mxu3 %v837_v24  ;;  %v871_v54 = vld [vmem:[#allocation3 + $0x358] sm:$0xff] }
 0x15f   :  { %v832_v6 = vld [vmem:[#allocation3 + $0x220] sm:$0xff]  ;;  %v833_v11 = vld [vmem:[#allocation3 + $0x228] sm:$0xff]  ;;  %906 = vmatpush.msra.mxu0 %v768_v5  ;;  %964 = vmatpush.msra.mxu2 %v769_v2  ;;  %v802_v56 = vld [vmem:[#allocation3 + $0x130] sm:$0xff] }
 0x160   :  { %v764_v20 = vld [vmem:[#allocation3] sm:$0xff]  ;;  %935 = vmatpush.msra.mxu1 %v832_v6  ;;  %v765_v25 = vld [vmem:[#allocation3 + $0x8] sm:$0xff]  ;;  %993 = vmatpush.msra.mxu3 %v833_v11  ;;  %v866_v57 = vld [vmem:[#allocation3 + $0x330] sm:$0xff] }
 0x161   :  { %v828_v55 = vld [vmem:[#allocation3 + $0x200] sm:$0xff]  ;;  %v829_v28 = vld [vmem:[#allocation3 + $0x208] sm:$0xff]  ;;  %907 = vmatpush.msra.mxu0 %v764_v20  ;;  %965 = vmatpush.msra.mxu2 %v765_v25  ;;  %v803_v58 = vld [vmem:[#allocation3 + $0x138] sm:$0xff] }
 0x162   :  { %936 = vmatpush.msra.mxu1 %v828_v55  ;;  %994 = vmatpush.msra.mxu3 %v829_v28  ;;  %v867_v60 = vld [vmem:[#allocation3 + $0x338] sm:$0xff]  ;;  %v798_v61 = vld [vmem:[#allocation3 + $0x110] sm:$0xff] }
 0x163   :  { %908 = vmatmul.f32.vlgmr.msra.gmra.mxu0 %v6725_v27  ;;  %937 = vmatmul.f32.vlgmr.msra.gmra.mxu1 %v6733_v59  ;;  %v862_v62 = vld [vmem:[#allocation3 + $0x310] sm:$0xff]  ;;  %v799_v63 = vld [vmem:[#allocation3 + $0x118] sm:$0xff] }
 0x164   :  { %966 = vmatmul.f32.vlgmr.msra.gmra.mxu2 %v6725_v27  ;;  %995 = vmatmul.f32.vlgmr.msra.gmra.mxu3 %v6733_v59  ;;  %v863_v1 = vld [vmem:[#allocation3 + $0x318] sm:$0xff]  ;;  %v794_v3 = vld [vmem:[#allocation3 + $0xf0] sm:$0xff] }
 0x165   :  { %1008 = vmatpush.msrb.mxu0 %v826_v29  ;;  %1037 = vmatpush.msrb.mxu1 %v890_v30  ;;  %v858_v7 = vld [vmem:[#allocation3 + $0x2f0] sm:$0xff]  ;;  %v795_v8 = vld [vmem:[#allocation3 + $0xf8] sm:$0xff] }
 0x166   :  { %1066 = vmatpush.msrb.mxu2 %v827_v31  ;;  %1095 = vmatpush.msrb.mxu3 %v891_v33  ;;  %v859_v9 = vld [vmem:[#allocation3 + $0x2f8] sm:$0xff]  ;;  %v790_v10 = vld [vmem:[#allocation3 + $0xd0] sm:$0xff] }
 0x167   :  { %1009 = vmatpush.msrb.mxu0 %v822_v32  ;;  %1038 = vmatpush.msrb.mxu1 %v886_v0  ;;  %v854_v12 = vld [vmem:[#allocation3 + $0x2d0] sm:$0xff]  ;;  %v791_v13 = vld [vmem:[#allocation3 + $0xd8] sm:$0xff] }
 0x168   :  { %1067 = vmatpush.msrb.mxu2 %v823_v35  ;;  %1096 = vmatpush.msrb.mxu3 %v887_v41  ;;  %v855_v14 = vld [vmem:[#allocation3 + $0x2d8] sm:$0xff]  ;;  %v786_v15 = vld [vmem:[#allocation3 + $0xb0] sm:$0xff] }
 0x169   :  { %1010 = vmatpush.msrb.mxu0 %v818_v36  ;;  %1039 = vmatpush.msrb.mxu1 %v882_v37  ;;  %v850_v17 = vld [vmem:[#allocation3 + $0x2b0] sm:$0xff]  ;;  %v787_v18 = vld [vmem:[#allocation3 + $0xb8] sm:$0xff] }
 0x16a   :  { %1068 = vmatpush.msrb.mxu2 %v819_v38  ;;  %1097 = vmatpush.msrb.mxu3 %v883_v39  ;;  %v851_v19 = vld [vmem:[#allocation3 + $0x2b8] sm:$0xff]  ;;  %v782_v21 = vld [vmem:[#allocation3 + $0x90] sm:$0xff] }
 0x16b   :  { %1011 = vmatpush.msrb.mxu0 %v814_v40  ;;  %1040 = vmatpush.msrb.mxu1 %v878_v43  ;;  %v846_v22 = vld [vmem:[#allocation3 + $0x290] sm:$0xff]  ;;  %v783_v23 = vld [vmem:[#allocation3 + $0x98] sm:$0xff] }
 0x16c   :  { %1069 = vmatpush.msrb.mxu2 %v815_v44  ;;  %1098 = vmatpush.msrb.mxu3 %v879_v45  ;;  %v847_v24 = vld [vmem:[#allocation3 + $0x298] sm:$0xff]  ;;  %v778_v5 = vld [vmem:[#allocation3 + $0x70] sm:$0xff] }
 0x16d   :  { %911 = vmatmul.f32.gmra.mxu0 %v6727_v34  ;;  %940 = vmatmul.f32.gmra.mxu1 %v6735_v4  ;;  %v842_v6 = vld [vmem:[#allocation3 + $0x270] sm:$0xff]  ;;  %v779_v2 = vld [vmem:[#allocation3 + $0x78] sm:$0xff] }
 0x16e   :  { %969 = vmatmul.f32.gmra.mxu2 %v6727_v34  ;;  %998 = vmatmul.f32.gmra.mxu3 %v6735_v4  ;;  %v843_v11 = vld [vmem:[#allocation3 + $0x278] sm:$0xff]  ;;  %v774_v20 = vld [vmem:[#allocation3 + $0x50] sm:$0xff] }
 0x16f   :  { %1012 = vmatpush.msrb.mxu0 %v810_v46  ;;  %1041 = vmatpush.msrb.mxu1 %v874_v47  ;;  %v838_v55 = vld [vmem:[#allocation3 + $0x250] sm:$0xff]  ;;  %v775_v25 = vld [vmem:[#allocation3 + $0x58] sm:$0xff] }
 0x170   :  { %1070 = vmatpush.msrb.mxu2 %v811_v48  ;;  %1099 = vmatpush.msrb.mxu3 %v875_v49  ;;  %v839_v28 = vld [vmem:[#allocation3 + $0x258] sm:$0xff]  ;;  %v770_v29 = vld [vmem:[#allocation3 + $0x30] sm:$0xff] }
 0x171   :  { %1013 = vmatpush.msrb.mxu0 %v806_v51  ;;  %1042 = vmatpush.msrb.mxu1 %v870_v52  ;;  %v834_v30 = vld [vmem:[#allocation3 + $0x230] sm:$0xff]  ;;  %v771_v31 = vld [vmem:[#allocation3 + $0x38] sm:$0xff]  ;;  %v1124_v51 = vld [vmem:[%s9300_s6] sm:$0xff] }
 0x172   :  { %1071 = vmatpush.msrb.mxu2 %v807_v53  ;;  %1100 = vmatpush.msrb.mxu3 %v871_v54  ;;  %v835_v33 = vld [vmem:[#allocation3 + $0x238] sm:$0xff]  ;;  %v766_v32 = vld [vmem:[#allocation3 + $0x10] sm:$0xff] }
 0x173   :  { %1014 = vmatpush.msrb.mxu0 %v802_v56  ;;  %1043 = vmatpush.msrb.mxu1 %v866_v57  ;;  %v830_v0 = vld [vmem:[#allocation3 + $0x210] sm:$0xff]  ;;  %v767_v35 = vld [vmem:[#allocation3 + $0x18] sm:$0xff] }
 0x174   :  { %1072 = vmatpush.msrb.mxu2 %v803_v58  ;;  %1101 = vmatpush.msrb.mxu3 %v867_v60  ;;  %v831_v41 = vld [vmem:[#allocation3 + $0x218] sm:$0xff]  ;;  %v1125_v60 = vld [vmem:[%s9300_s6 + $0x8] sm:$0xff] }
 0x175   :  { %1015 = vmatpush.msrb.mxu0 %v798_v61  ;;  %1044 = vmatpush.msrb.mxu1 %v862_v62 }
 0x176   :  { %1073 = vmatpush.msrb.mxu2 %v799_v63  ;;  %1102 = vmatpush.msrb.mxu3 %v863_v1 }
 0x177   :  { %914 = vmatmul.f32.gmra.mxu0 %v6729_v42  ;;  %943 = vmatmul.f32.gmra.mxu1 %v6737_v16 }
 0x178   :  { %972 = vmatmul.f32.gmra.mxu2 %v6729_v42  ;;  %1001 = vmatmul.f32.gmra.mxu3 %v6737_v16 }
 0x179   :  { %1016 = vmatpush.msrb.mxu0 %v794_v3  ;;  %1045 = vmatpush.msrb.mxu1 %v858_v7  ;;  %v1126_v3 = vld [vmem:[%s9300_s6 + $0x10] sm:$0xff] }
 0x17a   :  { %1074 = vmatpush.msrb.mxu2 %v795_v8  ;;  %1103 = vmatpush.msrb.mxu3 %v859_v9 }
 0x17b   :  { %1017 = vmatpush.msrb.mxu0 %v790_v10  ;;  %1046 = vmatpush.msrb.mxu1 %v854_v12  ;;  %v1127_v12 = vld [vmem:[%s9300_s6 + $0x18] sm:$0xff] }
 0x17c   :  { %1075 = vmatpush.msrb.mxu2 %v791_v13  ;;  %1104 = vmatpush.msrb.mxu3 %v855_v14 }
 0x17d   :  { %1018 = vmatpush.msrb.mxu0 %v786_v15  ;;  %1047 = vmatpush.msrb.mxu1 %v850_v17 }
 0x17e   :  { %1076 = vmatpush.msrb.mxu2 %v787_v18  ;;  %1105 = vmatpush.msrb.mxu3 %v851_v19 }
 0x17f   :  { %1019 = vmatpush.msrb.mxu0 %v782_v21  ;;  %1048 = vmatpush.msrb.mxu1 %v846_v22  ;;  %v1128_v22 = vld [vmem:[%s9300_s6 + $0x20] sm:$0xff] }
 0x180   :  { %1077 = vmatpush.msrb.mxu2 %v783_v23  ;;  %1106 = vmatpush.msrb.mxu3 %v847_v24 }
 0x181   :  { %917 = vmatmul.f32.gmra.mxu0 %v6731_v50  ;;  %946 = vmatmul.f32.gmra.mxu1 %v6739_v26 }
 0x182   :  { %975 = vmatmul.f32.gmra.mxu2 %v6731_v50  ;;  %1004 = vmatmul.f32.gmra.mxu3 %v6739_v26 }
 0x183   :  { %1020 = vmatpush.msrb.mxu0 %v778_v5  ;;  %1049 = vmatpush.msrb.mxu1 %v842_v6 }
 0x184   :  { %1078 = vmatpush.msrb.mxu2 %v779_v2  ;;  %1107 = vmatpush.msrb.mxu3 %v843_v11 }
 0x185   :  { %1021 = vmatpush.msrb.mxu0 %v774_v20  ;;  %1050 = vmatpush.msrb.mxu1 %v838_v55  ;;  %v1129_v20 = vld [vmem:[%s9300_s6 + $0x28] sm:$0xff] }
 0x186   :  { %1079 = vmatpush.msrb.mxu2 %v775_v25  ;;  %1108 = vmatpush.msrb.mxu3 %v839_v28  ;;  %v1130_v25 = vld [vmem:[%s9300_s6 + $0x30] sm:$0xff]  ;;  %v1131_v28 = vld [vmem:[%s9300_s6 + $0x38] sm:$0xff] }
 0x187   :  { %1022 = vmatpush.msrb.mxu0 %v770_v29  ;;  %1051 = vmatpush.msrb.mxu1 %v834_v30  ;;  %v6832_v29 = vld [vmem:[%s9301_s7 + $0x78] sm:$0xff]  ;;  %v6838_v30 = vld [vmem:[%s9301_s7 + $0x70] sm:$0xff] }
 0x188   :  { %1080 = vmatpush.msrb.mxu2 %v771_v31  ;;  %1109 = vmatpush.msrb.mxu3 %v835_v33  ;;  %v6844_v31 = vld [vmem:[%s9301_s7 + $0x68] sm:$0xff]  ;;  %v6850_v33 = vld [vmem:[%s9301_s7 + $0xf8] sm:$0xff] }
 0x189   :  { %1023 = vmatpush.msrb.mxu0 %v766_v32  ;;  %1052 = vmatpush.msrb.mxu1 %v830_v0  ;;  %v6855_v32 = vld [vmem:[%s9301_s7 + $0x60] sm:$0xff]  ;;  %v6861_v0 = vld [vmem:[%s9301_s7 + $0xf0] sm:$0xff] }
 0x18a   :  { %1081 = vmatpush.msrb.mxu2 %v767_v35  ;;  %1110 = vmatpush.msrb.mxu3 %v831_v41  ;;  %v6867_v35 = vld [vmem:[%s9301_s7 + $0xe8] sm:$0xff]  ;;  %v6872_v41 = vld [vmem:[%s9301_s7 + $0x58] sm:$0xff] }
 0x18b   :  { %1024 = vmatmul.f32.vlgmr.msrb.gmra.mxu0 %v6725_v27  ;;  %1053 = vmatmul.f32.vlgmr.msrb.gmra.mxu1 %v6733_v59 }
 0x18c   :  { %1082 = vmatmul.f32.vlgmr.msrb.gmra.mxu2 %v6725_v27  ;;  %1111 = vmatmul.f32.vlgmr.msrb.gmra.mxu3 %v6733_v59 }
 0x193   :  { %1027 = vmatmul.f32.gmra.mxu0 %v6727_v34  ;;  %1056 = vmatmul.f32.gmra.mxu1 %v6735_v4 }
 0x194   :  { %1085 = vmatmul.f32.gmra.mxu2 %v6727_v34  ;;  %1114 = vmatmul.f32.gmra.mxu3 %v6735_v4 }
 0x19b   :  { %1030 = vmatmul.f32.gmra.mxu0 %v6729_v42  ;;  %1059 = vmatmul.f32.gmra.mxu1 %v6737_v16 }
 0x19c   :  { %1088 = vmatmul.f32.gmra.mxu2 %v6729_v42  ;;  %1117 = vmatmul.f32.gmra.mxu3 %v6737_v16 }
 0x1a3   :  { %1033 = vmatmul.f32.gmra.mxu0 %v6731_v50  ;;  %1062 = vmatmul.f32.gmra.mxu1 %v6739_v26 }
 0x1a4   :  { %1091 = vmatmul.f32.gmra.mxu2 %v6731_v50  ;;  %1120 = vmatmul.f32.gmra.mxu3 %v6739_v26 }
 0x1e0   :  { %v909_v27 = vpop.f32.mrf.mxu0  ;;  %v938_v34 = vpop.f32.mrf.mxu1 }
 0x1e1   :  { %v939_v26 = vadd.f32 %v938_v34, %v909_v27  ;;  %v6879_v27 = vld [vmem:[%s9301_s7 + $0x50] sm:$0xff]  ;;  %v6886_v34 = vld [vmem:[%s9301_s7 + $0xe0] sm:$0xff] }
 0x1e7   :  { %v967_v59 = vpop.f32.mrf.mxu2  ;;  %v996_v4 = vpop.f32.mrf.mxu3 }
 0x1e8   :  { %v997_v58 = vadd.f32 %v996_v4, %v967_v59  ;;  %v6891_v59 = vld [vmem:[%s9301_s7 + $0x48] sm:$0xff] }
 0x1ea   :  { %v912_v36 = vpop.f32.mrf.mxu0  ;;  %v941_v37 = vpop.f32.mrf.mxu1 }
 0x1eb   :  { %v942_v50 = vadd.f32 %v941_v37, %v912_v36  ;;  %v6900_v36 = vld [vmem:[%s9301_s7 + $0xd8] sm:$0xff]  ;;  %v6905_v37 = vld [vmem:[%s9301_s7 + $0x40] sm:$0xff] }
 0x1f1   :  { %v970_v38 = vpop.f32.mrf.mxu2  ;;  %v999_v39 = vpop.f32.mrf.mxu3 }
 0x1f2   :  { %v1000_v57 = vadd.f32 %v999_v39, %v970_v38  ;;  %v6912_v38 = vld [vmem:[%s9301_s7 + $0xd0] sm:$0xff]  ;;  %v6917_v39 = vld [vmem:[%s9301_s7 + $0x38] sm:$0xff] }
 0x1f4   :  { %v915_v40 = vpop.f32.mrf.mxu0  ;;  %v944_v42 = vpop.f32.mrf.mxu1 }
 0x1f5   :  { %v945_v47 = vadd.f32 %v944_v42, %v915_v40  ;;  %v6924_v40 = vld [vmem:[%s9301_s7 + $0xc8] sm:$0xff]  ;;  %v6929_v42 = vld [vmem:[%s9301_s7 + $0x30] sm:$0xff] }
 0x1fb   :  { %v973_v43 = vpop.f32.mrf.mxu2  ;;  %v1002_v16 = vpop.f32.mrf.mxu3 }
 0x1fc   :  { %v1003_v53 = vadd.f32 %v1002_v16, %v973_v43  ;;  %v6938_v16 = vld [vmem:[%s9301_s7 + $0xc0] sm:$0xff] }
 0x1fe   :  { %v918_v44 = vpop.f32.mrf.mxu0  ;;  %v947_v45 = vpop.f32.mrf.mxu1 }
 0x1ff   :  { %v948_v46 = vadd.f32 %v947_v45, %v918_v44  ;;  %v6943_v44 = vld [vmem:[%s9301_s7 + $0x28] sm:$0xff] }
 0x201   :  { %1169 = vmatpush.msra.mxu0 %v948_v46  ;;  %v6952_v46 = vld [vmem:[%s9301_s7 + $0xb8] sm:$0xff] }
 0x203   :  { %1170 = vmatpush.msra.mxu0 %v945_v47  ;;  %v6957_v47 = vld [vmem:[%s9301_s7 + $0x20] sm:$0xff] }
 0x205   :  { %v976_v48 = vpop.f32.mrf.mxu2  ;;  %v1005_v49 = vpop.f32.mrf.mxu3  ;;  %1171 = vmatpush.msra.mxu0 %v942_v50  ;;  %v6964_v50 = vld [vmem:[%s9301_s7 + $0xb0] sm:$0xff] }
 0x206   :  { %v1006_v52 = vadd.f32 %v1005_v49, %v976_v48  ;;  %v6976_v48 = vld [vmem:[%s9301_s7 + $0xa8] sm:$0xff]  ;;  %v6981_v49 = vld [vmem:[%s9301_s7 + $0x10] sm:$0xff] }
 0x207   :  { %1172 = vmatpush.msra.mxu0 %v939_v26  ;;  %v6969_v26 = vld [vmem:[%s9301_s7 + $0x18] sm:$0xff] }
 0x208   :  { %v1025_v54 = vpop.f32.mrf.mxu0  ;;  %v1054_v56 = vpop.f32.mrf.mxu1  ;;  %1210 = vmatpush.msra.mxu1 %v1006_v52  ;;  %5330 = vmatmul.msk.f32.vlgmr.msra.gmra.mxu0 %vm1132_vm0, %v1124_v51  ;;  %v6990_v52 = vld [vmem:[%s9301_s7 + $0xa0] sm:$0xff] }
 0x209   :  { %v1055_v23 = vadd.f32 %v1054_v56, %v1025_v54  ;;  %1521 = vmatpush.msrb.mxu0 %v6832_v29  ;;  %v7004_v56 = vld [vmem:[%s9301_s7 + $0x98] sm:$0xff] }
 0x20a   :  { %1211 = vmatpush.msra.mxu1 %v1003_v53  ;;  %v6995_v53 = vld [vmem:[%s9301_s7 + $0x8] sm:$0xff] }
 0x20b   :  { %1522 = vmatpush.msrb.mxu0 %v6838_v30 }
 0x20c   :  { %1212 = vmatpush.msra.mxu1 %v1000_v57  ;;  %v7009_v57 = vld [vmem:[%s9301_s7] sm:$0xff] }
 0x20d   :  { %1523 = vmatpush.msrb.mxu0 %v6844_v31 }
 0x20e   :  { %1213 = vmatpush.msra.mxu1 %v997_v58  ;;  %v7016_v58 = vld [vmem:[%s9301_s7 + $0x90] sm:$0xff] }
 0x20f   :  { %v1083_v61 = vpop.f32.mrf.mxu2  ;;  %v1112_v62 = vpop.f32.mrf.mxu3  ;;  %5338 = vmatmul.msk.f32.vlgmr.msra.gmra.mxu1 %vm1132_vm0, %v1124_v51  ;;  %1524 = vmatpush.msrb.mxu0 %v6855_v32 }
 0x210   :  { %v1028_v63 = vpop.f32.mrf.mxu0  ;;  %v1057_v1 = vpop.f32.mrf.mxu1  ;;  %5331 = vmatmul.msk.f32.gmra.mxu0 %vm1132_vm0, %v1125_v60  ;;  %v1113_v55 = vadd.f32 %v1112_v62, %v1083_v61  ;;  %1541 = vmatpush.msrb.mxu1 %v6850_v33  ;;  %v7032_v62 = vld [vmem:[%s9301_s7 + $0x80] sm:$0xff] }
 0x211   :  { %v1058_v21 = vadd.f32 %v1057_v1, %v1028_v63  ;;  %1525 = vmatpush.msrb.mxu0 %v6872_v41  ;;  %v7041_v1 = vld [vmem:[%s9301_s7 + $0x178] sm:$0xff] }
 0x212   :  { %1542 = vmatpush.msrb.mxu1 %v6861_v0 }
 0x213   :  { %1526 = vmatpush.msrb.mxu0 %v6879_v27 }
 0x214   :  { %1543 = vmatpush.msrb.mxu1 %v6867_v35 }
 0x215   :  { %1527 = vmatpush.msrb.mxu0 %v6891_v59 }
 0x216   :  { %1544 = vmatpush.msrb.mxu1 %v6886_v34 }
 0x217   :  { %v1086_v7 = vpop.f32.mrf.mxu2  ;;  %v1115_v8 = vpop.f32.mrf.mxu3  ;;  %5339 = vmatmul.msk.f32.gmra.mxu1 %vm1132_vm0, %v1125_v60  ;;  %1528 = vmatpush.msrb.mxu0 %v6905_v37 }
 0x218   :  { %v1031_v9 = vpop.f32.mrf.mxu0  ;;  %v1060_v10 = vpop.f32.mrf.mxu1  ;;  %5332 = vmatmul.msk.f32.gmra.mxu0 %vm1132_vm0, %v1126_v3  ;;  %v1116_v11 = vadd.f32 %v1115_v8, %v1086_v7  ;;  %1545 = vmatpush.msrb.mxu1 %v6900_v36  ;;  %v7054_v7 = vld [vmem:[%s9301_s7 + $0x168] sm:$0xff] }
 0x219   :  { %v1061_v19 = vadd.f32 %v1060_v10, %v1031_v9  ;;  %1529 = vmatpush.msrb.mxu0 %v6917_v39 }
 0x21a   :  { %1546 = vmatpush.msrb.mxu1 %v6912_v38 }
 0x21b   :  { %1530 = vmatpush.msrb.mxu0 %v6929_v42 }
 0x21c   :  { %1547 = vmatpush.msrb.mxu1 %v6924_v40 }
 0x21d   :  { %1531 = vmatpush.msrb.mxu0 %v6943_v44 }
 0x21e   :  { %1548 = vmatpush.msrb.mxu1 %v6938_v16 }
 0x21f   :  { %v1089_v13 = vpop.f32.mrf.mxu2  ;;  %v1118_v14 = vpop.f32.mrf.mxu3  ;;  %5340 = vmatmul.msk.f32.gmra.mxu1 %vm1132_vm0, %v1126_v3  ;;  %1532 = vmatpush.msrb.mxu0 %v6957_v47 }
 0x220   :  { %v1034_v15 = vpop.f32.mrf.mxu0  ;;  %v1063_v17 = vpop.f32.mrf.mxu1  ;;  %5333 = vmatmul.msk.f32.gmra.mxu0 %vm1132_vm0, %v1127_v12  ;;  %v1119_v2 = vadd.f32 %v1118_v14, %v1089_v13  ;;  %1549 = vmatpush.msrb.mxu1 %v6952_v46  ;;  %v7076_v13 = vld [vmem:[%s9301_s7 + $0x1f8] sm:$0xff] }
 0x221   :  { %v1064_v18 = vadd.f32 %v1063_v17, %v1034_v15  ;;  %1533 = vmatpush.msrb.mxu0 %v6969_v26  ;;  %v7089_v17 = vld [vmem:[%s9301_s7 + $0x158] sm:$0xff] }
 0x222   :  { %1550 = vmatpush.msrb.mxu1 %v6964_v50 }
 0x223   :  { %1251 = vmatpush.msra.mxu2 %v1064_v18  ;;  %1534 = vmatpush.msrb.mxu0 %v6981_v49  ;;  %v7094_v18 = vld [vmem:[%s9301_s7 + $0x1f0] sm:$0xff] }
 0x224   :  { %1551 = vmatpush.msrb.mxu1 %v6976_v48 }
 0x225   :  { %1252 = vmatpush.msra.mxu2 %v1061_v19  ;;  %1535 = vmatpush.msrb.mxu0 %v6995_v53 }
 0x226   :  { %1552 = vmatpush.msrb.mxu1 %v6990_v52 }
 0x227   :  { %v1092_v24 = vpop.f32.mrf.mxu2  ;;  %v1121_v5 = vpop.f32.mrf.mxu3  ;;  %1253 = vmatpush.msra.mxu2 %v1058_v21  ;;  %5341 = vmatmul.msk.f32.gmra.mxu1 %vm1132_vm0, %v1127_v12 }
 0x228   :  { %v1122_v6 = vadd.f32 %v1121_v5, %v1092_v24  ;;  %5334 = vmatmul.msk.f32.gmra.mxu0 %vm1132_vm0, %v1128_v22  ;;  %1553 = vmatpush.msrb.mxu1 %v7004_v56  ;;  %v7115_v24 = vld [vmem:[%s9301_s7 + $0x148] sm:$0xff]  ;;  %v7124_v5 = vld [vmem:[%s9301_s7 + $0x1e0] sm:$0xff] }
 0x229   :  { %1254 = vmatpush.msra.mxu2 %v1055_v23  ;;  %1536 = vmatpush.msrb.mxu0 %v7009_v57  ;;  %v7110_v23 = vld [vmem:[%s9301_s7 + $0x1e8] sm:$0xff] }
 0x22a   :  { %1292 = vmatpush.msra.mxu3 %v1122_v6  ;;  %5346 = vmatmul.msk.f32.vlgmr.msra.gmra.mxu2 %vm1132_vm0, %v1124_v51 }
 0x22b   :  { %1601 = vmatpush.msra.mxu0 %v6832_v29  ;;  %1554 = vmatpush.msrb.mxu1 %v7016_v58 }
 0x22c   :  { %1293 = vmatpush.msra.mxu3 %v1119_v2  ;;  %1561 = vmatpush.msrb.mxu2 %v7041_v1 }
 0x22d   :  { %1602 = vmatpush.msra.mxu0 %v6838_v30 }
 0x22e   :  { %1294 = vmatpush.msra.mxu3 %v1116_v11 }
 0x22f   :  { %5342 = vmatmul.msk.f32.gmra.mxu1 %vm1132_vm0, %v1128_v22  ;;  %1603 = vmatpush.msra.mxu0 %v6844_v31 }
 0x230   :  { %1295 = vmatpush.msra.mxu3 %v1113_v55  ;;  %5335 = vmatmul.msk.f32.gmra.mxu0 %vm1132_vm0, %v1129_v20  ;;  %v7138_v55 = vld [vmem:[%s9301_s7 + $0x140] sm:$0xff] }
 0x231   :  { %5354 = vmatmul.msk.f32.vlgmr.msra.gmra.mxu3 %vm1132_vm0, %v1124_v51  ;;  %1604 = vmatpush.msra.mxu0 %v6855_v32  ;;  %v7161_v32 = vld [vmem:[%s9301_s7 + $0x138] sm:$0xff] }
 0x232   :  { %5347 = vmatmul.msk.f32.gmra.mxu2 %vm1132_vm0, %v1125_v60  ;;  %1581 = vmatpush.msrb.mxu3 %v7076_v13 }
 0x233   :  { %1605 = vmatpush.msra.mxu0 %v6872_v41 }
 0x234   :  { %1582 = vmatpush.msrb.mxu3 %v7094_v18 }
 0x235   :  { %1606 = vmatpush.msra.mxu0 %v6879_v27 }
 0x236   :  { %1583 = vmatpush.msrb.mxu3 %v7110_v23 }
 0x237   :  { %5343 = vmatmul.msk.f32.gmra.mxu1 %vm1132_vm0, %v1129_v20  ;;  %1607 = vmatpush.msra.mxu0 %v6891_v59  ;;  %v7184_v59 = vld [vmem:[%s9301_s7 + $0x1c8] sm:$0xff] }
 0x238   :  { %5336 = vmatmul.msk.f32.gmra.mxu0 %vm1132_vm0, %v1130_v25  ;;  %1584 = vmatpush.msrb.mxu3 %v7124_v5 }
 0x239   :  { %5355 = vmatmul.msk.f32.gmra.mxu3 %vm1132_vm0, %v1125_v60  ;;  %v7023_v60 = vld [vmem:[%s9301_s7 + $0x88] sm:$0xff]  ;;  %1608 = vmatpush.msra.mxu0 %v6905_v37 }
 0x23a   :  { %5348 = vmatmul.msk.f32.gmra.mxu2 %vm1132_vm0, %v1126_v3  ;;  %1555 = vmatpush.msrb.mxu1 %v7023_v60 }
 0x23b   :  { %1609 = vmatpush.msra.mxu0 %v6917_v39  ;;  %v7200_v39 = vld [vmem:[%s9301_s7 + $0x1c0] sm:$0xff] }
 0x23c   :  { %1556 = vmatpush.msrb.mxu1 %v7032_v62 }
 0x23d   :  { %1610 = vmatpush.msra.mxu0 %v6929_v42 }
 0x23e   :  { %1621 = vmatpush.msra.mxu1 %v6850_v33 }
 0x23f   :  { %5344 = vmatmul.msk.f32.gmra.mxu1 %vm1132_vm0, %v1130_v25  ;;  %1611 = vmatpush.msra.mxu0 %v6943_v44 }
 0x240   :  { %5337 = vmatmul.msk.f32.gmra.mxu0 %vm1132_vm0, %v1131_v28  ;;  %1622 = vmatpush.msra.mxu1 %v6861_v0  ;;  %v7166_v0 = vld [vmem:[%s9301_s7 + $0x1d0] sm:$0xff] }
 0x241   :  { %5356 = vmatmul.msk.f32.gmra.mxu3 %vm1132_vm0, %v1126_v3  ;;  %v7049_v3 = vld [vmem:[%s9301_s7 + $0x170] sm:$0xff]  ;;  %1612 = vmatpush.msra.mxu0 %v6957_v47 }
 0x242   :  { %5349 = vmatmul.msk.f32.gmra.mxu2 %vm1132_vm0, %v1127_v12  ;;  %1623 = vmatpush.msra.mxu1 %v6867_v35 }
 0x243   :  { %1562 = vmatpush.msrb.mxu2 %v7049_v3  ;;  %1613 = vmatpush.msra.mxu0 %v6969_v26  ;;  %v7222_v26 = vld [vmem:[%s9301_s7 + $0x1b8] sm:$0xff] }
 0x244   :  { %1624 = vmatpush.msra.mxu1 %v6886_v34  ;;  %v7179_v34 = vld [vmem:[%s9301_s7 + $0x130] sm:$0xff] }
 0x245   :  { %1563 = vmatpush.msrb.mxu2 %v7054_v7  ;;  %1614 = vmatpush.msra.mxu0 %v6981_v49 }
 0x246   :  { %1625 = vmatpush.msra.mxu1 %v6900_v36  ;;  %v7189_v36 = vld [vmem:[%s9301_s7 + $0x128] sm:$0xff] }
 0x247   :  { %5345 = vmatmul.msk.f32.gmra.mxu1 %vm1132_vm0, %v1131_v28  ;;  %1615 = vmatpush.msra.mxu0 %v6995_v53  ;;  %v7243_v53 = vld [vmem:[%s9301_s7 + $0x1b0] sm:$0xff] }
 0x248   :  { %1626 = vmatpush.msra.mxu1 %v6912_v38 }
 0x249   :  { %5357 = vmatmul.msk.f32.gmra.mxu3 %vm1132_vm0, %v1127_v12  ;;  %v7071_v12 = vld [vmem:[%s9301_s7 + $0x160] sm:$0xff]  ;;  %1616 = vmatpush.msra.mxu0 %v7009_v57 }
 0x24a   :  { %5350 = vmatmul.msk.f32.gmra.mxu2 %vm1132_vm0, %v1128_v22  ;;  %1627 = vmatpush.msra.mxu1 %v6924_v40 }
 0x24b   :  { %1564 = vmatpush.msrb.mxu2 %v7071_v12 }
 0x24c   :  { %1628 = vmatpush.msra.mxu1 %v6938_v16 }
 0x24d   :  { %1565 = vmatpush.msrb.mxu2 %v7089_v17 }
 0x24e   :  { %1629 = vmatpush.msra.mxu1 %v6952_v46 }
 0x250   :  { %1630 = vmatpush.msra.mxu1 %v6964_v50  ;;  %v7217_v50 = vld [vmem:[%s9301_s7 + $0x120] sm:$0xff] }
 0x251   :  { %5358 = vmatmul.msk.f32.gmra.mxu3 %vm1132_vm0, %v1128_v22  ;;  %v7105_v22 = vld [vmem:[%s9301_s7 + $0x150] sm:$0xff] }
 0x252   :  { %5351 = vmatmul.msk.f32.gmra.mxu2 %vm1132_vm0, %v1129_v20  ;;  %1631 = vmatpush.msra.mxu1 %v6976_v48 }
 0x253   :  { %1566 = vmatpush.msrb.mxu2 %v7105_v22 }
 0x254   :  { %1632 = vmatpush.msra.mxu1 %v6990_v52  ;;  %v7238_v52 = vld [vmem:[%s9301_s7 + $0x118] sm:$0xff] }
 0x255   :  { %1567 = vmatpush.msrb.mxu2 %v7115_v24 }
 0x256   :  { %1633 = vmatpush.msra.mxu1 %v7004_v56  ;;  %v7264_v56 = vld [vmem:[%s9301_s7 + $0x108] sm:$0xff] }
 0x257   :  { %1568 = vmatpush.msrb.mxu2 %v7138_v55 }
 0x258   :  { %1634 = vmatpush.msra.mxu1 %v7016_v58 }
 0x259   :  { %5359 = vmatmul.msk.f32.gmra.mxu3 %vm1132_vm0, %v1129_v20  ;;  %1569 = vmatpush.msrb.mxu2 %v7161_v32 }
 0x25a   :  { %5352 = vmatmul.msk.f32.gmra.mxu2 %vm1132_vm0, %v1130_v25  ;;  %1635 = vmatpush.msra.mxu1 %v7023_v60  ;;  %v7294_v60 = vld [vmem:[%s9301_s7 + $0x198] sm:$0xff] }
 0x25b   :  { %1570 = vmatpush.msrb.mxu2 %v7179_v34 }
 0x25c   :  { %1636 = vmatpush.msra.mxu1 %v7032_v62  ;;  %v7311_v62 = vld [vmem:[%s9301_s7 + $0x190] sm:$0xff] }
 0x25d   :  { %1571 = vmatpush.msrb.mxu2 %v7189_v36 }
 0x25f   :  { %1572 = vmatpush.msrb.mxu2 %v7217_v50 }
 0x261   :  { %5360 = vmatmul.msk.f32.gmra.mxu3 %vm1132_vm0, %v1130_v25  ;;  %v7143_v25 = vld [vmem:[%s9301_s7 + $0x1d8] sm:$0xff]  ;;  %1573 = vmatpush.msrb.mxu2 %v7238_v52 }
 0x262   :  { %5353 = vmatmul.msk.f32.gmra.mxu2 %vm1132_vm0, %v1131_v28  ;;  %1585 = vmatpush.msrb.mxu3 %v7143_v25 }
 0x264   :  { %1586 = vmatpush.msrb.mxu3 %v7166_v0 }
 0x266   :  { %1587 = vmatpush.msrb.mxu3 %v7184_v59 }
 0x268   :  { %1588 = vmatpush.msrb.mxu3 %v7200_v39 }
 0x269   :  { %5361 = vmatmul.msk.f32.gmra.mxu3 %vm1132_vm0, %v1131_v28 }
 0x26a   :  { %1589 = vmatpush.msrb.mxu3 %v7222_v26 }
 0x26c   :  { %1590 = vmatpush.msrb.mxu3 %v7243_v53 }
 0x285   :  { %v6893_v4 = vpop.f32.mrf.mxu0 }
 0x286   :  { %v1373_v8 = vmul.f32 %v6893_v4, %v6893_v4 }
 0x28c   :  { %v6933_v43 = vpop.f32.mrf.mxu1 }
 0x28d   :  { %v6945_v45 = vpop.f32.mrf.mxu0  ;;  %v1374_v28 = vmul.f32 %v6933_v43, %v6933_v43 }
 0x28e   :  { %v1377_v9 = vmul.f32 %v6945_v45, %v6945_v45  ;;  %v1321_v15 = vadd.f32 %v6945_v45, %v6893_v4 }
 0x290   :  { %v1405_v19 = vadd.f32 %v1377_v9, %v1373_v8 }
 0x294   :  { %v6985_v51 = vpop.f32.mrf.mxu1 }
 0x295   :  { %v6997_v54 = vpop.f32.mrf.mxu0  ;;  %v1378_v29 = vmul.f32 %v6985_v51, %v6985_v51  ;;  %v1334_v35 = vadd.f32 %v6985_v51, %v6933_v43 }
 0x296   :  { %v1381_v21 = vmul.f32 %v6997_v54, %v6997_v54  ;;  %v1322_v6 = vadd.f32 %v1321_v15, %v6997_v54 }
 0x297   :  { %v1418_v37 = vadd.f32 %v1378_v29, %v1374_v28 }
 0x298   :  { %v1406_v2 = vadd.f32 %v1405_v19, %v1381_v21 }
 0x29c   :  { %v7027_v61 = vpop.f32.mrf.mxu1 }
 0x29d   :  { %v7035_v63 = vpop.f32.mrf.mxu0  ;;  %v1382_v38 = vmul.f32 %v7027_v61, %v7027_v61  ;;  %v1335_v42 = vadd.f32 %v1334_v35, %v7027_v61 }
 0x29e   :  { %v1385_v11 = vmul.f32 %v7035_v63, %v7035_v63  ;;  %v1323_v33 = vadd.f32 %v1322_v6, %v7035_v63 }
 0x29f   :  { %v1419_v48 = vadd.f32 %v1418_v37, %v1382_v38  ;;  %v7289_v37 = vld [vmem:[%s9301_s7 + $0x100] sm:$0xff] }
 0x2a0   :  { %v1407_v41 = vadd.f32 %v1406_v2, %v1385_v11  ;;  %v7254_v2 = vld [vmem:[%s9301_s7 + $0x110] sm:$0xff]  ;;  %v7259_v11 = vld [vmem:[%s9301_s7 + $0x1a8] sm:$0xff] }
 0x2a1   :  { %1574 = vmatpush.msrb.mxu2 %v7254_v2  ;;  %1591 = vmatpush.msrb.mxu3 %v7259_v11 }
 0x2a3   :  { %1575 = vmatpush.msrb.mxu2 %v7264_v56 }
 0x2a4   :  { %v7066_v10 = vpop.f32.mrf.mxu1 }
 0x2a5   :  { %v7080_v14 = vpop.f32.mrf.mxu0  ;;  %v1386_v49 = vmul.f32 %v7066_v10, %v7066_v10  ;;  %v1336_v19 = vadd.f32 %v1335_v42, %v7066_v10  ;;  %1576 = vmatpush.msrb.mxu2 %v7289_v37 }
 0x2a6   :  { %v1389_v27 = vmul.f32 %v7080_v14, %v7080_v14  ;;  %v1324_v40 = vadd.f32 %v1323_v33, %v7080_v14  ;;  %v7275_v33 = vld [vmem:[%s9301_s7 + $0x1a0] sm:$0xff] }
 0x2a7   :  { %v1420_v28 = vadd.f32 %v1419_v48, %v1386_v49  ;;  %1592 = vmatpush.msrb.mxu3 %v7275_v33  ;;  %1641 = vmatpush.msra.mxu2 %v7041_v1 }
 0x2a8   :  { %v1408_v44 = vadd.f32 %v1407_v41, %v1389_v27 }
 0x2a9   :  { %1593 = vmatpush.msrb.mxu3 %v7294_v60  ;;  %1642 = vmatpush.msra.mxu2 %v7049_v3 }
 0x2ab   :  { %1594 = vmatpush.msrb.mxu3 %v7311_v62  ;;  %1643 = vmatpush.msra.mxu2 %v7054_v7 }
 0x2ac   :  { %v7133_v20 = vpop.f32.mrf.mxu1 }
 0x2ad   :  { %9538 = vst [vmem:[#allocation61_spill] sm:$0xff] %v7133_v20  ;;  %v7151_v30 = vpop.f32.mrf.mxu2  ;;  %v7153_v31 = vpop.f32.mrf.mxu0  ;;  %v1390_v29 = vmul.f32 %v7133_v20, %v7133_v20  ;;  %v1337_v58 = vadd.f32 %v1336_v19, %v7133_v20  ;;  %1644 = vmatpush.msra.mxu2 %v7071_v12 }
 0x2ae   :  { %v1393_v46 = vmul.f32 %v7153_v31, %v7153_v31  ;;  %v1325_v15 = vadd.f32 %v1324_v40, %v7153_v31 }
 0x2af   :  { %v1421_v38 = vadd.f32 %v1420_v28, %v1390_v29  ;;  %v7327_v29 = vld [vmem:[%s9301_s7 + $0x180] sm:$0xff]  ;;  %1645 = vmatpush.msra.mxu2 %v7089_v17 }
 0x2b0   :  { %v1409_v21 = vadd.f32 %v1408_v44, %v1393_v46 }
 0x2b1   :  { %1646 = vmatpush.msra.mxu2 %v7105_v22 }
 0x2b3   :  { %1647 = vmatpush.msra.mxu2 %v7115_v24 }
 0x2b4   :  { %v7208_v16 = vpop.f32.mrf.mxu3  ;;  %v7212_v47 = vpop.f32.mrf.mxu1 }
 0x2b5   :  { %9539 = vst [vmem:[#allocation78_spill] sm:$0xff] %v7212_v47  ;;  %v7228_v8 = vpop.f32.mrf.mxu2  ;;  %v7230_v9 = vpop.f32.mrf.mxu0  ;;  %v1394_v42 = vmul.f32 %v7212_v47, %v7212_v47  ;;  %v1338_v49 = vadd.f32 %v1337_v58, %v7212_v47  ;;  %1648 = vmatpush.msra.mxu2 %v7138_v55 }
 0x2b6   :  { %v1397_v6 = vmul.f32 %v7230_v9, %v7230_v9  ;;  %v1326_v35 = vadd.f32 %v1325_v15, %v7230_v9 }
 0x2b7   :  { %1649 = vmatpush.msra.mxu2 %v7161_v32 }
 0x2b8   :  { %v1410_v41 = vadd.f32 %v1409_v21, %v1397_v6  ;;  %v7319_v21 = vld [vmem:[%s9301_s7 + $0x188] sm:$0xff]  ;;  %v1422_v6 = vadd.f32 %v1421_v38, %v1394_v42 }
 0x2b9   :  { %1595 = vmatpush.msrb.mxu3 %v7319_v21  ;;  %1650 = vmatpush.msra.mxu2 %v7179_v34  ;;  %v1347_v34 = vadd.f32 %v7228_v8, %v7151_v30 }
 0x2bb   :  { %1596 = vmatpush.msrb.mxu3 %v7327_v29  ;;  %1651 = vmatpush.msra.mxu2 %v7189_v36 }
 0x2bc   :  { %v7282_v57 = vpop.f32.mrf.mxu3  ;;  %v7284_v27 = vpop.f32.mrf.mxu1 }
 0x2bd   :  { %9540 = vst [vmem:[#allocation97_spill] sm:$0xff] %v7284_v27  ;;  %v7297_v40 = vpop.f32.mrf.mxu2  ;;  %v7301_v44 = vpop.f32.mrf.mxu0  ;;  %v1398_v28 = vmul.f32 %v7284_v27, %v7284_v27  ;;  %v1339_v58 = vadd.f32 %v1338_v49, %v7284_v27  ;;  %1661 = vmatpush.msra.mxu3 %v7076_v13  ;;  %1652 = vmatpush.msra.mxu2 %v7217_v50 }
 0x2be   :  { %v1327_v46 = vadd.f32 %v1326_v35, %v7301_v44  ;;  %v1401_v48 = vmul.f32 %v7301_v44, %v7301_v44 }
 0x2bf   :  { %v1423_v47 = vadd.f32 %v1422_v6, %v1398_v28  ;;  %1662 = vmatpush.msra.mxu3 %v7094_v18  ;;  %1653 = vmatpush.msra.mxu2 %v7238_v52 }
 0x2c0   :  { %v1328_v15 = vrot.slane %v1327_v46, 4  ;;  %v1411_v19 = vadd.f32 %v1410_v41, %v1401_v48 }
 0x2c1   :  { %1663 = vmatpush.msra.mxu3 %v7110_v23  ;;  %1654 = vmatpush.msra.mxu2 %v7254_v2 }
 0x2c2   :  { %v1329_v1 = vadd.f32 %v1328_v15, %v1327_v46  ;;  %v1412_v35 = vrot.slane %v1411_v19, 4 }
 0x2c3   :  { %1664 = vmatpush.msra.mxu3 %v7124_v5  ;;  %1655 = vmatpush.msra.mxu2 %v7264_v56  ;;  %v1380_v56 = vmul.f32 %v7282_v57, %v7282_v57 }
 0x2c4   :  { %v7332_v41 = vpop.f32.mrf.mxu3  ;;  %v1330_v38 = vrot.slane %v1329_v1, 2  ;;  %v1413_v42 = vadd.f32 %v1412_v35, %v1411_v19  ;;  %v7334_v48 = vpop.f32.mrf.mxu1 }
 0x2c5   :  { %v7337_v3 = vpop.f32.mrf.mxu2  ;;  %v1340_v46 = vadd.f32 %v1339_v58, %v7334_v48  ;;  %v1402_v15 = vmul.f32 %v7334_v48, %v7334_v48  ;;  %1665 = vmatpush.msra.mxu3 %v7143_v25  ;;  %v1379_v25 = vmul.f32 %v7228_v8, %v7228_v8  ;;  %1656 = vmatpush.msra.mxu2 %v7289_v37 }
 0x2c6   :  { %v1331_v49 = vadd.f32 %v1330_v38, %v1329_v1  ;;  %v1414_v7 = vrot.slane %v1413_v42, 2  ;;  %v1387_v50 = vmul.f32 %v7337_v3, %v7337_v3  ;;  %v1376_v37 = vmul.f32 %v7208_v16, %v7208_v16 }
 0x2c7   :  { %v1341_v27 = vrot.slane %v1340_v46, 4  ;;  %v1424_v19 = vadd.f32 %v1423_v47, %v1402_v15  ;;  %1666 = vmatpush.msra.mxu3 %v7166_v0  ;;  %v1375_v0 = vmul.f32 %v7151_v30, %v7151_v30  ;;  %v1360_v15 = vadd.f32 %v7282_v57, %v7208_v16 }
 0x2c8   :  { %v1332_v35 = vrot.slane %v1331_v49, 1  ;;  %v1415_v58 = vadd.f32 %v1414_v7, %v1413_v42 }
 0x2c9   :  { %v1342_v20 = vadd.f32 %v1341_v27, %v1340_v46  ;;  %v1425_v6 = vrot.slane %v1424_v19, 4  ;;  %1667 = vmatpush.msra.mxu3 %v7184_v59  ;;  %v1383_v59 = vmul.f32 %v7297_v40, %v7297_v40  ;;  %v1431_v36 = vadd.f32 %v1379_v25, %v1375_v0 }
 0x2ca   :  { %v1333_v28 = vadd.f32 %v1332_v35, %v1331_v49  ;;  %v1416_v22 = vrot.slane %v1415_v58, 1  ;;  %v1444_v35 = vadd.f32 %v1380_v56, %v1376_v37 }
 0x2cb   :  { %v1343_v12 = vrot.slane %v1342_v20, 2  ;;  %v1426_v1 = vadd.f32 %v1425_v6, %v1424_v19  ;;  %1668 = vmatpush.msra.mxu3 %v7200_v39  ;;  %v1348_v39 = vadd.f32 %v1347_v34, %v7297_v40 }
 0x2cc   :  { %v7349_v13 = vpop.f32.mrf.mxu3  ;;  %1537 = vmatmul.f32.vlgmr.msrb.gmra.mxu0 %v1333_v28  ;;  %v1417_v38 = vadd.f32 %v1416_v22, %v1415_v58 }
 0x2cd   :  { %v7352_v17 = vpop.f32.mrf.mxu2  ;;  %v1344_v18 = vadd.f32 %v1343_v12, %v1342_v20  ;;  %v1427_v47 = vrot.slane %v1426_v1, 2  ;;  %1669 = vmatpush.msra.mxu3 %v7222_v26  ;;  %v1349_v2 = vadd.f32 %v1348_v39, %v7337_v3  ;;  %v1388_v6 = vmul.f32 %v7349_v13, %v7349_v13 }
 0x2cf   :  { %v1345_v27 = vrot.slane %v1344_v18, 1  ;;  %v1428_v24 = vadd.f32 %v1427_v47, %v1426_v1  ;;  %1670 = vmatpush.msra.mxu3 %v7243_v53  ;;  %v1432_v53 = vadd.f32 %v1431_v36, %v1383_v59  ;;  %v1350_v46 = vadd.f32 %v1349_v2, %v7352_v17 }
 0x2d1   :  { %v1346_v23 = vadd.f32 %v1345_v27, %v1344_v18  ;;  %v1429_v55 = vrot.slane %v1428_v24, 1  ;;  %1671 = vmatpush.msra.mxu3 %v7259_v11  ;;  %v1391_v11 = vmul.f32 %v7352_v17, %v7352_v17  ;;  %v1433_v42 = vadd.f32 %v1432_v53, %v1387_v50 }
 0x2d3   :  { %1557 = vmatmul.f32.vlgmr.msrb.gmra.mxu1 %v1346_v23  ;;  %v1430_v32 = vadd.f32 %v1429_v55, %v1428_v24  ;;  %1672 = vmatpush.msra.mxu3 %v7275_v33  ;;  %v1434_v49 = vadd.f32 %v1433_v42, %v1391_v11 }
 0x2d4   :  { %v7361_v5 = vpop.f32.mrf.mxu3  ;;  %1617 = vmatmul.f32.vlgmr.msra.gmra.mxu0 %v1417_v38 }
 0x2d5   :  { %v7364_v20 = vpop.f32.mrf.mxu2  ;;  %1673 = vmatpush.msra.mxu3 %v7294_v60  ;;  %v1384_v60 = vmul.f32 %v7332_v41, %v7332_v41  ;;  %v1392_v47 = vmul.f32 %v7361_v5, %v7361_v5 }
 0x2d6   :  { %v1395_v33 = vmul.f32 %v7364_v20, %v7364_v20  ;;  %v1351_v7 = vadd.f32 %v1350_v46, %v7364_v20 }
 0x2d7   :  { %1674 = vmatpush.msra.mxu3 %v7311_v62  ;;  %v1361_v62 = vadd.f32 %v1360_v15, %v7332_v41  ;;  %v1445_v1 = vadd.f32 %v1444_v35, %v1384_v60 }
 0x2d8   :  { %v1435_v28 = vadd.f32 %v1434_v49, %v1395_v33 }
 0x2d9   :  { %1675 = vmatpush.msra.mxu3 %v7319_v21  ;;  %v1362_v18 = vadd.f32 %v1361_v62, %v7349_v13  ;;  %v1446_v24 = vadd.f32 %v1445_v1, %v1388_v6 }
 0x2db   :  { %1637 = vmatmul.f32.vlgmr.msra.gmra.mxu1 %v1430_v32  ;;  %1676 = vmatpush.msra.mxu3 %v7327_v29  ;;  %v1363_v38 = vadd.f32 %v1362_v18, %v7361_v5  ;;  %v1447_v32 = vadd.f32 %v1446_v24, %v1392_v47 }
 0x2dc   :  { %v7384_v26 = vpop.f32.mrf.mxu3 }
 0x2dd   :  { %v7387_v52 = vpop.f32.mrf.mxu2  ;;  %v1396_v29 = vmul.f32 %v7384_v26, %v7384_v26  ;;  %v1364_v0 = vadd.f32 %v1363_v38, %v7384_v26 }
 0x2de   :  { %v1399_v19 = vmul.f32 %v7387_v52, %v7387_v52  ;;  %v1352_v58 = vadd.f32 %v1351_v7, %v7387_v52 }
 0x2df   :  { %v1448_v39 = vadd.f32 %v1447_v32, %v1396_v29  ;;  %v1703_v32 = vld [vmem:[%s9302_s8 + $0x20] sm:$0xff] }
 0x2e0   :  { %v1436_v22 = vadd.f32 %v1435_v28, %v1399_v19  ;;  %1725 = vmatpush.msrb.mxu0 %v1703_v32 }
 0x2e4   :  { %v7414_v12 = vpop.f32.mrf.mxu3 }
 0x2e5   :  { %v7420_v21 = vpop.f32.mrf.mxu2  ;;  %v1400_v34 = vmul.f32 %v7414_v12, %v7414_v12  ;;  %v1365_v50 = vadd.f32 %v1364_v0, %v7414_v12  ;;  %v1704_v0 = vld [vmem:[%s9302_s8 + $0x28] sm:$0xff] }
 0x2e6   :  { %v1353_v27 = vadd.f32 %v1352_v58, %v7420_v21  ;;  %v1403_v23 = vmul.f32 %v7420_v21, %v7420_v21  ;;  %1745 = vmatpush.msrb.mxu1 %v1704_v0 }
 0x2e7   :  { %v1449_v56 = vadd.f32 %v1448_v39, %v1400_v34  ;;  %v1705_v34 = vld [vmem:[%s9302_s8 + $0x30] sm:$0xff] }
 0x2e8   :  { %v1354_v55 = vrot.slane %v1353_v27, 4  ;;  %v1437_v25 = vadd.f32 %v1436_v22, %v1403_v23 }
 0x2ea   :  { %v1355_v59 = vadd.f32 %v1354_v55, %v1353_v27  ;;  %v1438_v36 = vrot.slane %v1437_v25, 4 }
 0x2ec   :  { %v1356_v53 = vrot.slane %v1355_v59, 2  ;;  %v1439_v2 = vadd.f32 %v1438_v36, %v1437_v25  ;;  %v7432_v11 = vpop.f32.mrf.mxu3  ;;  %v1706_v36 = vld [vmem:[%s9302_s8 + $0x38] sm:$0xff] }
 0x2ed   :  { %v1366_v42 = vadd.f32 %v1365_v50, %v7432_v11  ;;  %v1404_v46 = vmul.f32 %v7432_v11, %v7432_v11  ;;  %v1699_v50 = vld [vmem:[%s9302_s8] sm:$0xff] }
 0x2ee   :  { %v1357_v33 = vadd.f32 %v1356_v53, %v1355_v59  ;;  %v1440_v37 = vrot.slane %v1439_v2, 2  ;;  %v1700_v53 = vld [vmem:[%s9302_s8 + $0x8] sm:$0xff]  ;;  %1726 = vmatpush.msrb.mxu0 %v1699_v50 }
 0x2ef   :  { %v1367_v15 = vrot.slane %v1366_v42, 4  ;;  %v1450_v60 = vadd.f32 %v1449_v56, %v1404_v46  ;;  %1746 = vmatpush.msrb.mxu1 %v1700_v53 }
 0x2f0   :  { %v1358_v49 = vrot.slane %v1357_v33, 1  ;;  %v1441_v62 = vadd.f32 %v1440_v37, %v1439_v2  ;;  %v1701_v2 = vld [vmem:[%s9302_s8 + $0x10] sm:$0xff]  ;;  %1808 = vmatpush.msra.mxu0 %v1703_v32 }
 0x2f1   :  { %v1368_v7 = vadd.f32 %v1367_v15, %v1366_v42  ;;  %v1451_v19 = vrot.slane %v1450_v60, 4  ;;  %v1702_v42 = vld [vmem:[%s9302_s8 + $0x18] sm:$0xff]  ;;  %1828 = vmatpush.msra.mxu1 %v1704_v0 }
 0x2f2   :  { %v1359_v35 = vadd.f32 %v1358_v49, %v1357_v33  ;;  %v1442_v18 = vrot.slane %v1441_v62, 1  ;;  %1809 = vmatpush.msra.mxu0 %v1699_v50 }
 0x2f3   :  { %v1369_v6 = vrot.slane %v1368_v7, 2  ;;  %v1452_v28 = vadd.f32 %v1451_v19, %v1450_v60  ;;  %1829 = vmatpush.msra.mxu1 %v1700_v53 }
 0x2f4   :  { %1577 = vmatmul.f32.vlgmr.msrb.gmra.mxu2 %v1359_v35  ;;  %v1443_v23 = vadd.f32 %v1442_v18, %v1441_v62 }
 0x2f5   :  { %v1370_v58 = vadd.f32 %v1369_v6, %v1368_v7  ;;  %v1453_v1 = vrot.slane %v1452_v28, 2  ;;  %1765 = vmatpush.msrb.mxu2 %v1705_v34 }
 0x2f7   :  { %v1371_v47 = vrot.slane %v1370_v58, 1  ;;  %v1454_v27 = vadd.f32 %v1453_v1, %v1452_v28  ;;  %1766 = vmatpush.msrb.mxu2 %v1701_v2 }
 0x2f9   :  { %v1372_v22 = vadd.f32 %v1371_v47, %v1370_v58  ;;  %v1455_v24 = vrot.slane %v1454_v27, 1 }
 0x2fb   :  { %1597 = vmatmul.f32.vlgmr.msrb.gmra.mxu3 %v1372_v22  ;;  %v1456_v38 = vadd.f32 %v1455_v24, %v1454_v27  ;;  %v1683_v22 = vld [vmem:[%s9303_s9] sm:$0x1] }
 0x2fc   :  { %1657 = vmatmul.f32.vlgmr.msra.gmra.mxu2 %v1443_v23  ;;  %1785 = vmatpush.msrb.mxu3 %v1706_v36 }
 0x2fd   :  { %1848 = vmatpush.msra.mxu2 %v1705_v34 }
 0x2fe   :  { %1786 = vmatpush.msrb.mxu3 %v1702_v42 }
 0x2ff   :  { %1849 = vmatpush.msra.mxu2 %v1701_v2 }
 0x303   :  { %1677 = vmatmul.f32.vlgmr.msra.gmra.mxu3 %v1456_v38 }
 0x304   :  { %1868 = vmatpush.msra.mxu3 %v1706_v36 }
 0x306   :  { %1869 = vmatpush.msra.mxu3 %v1702_v42 }
 0x349   :  { %v1538_v55 = vpop.f32.mrf.mxu0 }
 0x350   :  { %v1558_v29 = vpop.f32.mrf.mxu1 }
 0x351   :  { %v1559_v39 = vadd.f32 %v1558_v29, %v1538_v55  ;;  %v1618_v33 = vpop.f32.mrf.mxu0  ;;  %v1696_v29 = vld [vmem:[%s9304_s10] sm:$0x1] }
 0x358   :  { %v1638_v56 = vpop.f32.mrf.mxu1 }
 0x359   :  { %v1639_v15 = vadd.f32 %v1638_v56, %v1618_v33 }
 0x377   :  { %v1578_v25 = vpop.f32.mrf.mxu2 }
 0x378   :  { %v1579_v46 = vadd.f32 %v1578_v25, %v1559_v39 }
 0x37e   :  { %v1598_v59 = vpop.f32.mrf.mxu3 }
 0x37f   :  { %v1658_v37 = vpop.f32.mrf.mxu2  ;;  %v1599_v60 = vadd.f32 %v1598_v59, %v1579_v46 }
 0x380   :  { %v1659_v49 = vadd.f32 %v1658_v37, %v1639_v15 }
 0x381   :  { %v1681_v19 = vmul.f32 %v1599_v60, %v1599_v60 }
 0x386   :  { %v1678_v7 = vpop.f32.mrf.mxu3 }
 0x387   :  { %v1679_v35 = vadd.f32 %v1678_v7, %v1659_v49  ;;  %v9541_v49 = vld [vmem:[#allocation61_spill] sm:$0xff]  ;;  %v9542_v7 = vld [vmem:[#allocation78_spill] sm:$0xff] }
 0x389   :  { %v1682_v62 = vsub.f32 %v1679_v35, %v1681_v19  ;;  %v9543_v35 = vld [vmem:[#allocation97_spill] sm:$0xff] }
 0x38b   :  { %v1684_v6 = vadd.f32 1e-05, %v1682_v62 }
 0x38d   :  { %5486 = vrsqrt.f32 %v1684_v6  ;;  %vm1691_vm2 = vweird.f32 %v1684_v6 }
 0x393   :  { %v5487_v28 = vpop.eup %5486 }
 0x394   :  { %v1686_v58 = vmul.f32 %v5487_v28, %v1684_v6  ;;  %vm1692_vm1 = vweird.f32 %v5487_v28 }
 0x395   :  { %vm1693_vm3 = vmor %vm1691_vm2, %vm1692_vm1 }
 0x396   :  { %v1687_v1 = vmul.f32 %v5487_v28, %v1686_v58 }
 0x398   :  { %v1688_v18 = vmul.f32 0.5, %v1687_v1 }
 0x39a   :  { %v1689_v47 = vsub.f32 1.5, %v1688_v18 }
 0x39c   :  { %v1690_v27 = vmul.f32 %v5487_v28, %v1689_v47 }
 0x39e   :  { %v1694_v23 = vsel %vm1693_vm3, %v5487_v28, %v1690_v27 }
 0x39f   :  { %v1695_v24 = vmul.f32 %v1694_v23, %v1683_v22 }
 0x3a1   :  { %5362 = vmatmul.msk.f32.vlgmr.msrb.gmra.mxu0 %vm1707_vm4, %v1695_v24  ;;  %5363 = vmatmul.msk.f32.vlgmr.msrb.gmra.mxu1 %vm1707_vm4, %v1695_v24  ;;  %v1697_v38 = vmul.f32 %v1695_v24, %v1599_v60 }
 0x3a2   :  { %5364 = vmatmul.msk.f32.vlgmr.msrb.gmra.mxu2 %vm1707_vm4, %v1695_v24  ;;  %5365 = vmatmul.msk.f32.vlgmr.msrb.gmra.mxu3 %vm1707_vm4, %v1695_v24 }
 0x3a3   :  { %v1698_v55 = vsub.f32 %v1696_v29, %v1697_v38 }
 0x3a9   :  { %5366 = vmatmul.msk.f32.vlgmr.msra.gmra.mxu0 %vm1707_vm4, %v1698_v55  ;;  %5367 = vmatmul.msk.f32.vlgmr.msra.gmra.mxu1 %vm1707_vm4, %v1698_v55 }
 0x3aa   :  { %5368 = vmatmul.msk.f32.vlgmr.msra.gmra.mxu2 %vm1707_vm4, %v1698_v55  ;;  %5369 = vmatmul.msk.f32.vlgmr.msra.gmra.mxu3 %vm1707_vm4, %v1698_v55 }
 0x41e   :  { %v1728_v25 = vpop.f32.mrf.mxu0  ;;  %v1748_v32 = vpop.f32.mrf.mxu1 }
 0x41f   :  { %v1874_v0 = vperm.slane %v1728_v25, 0  ;;  %v1875_v34 = vperm.slane %v1748_v32, 0 }
 0x421   :  { %v1878_v59 = vmul.f32 %v1874_v0, %v6893_v4  ;;  %v1882_v36 = vmul.f32 %v1874_v0, %v6945_v45  ;;  %v1886_v39 = vmul.f32 %v1874_v0, %v6997_v54  ;;  %v1890_v50 = vmul.f32 %v1874_v0, %v7035_v63 }
 0x422   :  { %v1894_v53 = vmul.f32 %v1874_v0, %v7080_v14  ;;  %v1898_v2 = vmul.f32 %v1874_v0, %v7153_v31  ;;  %v1902_v46 = vmul.f32 %v1874_v0, %v7230_v9  ;;  %v1906_v33 = vmul.f32 %v1874_v0, %v7301_v44 }
 0x423   :  { %v1879_v37 = vmul.f32 %v1875_v34, %v6933_v43  ;;  %v1883_v45 = vmul.f32 %v1875_v34, %v6985_v51  ;;  %v1887_v54 = vmul.f32 %v1875_v34, %v7027_v61  ;;  %v1891_v63 = vmul.f32 %v1875_v34, %v7066_v10 }
 0x424   :  { %v1895_v31 = vmul.f32 %v1875_v34, %v9541_v49  ;;  %v1899_v19 = vmul.f32 %v1875_v34, %v9542_v7  ;;  %v1903_v9 = vmul.f32 %v1875_v34, %v9543_v35  ;;  %v1907_v44 = vmul.f32 %v1875_v34, %v7334_v48 }
 0x425   :  { %v1768_v56 = vpop.f32.mrf.mxu2  ;;  %v1788_v42 = vpop.f32.mrf.mxu3 }
 0x426   :  { %v1876_v15 = vperm.slane %v1768_v56, 0  ;;  %v1811_v4 = vpop.f32.mrf.mxu0  ;;  %v1831_v60 = vpop.f32.mrf.mxu1  ;;  %v1877_v14 = vperm.slane %v1788_v42, 0 }
 0x427   :  { %v1910_v62 = vperm.slane %v1811_v4, 0  ;;  %v1911_v28 = vperm.slane %v1831_v60, 0 }
 0x428   :  { %v1880_v43 = vmul.f32 %v1876_v15, %v7151_v30  ;;  %v1884_v6 = vmul.f32 %v1876_v15, %v7228_v8  ;;  %v1888_v51 = vmul.f32 %v1876_v15, %v7297_v40  ;;  %v1892_v61 = vmul.f32 %v1876_v15, %v7337_v3 }
 0x429   :  { %v1896_v10 = vmul.f32 %v1876_v15, %v7352_v17  ;;  %v1900_v58 = vmul.f32 %v1876_v15, %v7364_v20  ;;  %v1904_v1 = vmul.f32 %v1876_v15, %v7387_v52  ;;  %v1908_v18 = vmul.f32 %v1876_v15, %v7420_v21 }
 0x42a   :  { %v1881_v47 = vmul.f32 %v1877_v14, %v7208_v16  ;;  %v1885_v48 = vmul.f32 %v1877_v14, %v7282_v57  ;;  %v7493_v30 = vadd.f32 %v1910_v62, %v1878_v59  ;;  %v7495_v8 = vadd.f32 %v1910_v62, %v1882_v36 }
 0x42b   :  { %v7497_v22 = vadd.f32 %v1910_v62, %v1886_v39  ;;  %v7499_v40 = vadd.f32 %v1910_v62, %v1890_v50  ;;  %v7501_v3 = vadd.f32 %v1910_v62, %v1894_v53  ;;  %v7503_v17 = vadd.f32 %v1910_v62, %v1898_v2 }
 0x42c   :  { %v7505_v20 = vadd.f32 %v1910_v62, %v1902_v46  ;;  %v7507_v52 = vadd.f32 %v1910_v62, %v1906_v33  ;;  %v7509_v27 = vadd.f32 %v1911_v28, %v1879_v37  ;;  %v7511_v57 = vadd.f32 %v1911_v28, %v1883_v45 }
 0x42d   :  { %v1851_v21 = vpop.f32.mrf.mxu2  ;;  %v1871_v16 = vpop.f32.mrf.mxu3  ;;  %v7513_v23 = vadd.f32 %v1911_v28, %v1887_v54  ;;  %v7515_v24 = vadd.f32 %v1911_v28, %v1891_v63  ;;  %v7517_v38 = vadd.f32 %v1911_v28, %v1895_v31  ;;  %v7519_v29 = vadd.f32 %v1911_v28, %v1899_v19 }
 0x42e   :  { %v7521_v55 = vadd.f32 %v1911_v28, %v1903_v9  ;;  %v7523_v25 = vadd.f32 %v1911_v28, %v1907_v44  ;;  %v1889_v32 = vmul.f32 %v1877_v14, %v7332_v41  ;;  %v1893_v0 = vmul.f32 %v1877_v14, %v7349_v13 }
 0x42f   :  { %v1912_v34 = vperm.slane %v1851_v21, 0  ;;  %v1913_v59 = vperm.slane %v1871_v16, 0  ;;  %v1897_v36 = vmul.f32 %v1877_v14, %v7361_v5  ;;  %v1901_v39 = vmul.f32 %v1877_v14, %v7384_v26 }
 0x430   :  { %v1905_v50 = vmul.f32 %v1877_v14, %v7414_v12  ;;  %v1909_v53 = vmul.f32 %v1877_v14, %v7432_v11 }
 0x431   :  { %v7531_v2 = vadd.f32 %v1912_v34, %v1880_v43  ;;  %v7533_v56 = vadd.f32 %v1912_v34, %v1884_v6  ;;  %v7535_v42 = vadd.f32 %v1912_v34, %v1888_v51  ;;  %v7537_v46 = vadd.f32 %v1912_v34, %v1892_v61 }
 0x432   :  { %v7539_v41 = vadd.f32 %v1912_v34, %v1896_v10  ;;  %v7541_v13 = vadd.f32 %v1912_v34, %v1900_v58  ;;  %v7543_v33 = vadd.f32 %v1912_v34, %v1904_v1  ;;  %v7545_v5 = vadd.f32 %v1912_v34, %v1908_v18 }
 0x433   :  { %v7547_v26 = vadd.f32 %v1913_v59, %v1881_v47  ;;  %v7549_v12 = vadd.f32 %v1913_v59, %v1885_v48  ;;  %v7551_v11 = vadd.f32 %v1913_v59, %v1889_v32  ;;  %v7553_v37 = vadd.f32 %v1913_v59, %v1893_v0 }
 0x434   :  { %v7555_v15 = vadd.f32 %v1913_v59, %v1897_v36  ;;  %v7557_v4 = vadd.f32 %v1913_v59, %v1901_v39  ;;  %v7559_v60 = vadd.f32 %v1913_v59, %v1905_v50  ;;  %v7561_v45 = vadd.f32 %v1913_v59, %v1909_v53 }
 0x435   :  { %5742 = dma.done.wait [#allocation7 + $0x2], 16384 }
 0x436   :  { %5743 = vsyncadd [#allocation7 + $0x2], 4294950912  ;;  %v2042_v54 = vld [vmem:[#allocation4 + $0x2f0] sm:$0xff]  ;;  %v2040_v63 = vld [vmem:[#allocation4 + $0x2e0] sm:$0xff] }
 0x437   :  { %v2074_v14 = vld [vmem:[#allocation4 + $0x3f0] sm:$0xff]  ;;  %2158 = vmatpush.msrb.mxu2 %v2042_v54  ;;  %v2072_v19 = vld [vmem:[#allocation4 + $0x3e0] sm:$0xff] }
 0x438   :  { %2199 = vmatpush.msrb.mxu3 %v2074_v14  ;;  %v1978_v49 = vld [vmem:[#allocation4 + $0xf0] sm:$0xff]  ;;  %v1976_v35 = vld [vmem:[#allocation4 + $0xe0] sm:$0xff] }
 0x439   :  { %v2010_v31 = vld [vmem:[#allocation4 + $0x1f0] sm:$0xff]  ;;  %2076 = vmatpush.msrb.mxu0 %v1978_v49  ;;  %v2008_v9 = vld [vmem:[#allocation4 + $0x1e0] sm:$0xff]  ;;  %2159 = vmatpush.msrb.mxu2 %v2040_v63 }
 0x43a   :  { %v2038_v7 = vld [vmem:[#allocation4 + $0x2d0] sm:$0xff]  ;;  %2117 = vmatpush.msrb.mxu1 %v2010_v31  ;;  %2200 = vmatpush.msrb.mxu3 %v2072_v19  ;;  %v2036_v43 = vld [vmem:[#allocation4 + $0x2c0] sm:$0xff] }
 0x43b   :  { %v2070_v62 = vld [vmem:[#allocation4 + $0x3d0] sm:$0xff]  ;;  %2077 = vmatpush.msrb.mxu0 %v1976_v35  ;;  %v2068_v28 = vld [vmem:[#allocation4 + $0x3c0] sm:$0xff]  ;;  %2160 = vmatpush.msrb.mxu2 %v2038_v7 }
 0x43c   :  { %v1974_v44 = vld [vmem:[#allocation4 + $0xd0] sm:$0xff]  ;;  %2118 = vmatpush.msrb.mxu1 %v2008_v9  ;;  %2201 = vmatpush.msrb.mxu3 %v2070_v62  ;;  %v1972_v51 = vld [vmem:[#allocation4 + $0xc0] sm:$0xff] }
 0x43d   :  { %v2006_v6 = vld [vmem:[#allocation4 + $0x1d0] sm:$0xff]  ;;  %v2004_v61 = vld [vmem:[#allocation4 + $0x1c0] sm:$0xff]  ;;  %2078 = vmatpush.msrb.mxu0 %v1974_v44  ;;  %2161 = vmatpush.msrb.mxu2 %v2036_v43 }
 0x43e   :  { %2119 = vmatpush.msrb.mxu1 %v2006_v6  ;;  %v2034_v10 = vld [vmem:[#allocation4 + $0x2b0] sm:$0xff]  ;;  %2202 = vmatpush.msrb.mxu3 %v2068_v28  ;;  %v2032_v47 = vld [vmem:[#allocation4 + $0x2a0] sm:$0xff] }
 0x43f   :  { %v2066_v58 = vld [vmem:[#allocation4 + $0x3b0] sm:$0xff]  ;;  %2079 = vmatpush.msrb.mxu0 %v1972_v51  ;;  %v2064_v48 = vld [vmem:[#allocation4 + $0x3a0] sm:$0xff]  ;;  %2162 = vmatpush.msrb.mxu2 %v2034_v10 }
 0x440   :  { %v1970_v1 = vld [vmem:[#allocation4 + $0xb0] sm:$0xff]  ;;  %2120 = vmatpush.msrb.mxu1 %v2004_v61  ;;  %2203 = vmatpush.msrb.mxu3 %v2066_v58  ;;  %v1968_v21 = vld [vmem:[#allocation4 + $0xa0] sm:$0xff] }
 0x441   :  { %v2002_v18 = vld [vmem:[#allocation4 + $0x1b0] sm:$0xff]  ;;  %v2000_v16 = vld [vmem:[#allocation4 + $0x1a0] sm:$0xff]  ;;  %2080 = vmatpush.msrb.mxu0 %v1970_v1  ;;  %2163 = vmatpush.msrb.mxu2 %v2032_v47 }
 0x442   :  { %2121 = vmatpush.msrb.mxu1 %v2002_v18  ;;  %v2030_v32 = vld [vmem:[#allocation4 + $0x290] sm:$0xff]  ;;  %2204 = vmatpush.msrb.mxu3 %v2064_v48  ;;  %v2028_v36 = vld [vmem:[#allocation4 + $0x280] sm:$0xff] }
 0x443   :  { %v2062_v0 = vld [vmem:[#allocation4 + $0x390] sm:$0xff]  ;;  %2081 = vmatpush.msrb.mxu0 %v1968_v21  ;;  %v2060_v39 = vld [vmem:[#allocation4 + $0x380] sm:$0xff]  ;;  %2164 = vmatpush.msrb.mxu2 %v2030_v32 }
 0x444   :  { %v1966_v34 = vld [vmem:[#allocation4 + $0x90] sm:$0xff]  ;;  %2122 = vmatpush.msrb.mxu1 %v2000_v16  ;;  %2205 = vmatpush.msrb.mxu3 %v2062_v0  ;;  %v1964_v50 = vld [vmem:[#allocation4 + $0x80] sm:$0xff] }
 0x445   :  { %v1998_v59 = vld [vmem:[#allocation4 + $0x190] sm:$0xff]  ;;  %v1996_v53 = vld [vmem:[#allocation4 + $0x180] sm:$0xff]  ;;  %2082 = vmatpush.msrb.mxu0 %v1966_v34  ;;  %2165 = vmatpush.msrb.mxu2 %v2028_v36 }
 0x446   :  { %2123 = vmatpush.msrb.mxu1 %v1998_v59  ;;  %v2026_v54 = vld [vmem:[#allocation4 + $0x270] sm:$0xff]  ;;  %2206 = vmatpush.msrb.mxu3 %v2060_v39  ;;  %v2024_v31 = vld [vmem:[#allocation4 + $0x260] sm:$0xff] }
 0x447   :  { %v2058_v63 = vld [vmem:[#allocation4 + $0x370] sm:$0xff]  ;;  %2083 = vmatpush.msrb.mxu0 %v1964_v50  ;;  %v2056_v7 = vld [vmem:[#allocation4 + $0x360] sm:$0xff]  ;;  %2166 = vmatpush.msrb.mxu2 %v2026_v54  ;;  %v2043_v50 = vld [vmem:[#allocation4 + $0x2f8] sm:$0xff] }
 0x448   :  { %v1962_v14 = vld [vmem:[#allocation4 + $0x70] sm:$0xff]  ;;  %2124 = vmatpush.msrb.mxu1 %v1996_v53  ;;  %2207 = vmatpush.msrb.mxu3 %v2058_v63  ;;  %v1960_v19 = vld [vmem:[#allocation4 + $0x60] sm:$0xff]  ;;  %v2075_v53 = vld [vmem:[#allocation4 + $0x3f8] sm:$0xff] }
 0x449   :  { %v1994_v49 = vld [vmem:[#allocation4 + $0x170] sm:$0xff]  ;;  %v1992_v35 = vld [vmem:[#allocation4 + $0x160] sm:$0xff]  ;;  %2084 = vmatpush.msrb.mxu0 %v1962_v14  ;;  %2167 = vmatpush.msrb.mxu2 %v2024_v31  ;;  %v1979_v14 = vld [vmem:[#allocation4 + $0xf8] sm:$0xff] }
 0x44a   :  { %2125 = vmatpush.msrb.mxu1 %v1994_v49  ;;  %v2022_v9 = vld [vmem:[#allocation4 + $0x250] sm:$0xff]  ;;  %2208 = vmatpush.msrb.mxu3 %v2056_v7  ;;  %v2020_v6 = vld [vmem:[#allocation4 + $0x240] sm:$0xff]  ;;  %v2011_v49 = vld [vmem:[#allocation4 + $0x1f8] sm:$0xff] }
 0x44b   :  { %v2054_v62 = vld [vmem:[#allocation4 + $0x350] sm:$0xff]  ;;  %2085 = vmatpush.msrb.mxu0 %v1960_v19  ;;  %v2052_v28 = vld [vmem:[#allocation4 + $0x340] sm:$0xff]  ;;  %2168 = vmatpush.msrb.mxu2 %v2022_v9  ;;  %v2041_v31 = vld [vmem:[#allocation4 + $0x2e8] sm:$0xff] }
 0x44c   :  { %v1958_v44 = vld [vmem:[#allocation4 + $0x50] sm:$0xff]  ;;  %2126 = vmatpush.msrb.mxu1 %v1992_v35  ;;  %2209 = vmatpush.msrb.mxu3 %v2054_v62  ;;  %v1956_v51 = vld [vmem:[#allocation4 + $0x40] sm:$0xff]  ;;  %v2073_v7 = vld [vmem:[#allocation4 + $0x3e8] sm:$0xff] }
 0x44d   :  { %v1990_v43 = vld [vmem:[#allocation4 + $0x150] sm:$0xff]  ;;  %v1988_v61 = vld [vmem:[#allocation4 + $0x140] sm:$0xff]  ;;  %2086 = vmatpush.msrb.mxu0 %v1958_v44  ;;  %2169 = vmatpush.msrb.mxu2 %v2020_v6  ;;  %v1977_v19 = vld [vmem:[#allocation4 + $0xe8] sm:$0xff] }
 0x44e   :  { %2127 = vmatpush.msrb.mxu1 %v1990_v43  ;;  %v2018_v10 = vld [vmem:[#allocation4 + $0x230] sm:$0xff]  ;;  %2210 = vmatpush.msrb.mxu3 %v2052_v28  ;;  %v2016_v47 = vld [vmem:[#allocation4 + $0x220] sm:$0xff]  ;;  %v2009_v35 = vld [vmem:[#allocation4 + $0x1e8] sm:$0xff] }
 0x44f   :  { %v2050_v58 = vld [vmem:[#allocation4 + $0x330] sm:$0xff]  ;;  %2087 = vmatpush.msrb.mxu0 %v1956_v51  ;;  %v2048_v48 = vld [vmem:[#allocation4 + $0x320] sm:$0xff]  ;;  %2170 = vmatpush.msrb.mxu2 %v2018_v10  ;;  %v2039_v9 = vld [vmem:[#allocation4 + $0x2d8] sm:$0xff] }
 0x450   :  { %v1954_v1 = vld [vmem:[#allocation4 + $0x30] sm:$0xff]  ;;  %2128 = vmatpush.msrb.mxu1 %v1988_v61  ;;  %2211 = vmatpush.msrb.mxu3 %v2050_v58  ;;  %v1952_v21 = vld [vmem:[#allocation4 + $0x20] sm:$0xff]  ;;  %v2071_v62 = vld [vmem:[#allocation4 + $0x3d8] sm:$0xff] }
 0x451   :  { %v1986_v18 = vld [vmem:[#allocation4 + $0x130] sm:$0xff]  ;;  %v1984_v16 = vld [vmem:[#allocation4 + $0x120] sm:$0xff]  ;;  %2088 = vmatpush.msrb.mxu0 %v1954_v1  ;;  %2171 = vmatpush.msrb.mxu2 %v2016_v47  ;;  %v1975_v44 = vld [vmem:[#allocation4 + $0xd8] sm:$0xff] }
 0x452   :  { %2129 = vmatpush.msrb.mxu1 %v1986_v18  ;;  %v2014_v32 = vld [vmem:[#allocation4 + $0x210] sm:$0xff]  ;;  %2212 = vmatpush.msrb.mxu3 %v2048_v48  ;;  %v2012_v36 = vld [vmem:[#allocation4 + $0x200] sm:$0xff]  ;;  %v2007_v43 = vld [vmem:[#allocation4 + $0x1d8] sm:$0xff] }
 0x453   :  { %v2046_v0 = vld [vmem:[#allocation4 + $0x310] sm:$0xff]  ;;  %2089 = vmatpush.msrb.mxu0 %v1952_v21  ;;  %v2044_v39 = vld [vmem:[#allocation4 + $0x300] sm:$0xff]  ;;  %2172 = vmatpush.msrb.mxu2 %v2014_v32  ;;  %v2037_v6 = vld [vmem:[#allocation4 + $0x2c8] sm:$0xff] }
 0x454   :  { %v1950_v34 = vld [vmem:[#allocation4 + $0x10] sm:$0xff]  ;;  %2130 = vmatpush.msrb.mxu1 %v1984_v16  ;;  %2213 = vmatpush.msrb.mxu3 %v2046_v0  ;;  %v1948_v54 = vld [vmem:[#allocation4] sm:$0xff]  ;;  %v2069_v28 = vld [vmem:[#allocation4 + $0x3c8] sm:$0xff] }
 0x455   :  { %v1982_v59 = vld [vmem:[#allocation4 + $0x110] sm:$0xff]  ;;  %2090 = vmatpush.msrb.mxu0 %v1950_v34  ;;  %2173 = vmatpush.msrb.mxu2 %v2012_v36  ;;  %v1980_v63 = vld [vmem:[#allocation4 + $0x100] sm:$0xff]  ;;  %v1973_v51 = vld [vmem:[#allocation4 + $0xc8] sm:$0xff] }
 0x456   :  { %2131 = vmatpush.msrb.mxu1 %v1982_v59  ;;  %2214 = vmatpush.msrb.mxu3 %v2044_v39  ;;  %v2005_v61 = vld [vmem:[#allocation4 + $0x1c8] sm:$0xff]  ;;  %v2035_v10 = vld [vmem:[#allocation4 + $0x2b8] sm:$0xff] }
 0x457   :  { %2174 = vmatmul.f32.vlgmr.msrb.gmra.mxu2 %v7531_v2  ;;  %2215 = vmatmul.f32.vlgmr.msrb.gmra.mxu3 %v7547_v26  ;;  %v2067_v58 = vld [vmem:[#allocation4 + $0x3b8] sm:$0xff]  ;;  %v2033_v47 = vld [vmem:[#allocation4 + $0x2a8] sm:$0xff] }
 0x458   :  { %2322 = vmatpush.msra.mxu2 %v2043_v50  ;;  %2363 = vmatpush.msra.mxu3 %v2075_v53  ;;  %v1971_v1 = vld [vmem:[#allocation4 + $0xb8] sm:$0xff]  ;;  %v2065_v48 = vld [vmem:[#allocation4 + $0x3a8] sm:$0xff] }
 0x459   :  { %2091 = vmatpush.msrb.mxu0 %v1948_v54  ;;  %2132 = vmatpush.msrb.mxu1 %v1980_v63  ;;  %v2003_v18 = vld [vmem:[#allocation4 + $0x1b8] sm:$0xff]  ;;  %v1969_v21 = vld [vmem:[#allocation4 + $0xa8] sm:$0xff] }
 0x45a   :  { %2092 = vmatmul.f32.vlgmr.msrb.gmra.mxu0 %v7493_v30  ;;  %2133 = vmatmul.f32.vlgmr.msrb.gmra.mxu1 %v7509_v27  ;;  %v2001_v16 = vld [vmem:[#allocation4 + $0x1a8] sm:$0xff]  ;;  %v2031_v32 = vld [vmem:[#allocation4 + $0x298] sm:$0xff] }
 0x45b   :  { %2240 = vmatpush.msra.mxu0 %v1979_v14  ;;  %2281 = vmatpush.msra.mxu1 %v2011_v49  ;;  %v2063_v0 = vld [vmem:[#allocation4 + $0x398] sm:$0xff]  ;;  %v2029_v36 = vld [vmem:[#allocation4 + $0x288] sm:$0xff] }
 0x45c   :  { %2323 = vmatpush.msra.mxu2 %v2041_v31  ;;  %2364 = vmatpush.msra.mxu3 %v2073_v7  ;;  %v1967_v34 = vld [vmem:[#allocation4 + $0x98] sm:$0xff]  ;;  %v2061_v39 = vld [vmem:[#allocation4 + $0x388] sm:$0xff] }
 0x45d   :  { %2241 = vmatpush.msra.mxu0 %v1977_v19  ;;  %2282 = vmatpush.msra.mxu1 %v2009_v35  ;;  %v1999_v59 = vld [vmem:[#allocation4 + $0x198] sm:$0xff]  ;;  %v1965_v50 = vld [vmem:[#allocation4 + $0x88] sm:$0xff] }
 0x45e   :  { %2324 = vmatpush.msra.mxu2 %v2039_v9  ;;  %2365 = vmatpush.msra.mxu3 %v2071_v62  ;;  %v1997_v53 = vld [vmem:[#allocation4 + $0x188] sm:$0xff]  ;;  %v2027_v54 = vld [vmem:[#allocation4 + $0x278] sm:$0xff] }
 0x45f   :  { %2177 = vmatmul.f32.gmra.mxu2 %v7533_v56  ;;  %2218 = vmatmul.f32.gmra.mxu3 %v7549_v12  ;;  %v2059_v63 = vld [vmem:[#allocation4 + $0x378] sm:$0xff]  ;;  %v2025_v31 = vld [vmem:[#allocation4 + $0x268] sm:$0xff] }
 0x460   :  { %2242 = vmatpush.msra.mxu0 %v1975_v44  ;;  %2283 = vmatpush.msra.mxu1 %v2007_v43  ;;  %v1963_v14 = vld [vmem:[#allocation4 + $0x78] sm:$0xff]  ;;  %v2057_v7 = vld [vmem:[#allocation4 + $0x368] sm:$0xff] }
 0x461   :  { %2325 = vmatpush.msra.mxu2 %v2037_v6  ;;  %2366 = vmatpush.msra.mxu3 %v2069_v28  ;;  %v1995_v49 = vld [vmem:[#allocation4 + $0x178] sm:$0xff]  ;;  %v1961_v19 = vld [vmem:[#allocation4 + $0x68] sm:$0xff] }
 0x462   :  { %2095 = vmatmul.f32.gmra.mxu0 %v7495_v8  ;;  %2136 = vmatmul.f32.gmra.mxu1 %v7511_v57  ;;  %v1993_v35 = vld [vmem:[#allocation4 + $0x168] sm:$0xff]  ;;  %v2023_v9 = vld [vmem:[#allocation4 + $0x258] sm:$0xff] }
 0x463   :  { %2243 = vmatpush.msra.mxu0 %v1973_v51  ;;  %2284 = vmatpush.msra.mxu1 %v2005_v61  ;;  %v2055_v62 = vld [vmem:[#allocation4 + $0x358] sm:$0xff]  ;;  %v2021_v6 = vld [vmem:[#allocation4 + $0x248] sm:$0xff] }
 0x464   :  { %2326 = vmatpush.msra.mxu2 %v2035_v10  ;;  %2367 = vmatpush.msra.mxu3 %v2067_v58  ;;  %v1959_v44 = vld [vmem:[#allocation4 + $0x58] sm:$0xff]  ;;  %v2053_v28 = vld [vmem:[#allocation4 + $0x348] sm:$0xff] }
 0x465   :  { %2244 = vmatpush.msra.mxu0 %v1971_v1  ;;  %2285 = vmatpush.msra.mxu1 %v2003_v18  ;;  %v1991_v43 = vld [vmem:[#allocation4 + $0x158] sm:$0xff]  ;;  %v1957_v51 = vld [vmem:[#allocation4 + $0x48] sm:$0xff] }
 0x466   :  { %2327 = vmatpush.msra.mxu2 %v2033_v47  ;;  %2368 = vmatpush.msra.mxu3 %v2065_v48  ;;  %v1989_v61 = vld [vmem:[#allocation4 + $0x148] sm:$0xff]  ;;  %v2019_v10 = vld [vmem:[#allocation4 + $0x238] sm:$0xff] }
 0x467   :  { %2180 = vmatmul.f32.gmra.mxu2 %v7535_v42  ;;  %2221 = vmatmul.f32.gmra.mxu3 %v7551_v11  ;;  %v2051_v58 = vld [vmem:[#allocation4 + $0x338] sm:$0xff]  ;;  %v2017_v47 = vld [vmem:[#allocation4 + $0x228] sm:$0xff] }
 0x468   :  { %2245 = vmatpush.msra.mxu0 %v1969_v21  ;;  %2286 = vmatpush.msra.mxu1 %v2001_v16  ;;  %v1955_v1 = vld [vmem:[#allocation4 + $0x38] sm:$0xff]  ;;  %v2049_v48 = vld [vmem:[#allocation4 + $0x328] sm:$0xff] }
 0x469   :  { %2328 = vmatpush.msra.mxu2 %v2031_v32  ;;  %2369 = vmatpush.msra.mxu3 %v2063_v0  ;;  %v1987_v18 = vld [vmem:[#allocation4 + $0x138] sm:$0xff]  ;;  %v1953_v21 = vld [vmem:[#allocation4 + $0x28] sm:$0xff] }
 0x46a   :  { %2098 = vmatmul.f32.gmra.mxu0 %v7497_v22  ;;  %2139 = vmatmul.f32.gmra.mxu1 %v7513_v23  ;;  %v1985_v16 = vld [vmem:[#allocation4 + $0x128] sm:$0xff]  ;;  %v2015_v32 = vld [vmem:[#allocation4 + $0x218] sm:$0xff] }
 0x46b   :  { %2246 = vmatpush.msra.mxu0 %v1967_v34  ;;  %2287 = vmatpush.msra.mxu1 %v1999_v59  ;;  %v2047_v0 = vld [vmem:[#allocation4 + $0x318] sm:$0xff] }
 0x46c   :  { %2329 = vmatpush.msra.mxu2 %v2029_v36  ;;  %2370 = vmatpush.msra.mxu3 %v2061_v39  ;;  %v1951_v34 = vld [vmem:[#allocation4 + $0x18] sm:$0xff]  ;;  %v2013_v36 = vld [vmem:[#allocation4 + $0x208] sm:$0xff] }
 0x46d   :  { %2247 = vmatpush.msra.mxu0 %v1965_v50  ;;  %2288 = vmatpush.msra.mxu1 %v1997_v53  ;;  %v1983_v59 = vld [vmem:[#allocation4 + $0x118] sm:$0xff]  ;;  %v2045_v39 = vld [vmem:[#allocation4 + $0x308] sm:$0xff] }
 0x46e   :  { %2330 = vmatpush.msra.mxu2 %v2027_v54  ;;  %2371 = vmatpush.msra.mxu3 %v2059_v63  ;;  %v1949_v50 = vld [vmem:[#allocation4 + $0x8] sm:$0xff] }
 0x46f   :  { %2183 = vmatmul.f32.gmra.mxu2 %v7537_v46  ;;  %2224 = vmatmul.f32.gmra.mxu3 %v7553_v37  ;;  %v1981_v53 = vld [vmem:[#allocation4 + $0x108] sm:$0xff] }
 0x470   :  { %2248 = vmatpush.msra.mxu0 %v1963_v14  ;;  %2289 = vmatpush.msra.mxu1 %v1995_v49 }
 0x471   :  { %2331 = vmatpush.msra.mxu2 %v2025_v31  ;;  %2372 = vmatpush.msra.mxu3 %v2057_v7 }
 0x472   :  { %2101 = vmatmul.f32.gmra.mxu0 %v7499_v40  ;;  %2142 = vmatmul.f32.gmra.mxu1 %v7515_v24 }
 0x473   :  { %2249 = vmatpush.msra.mxu0 %v1961_v19  ;;  %2290 = vmatpush.msra.mxu1 %v1993_v35 }
 0x474   :  { %2332 = vmatpush.msra.mxu2 %v2023_v9  ;;  %2373 = vmatpush.msra.mxu3 %v2055_v62 }
 0x475   :  { %2250 = vmatpush.msra.mxu0 %v1959_v44  ;;  %2291 = vmatpush.msra.mxu1 %v1991_v43 }
 0x476   :  { %2333 = vmatpush.msra.mxu2 %v2021_v6  ;;  %2374 = vmatpush.msra.mxu3 %v2053_v28 }
 0x477   :  { %2186 = vmatmul.f32.gmra.mxu2 %v7539_v41  ;;  %2227 = vmatmul.f32.gmra.mxu3 %v7555_v15 }
 0x478   :  { %2251 = vmatpush.msra.mxu0 %v1957_v51  ;;  %2292 = vmatpush.msra.mxu1 %v1989_v61 }
 0x479   :  { %2334 = vmatpush.msra.mxu2 %v2019_v10  ;;  %2375 = vmatpush.msra.mxu3 %v2051_v58 }
 0x47a   :  { %2104 = vmatmul.f32.gmra.mxu0 %v7501_v3  ;;  %2145 = vmatmul.f32.gmra.mxu1 %v7517_v38 }
 0x47b   :  { %2252 = vmatpush.msra.mxu0 %v1955_v1  ;;  %2293 = vmatpush.msra.mxu1 %v1987_v18 }
 0x47c   :  { %2335 = vmatpush.msra.mxu2 %v2017_v47  ;;  %2376 = vmatpush.msra.mxu3 %v2049_v48 }
 0x47d   :  { %2253 = vmatpush.msra.mxu0 %v1953_v21  ;;  %2294 = vmatpush.msra.mxu1 %v1985_v16 }
 0x47e   :  { %2336 = vmatpush.msra.mxu2 %v2015_v32  ;;  %2377 = vmatpush.msra.mxu3 %v2047_v0 }
 0x47f   :  { %2189 = vmatmul.f32.gmra.mxu2 %v7541_v13  ;;  %2230 = vmatmul.f32.gmra.mxu3 %v7557_v4 }
 0x480   :  { %2254 = vmatpush.msra.mxu0 %v1951_v34  ;;  %2295 = vmatpush.msra.mxu1 %v1983_v59 }
 0x481   :  { %2337 = vmatpush.msra.mxu2 %v2013_v36  ;;  %2378 = vmatpush.msra.mxu3 %v2045_v39 }
 0x482   :  { %2107 = vmatmul.f32.gmra.mxu0 %v7503_v17  ;;  %2148 = vmatmul.f32.gmra.mxu1 %v7519_v29 }
 0x483   :  { %2255 = vmatpush.msra.mxu0 %v1949_v50  ;;  %2296 = vmatpush.msra.mxu1 %v1981_v53 }
 0x487   :  { %2192 = vmatmul.f32.gmra.mxu2 %v7543_v33  ;;  %2233 = vmatmul.f32.gmra.mxu3 %v7559_v60 }
 0x48a   :  { %2110 = vmatmul.f32.gmra.mxu0 %v7505_v20  ;;  %2151 = vmatmul.f32.gmra.mxu1 %v7521_v55 }
 0x48f   :  { %2195 = vmatmul.f32.gmra.mxu2 %v7545_v5  ;;  %2236 = vmatmul.f32.gmra.mxu3 %v7561_v45 }
 0x492   :  { %2113 = vmatmul.f32.gmra.mxu0 %v7507_v52  ;;  %2154 = vmatmul.f32.gmra.mxu1 %v7523_v25 }
 0x497   :  { %2338 = vmatmul.f32.vlgmr.msra.gmra.mxu2 %v7531_v2  ;;  %2379 = vmatmul.f32.vlgmr.msra.gmra.mxu3 %v7547_v26 }
 0x49a   :  { %2256 = vmatmul.f32.vlgmr.msra.gmra.mxu0 %v7493_v30  ;;  %2297 = vmatmul.f32.vlgmr.msra.gmra.mxu1 %v7509_v27 }
 0x49f   :  { %2341 = vmatmul.f32.gmra.mxu2 %v7533_v56  ;;  %2382 = vmatmul.f32.gmra.mxu3 %v7549_v12 }
 0x4a2   :  { %2259 = vmatmul.f32.gmra.mxu0 %v7495_v8  ;;  %2300 = vmatmul.f32.gmra.mxu1 %v7511_v57 }
 0x4a7   :  { %2344 = vmatmul.f32.gmra.mxu2 %v7535_v42  ;;  %2385 = vmatmul.f32.gmra.mxu3 %v7551_v11 }
 0x4aa   :  { %2262 = vmatmul.f32.gmra.mxu0 %v7497_v22  ;;  %2303 = vmatmul.f32.gmra.mxu1 %v7513_v23 }
 0x4af   :  { %2347 = vmatmul.f32.gmra.mxu2 %v7537_v46  ;;  %2388 = vmatmul.f32.gmra.mxu3 %v7553_v37 }
 0x4b2   :  { %2265 = vmatmul.f32.gmra.mxu0 %v7499_v40  ;;  %2306 = vmatmul.f32.gmra.mxu1 %v7515_v24 }
 0x4b7   :  { %2350 = vmatmul.f32.gmra.mxu2 %v7539_v41  ;;  %2391 = vmatmul.f32.gmra.mxu3 %v7555_v15 }
 0x4ba   :  { %2268 = vmatmul.f32.gmra.mxu0 %v7501_v3  ;;  %2309 = vmatmul.f32.gmra.mxu1 %v7517_v38 }
 0x4bf   :  { %2353 = vmatmul.f32.gmra.mxu2 %v7541_v13  ;;  %2394 = vmatmul.f32.gmra.mxu3 %v7557_v4 }
 0x4c2   :  { %2271 = vmatmul.f32.gmra.mxu0 %v7503_v17  ;;  %2312 = vmatmul.f32.gmra.mxu1 %v7519_v29 }
 0x4c7   :  { %2356 = vmatmul.f32.gmra.mxu2 %v7543_v33  ;;  %2397 = vmatmul.f32.gmra.mxu3 %v7559_v60 }
 0x4ca   :  { %2274 = vmatmul.f32.gmra.mxu0 %v7505_v20  ;;  %2315 = vmatmul.f32.gmra.mxu1 %v7521_v55 }
 0x4cf   :  { %2359 = vmatmul.f32.gmra.mxu2 %v7545_v5  ;;  %2400 = vmatmul.f32.gmra.mxu3 %v7561_v45 }
 0x4d2   :  { %2277 = vmatmul.f32.gmra.mxu0 %v7507_v52  ;;  %2318 = vmatmul.f32.gmra.mxu1 %v7523_v25 }
 0x4d7   :  { %v2093_v30 = vpop.f32.mrf.mxu0  ;;  %v2134_v8 = vpop.f32.mrf.mxu1 }
 0x4d8   :  { %v2135_v22 = vadd.f32 %v2134_v8, %v2093_v30 }
 0x4da   :  { %v2175_v40 = vpop.f32.mrf.mxu2  ;;  %v2216_v3 = vpop.f32.mrf.mxu3 }
 0x4db   :  { %v2176_v17 = vadd.f32 %v2175_v40, %v2135_v22 }
 0x4dd   :  { %v2217_v27 = vadd.f32 %v2216_v3, %v2176_v17 }
 0x4df   :  { %v7627_v57 = vmax.f32 %v2217_v27, 0.0  ;;  %v2096_v20 = vpop.f32.mrf.mxu0  ;;  %v2137_v23 = vpop.f32.mrf.mxu1 }
 0x4e0   :  { %v2138_v24 = vadd.f32 %v2137_v23, %v2096_v20 }
 0x4e2   :  { %v2178_v38 = vpop.f32.mrf.mxu2  ;;  %v2219_v29 = vpop.f32.mrf.mxu3 }
 0x4e3   :  { %v2179_v55 = vadd.f32 %v2178_v38, %v2138_v24 }
 0x4e5   :  { %v2220_v2 = vadd.f32 %v2219_v29, %v2179_v55 }
 0x4e7   :  { %v7629_v56 = vmax.f32 %v2220_v2, 0.0  ;;  %v2099_v52 = vpop.f32.mrf.mxu0  ;;  %v2140_v25 = vpop.f32.mrf.mxu1 }
 0x4e8   :  { %v2141_v42 = vadd.f32 %v2140_v25, %v2099_v52 }
 0x4ea   :  { %v2181_v46 = vpop.f32.mrf.mxu2  ;;  %v2222_v41 = vpop.f32.mrf.mxu3 }
 0x4eb   :  { %v2182_v13 = vadd.f32 %v2181_v46, %v2141_v42 }
 0x4ed   :  { %v2223_v33 = vadd.f32 %v2222_v41, %v2182_v13 }
 0x4ef   :  { %v7631_v5 = vmax.f32 %v2223_v33, 0.0  ;;  %v2102_v26 = vpop.f32.mrf.mxu0  ;;  %v2143_v12 = vpop.f32.mrf.mxu1 }
 0x4f0   :  { %v2144_v11 = vadd.f32 %v2143_v12, %v2102_v26 }
 0x4f2   :  { %v2184_v37 = vpop.f32.mrf.mxu2  ;;  %v2225_v15 = vpop.f32.mrf.mxu3 }
 0x4f3   :  { %v2185_v4 = vadd.f32 %v2184_v37, %v2144_v11 }
 0x4f5   :  { %v2226_v60 = vadd.f32 %v2225_v15, %v2185_v4 }
 0x4f7   :  { %v7633_v45 = vmax.f32 %v2226_v60, 0.0  ;;  %v2105_v54 = vpop.f32.mrf.mxu0  ;;  %v2146_v63 = vpop.f32.mrf.mxu1 }
 0x4f8   :  { %v2147_v14 = vadd.f32 %v2146_v63, %v2105_v54 }
 0x4fa   :  { %v2187_v49 = vpop.f32.mrf.mxu2  ;;  %v2228_v31 = vpop.f32.mrf.mxu3 }
 0x4fb   :  { %v2188_v7 = vadd.f32 %v2187_v49, %v2147_v14 }
 0x4fd   :  { %v2229_v19 = vadd.f32 %v2228_v31, %v2188_v7 }
 0x4ff   :  { %v7635_v35 = vmax.f32 %v2229_v19, 0.0  ;;  %v2108_v9 = vpop.f32.mrf.mxu0  ;;  %v2149_v62 = vpop.f32.mrf.mxu1 }
 0x500   :  { %v2150_v44 = vadd.f32 %v2149_v62, %v2108_v9 }
 0x502   :  { %v2190_v43 = vpop.f32.mrf.mxu2  ;;  %v2231_v6 = vpop.f32.mrf.mxu3 }
 0x503   :  { %v2191_v28 = vadd.f32 %v2190_v43, %v2150_v44 }
 0x505   :  { %v2232_v51 = vadd.f32 %v2231_v6, %v2191_v28 }
 0x507   :  { %v7637_v61 = vmax.f32 %v2232_v51, 0.0  ;;  %v2111_v10 = vpop.f32.mrf.mxu0  ;;  %v2152_v58 = vpop.f32.mrf.mxu1 }
 0x508   :  { %v2153_v1 = vadd.f32 %v2152_v58, %v2111_v10 }
 0x50a   :  { %v2193_v18 = vpop.f32.mrf.mxu2  ;;  %v2234_v47 = vpop.f32.mrf.mxu3 }
 0x50b   :  { %v2194_v48 = vadd.f32 %v2193_v18, %v2153_v1 }
 0x50d   :  { %v2235_v21 = vadd.f32 %v2234_v47, %v2194_v48 }
 0x50f   :  { %v7639_v16 = vmax.f32 %v2235_v21, 0.0  ;;  %v2114_v32 = vpop.f32.mrf.mxu0  ;;  %v2155_v0 = vpop.f32.mrf.mxu1 }
 0x510   :  { %v2156_v34 = vadd.f32 %v2155_v0, %v2114_v32 }
 0x512   :  { %v2196_v59 = vpop.f32.mrf.mxu2  ;;  %v2237_v36 = vpop.f32.mrf.mxu3 }
 0x513   :  { %v2197_v39 = vadd.f32 %v2196_v59, %v2156_v34 }
 0x515   :  { %v2238_v50 = vadd.f32 %v2237_v36, %v2197_v39 }
 0x517   :  { %v7641_v53 = vmax.f32 %v2238_v50, 0.0  ;;  %v2257_v30 = vpop.f32.mrf.mxu0  ;;  %v2298_v8 = vpop.f32.mrf.mxu1 }
 0x518   :  { %v2299_v22 = vadd.f32 %v2298_v8, %v2257_v30 }
 0x51a   :  { %v2339_v40 = vpop.f32.mrf.mxu2  ;;  %v2380_v3 = vpop.f32.mrf.mxu3 }
 0x51b   :  { %v2340_v17 = vadd.f32 %v2339_v40, %v2299_v22 }
 0x51d   :  { %v2381_v27 = vadd.f32 %v2380_v3, %v2340_v17 }
 0x51f   :  { %v7643_v20 = vmax.f32 %v2381_v27, 0.0  ;;  %v2260_v23 = vpop.f32.mrf.mxu0  ;;  %v2301_v24 = vpop.f32.mrf.mxu1 }
 0x520   :  { %v2302_v38 = vadd.f32 %v2301_v24, %v2260_v23 }
 0x522   :  { %v2342_v29 = vpop.f32.mrf.mxu2  ;;  %v2383_v55 = vpop.f32.mrf.mxu3 }
 0x523   :  { %v2343_v2 = vadd.f32 %v2342_v29, %v2302_v38 }
 0x525   :  { %v2384_v52 = vadd.f32 %v2383_v55, %v2343_v2 }
 0x527   :  { %v7645_v25 = vmax.f32 %v2384_v52, 0.0  ;;  %v2263_v42 = vpop.f32.mrf.mxu0  ;;  %v2304_v46 = vpop.f32.mrf.mxu1 }
 0x528   :  { %v2305_v41 = vadd.f32 %v2304_v46, %v2263_v42 }
 0x52a   :  { %v2345_v13 = vpop.f32.mrf.mxu2  ;;  %v2386_v33 = vpop.f32.mrf.mxu3 }
 0x52b   :  { %v2346_v26 = vadd.f32 %v2345_v13, %v2305_v41 }
 0x52d   :  { %v2387_v12 = vadd.f32 %v2386_v33, %v2346_v26 }
 0x52f   :  { %v7647_v11 = vmax.f32 %v2387_v12, 0.0  ;;  %v2266_v37 = vpop.f32.mrf.mxu0  ;;  %v2307_v15 = vpop.f32.mrf.mxu1 }
 0x530   :  { %v2308_v4 = vadd.f32 %v2307_v15, %v2266_v37 }
 0x532   :  { %v2348_v60 = vpop.f32.mrf.mxu2  ;;  %v2389_v54 = vpop.f32.mrf.mxu3 }
 0x533   :  { %v2349_v63 = vadd.f32 %v2348_v60, %v2308_v4 }
 0x535   :  { %v2390_v14 = vadd.f32 %v2389_v54, %v2349_v63 }
 0x537   :  { %v7649_v49 = vmax.f32 %v2390_v14, 0.0  ;;  %v2269_v31 = vpop.f32.mrf.mxu0  ;;  %v2310_v7 = vpop.f32.mrf.mxu1 }
 0x538   :  { %v2311_v19 = vadd.f32 %v2310_v7, %v2269_v31 }
 0x53a   :  { %v2351_v9 = vpop.f32.mrf.mxu2  ;;  %v2392_v62 = vpop.f32.mrf.mxu3 }
 0x53b   :  { %v2352_v44 = vadd.f32 %v2351_v9, %v2311_v19 }
 0x53d   :  { %v2393_v43 = vadd.f32 %v2392_v62, %v2352_v44 }
 0x53f   :  { %v7651_v6 = vmax.f32 %v2393_v43, 0.0  ;;  %v2272_v28 = vpop.f32.mrf.mxu0  ;;  %v2313_v51 = vpop.f32.mrf.mxu1 }
 0x540   :  { %v2314_v10 = vadd.f32 %v2313_v51, %v2272_v28 }
 0x542   :  { %v2354_v58 = vpop.f32.mrf.mxu2  ;;  %v2395_v1 = vpop.f32.mrf.mxu3 }
 0x543   :  { %v2355_v18 = vadd.f32 %v2354_v58, %v2314_v10 }
 0x545   :  { %v2396_v47 = vadd.f32 %v2395_v1, %v2355_v18 }
 0x547   :  { %v7653_v48 = vmax.f32 %v2396_v47, 0.0  ;;  %v2275_v21 = vpop.f32.mrf.mxu0  ;;  %v2316_v32 = vpop.f32.mrf.mxu1 }
 0x548   :  { %v2317_v0 = vadd.f32 %v2316_v32, %v2275_v21 }
 0x54a   :  { %v2357_v34 = vpop.f32.mrf.mxu2  ;;  %v2398_v59 = vpop.f32.mrf.mxu3 }
 0x54b   :  { %v2358_v36 = vadd.f32 %v2357_v34, %v2317_v0 }
 0x54d   :  { %v2399_v39 = vadd.f32 %v2398_v59, %v2358_v36 }
 0x54f   :  { %v7655_v50 = vmax.f32 %v2399_v39, 0.0  ;;  %v2278_v30 = vpop.f32.mrf.mxu0  ;;  %v2319_v8 = vpop.f32.mrf.mxu1 }
 0x550   :  { %v2320_v22 = vadd.f32 %v2319_v8, %v2278_v30 }
 0x552   :  { %v2360_v40 = vpop.f32.mrf.mxu2  ;;  %v2401_v3 = vpop.f32.mrf.mxu3 }
 0x553   :  { %v2361_v17 = vadd.f32 %v2360_v40, %v2320_v22 }
 0x555   :  { %v2402_v27 = vadd.f32 %v2401_v3, %v2361_v17 }
 0x557   :  { %v7657_v23 = vmax.f32 %v2402_v27, 0.0 }
 0x558   :  { %5744 = dma.done.wait [#allocation7 + $0x3], 16384 }
 0x559   :  { %5745 = vsyncadd [#allocation7 + $0x3], 4294950912  ;;  %v2482_v24 = vld [vmem:[#allocation5 + $0x1e0] sm:$0xff]  ;;  %v2483_v29 = vld [vmem:[#allocation5 + $0x1e8] sm:$0xff]  ;;  %vm2894_vm5 = vcmask 523264   ;;  %vm3681_vm9 = vcmask 64512  }
 0x55a   :  { %v2546_v38 = vld [vmem:[#allocation5 + $0x3e0] sm:$0xff]  ;;  %2550 = vmatpush.msrb.mxu0 %v2482_v24  ;;  %v2547_v55 = vld [vmem:[#allocation5 + $0x3e8] sm:$0xff]  ;;  %2632 = vmatpush.msrb.mxu2 %v2483_v29 }
 0x55b   :  { %2591 = vmatpush.msrb.mxu1 %v2546_v38  ;;  %v2478_v2 = vld [vmem:[#allocation5 + $0x1c0] sm:$0xff]  ;;  %2673 = vmatpush.msrb.mxu3 %v2547_v55  ;;  %v2479_v42 = vld [vmem:[#allocation5 + $0x1c8] sm:$0xff] }
 0x55c   :  { %v2542_v52 = vld [vmem:[#allocation5 + $0x3c0] sm:$0xff]  ;;  %v2543_v46 = vld [vmem:[#allocation5 + $0x3c8] sm:$0xff]  ;;  %2551 = vmatpush.msrb.mxu0 %v2478_v2  ;;  %2633 = vmatpush.msrb.mxu2 %v2479_v42 }
 0x55d   :  { %v2474_v41 = vld [vmem:[#allocation5 + $0x1a0] sm:$0xff]  ;;  %2592 = vmatpush.msrb.mxu1 %v2542_v52  ;;  %v2475_v33 = vld [vmem:[#allocation5 + $0x1a8] sm:$0xff]  ;;  %2674 = vmatpush.msrb.mxu3 %v2543_v46 }
 0x55e   :  { %v2538_v13 = vld [vmem:[#allocation5 + $0x3a0] sm:$0xff]  ;;  %v2539_v26 = vld [vmem:[#allocation5 + $0x3a8] sm:$0xff]  ;;  %2552 = vmatpush.msrb.mxu0 %v2474_v41  ;;  %2634 = vmatpush.msrb.mxu2 %v2475_v33 }
 0x55f   :  { %v2470_v12 = vld [vmem:[#allocation5 + $0x180] sm:$0xff]  ;;  %2593 = vmatpush.msrb.mxu1 %v2538_v13  ;;  %v2471_v15 = vld [vmem:[#allocation5 + $0x188] sm:$0xff]  ;;  %2675 = vmatpush.msrb.mxu3 %v2539_v26 }
 0x560   :  { %v2534_v37 = vld [vmem:[#allocation5 + $0x380] sm:$0xff]  ;;  %v2535_v4 = vld [vmem:[#allocation5 + $0x388] sm:$0xff]  ;;  %2553 = vmatpush.msrb.mxu0 %v2470_v12  ;;  %2635 = vmatpush.msrb.mxu2 %v2471_v15 }
 0x561   :  { %v2466_v60 = vld [vmem:[#allocation5 + $0x160] sm:$0xff]  ;;  %2594 = vmatpush.msrb.mxu1 %v2534_v37  ;;  %v2467_v63 = vld [vmem:[#allocation5 + $0x168] sm:$0xff]  ;;  %2676 = vmatpush.msrb.mxu3 %v2535_v4 }
 0x562   :  { %v2530_v54 = vld [vmem:[#allocation5 + $0x360] sm:$0xff]  ;;  %v2531_v14 = vld [vmem:[#allocation5 + $0x368] sm:$0xff]  ;;  %2554 = vmatpush.msrb.mxu0 %v2466_v60  ;;  %2636 = vmatpush.msrb.mxu2 %v2467_v63  ;;  %v2484_v60 = vld [vmem:[#allocation5 + $0x1f0] sm:$0xff] }
 0x563   :  { %v2462_v31 = vld [vmem:[#allocation5 + $0x140] sm:$0xff]  ;;  %2595 = vmatpush.msrb.mxu1 %v2530_v54  ;;  %v2463_v19 = vld [vmem:[#allocation5 + $0x148] sm:$0xff]  ;;  %2677 = vmatpush.msrb.mxu3 %v2531_v14  ;;  %v2548_v54 = vld [vmem:[#allocation5 + $0x3f0] sm:$0xff] }
 0x564   :  { %v2526_v7 = vld [vmem:[#allocation5 + $0x340] sm:$0xff]  ;;  %v2527_v9 = vld [vmem:[#allocation5 + $0x348] sm:$0xff]  ;;  %2555 = vmatpush.msrb.mxu0 %v2462_v31  ;;  %2637 = vmatpush.msrb.mxu2 %v2463_v19  ;;  %v2485_v63 = vld [vmem:[#allocation5 + $0x1f8] sm:$0xff] }
 0x565   :  { %v2458_v62 = vld [vmem:[#allocation5 + $0x120] sm:$0xff]  ;;  %2596 = vmatpush.msrb.mxu1 %v2526_v7  ;;  %v2459_v43 = vld [vmem:[#allocation5 + $0x128] sm:$0xff]  ;;  %2678 = vmatpush.msrb.mxu3 %v2527_v9  ;;  %v2549_v14 = vld [vmem:[#allocation5 + $0x3f8] sm:$0xff] }
 0x566   :  { %v2522_v44 = vld [vmem:[#allocation5 + $0x320] sm:$0xff]  ;;  %v2523_v28 = vld [vmem:[#allocation5 + $0x328] sm:$0xff]  ;;  %2556 = vmatpush.msrb.mxu0 %v2458_v62  ;;  %2638 = vmatpush.msrb.mxu2 %v2459_v43  ;;  %v2480_v31 = vld [vmem:[#allocation5 + $0x1d0] sm:$0xff] }
 0x567   :  { %v2454_v51 = vld [vmem:[#allocation5 + $0x100] sm:$0xff]  ;;  %2597 = vmatpush.msrb.mxu1 %v2522_v44  ;;  %v2455_v58 = vld [vmem:[#allocation5 + $0x108] sm:$0xff]  ;;  %2679 = vmatpush.msrb.mxu3 %v2523_v28  ;;  %v2544_v7 = vld [vmem:[#allocation5 + $0x3d0] sm:$0xff] }
 0x568   :  { %v2518_v10 = vld [vmem:[#allocation5 + $0x300] sm:$0xff]  ;;  %v2519_v1 = vld [vmem:[#allocation5 + $0x308] sm:$0xff]  ;;  %2557 = vmatpush.msrb.mxu0 %v2454_v51  ;;  %2639 = vmatpush.msrb.mxu2 %v2455_v58  ;;  %v2481_v19 = vld [vmem:[#allocation5 + $0x1d8] sm:$0xff] }
 0x569   :  { %v2450_v18 = vld [vmem:[#allocation5 + $0xe0] sm:$0xff]  ;;  %2598 = vmatpush.msrb.mxu1 %v2518_v10  ;;  %v2451_v21 = vld [vmem:[#allocation5 + $0xe8] sm:$0xff]  ;;  %2680 = vmatpush.msrb.mxu3 %v2519_v1  ;;  %v2545_v9 = vld [vmem:[#allocation5 + $0x3d8] sm:$0xff] }
 0x56a   :  { %v2514_v47 = vld [vmem:[#allocation5 + $0x2e0] sm:$0xff]  ;;  %v2515_v32 = vld [vmem:[#allocation5 + $0x2e8] sm:$0xff]  ;;  %2558 = vmatpush.msrb.mxu0 %v2450_v18  ;;  %2640 = vmatpush.msrb.mxu2 %v2451_v21  ;;  %v2476_v62 = vld [vmem:[#allocation5 + $0x1b0] sm:$0xff] }
 0x56b   :  { %v2446_v0 = vld [vmem:[#allocation5 + $0xc0] sm:$0xff]  ;;  %2599 = vmatpush.msrb.mxu1 %v2514_v47  ;;  %v2447_v59 = vld [vmem:[#allocation5 + $0xc8] sm:$0xff]  ;;  %2681 = vmatpush.msrb.mxu3 %v2515_v32  ;;  %v2540_v44 = vld [vmem:[#allocation5 + $0x3b0] sm:$0xff] }
 0x56c   :  { %v2510_v34 = vld [vmem:[#allocation5 + $0x2c0] sm:$0xff]  ;;  %v2511_v36 = vld [vmem:[#allocation5 + $0x2c8] sm:$0xff]  ;;  %2559 = vmatpush.msrb.mxu0 %v2446_v0  ;;  %2641 = vmatpush.msrb.mxu2 %v2447_v59  ;;  %v2477_v43 = vld [vmem:[#allocation5 + $0x1b8] sm:$0xff] }
 0x56d   :  { %v2442_v39 = vld [vmem:[#allocation5 + $0xa0] sm:$0xff]  ;;  %2600 = vmatpush.msrb.mxu1 %v2510_v34  ;;  %v2443_v8 = vld [vmem:[#allocation5 + $0xa8] sm:$0xff]  ;;  %2682 = vmatpush.msrb.mxu3 %v2511_v36  ;;  %v2541_v28 = vld [vmem:[#allocation5 + $0x3b8] sm:$0xff] }
 0x56e   :  { %v2506_v30 = vld [vmem:[#allocation5 + $0x2a0] sm:$0xff]  ;;  %v2507_v22 = vld [vmem:[#allocation5 + $0x2a8] sm:$0xff]  ;;  %2560 = vmatpush.msrb.mxu0 %v2442_v39  ;;  %2642 = vmatpush.msrb.mxu2 %v2443_v8  ;;  %v2472_v51 = vld [vmem:[#allocation5 + $0x190] sm:$0xff] }
 0x56f   :  { %v2438_v40 = vld [vmem:[#allocation5 + $0x80] sm:$0xff]  ;;  %2601 = vmatpush.msrb.mxu1 %v2506_v30  ;;  %v2439_v17 = vld [vmem:[#allocation5 + $0x88] sm:$0xff]  ;;  %2683 = vmatpush.msrb.mxu3 %v2507_v22  ;;  %v2536_v10 = vld [vmem:[#allocation5 + $0x390] sm:$0xff] }
 0x570   :  { %v2502_v3 = vld [vmem:[#allocation5 + $0x280] sm:$0xff]  ;;  %v2503_v27 = vld [vmem:[#allocation5 + $0x288] sm:$0xff]  ;;  %2561 = vmatpush.msrb.mxu0 %v2438_v40  ;;  %2643 = vmatpush.msrb.mxu2 %v2439_v17  ;;  %v2473_v58 = vld [vmem:[#allocation5 + $0x198] sm:$0xff] }
 0x571   :  { %v2434_v24 = vld [vmem:[#allocation5 + $0x60] sm:$0xff]  ;;  %2602 = vmatpush.msrb.mxu1 %v2502_v3  ;;  %v2435_v29 = vld [vmem:[#allocation5 + $0x68] sm:$0xff]  ;;  %2684 = vmatpush.msrb.mxu3 %v2503_v27  ;;  %v2537_v1 = vld [vmem:[#allocation5 + $0x398] sm:$0xff] }
 0x572   :  { %v2498_v38 = vld [vmem:[#allocation5 + $0x260] sm:$0xff]  ;;  %v2499_v55 = vld [vmem:[#allocation5 + $0x268] sm:$0xff]  ;;  %2562 = vmatpush.msrb.mxu0 %v2434_v24  ;;  %2644 = vmatpush.msrb.mxu2 %v2435_v29  ;;  %v2468_v18 = vld [vmem:[#allocation5 + $0x170] sm:$0xff] }
 0x573   :  { %v2430_v2 = vld [vmem:[#allocation5 + $0x40] sm:$0xff]  ;;  %2603 = vmatpush.msrb.mxu1 %v2498_v38  ;;  %v2431_v42 = vld [vmem:[#allocation5 + $0x48] sm:$0xff]  ;;  %2685 = vmatpush.msrb.mxu3 %v2499_v55  ;;  %v2532_v47 = vld [vmem:[#allocation5 + $0x370] sm:$0xff] }
 0x574   :  { %v2494_v52 = vld [vmem:[#allocation5 + $0x240] sm:$0xff]  ;;  %v2495_v46 = vld [vmem:[#allocation5 + $0x248] sm:$0xff]  ;;  %2563 = vmatpush.msrb.mxu0 %v2430_v2  ;;  %2645 = vmatpush.msrb.mxu2 %v2431_v42  ;;  %v2469_v21 = vld [vmem:[#allocation5 + $0x178] sm:$0xff] }
 0x575   :  { %v2426_v41 = vld [vmem:[#allocation5 + $0x20] sm:$0xff]  ;;  %2604 = vmatpush.msrb.mxu1 %v2494_v52  ;;  %v2427_v33 = vld [vmem:[#allocation5 + $0x28] sm:$0xff]  ;;  %2686 = vmatpush.msrb.mxu3 %v2495_v46  ;;  %v2533_v32 = vld [vmem:[#allocation5 + $0x378] sm:$0xff] }
 0x576   :  { %v2490_v13 = vld [vmem:[#allocation5 + $0x220] sm:$0xff]  ;;  %v2491_v26 = vld [vmem:[#allocation5 + $0x228] sm:$0xff]  ;;  %2564 = vmatpush.msrb.mxu0 %v2426_v41  ;;  %2646 = vmatpush.msrb.mxu2 %v2427_v33  ;;  %v2464_v0 = vld [vmem:[#allocation5 + $0x150] sm:$0xff] }
 0x577   :  { %v2422_v12 = vld [vmem:[#allocation5] sm:$0xff]  ;;  %2605 = vmatpush.msrb.mxu1 %v2490_v13  ;;  %v2423_v15 = vld [vmem:[#allocation5 + $0x8] sm:$0xff]  ;;  %2687 = vmatpush.msrb.mxu3 %v2491_v26  ;;  %v2528_v34 = vld [vmem:[#allocation5 + $0x350] sm:$0xff] }
 0x578   :  { %v2486_v37 = vld [vmem:[#allocation5 + $0x200] sm:$0xff]  ;;  %v2487_v4 = vld [vmem:[#allocation5 + $0x208] sm:$0xff]  ;;  %2565 = vmatpush.msrb.mxu0 %v2422_v12  ;;  %2647 = vmatpush.msrb.mxu2 %v2423_v15  ;;  %v2465_v59 = vld [vmem:[#allocation5 + $0x158] sm:$0xff] }
 0x579   :  { %2606 = vmatpush.msrb.mxu1 %v2486_v37  ;;  %2688 = vmatpush.msrb.mxu3 %v2487_v4  ;;  %v2529_v36 = vld [vmem:[#allocation5 + $0x358] sm:$0xff]  ;;  %v2460_v39 = vld [vmem:[#allocation5 + $0x130] sm:$0xff] }
 0x57a   :  { %2566 = vmatmul.f32.vlgmr.msrb.gmra.mxu0 %v7627_v57  ;;  %2607 = vmatmul.f32.vlgmr.msrb.gmra.mxu1 %v7643_v20  ;;  %v2524_v30 = vld [vmem:[#allocation5 + $0x330] sm:$0xff]  ;;  %v2461_v8 = vld [vmem:[#allocation5 + $0x138] sm:$0xff] }
 0x57b   :  { %2648 = vmatmul.f32.vlgmr.msrb.gmra.mxu2 %v7627_v57  ;;  %2689 = vmatmul.f32.vlgmr.msrb.gmra.mxu3 %v7643_v20  ;;  %v2525_v22 = vld [vmem:[#allocation5 + $0x338] sm:$0xff]  ;;  %v2456_v40 = vld [vmem:[#allocation5 + $0x110] sm:$0xff] }
 0x57c   :  { %2714 = vmatpush.msra.mxu0 %v2484_v60  ;;  %2755 = vmatpush.msra.mxu1 %v2548_v54  ;;  %v2520_v3 = vld [vmem:[#allocation5 + $0x310] sm:$0xff]  ;;  %v2457_v17 = vld [vmem:[#allocation5 + $0x118] sm:$0xff] }
 0x57d   :  { %2796 = vmatpush.msra.mxu2 %v2485_v63  ;;  %2837 = vmatpush.msra.mxu3 %v2549_v14  ;;  %v2521_v27 = vld [vmem:[#allocation5 + $0x318] sm:$0xff]  ;;  %v2452_v24 = vld [vmem:[#allocation5 + $0xf0] sm:$0xff] }
 0x57e   :  { %2715 = vmatpush.msra.mxu0 %v2480_v31  ;;  %2756 = vmatpush.msra.mxu1 %v2544_v7  ;;  %v2516_v38 = vld [vmem:[#allocation5 + $0x2f0] sm:$0xff]  ;;  %v2453_v29 = vld [vmem:[#allocation5 + $0xf8] sm:$0xff] }
 0x57f   :  { %2797 = vmatpush.msra.mxu2 %v2481_v19  ;;  %2838 = vmatpush.msra.mxu3 %v2545_v9  ;;  %v2517_v55 = vld [vmem:[#allocation5 + $0x2f8] sm:$0xff]  ;;  %v2448_v2 = vld [vmem:[#allocation5 + $0xd0] sm:$0xff] }
 0x580   :  { %2716 = vmatpush.msra.mxu0 %v2476_v62  ;;  %2757 = vmatpush.msra.mxu1 %v2540_v44  ;;  %v2512_v52 = vld [vmem:[#allocation5 + $0x2d0] sm:$0xff]  ;;  %v2449_v42 = vld [vmem:[#allocation5 + $0xd8] sm:$0xff] }
 0x581   :  { %2798 = vmatpush.msra.mxu2 %v2477_v43  ;;  %2839 = vmatpush.msra.mxu3 %v2541_v28  ;;  %v2513_v46 = vld [vmem:[#allocation5 + $0x2d8] sm:$0xff]  ;;  %v2444_v41 = vld [vmem:[#allocation5 + $0xb0] sm:$0xff] }
 0x582   :  { %2569 = vmatmul.f32.gmra.mxu0 %v7629_v56  ;;  %2610 = vmatmul.f32.gmra.mxu1 %v7645_v25  ;;  %v2508_v13 = vld [vmem:[#allocation5 + $0x2b0] sm:$0xff]  ;;  %v2445_v33 = vld [vmem:[#allocation5 + $0xb8] sm:$0xff] }
 0x583   :  { %2651 = vmatmul.f32.gmra.mxu2 %v7629_v56  ;;  %2692 = vmatmul.f32.gmra.mxu3 %v7645_v25  ;;  %v2509_v26 = vld [vmem:[#allocation5 + $0x2b8] sm:$0xff]  ;;  %v2440_v12 = vld [vmem:[#allocation5 + $0x90] sm:$0xff] }
 0x584   :  { %2717 = vmatpush.msra.mxu0 %v2472_v51  ;;  %2758 = vmatpush.msra.mxu1 %v2536_v10  ;;  %v2504_v37 = vld [vmem:[#allocation5 + $0x290] sm:$0xff]  ;;  %v2441_v15 = vld [vmem:[#allocation5 + $0x98] sm:$0xff] }
 0x585   :  { %2799 = vmatpush.msra.mxu2 %v2473_v58  ;;  %2840 = vmatpush.msra.mxu3 %v2537_v1  ;;  %v2505_v4 = vld [vmem:[#allocation5 + $0x298] sm:$0xff]  ;;  %v2436_v60 = vld [vmem:[#allocation5 + $0x70] sm:$0xff] }
 0x586   :  { %2718 = vmatpush.msra.mxu0 %v2468_v18  ;;  %2759 = vmatpush.msra.mxu1 %v2532_v47  ;;  %v2500_v54 = vld [vmem:[#allocation5 + $0x270] sm:$0xff]  ;;  %v2437_v63 = vld [vmem:[#allocation5 + $0x78] sm:$0xff] }
 0x587   :  { %2800 = vmatpush.msra.mxu2 %v2469_v21  ;;  %2841 = vmatpush.msra.mxu3 %v2533_v32  ;;  %v2501_v14 = vld [vmem:[#allocation5 + $0x278] sm:$0xff]  ;;  %v2432_v31 = vld [vmem:[#allocation5 + $0x50] sm:$0xff] }
 0x588   :  { %2719 = vmatpush.msra.mxu0 %v2464_v0  ;;  %2760 = vmatpush.msra.mxu1 %v2528_v34  ;;  %v2496_v7 = vld [vmem:[#allocation5 + $0x250] sm:$0xff]  ;;  %v2433_v19 = vld [vmem:[#allocation5 + $0x58] sm:$0xff] }
 0x589   :  { %2801 = vmatpush.msra.mxu2 %v2465_v59  ;;  %2842 = vmatpush.msra.mxu3 %v2529_v36  ;;  %v2497_v9 = vld [vmem:[#allocation5 + $0x258] sm:$0xff]  ;;  %v2428_v62 = vld [vmem:[#allocation5 + $0x30] sm:$0xff] }
 0x58a   :  { %2572 = vmatmul.f32.gmra.mxu0 %v7631_v5  ;;  %2613 = vmatmul.f32.gmra.mxu1 %v7647_v11  ;;  %v2492_v44 = vld [vmem:[#allocation5 + $0x230] sm:$0xff]  ;;  %v2429_v43 = vld [vmem:[#allocation5 + $0x38] sm:$0xff] }
 0x58b   :  { %2654 = vmatmul.f32.gmra.mxu2 %v7631_v5  ;;  %2695 = vmatmul.f32.gmra.mxu3 %v7647_v11  ;;  %v2493_v28 = vld [vmem:[#allocation5 + $0x238] sm:$0xff]  ;;  %v2424_v51 = vld [vmem:[#allocation5 + $0x10] sm:$0xff] }
 0x58c   :  { %2720 = vmatpush.msra.mxu0 %v2460_v39  ;;  %2761 = vmatpush.msra.mxu1 %v2524_v30  ;;  %v2488_v10 = vld [vmem:[#allocation5 + $0x210] sm:$0xff]  ;;  %v2425_v58 = vld [vmem:[#allocation5 + $0x18] sm:$0xff] }
 0x58d   :  { %2802 = vmatpush.msra.mxu2 %v2461_v8  ;;  %2843 = vmatpush.msra.mxu3 %v2525_v22  ;;  %v2489_v1 = vld [vmem:[#allocation5 + $0x218] sm:$0xff] }
 0x58e   :  { %2721 = vmatpush.msra.mxu0 %v2456_v40  ;;  %2762 = vmatpush.msra.mxu1 %v2520_v3 }
 0x58f   :  { %2803 = vmatpush.msra.mxu2 %v2457_v17  ;;  %2844 = vmatpush.msra.mxu3 %v2521_v27 }
 0x590   :  { %2722 = vmatpush.msra.mxu0 %v2452_v24  ;;  %2763 = vmatpush.msra.mxu1 %v2516_v38 }
 0x591   :  { %2804 = vmatpush.msra.mxu2 %v2453_v29  ;;  %2845 = vmatpush.msra.mxu3 %v2517_v55 }
 0x592   :  { %2575 = vmatmul.f32.gmra.mxu0 %v7633_v45  ;;  %2616 = vmatmul.f32.gmra.mxu1 %v7649_v49 }
 0x593   :  { %2657 = vmatmul.f32.gmra.mxu2 %v7633_v45  ;;  %2698 = vmatmul.f32.gmra.mxu3 %v7649_v49 }
 0x594   :  { %2723 = vmatpush.msra.mxu0 %v2448_v2  ;;  %2764 = vmatpush.msra.mxu1 %v2512_v52 }
 0x595   :  { %2805 = vmatpush.msra.mxu2 %v2449_v42  ;;  %2846 = vmatpush.msra.mxu3 %v2513_v46 }
 0x596   :  { %2724 = vmatpush.msra.mxu0 %v2444_v41  ;;  %2765 = vmatpush.msra.mxu1 %v2508_v13 }
 0x597   :  { %2806 = vmatpush.msra.mxu2 %v2445_v33  ;;  %2847 = vmatpush.msra.mxu3 %v2509_v26 }
 0x598   :  { %2725 = vmatpush.msra.mxu0 %v2440_v12  ;;  %2766 = vmatpush.msra.mxu1 %v2504_v37 }
 0x599   :  { %2807 = vmatpush.msra.mxu2 %v2441_v15  ;;  %2848 = vmatpush.msra.mxu3 %v2505_v4 }
 0x59a   :  { %2578 = vmatmul.f32.gmra.mxu0 %v7635_v35  ;;  %2619 = vmatmul.f32.gmra.mxu1 %v7651_v6 }
 0x59b   :  { %2660 = vmatmul.f32.gmra.mxu2 %v7635_v35  ;;  %2701 = vmatmul.f32.gmra.mxu3 %v7651_v6 }
 0x59c   :  { %2726 = vmatpush.msra.mxu0 %v2436_v60  ;;  %2767 = vmatpush.msra.mxu1 %v2500_v54  ;;  %v7738_v60 = vld [vmem:[%s9305_s11] sm:$0xff] }
 0x59d   :  { %2808 = vmatpush.msra.mxu2 %v2437_v63  ;;  %2849 = vmatpush.msra.mxu3 %v2501_v14 }
 0x59e   :  { %2727 = vmatpush.msra.mxu0 %v2432_v31  ;;  %2768 = vmatpush.msra.mxu1 %v2496_v7 }
 0x59f   :  { %2809 = vmatpush.msra.mxu2 %v2433_v19  ;;  %2850 = vmatpush.msra.mxu3 %v2497_v9 }
 0x5a0   :  { %2728 = vmatpush.msra.mxu0 %v2428_v62  ;;  %2769 = vmatpush.msra.mxu1 %v2492_v44  ;;  %v7755_v44 = vld [vmem:[%s9305_s11 + $0x8] sm:$0xff] }
 0x5a1   :  { %2810 = vmatpush.msra.mxu2 %v2429_v43  ;;  %2851 = vmatpush.msra.mxu3 %v2493_v28 }
 0x5a2   :  { %2581 = vmatmul.f32.gmra.mxu0 %v7637_v61  ;;  %2622 = vmatmul.f32.gmra.mxu1 %v7653_v48 }
 0x5a3   :  { %2663 = vmatmul.f32.gmra.mxu2 %v7637_v61  ;;  %2704 = vmatmul.f32.gmra.mxu3 %v7653_v48 }
 0x5a4   :  { %2729 = vmatpush.msra.mxu0 %v2424_v51  ;;  %2770 = vmatpush.msra.mxu1 %v2488_v10 }
 0x5a5   :  { %2811 = vmatpush.msra.mxu2 %v2425_v58  ;;  %2852 = vmatpush.msra.mxu3 %v2489_v1  ;;  %v7768_v58 = vld [vmem:[%s9305_s11 + $0x10] sm:$0xff] }
 0x5aa   :  { %2584 = vmatmul.f32.gmra.mxu0 %v7639_v16  ;;  %2625 = vmatmul.f32.gmra.mxu1 %v7655_v50 }
 0x5ab   :  { %2666 = vmatmul.f32.gmra.mxu2 %v7639_v16  ;;  %2707 = vmatmul.f32.gmra.mxu3 %v7655_v50 }
 0x5b2   :  { %2587 = vmatmul.f32.gmra.mxu0 %v7641_v53  ;;  %2628 = vmatmul.f32.gmra.mxu1 %v7657_v23 }
 0x5b3   :  { %2669 = vmatmul.f32.gmra.mxu2 %v7641_v53  ;;  %2710 = vmatmul.f32.gmra.mxu3 %v7657_v23 }
 0x5ba   :  { %2730 = vmatmul.f32.vlgmr.msra.gmra.mxu0 %v7627_v57  ;;  %2771 = vmatmul.f32.vlgmr.msra.gmra.mxu1 %v7643_v20 }
 0x5bb   :  { %2812 = vmatmul.f32.vlgmr.msra.gmra.mxu2 %v7627_v57  ;;  %2853 = vmatmul.f32.vlgmr.msra.gmra.mxu3 %v7643_v20 }
 0x5c2   :  { %2733 = vmatmul.f32.gmra.mxu0 %v7629_v56  ;;  %2774 = vmatmul.f32.gmra.mxu1 %v7645_v25 }
 0x5c3   :  { %2815 = vmatmul.f32.gmra.mxu2 %v7629_v56  ;;  %2856 = vmatmul.f32.gmra.mxu3 %v7645_v25 }
 0x5ca   :  { %2736 = vmatmul.f32.gmra.mxu0 %v7631_v5  ;;  %2777 = vmatmul.f32.gmra.mxu1 %v7647_v11 }
 0x5cb   :  { %2818 = vmatmul.f32.gmra.mxu2 %v7631_v5  ;;  %2859 = vmatmul.f32.gmra.mxu3 %v7647_v11 }
 0x5d2   :  { %2739 = vmatmul.f32.gmra.mxu0 %v7633_v45  ;;  %2780 = vmatmul.f32.gmra.mxu1 %v7649_v49 }
 0x5d3   :  { %2821 = vmatmul.f32.gmra.mxu2 %v7633_v45  ;;  %2862 = vmatmul.f32.gmra.mxu3 %v7649_v49 }
 0x5da   :  { %2742 = vmatmul.f32.gmra.mxu0 %v7635_v35  ;;  %2783 = vmatmul.f32.gmra.mxu1 %v7651_v6 }
 0x5db   :  { %2824 = vmatmul.f32.gmra.mxu2 %v7635_v35  ;;  %2865 = vmatmul.f32.gmra.mxu3 %v7651_v6 }
 0x5e2   :  { %2745 = vmatmul.f32.gmra.mxu0 %v7637_v61  ;;  %2786 = vmatmul.f32.gmra.mxu1 %v7653_v48 }
 0x5e3   :  { %2827 = vmatmul.f32.gmra.mxu2 %v7637_v61  ;;  %2868 = vmatmul.f32.gmra.mxu3 %v7653_v48 }
 0x5ea   :  { %2748 = vmatmul.f32.gmra.mxu0 %v7639_v16  ;;  %2789 = vmatmul.f32.gmra.mxu1 %v7655_v50 }
 0x5eb   :  { %2830 = vmatmul.f32.gmra.mxu2 %v7639_v16  ;;  %2871 = vmatmul.f32.gmra.mxu3 %v7655_v50 }
 0x5f2   :  { %2751 = vmatmul.f32.gmra.mxu0 %v7641_v53  ;;  %2792 = vmatmul.f32.gmra.mxu1 %v7657_v23 }
 0x5f3   :  { %2833 = vmatmul.f32.gmra.mxu2 %v7641_v53  ;;  %2874 = vmatmul.f32.gmra.mxu3 %v7657_v23 }
 0x5f7   :  { %v2567_v57 = vpop.f32.mrf.mxu0  ;;  %v2608_v56 = vpop.f32.mrf.mxu1 }
 0x5f8   :  { %v2609_v37 = vadd.f32 %v2608_v56, %v2567_v57 }
 0x5fe   :  { %v7723_v5 = vpop.f32.mrf.mxu2  ;;  %v7725_v45 = vpop.f32.mrf.mxu3 }
 0x5ff   :  { %v2570_v35 = vpop.f32.mrf.mxu0  ;;  %v2611_v61 = vpop.f32.mrf.mxu1  ;;  %v2691_v19 = vadd.f32 %v7725_v45, %v7723_v5  ;;  %v7777_v45 = vld [vmem:[%s9305_s11 + $0x18] sm:$0xff] }
 0x600   :  { %v2612_v26 = vadd.f32 %v2611_v61, %v2570_v35 }
 0x606   :  { %v2652_v20 = vpop.f32.mrf.mxu2  ;;  %v2693_v16 = vpop.f32.mrf.mxu3 }
 0x607   :  { %v2573_v25 = vpop.f32.mrf.mxu0  ;;  %v2614_v11 = vpop.f32.mrf.mxu1  ;;  %v2694_v7 = vadd.f32 %v2693_v16, %v2652_v20 }
 0x608   :  { %v2615_v13 = vadd.f32 %v2614_v11, %v2573_v25  ;;  %v7786_v25 = vld [vmem:[%s9305_s11 + $0x20] sm:$0xff] }
 0x60e   :  { %v2655_v49 = vpop.f32.mrf.mxu2  ;;  %v2696_v6 = vpop.f32.mrf.mxu3 }
 0x60f   :  { %v2576_v48 = vpop.f32.mrf.mxu0  ;;  %v2617_v50 = vpop.f32.mrf.mxu1  ;;  %v2697_v31 = vadd.f32 %v2696_v6, %v2655_v49 }
 0x610   :  { %v2618_v46 = vadd.f32 %v2617_v50, %v2576_v48  ;;  %v7795_v50 = vld [vmem:[%s9305_s11 + $0x28] sm:$0xff] }
 0x616   :  { %v2658_v18 = vpop.f32.mrf.mxu2  ;;  %v2699_v53 = vpop.f32.mrf.mxu3 }
 0x617   :  { %v2579_v47 = vpop.f32.mrf.mxu0  ;;  %v2620_v23 = vpop.f32.mrf.mxu1  ;;  %v2700_v54 = vadd.f32 %v2699_v53, %v2658_v18 }
 0x618   :  { %v2621_v38 = vadd.f32 %v2620_v23, %v2579_v47 }
 0x61e   :  { %v2661_v21 = vpop.f32.mrf.mxu2  ;;  %v2702_v32 = vpop.f32.mrf.mxu3 }
 0x61f   :  { %v2582_v0 = vpop.f32.mrf.mxu0  ;;  %v2623_v34 = vpop.f32.mrf.mxu1  ;;  %v2703_v12 = vadd.f32 %v2702_v32, %v2661_v21  ;;  %v7804_v21 = vld [vmem:[%s9305_s11 + $0x30] sm:$0xff] }
 0x620   :  { %v2624_v24 = vadd.f32 %v2623_v34, %v2582_v0 }
 0x626   :  { %v2664_v59 = vpop.f32.mrf.mxu2  ;;  %v2705_v36 = vpop.f32.mrf.mxu3 }
 0x627   :  { %v2585_v39 = vpop.f32.mrf.mxu0  ;;  %v2626_v30 = vpop.f32.mrf.mxu1  ;;  %v2706_v33 = vadd.f32 %v2705_v36, %v2664_v59 }
 0x628   :  { %v2627_v27 = vadd.f32 %v2626_v30, %v2585_v39 }
 0x62e   :  { %v2667_v8 = vpop.f32.mrf.mxu2  ;;  %v2708_v22 = vpop.f32.mrf.mxu3 }
 0x62f   :  { %v2588_v40 = vpop.f32.mrf.mxu0  ;;  %v2629_v3 = vpop.f32.mrf.mxu1  ;;  %v2709_v41 = vadd.f32 %v2708_v22, %v2667_v8  ;;  %v7813_v22 = vld [vmem:[%s9305_s11 + $0x38] sm:$0xff] }
 0x630   :  { %v2630_v17 = vadd.f32 %v2629_v3, %v2588_v40 }
 0x632   :  { %2951 = vmatpush.msrb.mxu0 %v2630_v17 }
 0x634   :  { %2952 = vmatpush.msrb.mxu0 %v2627_v27 }
 0x636   :  { %v2670_v29 = vpop.f32.mrf.mxu2  ;;  %v2711_v55 = vpop.f32.mrf.mxu3  ;;  %2953 = vmatpush.msrb.mxu0 %v2624_v24 }
 0x637   :  { %v2712_v2 = vadd.f32 %v2711_v55, %v2670_v29  ;;  %v7727_v52 = vpop.f32.mrf.mxu0  ;;  %v7729_v42 = vpop.f32.mrf.mxu1 }
 0x638   :  { %2954 = vmatpush.msrb.mxu0 %v2621_v38  ;;  %v2773_v55 = vadd.f32 %v7729_v42, %v7727_v52 }
 0x639   :  { %3016 = vmatpush.msrb.mxu1 %v2712_v2 }
 0x63a   :  { %2955 = vmatpush.msrb.mxu0 %v2618_v46  ;;  %v2886_v46 = vld [vmem:[%s9305_s11 + $0x40] sm:$0xff] }
 0x63b   :  { %3017 = vmatpush.msrb.mxu1 %v2709_v41 }
 0x63c   :  { %2956 = vmatpush.msrb.mxu0 %v2615_v13  ;;  %v2887_v13 = vld [vmem:[%s9305_s11 + $0x48] sm:$0xff] }
 0x63d   :  { %3018 = vmatpush.msrb.mxu1 %v2706_v33  ;;  %v2888_v33 = vld [vmem:[%s9305_s11 + $0x50] sm:$0xff] }
 0x63e   :  { %v7731_v15 = vpop.f32.mrf.mxu2  ;;  %v7733_v4 = vpop.f32.mrf.mxu3  ;;  %2957 = vmatpush.msrb.mxu0 %v2612_v26  ;;  %v2889_v26 = vld [vmem:[%s9305_s11 + $0x58] sm:$0xff] }
 0x63f   :  { %3019 = vmatpush.msrb.mxu1 %v2703_v12  ;;  %v7740_v63 = vpop.f32.mrf.mxu0  ;;  %v7742_v14 = vpop.f32.mrf.mxu1  ;;  %v2855_v42 = vadd.f32 %v7733_v4, %v7731_v15  ;;  %v2890_v12 = vld [vmem:[%s9305_s11 + $0x60] sm:$0xff]  ;;  %v2892_v15 = vld [vmem:[%s9305_s11 + $0x70] sm:$0xff]  ;;  %v7894_v4 = vld [vmem:[%s9305_s11 + $0x78] sm:$0xff] }
 0x640   :  { %2958 = vmatpush.msrb.mxu0 %v2609_v37  ;;  %v2776_v38 = vadd.f32 %v7742_v14, %v7740_v63  ;;  %v2891_v37 = vld [vmem:[%s9305_s11 + $0x68] sm:$0xff] }
 0x641   :  { %3020 = vmatpush.msrb.mxu1 %v2700_v54  ;;  %5370 = vmatmul.msk.f32.vlgmr.msrb.gmra.mxu0 %vm2894_vm5, %v7738_v60 }
 0x643   :  { %3021 = vmatpush.msrb.mxu1 %v2697_v31 }
 0x645   :  { %3022 = vmatpush.msrb.mxu1 %v2694_v7 }
 0x646   :  { %v7748_v9 = vpop.f32.mrf.mxu2  ;;  %v7750_v62 = vpop.f32.mrf.mxu3 }
 0x647   :  { %3023 = vmatpush.msrb.mxu1 %v2691_v19  ;;  %v2737_v43 = vpop.f32.mrf.mxu0  ;;  %v2778_v28 = vpop.f32.mrf.mxu1  ;;  %v2858_v52 = vadd.f32 %v7750_v62, %v7748_v9 }
 0x648   :  { %5386 = vmatmul.msk.f32.vlgmr.msrb.gmra.mxu1 %vm2894_vm5, %v7738_v60  ;;  %v2779_v27 = vadd.f32 %v2778_v28, %v2737_v43 }
 0x649   :  { %5371 = vmatmul.msk.f32.gmra.mxu0 %vm2894_vm5, %v7755_v44 }
 0x64e   :  { %v7761_v51 = vpop.f32.mrf.mxu2  ;;  %v7763_v10 = vpop.f32.mrf.mxu3 }
 0x64f   :  { %v2740_v1 = vpop.f32.mrf.mxu0  ;;  %v2781_v57 = vpop.f32.mrf.mxu1  ;;  %v2861_v41 = vadd.f32 %v7763_v10, %v7761_v51  ;;  %v7947_v10 = vld [vmem:[%s9306_s12 + $0x78] sm:$0xff] }
 0x650   :  { %5387 = vmatmul.msk.f32.gmra.mxu1 %vm2894_vm5, %v7755_v44  ;;  %v2782_v3 = vadd.f32 %v2781_v57, %v2740_v1  ;;  %3499 = vmatpush.msra.mxu0 %v7947_v10  ;;  %v7961_v1 = vld [vmem:[%s9306_s12 + $0x68] sm:$0xff] }
 0x651   :  { %5372 = vmatmul.msk.f32.gmra.mxu0 %vm2894_vm5, %v7768_v58 }
 0x656   :  { %v2822_v56 = vpop.f32.mrf.mxu2  ;;  %v2863_v5 = vpop.f32.mrf.mxu3 }
 0x657   :  { %v2743_v35 = vpop.f32.mrf.mxu0  ;;  %v2784_v61 = vpop.f32.mrf.mxu1  ;;  %v2864_v2 = vadd.f32 %v2863_v5, %v2822_v56  ;;  %v7969_v56 = vld [vmem:[%s9306_s12 + $0xf8] sm:$0xff]  ;;  %v7974_v5 = vld [vmem:[%s9306_s12 + $0x60] sm:$0xff] }
 0x658   :  { %5388 = vmatmul.msk.f32.gmra.mxu1 %vm2894_vm5, %v7768_v58  ;;  %v2785_v39 = vadd.f32 %v2784_v61, %v2743_v35  ;;  %v7983_v35 = vld [vmem:[%s9306_s12 + $0xf0] sm:$0xff]  ;;  %v7988_v61 = vld [vmem:[%s9306_s12 + $0x58] sm:$0xff] }
 0x659   :  { %5373 = vmatmul.msk.f32.gmra.mxu0 %vm2894_vm5, %v7777_v45  ;;  %3519 = vmatpush.msra.mxu1 %v7969_v56 }
 0x65b   :  { %3520 = vmatpush.msra.mxu1 %v7983_v35 }
 0x65e   :  { %v2825_v20 = vpop.f32.mrf.mxu2  ;;  %v2866_v16 = vpop.f32.mrf.mxu3 }
 0x65f   :  { %v2746_v11 = vpop.f32.mrf.mxu0  ;;  %v2787_v49 = vpop.f32.mrf.mxu1  ;;  %v2867_v29 = vadd.f32 %v2866_v16, %v2825_v20  ;;  %v7997_v20 = vld [vmem:[%s9306_s12 + $0xe8] sm:$0xff]  ;;  %v8003_v16 = vld [vmem:[%s9306_s12 + $0x50] sm:$0xff] }
 0x660   :  { %5389 = vmatmul.msk.f32.gmra.mxu1 %vm2894_vm5, %v7777_v45  ;;  %v2788_v36 = vadd.f32 %v2787_v49, %v2746_v11  ;;  %v8015_v11 = vld [vmem:[%s9306_s12 + $0x48] sm:$0xff] }
 0x661   :  { %5374 = vmatmul.msk.f32.gmra.mxu0 %vm2894_vm5, %v7786_v25  ;;  %3521 = vmatpush.msra.mxu1 %v7997_v20 }
 0x666   :  { %v2828_v6 = vpop.f32.mrf.mxu2  ;;  %v2869_v48 = vpop.f32.mrf.mxu3 }
 0x667   :  { %v2749_v18 = vpop.f32.mrf.mxu0  ;;  %v2790_v53 = vpop.f32.mrf.mxu1  ;;  %v2870_v24 = vadd.f32 %v2869_v48, %v2828_v6  ;;  %v8023_v6 = vld [vmem:[%s9306_s12 + $0xd8] sm:$0xff]  ;;  %v8029_v48 = vld [vmem:[%s9306_s12 + $0x40] sm:$0xff] }
 0x668   :  { %5390 = vmatmul.msk.f32.gmra.mxu1 %vm2894_vm5, %v7786_v25  ;;  %v2791_v59 = vadd.f32 %v2790_v53, %v2749_v18  ;;  %v8037_v18 = vld [vmem:[%s9306_s12 + $0xd0] sm:$0xff]  ;;  %v8043_v53 = vld [vmem:[%s9306_s12 + $0x38] sm:$0xff] }
 0x669   :  { %5375 = vmatmul.msk.f32.gmra.mxu0 %vm2894_vm5, %v7795_v50 }
 0x66e   :  { %v2831_v47 = vpop.f32.mrf.mxu2  ;;  %v2872_v23 = vpop.f32.mrf.mxu3 }
 0x66f   :  { %v2752_v32 = vpop.f32.mrf.mxu0  ;;  %v2793_v0 = vpop.f32.mrf.mxu1  ;;  %v2873_v17 = vadd.f32 %v2872_v23, %v2831_v47  ;;  %v8051_v47 = vld [vmem:[%s9306_s12 + $0xc8] sm:$0xff]  ;;  %v8057_v23 = vld [vmem:[%s9306_s12 + $0x30] sm:$0xff] }
 0x670   :  { %v2794_v34 = vadd.f32 %v2793_v0, %v2752_v32  ;;  %5391 = vmatmul.msk.f32.gmra.mxu1 %vm2894_vm5, %v7795_v50  ;;  %v8069_v32 = vld [vmem:[%s9306_s12 + $0x28] sm:$0xff] }
 0x671   :  { %5376 = vmatmul.msk.f32.gmra.mxu0 %vm2894_vm5, %v7804_v21 }
 0x672   :  { %3081 = vmatpush.msrb.mxu2 %v2794_v34 }
 0x674   :  { %3082 = vmatpush.msrb.mxu2 %v2791_v59 }
 0x676   :  { %v2834_v30 = vpop.f32.mrf.mxu2  ;;  %v2875_v8 = vpop.f32.mrf.mxu3  ;;  %3083 = vmatpush.msrb.mxu2 %v2788_v36 }
 0x677   :  { %v2876_v40 = vadd.f32 %v2875_v8, %v2834_v30  ;;  %v8089_v30 = vld [vmem:[%s9306_s12 + $0x20] sm:$0xff] }
 0x678   :  { %3084 = vmatpush.msrb.mxu2 %v2785_v39  ;;  %5392 = vmatmul.msk.f32.gmra.mxu1 %vm2894_vm5, %v7804_v21  ;;  %v8083_v39 = vld [vmem:[%s9306_s12 + $0xb8] sm:$0xff] }
 0x679   :  { %3146 = vmatpush.msrb.mxu3 %v2876_v40  ;;  %5377 = vmatmul.msk.f32.gmra.mxu0 %vm2894_vm5, %v7813_v22  ;;  %v8099_v40 = vld [vmem:[%s9306_s12 + $0xb0] sm:$0xff] }
 0x67a   :  { %3085 = vmatpush.msrb.mxu2 %v2782_v3  ;;  %v8105_v3 = vld [vmem:[%s9306_s12 + $0x18] sm:$0xff] }
 0x67b   :  { %3147 = vmatpush.msrb.mxu3 %v2873_v17 }
 0x67c   :  { %3086 = vmatpush.msrb.mxu2 %v2779_v27 }
 0x67d   :  { %3148 = vmatpush.msrb.mxu3 %v2870_v24  ;;  %v8113_v24 = vld [vmem:[%s9306_s12 + $0xa8] sm:$0xff] }
 0x67e   :  { %3087 = vmatpush.msrb.mxu2 %v2776_v38  ;;  %v8119_v38 = vld [vmem:[%s9306_s12 + $0x10] sm:$0xff] }
 0x67f   :  { %3149 = vmatpush.msrb.mxu3 %v2867_v29 }
 0x680   :  { %3088 = vmatpush.msrb.mxu2 %v2773_v55  ;;  %5393 = vmatmul.msk.f32.gmra.mxu1 %vm2894_vm5, %v7813_v22 }
 0x681   :  { %3150 = vmatpush.msrb.mxu3 %v2864_v2  ;;  %5402 = vmatmul.msk.f32.vlgmr.msrb.gmra.mxu2 %vm2894_vm5, %v7738_v60  ;;  %v8128_v2 = vld [vmem:[%s9306_s12 + $0xa0] sm:$0xff] }
 0x682   :  { %5378 = vmatmul.msk.f32.gmra.mxu0 %vm2894_vm5, %v2886_v46 }
 0x683   :  { %3151 = vmatpush.msrb.mxu3 %v2861_v41 }
 0x685   :  { %3152 = vmatpush.msrb.mxu3 %v2858_v52 }
 0x687   :  { %3153 = vmatpush.msrb.mxu3 %v2855_v42 }
 0x688   :  { %5418 = vmatmul.msk.f32.vlgmr.msrb.gmra.mxu3 %vm2894_vm5, %v7738_v60  ;;  %5394 = vmatmul.msk.f32.gmra.mxu1 %vm2894_vm5, %v2886_v46 }
 0x689   :  { %5403 = vmatmul.msk.f32.gmra.mxu2 %vm2894_vm5, %v7755_v44 }
 0x68a   :  { %5379 = vmatmul.msk.f32.gmra.mxu0 %vm2894_vm5, %v2887_v13 }
 0x690   :  { %5419 = vmatmul.msk.f32.gmra.mxu3 %vm2894_vm5, %v7755_v44  ;;  %5395 = vmatmul.msk.f32.gmra.mxu1 %vm2894_vm5, %v2887_v13 }
 0x691   :  { %5404 = vmatmul.msk.f32.gmra.mxu2 %vm2894_vm5, %v7768_v58 }
 0x692   :  { %5380 = vmatmul.msk.f32.gmra.mxu0 %vm2894_vm5, %v2888_v33 }
 0x698   :  { %5420 = vmatmul.msk.f32.gmra.mxu3 %vm2894_vm5, %v7768_v58  ;;  %5396 = vmatmul.msk.f32.gmra.mxu1 %vm2894_vm5, %v2888_v33  ;;  %v7955_v58 = vld [vmem:[%s9306_s12 + $0x70] sm:$0xff] }
 0x699   :  { %5405 = vmatmul.msk.f32.gmra.mxu2 %vm2894_vm5, %v7777_v45  ;;  %3500 = vmatpush.msra.mxu0 %v7955_v58 }
 0x69a   :  { %5381 = vmatmul.msk.f32.gmra.mxu0 %vm2894_vm5, %v2889_v26 }
 0x69b   :  { %3501 = vmatpush.msra.mxu0 %v7961_v1 }
 0x69d   :  { %3502 = vmatpush.msra.mxu0 %v7974_v5 }
 0x69f   :  { %3503 = vmatpush.msra.mxu0 %v7988_v61 }
 0x6a0   :  { %5421 = vmatmul.msk.f32.gmra.mxu3 %vm2894_vm5, %v7777_v45  ;;  %5397 = vmatmul.msk.f32.gmra.mxu1 %vm2894_vm5, %v2889_v26 }
 0x6a1   :  { %5406 = vmatmul.msk.f32.gmra.mxu2 %vm2894_vm5, %v7786_v25  ;;  %3504 = vmatpush.msra.mxu0 %v8003_v16 }
 0x6a2   :  { %5382 = vmatmul.msk.f32.gmra.mxu0 %vm2894_vm5, %v2890_v12 }
 0x6a3   :  { %3505 = vmatpush.msra.mxu0 %v8015_v11 }
 0x6a5   :  { %3506 = vmatpush.msra.mxu0 %v8029_v48 }
 0x6a7   :  { %3507 = vmatpush.msra.mxu0 %v8043_v53 }
 0x6a8   :  { %5422 = vmatmul.msk.f32.gmra.mxu3 %vm2894_vm5, %v7786_v25  ;;  %5398 = vmatmul.msk.f32.gmra.mxu1 %vm2894_vm5, %v2890_v12  ;;  %v8009_v25 = vld [vmem:[%s9306_s12 + $0xe0] sm:$0xff] }
 0x6a9   :  { %5407 = vmatmul.msk.f32.gmra.mxu2 %vm2894_vm5, %v7795_v50  ;;  %3522 = vmatpush.msra.mxu1 %v8009_v25 }
 0x6aa   :  { %5383 = vmatmul.msk.f32.gmra.mxu0 %vm2894_vm5, %v2891_v37 }
 0x6ab   :  { %3523 = vmatpush.msra.mxu1 %v8023_v6  ;;  %3508 = vmatpush.msra.mxu0 %v8057_v23 }
 0x6ad   :  { %3524 = vmatpush.msra.mxu1 %v8037_v18  ;;  %3509 = vmatpush.msra.mxu0 %v8069_v32 }
 0x6af   :  { %3525 = vmatpush.msra.mxu1 %v8051_v47  ;;  %3510 = vmatpush.msra.mxu0 %v8089_v30 }
 0x6b0   :  { %5423 = vmatmul.msk.f32.gmra.mxu3 %vm2894_vm5, %v7795_v50  ;;  %5399 = vmatmul.msk.f32.gmra.mxu1 %vm2894_vm5, %v2891_v37 }
 0x6b1   :  { %5408 = vmatmul.msk.f32.gmra.mxu2 %vm2894_vm5, %v7804_v21  ;;  %3511 = vmatpush.msra.mxu0 %v8105_v3 }
 0x6b2   :  { %5384 = vmatmul.msk.f32.gmra.mxu0 %vm2894_vm5, %v2892_v15 }
 0x6b3   :  { %3512 = vmatpush.msra.mxu0 %v8119_v38 }
 0x6b8   :  { %5424 = vmatmul.msk.f32.gmra.mxu3 %vm2894_vm5, %v7804_v21  ;;  %5400 = vmatmul.msk.f32.gmra.mxu1 %vm2894_vm5, %v2892_v15  ;;  %v8063_v21 = vld [vmem:[%s9306_s12 + $0xc0] sm:$0xff] }
 0x6b9   :  { %5409 = vmatmul.msk.f32.gmra.mxu2 %vm2894_vm5, %v7813_v22  ;;  %3526 = vmatpush.msra.mxu1 %v8063_v21 }
 0x6ba   :  { %5385 = vmatmul.msk.f32.gmra.mxu0 %vm2894_vm5, %v7894_v4 }
 0x6bb   :  { %3527 = vmatpush.msra.mxu1 %v8083_v39 }
 0x6bd   :  { %3528 = vmatpush.msra.mxu1 %v8099_v40 }
 0x6be   :  { %v7903_v60 = vpop.f32.mrf.mxu0 }
 0x6bf   :  { %v3287_v0 = vmul.f32 %v7903_v60, %v7903_v60  ;;  %3529 = vmatpush.msra.mxu1 %v8113_v24 }
 0x6c0   :  { %5425 = vmatmul.msk.f32.gmra.mxu3 %vm2894_vm5, %v7813_v22  ;;  %5401 = vmatmul.msk.f32.gmra.mxu1 %vm2894_vm5, %v7894_v4 }
 0x6c1   :  { %5410 = vmatmul.msk.f32.gmra.mxu2 %vm2894_vm5, %v2886_v46  ;;  %3530 = vmatpush.msra.mxu1 %v8128_v2 }
 0x6c5   :  { %v7910_v54 = vpop.f32.mrf.mxu1 }
 0x6c6   :  { %9544 = vst [vmem:[#allocation98_spill] sm:$0xff] %v7910_v54  ;;  %v7912_v63 = vpop.f32.mrf.mxu0 }
 0x6c7   :  { %v3291_v34 = vmul.f32 %v7912_v63, %v7912_v63  ;;  %v3203_v8 = vadd.f32 %v7912_v63, %v7903_v60 }
 0x6c8   :  { %5426 = vmatmul.msk.f32.gmra.mxu3 %vm2894_vm5, %v2886_v46  ;;  %v8134_v46 = vld [vmem:[%s9306_s12 + $0x8] sm:$0xff] }
 0x6c9   :  { %5411 = vmatmul.msk.f32.gmra.mxu2 %vm2894_vm5, %v2887_v13  ;;  %v3351_v17 = vadd.f32 %v3291_v34, %v3287_v0  ;;  %3513 = vmatpush.msra.mxu0 %v8134_v46  ;;  %v8167_v34 = vld [vmem:[%s9306_s12 + $0x90] sm:$0xff] }
 0x6cd   :  { %v7916_v14 = vpop.f32.mrf.mxu1 }
 0x6ce   :  { %9545 = vst [vmem:[#allocation77_spill] sm:$0xff] %v7916_v14  ;;  %v7918_v31 = vpop.f32.mrf.mxu0 }
 0x6cf   :  { %v3295_v27 = vmul.f32 %v7918_v31, %v7918_v31  ;;  %v3204_v29 = vadd.f32 %v3203_v8, %v7918_v31 }
 0x6d0   :  { %5427 = vmatmul.msk.f32.gmra.mxu3 %vm2894_vm5, %v2887_v13  ;;  %v3288_v13 = vmul.f32 %v7910_v54, %v7910_v54 }
 0x6d1   :  { %5412 = vmatmul.msk.f32.gmra.mxu2 %vm2894_vm5, %v2888_v33  ;;  %v3352_v41 = vadd.f32 %v3351_v17, %v3295_v27 }
 0x6d5   :  { %v7922_v7 = vpop.f32.mrf.mxu1 }
 0x6d6   :  { %9546 = vst [vmem:[#allocation94_spill] sm:$0xff] %v7922_v7  ;;  %v7924_v19 = vpop.f32.mrf.mxu0 }
 0x6d7   :  { %9547 = vst [vmem:[#allocation27_spill] sm:$0xff] %v7924_v19  ;;  %v3299_v52 = vmul.f32 %v7924_v19, %v7924_v19 }
 0x6d8   :  { %5428 = vmatmul.msk.f32.gmra.mxu3 %vm2894_vm5, %v2888_v33  ;;  %v3292_v33 = vmul.f32 %v7916_v14, %v7916_v14 }
 0x6d9   :  { %5413 = vmatmul.msk.f32.gmra.mxu2 %vm2894_vm5, %v2889_v26  ;;  %v3353_v8 = vadd.f32 %v3352_v41, %v3299_v52 }
 0x6da   :  { %v3372_v27 = vadd.f32 %v3292_v33, %v3288_v13 }
 0x6dd   :  { %v7928_v9 = vpop.f32.mrf.mxu1 }
 0x6de   :  { %9548 = vst [vmem:[#allocation44_spill] sm:$0xff] %v7928_v9  ;;  %v7930_v62 = vpop.f32.mrf.mxu0 }
 0x6df   :  { %9549 = vst [vmem:[#allocation76_spill] sm:$0xff] %v7930_v62  ;;  %v3303_v17 = vmul.f32 %v7930_v62, %v7930_v62 }
 0x6e0   :  { %5429 = vmatmul.msk.f32.gmra.mxu3 %vm2894_vm5, %v2889_v26 }
 0x6e1   :  { %5414 = vmatmul.msk.f32.gmra.mxu2 %vm2894_vm5, %v2890_v12  ;;  %v3354_v13 = vadd.f32 %v3353_v8, %v3303_v17 }
 0x6e5   :  { %v7934_v44 = vpop.f32.mrf.mxu1 }
 0x6e6   :  { %9550 = vst [vmem:[#allocation95_spill] sm:$0xff] %v7934_v44  ;;  %v7936_v43 = vpop.f32.mrf.mxu0 }
 0x6e7   :  { %v3307_v33 = vmul.f32 %v7936_v43, %v7936_v43 }
 0x6e8   :  { %5430 = vmatmul.msk.f32.gmra.mxu3 %vm2894_vm5, %v2890_v12  ;;  %v8150_v12 = vld [vmem:[%s9306_s12 + $0x98] sm:$0xff] }
 0x6e9   :  { %5415 = vmatmul.msk.f32.gmra.mxu2 %vm2894_vm5, %v2891_v37  ;;  %3531 = vmatpush.msra.mxu1 %v8150_v12 }
 0x6eb   :  { %3532 = vmatpush.msra.mxu1 %v8167_v34 }
 0x6ed   :  { %v7940_v28 = vpop.f32.mrf.mxu1 }
 0x6ee   :  { %9551 = vst [vmem:[#allocation96_spill] sm:$0xff] %v7940_v28  ;;  %v7942_v51 = vpop.f32.mrf.mxu0 }
 0x6f0   :  { %5431 = vmatmul.msk.f32.gmra.mxu3 %vm2894_vm5, %v2891_v37  ;;  %v8156_v37 = vld [vmem:[%s9306_s12] sm:$0xff] }
 0x6f1   :  { %5416 = vmatmul.msk.f32.gmra.mxu2 %vm2894_vm5, %v2892_v15  ;;  %3514 = vmatpush.msra.mxu0 %v8156_v37 }
 0x6f3   :  { %3579 = vmatpush.msrb.mxu0 %v7947_v10  ;;  %v8190_v10 = vld [vmem:[%s9306_s12 + $0x80] sm:$0xff] }
 0x6f5   :  { %v7964_v57 = vpop.f32.mrf.mxu1  ;;  %3580 = vmatpush.msrb.mxu0 %v7955_v58  ;;  %v3300_v58 = vmul.f32 %v7928_v9, %v7928_v9 }
 0x6f6   :  { %9552 = vst [vmem:[#allocation43_spill] sm:$0xff] %v7964_v57  ;;  %v7976_v45 = vpop.f32.mrf.mxu0 }
 0x6f7   :  { %3581 = vmatpush.msrb.mxu0 %v7961_v1  ;;  %v3311_v1 = vmul.f32 %v7942_v51, %v7942_v51 }
 0x6f8   :  { %5432 = vmatmul.msk.f32.gmra.mxu3 %vm2894_vm5, %v2892_v15  ;;  %v3224_v15 = vadd.f32 %v7916_v14, %v7910_v54  ;;  %v8179_v14 = vld [vmem:[%s9306_s12 + $0x88] sm:$0xff] }
 0x6f9   :  { %5417 = vmatmul.msk.f32.gmra.mxu2 %vm2894_vm5, %v7894_v4  ;;  %3533 = vmatpush.msra.mxu1 %v8179_v14 }
 0x6fa   :  { %v3225_v54 = vadd.f32 %v3224_v15, %v7922_v7  ;;  %3582 = vmatpush.msrb.mxu0 %v7974_v5 }
 0x6fb   :  { %3534 = vmatpush.msra.mxu1 %v8190_v10 }
 0x6fc   :  { %3583 = vmatpush.msrb.mxu0 %v7988_v61  ;;  %v3315_v61 = vmul.f32 %v7976_v45, %v7976_v45 }
 0x6fd   :  { %v8018_v49 = vpop.f32.mrf.mxu1  ;;  %3599 = vmatpush.msrb.mxu1 %v7969_v56  ;;  %v3304_v56 = vmul.f32 %v7934_v44, %v7934_v44 }
 0x6fe   :  { %9553 = vst [vmem:[#allocation60_spill] sm:$0xff] %v8018_v49  ;;  %3584 = vmatpush.msrb.mxu0 %v8003_v16 }
 0x6ff   :  { %v8032_v50 = vpop.f32.mrf.mxu0  ;;  %3600 = vmatpush.msrb.mxu1 %v7983_v35 }
 0x700   :  { %5433 = vmatmul.msk.f32.gmra.mxu3 %vm2894_vm5, %v7894_v4  ;;  %v3205_v4 = vadd.f32 %v3204_v29, %v7924_v19  ;;  %v3296_v29 = vmul.f32 %v7922_v7, %v7922_v7  ;;  %v3226_v7 = vadd.f32 %v3225_v54, %v7928_v9  ;;  %3585 = vmatpush.msrb.mxu0 %v8015_v11  ;;  %v8239_v11 = vld [vmem:[%s9306_s12 + $0x178] sm:$0xff] }
 0x701   :  { %3601 = vmatpush.msrb.mxu1 %v7997_v20  ;;  %3539 = vmatpush.msra.mxu2 %v8239_v11 }
 0x702   :  { %v3206_v41 = vadd.f32 %v3205_v4, %v7930_v62  ;;  %v3373_v15 = vadd.f32 %v3372_v27, %v3296_v29  ;;  %v3355_v62 = vadd.f32 %v3354_v13, %v3307_v33  ;;  %v3227_v54 = vadd.f32 %v3226_v7, %v7934_v44  ;;  %3586 = vmatpush.msrb.mxu0 %v8029_v48  ;;  %v8469_v44 = vld [vmem:[%s9306_s12 + $0x1b8] sm:$0xff] }
 0x703   :  { %3602 = vmatpush.msrb.mxu1 %v8009_v25  ;;  %v3308_v7 = vmul.f32 %v7940_v28, %v7940_v28  ;;  %v3312_v48 = vmul.f32 %v7964_v57, %v7964_v57 }
 0x704   :  { %v8075_v59 = vpop.f32.mrf.mxu2  ;;  %v3207_v8 = vadd.f32 %v3206_v41, %v7936_v43  ;;  %v3374_v27 = vadd.f32 %v3373_v15, %v3300_v58  ;;  %v3356_v35 = vadd.f32 %v3355_v62, %v3311_v1  ;;  %v3228_v16 = vadd.f32 %v3227_v54, %v7940_v28  ;;  %3587 = vmatpush.msrb.mxu0 %v8043_v53  ;;  %v8464_v28 = vld [vmem:[%s9306_s12 + $0x120] sm:$0xff] }
 0x705   :  { %9554 = vst [vmem:[#allocation75_spill] sm:$0xff] %v8075_v59  ;;  %v8078_v36 = vpop.f32.mrf.mxu1  ;;  %3603 = vmatpush.msrb.mxu1 %v8023_v6  ;;  %v3319_v15 = vmul.f32 %v8032_v50, %v8032_v50 }
 0x706   :  { %9555 = vst [vmem:[#allocation93_spill] sm:$0xff] %v8078_v36  ;;  %v3208_v5 = vadd.f32 %v3207_v8, %v7942_v51  ;;  %v3375_v13 = vadd.f32 %v3374_v27, %v3304_v56  ;;  %v3357_v33 = vadd.f32 %v3356_v35, %v3315_v61  ;;  %v3229_v58 = vadd.f32 %v3228_v16, %v7964_v57  ;;  %v8279_v35 = vld [vmem:[%s9306_s12 + $0x170] sm:$0xff] }
 0x707   :  { %v8094_v22 = vpop.f32.mrf.mxu0  ;;  %3604 = vmatpush.msrb.mxu1 %v8037_v18  ;;  %3588 = vmatpush.msrb.mxu0 %v8057_v23 }
 0x708   :  { %v3209_v25 = vadd.f32 %v3208_v5, %v7976_v45  ;;  %v3376_v6 = vadd.f32 %v3375_v13, %v3308_v7  ;;  %v3358_v1 = vadd.f32 %v3357_v33, %v3319_v15  ;;  %v3323_v53 = vmul.f32 %v8094_v22, %v8094_v22  ;;  %v8270_v5 = vld [vmem:[%s9306_s12 + $0x1f8] sm:$0xff]  ;;  %3540 = vmatpush.msra.mxu2 %v8279_v35 }
 0x709   :  { %3605 = vmatpush.msrb.mxu1 %v8051_v47  ;;  %3589 = vmatpush.msrb.mxu0 %v8069_v32  ;;  %v3316_v47 = vmul.f32 %v8018_v49, %v8018_v49  ;;  %v3230_v23 = vadd.f32 %v3229_v58, %v8018_v49  ;;  %v3320_v13 = vmul.f32 %v8078_v36, %v8078_v36  ;;  %v8319_v58 = vld [vmem:[%s9306_s12 + $0x168] sm:$0xff] }
 0x70a   :  { %v3210_v8 = vadd.f32 %v3209_v25, %v8032_v50  ;;  %v3377_v56 = vadd.f32 %v3376_v6, %v3312_v48  ;;  %3559 = vmatpush.msra.mxu3 %v8270_v5  ;;  %v8310_v48 = vld [vmem:[%s9306_s12 + $0x1f0] sm:$0xff]  ;;  %3541 = vmatpush.msra.mxu2 %v8319_v58 }
 0x70b   :  { %v8123_v55 = vpop.f32.mrf.mxu3  ;;  %3606 = vmatpush.msrb.mxu1 %v8063_v21  ;;  %3590 = vmatpush.msrb.mxu0 %v8089_v30  ;;  %v3231_v7 = vadd.f32 %v3230_v23, %v8078_v36 }
 0x70c   :  { %v8138_v42 = vpop.f32.mrf.mxu2  ;;  %v3211_v21 = vadd.f32 %v3210_v8, %v8094_v22  ;;  %v3378_v30 = vadd.f32 %v3377_v56, %v3316_v47  ;;  %3560 = vmatpush.msra.mxu3 %v8310_v48 }
 0x70d   :  { %9556 = vst [vmem:[#allocation42_spill] sm:$0xff] %v8138_v42  ;;  %v8145_v26 = vpop.f32.mrf.mxu1  ;;  %3607 = vmatpush.msrb.mxu1 %v8083_v39  ;;  %v3359_v39 = vadd.f32 %v3358_v1, %v3323_v53  ;;  %3591 = vmatpush.msrb.mxu0 %v8105_v3 }
 0x70e   :  { %9557 = vst [vmem:[#allocation59_spill] sm:$0xff] %v8145_v26  ;;  %v3379_v15 = vadd.f32 %v3378_v30, %v3320_v13 }
 0x70f   :  { %v8162_v0 = vpop.f32.mrf.mxu0  ;;  %3608 = vmatpush.msrb.mxu1 %v8099_v40  ;;  %3592 = vmatpush.msrb.mxu0 %v8119_v38  ;;  %v3232_v38 = vadd.f32 %v3231_v7, %v8145_v26 }
 0x710   :  { %9558 = vst [vmem:[#allocation74_spill] sm:$0xff] %v8162_v0  ;;  %v3327_v61 = vmul.f32 %v8162_v0, %v8162_v0  ;;  %v3212_v16 = vadd.f32 %v3211_v21, %v8162_v0 }
 0x711   :  { %3609 = vmatpush.msrb.mxu1 %v8113_v24  ;;  %3593 = vmatpush.msrb.mxu0 %v8134_v46  ;;  %v3324_v24 = vmul.f32 %v8145_v26, %v8145_v26 }
 0x712   :  { %v3360_v25 = vadd.f32 %v3359_v39, %v3327_v61 }
 0x713   :  { %v8185_v52 = vpop.f32.mrf.mxu3  ;;  %3610 = vmatpush.msrb.mxu1 %v8128_v2  ;;  %3594 = vmatpush.msrb.mxu0 %v8156_v37  ;;  %v3380_v1 = vadd.f32 %v3379_v15, %v3324_v24  ;;  %v8359_v24 = vld [vmem:[%s9306_s12 + $0x160] sm:$0xff] }
 0x714   :  { %v8194_v19 = vpop.f32.mrf.mxu2  ;;  %3542 = vmatpush.msra.mxu2 %v8359_v24 }
 0x715   :  { %v8200_v4 = vpop.f32.mrf.mxu1  ;;  %3611 = vmatpush.msrb.mxu1 %v8150_v12 }
 0x716   :  { %9559 = vst [vmem:[#allocation92_spill] sm:$0xff] %v8200_v4  ;;  %v3328_v37 = vmul.f32 %v8200_v4, %v8200_v4  ;;  %v3233_v53 = vadd.f32 %v3232_v38, %v8200_v4 }
 0x717   :  { %v8206_v17 = vpop.f32.mrf.mxu0  ;;  %3612 = vmatpush.msrb.mxu1 %v8167_v34 }
 0x718   :  { %9560 = vst [vmem:[#allocation101_spill] sm:$0xff] %v8206_v17  ;;  %v3331_v3 = vmul.f32 %v8206_v17, %v8206_v17  ;;  %v3213_v2 = vadd.f32 %v3212_v16, %v8206_v17  ;;  %v3245_v17 = vadd.f32 %v8138_v42, %v8075_v59 }
 0x719   :  { %3613 = vmatpush.msrb.mxu1 %v8179_v14  ;;  %v3381_v14 = vadd.f32 %v3380_v1, %v3328_v37 }
 0x71a   :  { %v3361_v12 = vadd.f32 %v3360_v25, %v3331_v3 }
 0x71b   :  { %v8218_v29 = vpop.f32.mrf.mxu3  ;;  %3614 = vmatpush.msrb.mxu1 %v8190_v10  ;;  %v8349_v10 = vld [vmem:[%s9306_s12 + $0x1e8] sm:$0xff] }
 0x71c   :  { %v8223_v41 = vpop.f32.mrf.mxu2  ;;  %3561 = vmatpush.msra.mxu3 %v8349_v10 }
 0x71d   :  { %v8228_v20 = vpop.f32.mrf.mxu1 }
 0x71e   :  { %9561 = vst [vmem:[#allocation41_spill] sm:$0xff] %v8228_v20  ;;  %v3332_v30 = vmul.f32 %v8228_v20, %v8228_v20  ;;  %v3234_v7 = vadd.f32 %v3233_v53, %v8228_v20 }
 0x71f   :  { %v8234_v62 = vpop.f32.mrf.mxu0 }
 0x720   :  { %9562 = vst [vmem:[#allocation58_spill] sm:$0xff] %v8234_v62  ;;  %v3335_v8 = vmul.f32 %v8234_v62, %v8234_v62  ;;  %v3214_v56 = vadd.f32 %v3213_v2, %v8234_v62  ;;  %v3382_v1 = vadd.f32 %v3381_v14, %v3332_v30 }
 0x722   :  { %v3362_v21 = vadd.f32 %v3361_v12, %v3335_v8 }
 0x723   :  { %v8252_v18 = vpop.f32.mrf.mxu3 }
 0x724   :  { %v8257_v27 = vpop.f32.mrf.mxu2 }
 0x725   :  { %v8262_v54 = vpop.f32.mrf.mxu1 }
 0x726   :  { %9563 = vst [vmem:[#allocation73_spill] sm:$0xff] %v8262_v54  ;;  %v3336_v3 = vmul.f32 %v8262_v54, %v8262_v54  ;;  %v3235_v38 = vadd.f32 %v3234_v7, %v8262_v54 }
 0x727   :  { %v8273_v32 = vpop.f32.mrf.mxu0 }
 0x728   :  { %9564 = vst [vmem:[#allocation91_spill] sm:$0xff] %v8273_v32  ;;  %v3339_v47 = vmul.f32 %v8273_v32, %v8273_v32  ;;  %v3215_v39 = vadd.f32 %v3214_v56, %v8273_v32  ;;  %v8521_v32 = vld [vmem:[%s9306_s12 + $0x198] sm:$0xff] }
 0x72a   :  { %v3363_v16 = vadd.f32 %v3362_v21, %v3339_v47  ;;  %v3383_v21 = vadd.f32 %v3382_v1, %v3336_v3  ;;  %v8382_v3 = vld [vmem:[%s9306_s12 + $0x1e0] sm:$0xff] }
 0x72b   :  { %v8292_v40 = vpop.f32.mrf.mxu3  ;;  %3562 = vmatpush.msra.mxu3 %v8382_v3 }
 0x72c   :  { %v8295_v33 = vpop.f32.mrf.mxu2 }
 0x72d   :  { %v8302_v6 = vpop.f32.mrf.mxu1 }
 0x72e   :  { %9565 = vst [vmem:[#allocation102_spill] sm:$0xff] %v8302_v6  ;;  %v3340_v37 = vmul.f32 %v8302_v6, %v8302_v6  ;;  %v3236_v53 = vadd.f32 %v3235_v38, %v8302_v6 }
 0x72f   :  { %v8313_v46 = vpop.f32.mrf.mxu0 }
 0x730   :  { %9566 = vst [vmem:[#allocation40_spill] sm:$0xff] %v8313_v46  ;;  %v3343_v61 = vmul.f32 %v8313_v46, %v8313_v46  ;;  %v3216_v25 = vadd.f32 %v3215_v39, %v8313_v46  ;;  %v3384_v14 = vadd.f32 %v3383_v21, %v3340_v37  ;;  %v8516_v46 = vld [vmem:[%s9306_s12 + $0x100] sm:$0xff] }
 0x732   :  { %v3364_v2 = vadd.f32 %v3363_v16, %v3343_v61 }
 0x733   :  { %v8332_v34 = vpop.f32.mrf.mxu3 }
 0x734   :  { %v8335_v23 = vpop.f32.mrf.mxu2 }
 0x735   :  { %v8342_v13 = vpop.f32.mrf.mxu1 }
 0x736   :  { %9567 = vst [vmem:[#allocation57_spill] sm:$0xff] %v8342_v13  ;;  %v3344_v61 = vmul.f32 %v8342_v13, %v8342_v13  ;;  %v3237_v16 = vadd.f32 %v3236_v53, %v8342_v13  ;;  %v8412_v13 = vld [vmem:[%s9306_s12 + $0x1d8] sm:$0xff] }
 0x737   :  { %v8353_v15 = vpop.f32.mrf.mxu0  ;;  %3563 = vmatpush.msra.mxu3 %v8412_v13 }
 0x738   :  { %9568 = vst [vmem:[#allocation72_spill] sm:$0xff] %v8353_v15  ;;  %v3217_v12 = vadd.f32 %v3216_v25, %v8353_v15  ;;  %v3347_v8 = vmul.f32 %v8353_v15, %v8353_v15 }
 0x73a   :  { %v3218_v56 = vrot.slane %v3217_v12, 4  ;;  %v3365_v47 = vadd.f32 %v3364_v2, %v3347_v8  ;;  %v8387_v2 = vld [vmem:[%s9306_s12 + $0x158] sm:$0xff]  ;;  %v3385_v8 = vadd.f32 %v3384_v14, %v3344_v61 }
 0x73b   :  { %v8369_v39 = vpop.f32.mrf.mxu3  ;;  %3543 = vmatpush.msra.mxu2 %v8387_v2 }
 0x73c   :  { %v8373_v7 = vpop.f32.mrf.mxu2  ;;  %v3219_v25 = vadd.f32 %v3218_v56, %v3217_v12  ;;  %v3366_v54 = vrot.slane %v3365_v47, 4  ;;  %v8401_v56 = vld [vmem:[%s9306_s12 + $0x148] sm:$0xff] }
 0x73d   :  { %v8376_v30 = vpop.f32.mrf.mxu1 }
 0x73e   :  { %9569 = vst [vmem:[#allocation90_spill] sm:$0xff] %v8376_v30  ;;  %v3220_v20 = vrot.slane %v3219_v25, 2  ;;  %v3367_v4 = vadd.f32 %v3366_v54, %v3365_v47  ;;  %v3238_v38 = vadd.f32 %v3237_v16, %v8376_v30  ;;  %v3348_v12 = vmul.f32 %v8376_v30, %v8376_v30  ;;  %v8396_v54 = vld [vmem:[%s9306_s12 + $0x150] sm:$0xff] }
 0x73f   :  { %3544 = vmatpush.msra.mxu2 %v8396_v54 }
 0x740   :  { %v3221_v1 = vadd.f32 %v3220_v20, %v3219_v25  ;;  %v3368_v37 = vrot.slane %v3367_v4, 2  ;;  %v3239_v53 = vrot.slane %v3238_v38, 4  ;;  %v3386_v47 = vadd.f32 %v3385_v8, %v3348_v12  ;;  %v8417_v8 = vld [vmem:[%s9306_s12 + $0x140] sm:$0xff] }
 0x741   :  { %3545 = vmatpush.msra.mxu2 %v8401_v56 }
 0x742   :  { %v3222_v21 = vrot.slane %v3221_v1, 1  ;;  %v3240_v61 = vadd.f32 %v3239_v53, %v3238_v38  ;;  %v3387_v14 = vrot.slane %v3386_v47, 4  ;;  %v3369_v25 = vadd.f32 %v3368_v37, %v3367_v4  ;;  %v8424_v4 = vld [vmem:[%s9306_s12 + $0x138] sm:$0xff] }
 0x743   :  { %v8404_v16 = vpop.f32.mrf.mxu3  ;;  %3546 = vmatpush.msra.mxu2 %v8417_v8 }
 0x744   :  { %v8407_v30 = vpop.f32.mrf.mxu2  ;;  %v3223_v20 = vadd.f32 %v3222_v21, %v3221_v1  ;;  %v3241_v38 = vrot.slane %v3240_v61, 2  ;;  %v3388_v12 = vadd.f32 %v3387_v14, %v3386_v47  ;;  %v8429_v1 = vld [vmem:[%s9306_s12 + $0x1d0] sm:$0xff]  ;;  %v8441_v21 = vld [vmem:[%s9306_s12 + $0x1c8] sm:$0xff]  ;;  %v3370_v14 = vrot.slane %v3369_v25, 1 }
 0x745   :  { %3547 = vmatpush.msra.mxu2 %v8424_v4  ;;  %3564 = vmatpush.msra.mxu3 %v8429_v1  ;;  %v8436_v47 = vld [vmem:[%s9306_s12 + $0x130] sm:$0xff] }
 0x746   :  { %3515 = vmatmul.f32.vlgmr.msra.gmra.mxu0 %v3223_v20  ;;  %v3242_v37 = vadd.f32 %v3241_v38, %v3240_v61  ;;  %v3389_v53 = vrot.slane %v3388_v12, 2  ;;  %v8446_v61 = vld [vmem:[%s9306_s12 + $0x128] sm:$0xff]  ;;  %v8451_v20 = vld [vmem:[%s9306_s12 + $0x1c0] sm:$0xff]  ;;  %v3371_v57 = vadd.f32 %v3370_v14, %v3369_v25  ;;  %v8476_v25 = vld [vmem:[%s9306_s12 + $0x118] sm:$0xff] }
 0x747   :  { %3548 = vmatpush.msra.mxu2 %v8436_v47  ;;  %3565 = vmatpush.msra.mxu3 %v8441_v21  ;;  %v8504_v14 = vld [vmem:[%s9306_s12 + $0x1a0] sm:$0xff] }
 0x748   :  { %v3243_v38 = vrot.slane %v3242_v37, 1  ;;  %v3390_v36 = vadd.f32 %v3389_v53, %v3388_v12  ;;  %v8481_v12 = vld [vmem:[%s9306_s12 + $0x1b0] sm:$0xff]  ;;  %v8498_v53 = vld [vmem:[%s9306_s12 + $0x108] sm:$0xff] }
 0x749   :  { %3549 = vmatpush.msra.mxu2 %v8446_v61  ;;  %3566 = vmatpush.msra.mxu3 %v8451_v20 }
 0x74a   :  { %v3244_v26 = vadd.f32 %v3243_v38, %v3242_v37  ;;  %v3391_v37 = vrot.slane %v3390_v36, 1 }
 0x74b   :  { %v8455_v6 = vpop.f32.mrf.mxu3  ;;  %3550 = vmatpush.msra.mxu2 %v8464_v28  ;;  %3567 = vmatpush.msra.mxu3 %v8469_v44 }
 0x74c   :  { %v8459_v49 = vpop.f32.mrf.mxu2  ;;  %3535 = vmatmul.f32.vlgmr.msra.gmra.mxu1 %v3244_v26  ;;  %v8487_v26 = vld [vmem:[%s9306_s12 + $0x110] sm:$0xff]  ;;  %v3392_v38 = vadd.f32 %v3391_v37, %v3390_v36  ;;  %v8534_v37 = vld [vmem:[%s9306_s12 + $0x188] sm:$0xff] }
 0x74d   :  { %3551 = vmatpush.msra.mxu2 %v8476_v25  ;;  %3568 = vmatpush.msra.mxu3 %v8481_v12  ;;  %v8529_v36 = vld [vmem:[%s9306_s12 + $0x190] sm:$0xff] }
 0x74e   :  { %3595 = vmatmul.f32.vlgmr.msrb.gmra.mxu0 %v3371_v57  ;;  %v8492_v57 = vld [vmem:[%s9306_s12 + $0x1a8] sm:$0xff] }
 0x74f   :  { %3552 = vmatpush.msra.mxu2 %v8487_v26  ;;  %3569 = vmatpush.msra.mxu3 %v8492_v57 }
 0x751   :  { %3553 = vmatpush.msra.mxu2 %v8498_v53  ;;  %3570 = vmatpush.msra.mxu3 %v8504_v14 }
 0x753   :  { %v8507_v9 = vpop.f32.mrf.mxu3  ;;  %3554 = vmatpush.msra.mxu2 %v8516_v46  ;;  %3571 = vmatpush.msra.mxu3 %v8521_v32 }
 0x754   :  { %v8510_v15 = vpop.f32.mrf.mxu2  ;;  %3615 = vmatmul.f32.vlgmr.msrb.gmra.mxu1 %v3392_v38  ;;  %v8541_v38 = vld [vmem:[%s9306_s12 + $0x180] sm:$0xff] }
 0x755   :  { %3619 = vmatpush.msrb.mxu2 %v8239_v11  ;;  %3572 = vmatpush.msra.mxu3 %v8529_v36 }
 0x757   :  { %3620 = vmatpush.msrb.mxu2 %v8279_v35  ;;  %3573 = vmatpush.msra.mxu3 %v8534_v37  ;;  %v3293_v35 = vmul.f32 %v8138_v42, %v8138_v42 }
 0x759   :  { %3621 = vmatpush.msrb.mxu2 %v8319_v58  ;;  %3574 = vmatpush.msra.mxu3 %v8541_v38  ;;  %v3289_v58 = vmul.f32 %v8075_v59, %v8075_v59 }
 0x75b   :  { %v8545_v11 = vpop.f32.mrf.mxu3  ;;  %3622 = vmatpush.msrb.mxu2 %v8359_v24  ;;  %3639 = vmatpush.msrb.mxu3 %v8270_v5  ;;  %v3297_v24 = vmul.f32 %v8194_v19, %v8194_v19  ;;  %v3393_v5 = vadd.f32 %v3293_v35, %v3289_v58  ;;  %v3309_v35 = vmul.f32 %v8295_v33, %v8295_v33 }
 0x75c   :  { %9570 = vst [vmem:[#allocation99_spill] sm:$0xff] %v8545_v11  ;;  %v8547_v62 = vpop.f32.mrf.mxu2  ;;  %v3266_v58 = vadd.f32 %v8185_v52, %v8123_v55 }
 0x75d   :  { %3623 = vmatpush.msrb.mxu2 %v8387_v2  ;;  %3640 = vmatpush.msrb.mxu3 %v8310_v48  ;;  %v3246_v2 = vadd.f32 %v3245_v17, %v8194_v19  ;;  %v3301_v48 = vmul.f32 %v8223_v41, %v8223_v41  ;;  %v3394_v42 = vadd.f32 %v3393_v5, %v3297_v24 }
 0x75e   :  { %v3294_v17 = vmul.f32 %v8185_v52, %v8185_v52  ;;  %v3267_v24 = vadd.f32 %v3266_v58, %v8218_v29  ;;  %v3302_v5 = vmul.f32 %v8252_v18, %v8252_v18 }
 0x75f   :  { %3624 = vmatpush.msrb.mxu2 %v8396_v54  ;;  %3641 = vmatpush.msrb.mxu3 %v8349_v10  ;;  %v3247_v59 = vadd.f32 %v3246_v2, %v8223_v41  ;;  %v3305_v10 = vmul.f32 %v8257_v27, %v8257_v27 }
 0x761   :  { %3625 = vmatpush.msrb.mxu2 %v8401_v56  ;;  %3642 = vmatpush.msrb.mxu3 %v8382_v3  ;;  %v3395_v56 = vadd.f32 %v3394_v42, %v3301_v48  ;;  %v3248_v3 = vadd.f32 %v3247_v59, %v8257_v27  ;;  %v3313_v59 = vmul.f32 %v8335_v23, %v8335_v23 }
 0x763   :  { %v8568_v54 = vpop.f32.mrf.mxu3  ;;  %3626 = vmatpush.msrb.mxu2 %v8417_v8  ;;  %3643 = vmatpush.msrb.mxu3 %v8412_v13  ;;  %v3290_v8 = vmul.f32 %v8123_v55, %v8123_v55  ;;  %v3298_v13 = vmul.f32 %v8218_v29, %v8218_v29  ;;  %v3249_v42 = vadd.f32 %v3248_v3, %v8295_v33 }
 0x764   :  { %9571 = vst [vmem:[#allocation100_spill] sm:$0xff] %v8568_v54  ;;  %v8571_v0 = vpop.f32.mrf.mxu2 }
 0x765   :  { %3627 = vmatpush.msrb.mxu2 %v8424_v4  ;;  %3644 = vmatpush.msrb.mxu3 %v8429_v1  ;;  %v3396_v4 = vadd.f32 %v3395_v56, %v3305_v10  ;;  %v3414_v1 = vadd.f32 %v3294_v17, %v3290_v8  ;;  %v3250_v48 = vadd.f32 %v3249_v42, %v8335_v23 }
 0x766   :  { %v3306_v17 = vmul.f32 %v8292_v40, %v8292_v40  ;;  %v3321_v8 = vmul.f32 %v8407_v30, %v8407_v30 }
 0x767   :  { %3628 = vmatpush.msrb.mxu2 %v8436_v47  ;;  %3645 = vmatpush.msrb.mxu3 %v8441_v21  ;;  %v3397_v2 = vadd.f32 %v3396_v4, %v3309_v35  ;;  %v3317_v47 = vmul.f32 %v8373_v7, %v8373_v7  ;;  %v3415_v56 = vadd.f32 %v3414_v1, %v3298_v13 }
 0x768   :  { %v3268_v21 = vadd.f32 %v3267_v24, %v8252_v18  ;;  %v3251_v35 = vadd.f32 %v3250_v48, %v8373_v7  ;;  %v3310_v13 = vmul.f32 %v8332_v34, %v8332_v34 }
 0x769   :  { %3629 = vmatpush.msrb.mxu2 %v8446_v61  ;;  %3646 = vmatpush.msrb.mxu3 %v8451_v20  ;;  %v3398_v61 = vadd.f32 %v3397_v2, %v3313_v59  ;;  %v3416_v58 = vadd.f32 %v3415_v56, %v3302_v5 }
 0x76a   :  { %v3269_v20 = vadd.f32 %v3268_v21, %v8292_v40  ;;  %v3252_v42 = vadd.f32 %v3251_v35, %v8407_v30 }
 0x76b   :  { %v8603_v10 = vpop.f32.mrf.mxu3  ;;  %3630 = vmatpush.msrb.mxu2 %v8464_v28  ;;  %3647 = vmatpush.msrb.mxu3 %v8469_v44  ;;  %v3399_v4 = vadd.f32 %v3398_v61, %v3317_v47  ;;  %v3325_v28 = vmul.f32 %v8459_v49, %v8459_v49  ;;  %v3417_v59 = vadd.f32 %v3416_v58, %v3306_v17 }
 0x76c   :  { %9572 = vst [vmem:[#allocation39_spill] sm:$0xff] %v8603_v10  ;;  %v8609_v3 = vpop.f32.mrf.mxu2  ;;  %v3270_v1 = vadd.f32 %v3269_v20, %v8332_v34  ;;  %v3314_v44 = vmul.f32 %v8369_v39, %v8369_v39  ;;  %v3253_v5 = vadd.f32 %v3252_v42, %v8459_v49  ;;  %v3322_v61 = vmul.f32 %v8455_v6, %v8455_v6 }
 0x76d   :  { %3631 = vmatpush.msrb.mxu2 %v8476_v25  ;;  %3648 = vmatpush.msrb.mxu3 %v8481_v12  ;;  %v3400_v24 = vadd.f32 %v3399_v4, %v3321_v8  ;;  %v3329_v25 = vmul.f32 %v8510_v15, %v8510_v15  ;;  %v3418_v2 = vadd.f32 %v3417_v59, %v3310_v13 }
 0x76e   :  { %v3271_v48 = vadd.f32 %v3270_v1, %v8369_v39  ;;  %v3318_v12 = vmul.f32 %v8404_v16, %v8404_v16  ;;  %v3254_v56 = vadd.f32 %v3253_v5, %v8510_v15  ;;  %v3337_v58 = vmul.f32 %v8571_v0, %v8571_v0 }
 0x76f   :  { %3632 = vmatpush.msrb.mxu2 %v8487_v26  ;;  %3649 = vmatpush.msrb.mxu3 %v8492_v57  ;;  %v3401_v47 = vadd.f32 %v3400_v24, %v3325_v28  ;;  %v3333_v26 = vmul.f32 %v8547_v62, %v8547_v62  ;;  %v3419_v17 = vadd.f32 %v3418_v2, %v3314_v44 }
 0x770   :  { %v3272_v57 = vadd.f32 %v3271_v48, %v8404_v16  ;;  %v3255_v8 = vadd.f32 %v3254_v56, %v8547_v62  ;;  %v3326_v13 = vmul.f32 %v8507_v9, %v8507_v9 }
 0x771   :  { %3633 = vmatpush.msrb.mxu2 %v8498_v53  ;;  %3650 = vmatpush.msrb.mxu3 %v8504_v14  ;;  %v3402_v53 = vadd.f32 %v3401_v47, %v3329_v25  ;;  %v3420_v20 = vadd.f32 %v3419_v17, %v3318_v12 }
 0x772   :  { %v3273_v14 = vadd.f32 %v3272_v57, %v8455_v6  ;;  %v3256_v42 = vadd.f32 %v3255_v8, %v8571_v0 }
 0x773   :  { %v8639_v21 = vpop.f32.mrf.mxu3  ;;  %3634 = vmatpush.msrb.mxu2 %v8516_v46  ;;  %3651 = vmatpush.msrb.mxu3 %v8521_v32  ;;  %v3403_v4 = vadd.f32 %v3402_v53, %v3333_v26  ;;  %v3341_v46 = vmul.f32 %v8609_v3, %v8609_v3  ;;  %v3421_v28 = vadd.f32 %v3420_v20, %v3322_v61 }
 0x774   :  { %9573 = vst [vmem:[#allocation56_spill] sm:$0xff] %v8639_v21  ;;  %v8645_v35 = vpop.f32.mrf.mxu2  ;;  %v3274_v59 = vadd.f32 %v3273_v14, %v8507_v9  ;;  %v3330_v32 = vmul.f32 %v8545_v11, %v8545_v11  ;;  %v3257_v44 = vadd.f32 %v3256_v42, %v8609_v3  ;;  %v3338_v26 = vmul.f32 %v8603_v10, %v8603_v10 }
 0x775   :  { %3652 = vmatpush.msrb.mxu3 %v8529_v36  ;;  %v3404_v1 = vadd.f32 %v3403_v4, %v3337_v58  ;;  %v3345_v24 = vmul.f32 %v8645_v35, %v8645_v35  ;;  %v3422_v5 = vadd.f32 %v3421_v28, %v3326_v13  ;;  %v3334_v36 = vmul.f32 %v8568_v54, %v8568_v54 }
 0x776   :  { %v3275_v25 = vadd.f32 %v3274_v59, %v8545_v11  ;;  %v3258_v48 = vadd.f32 %v3257_v44, %v8645_v35  ;;  %v9602_v11 = vld [vmem:[#allocation41_spill] sm:$0xff] }
 0x777   :  { %3653 = vmatpush.msrb.mxu3 %v8534_v37  ;;  %v3405_v2 = vadd.f32 %v3404_v1, %v3341_v46  ;;  %v3423_v47 = vadd.f32 %v3422_v5, %v3330_v32 }
 0x778   :  { %v3276_v56 = vadd.f32 %v3275_v25, %v8568_v54 }
 0x779   :  { %3654 = vmatpush.msrb.mxu3 %v8541_v38  ;;  %v3406_v17 = vadd.f32 %v3405_v2, %v3345_v24  ;;  %v3424_v53 = vadd.f32 %v3423_v47, %v3334_v36  ;;  %v3342_v38 = vmul.f32 %v8639_v21, %v8639_v21 }
 0x77a   :  { %v3277_v8 = vadd.f32 %v3276_v56, %v8603_v10 }
 0x77b   :  { %v8670_v12 = vpop.f32.mrf.mxu3  ;;  %v3425_v14 = vadd.f32 %v3424_v53, %v3338_v26 }
 0x77c   :  { %9574 = vst [vmem:[#allocation71_spill] sm:$0xff] %v8670_v12  ;;  %v8676_v37 = vpop.f32.mrf.mxu2  ;;  %v3278_v13 = vadd.f32 %v3277_v8, %v8639_v21  ;;  %v3346_v4 = vmul.f32 %v8670_v12, %v8670_v12  ;;  %v9600_v21 = vld [vmem:[#allocation59_spill] sm:$0xff] }
 0x77d   :  { %v3259_v57 = vadd.f32 %v3258_v48, %v8676_v37  ;;  %v3349_v61 = vmul.f32 %v8676_v37, %v8676_v37  ;;  %v3426_v28 = vadd.f32 %v3425_v14, %v3342_v38 }
 0x77e   :  { %v3279_v59 = vadd.f32 %v3278_v13, %v8670_v12 }
 0x77f   :  { %v3260_v58 = vrot.slane %v3259_v57, 4  ;;  %v3407_v20 = vadd.f32 %v3406_v17, %v3349_v61  ;;  %v3427_v24 = vadd.f32 %v3426_v28, %v3346_v4 }
 0x781   :  { %v3261_v42 = vadd.f32 %v3260_v58, %v3259_v57  ;;  %v3408_v46 = vrot.slane %v3407_v20, 4 }
 0x783   :  { %v3262_v32 = vrot.slane %v3261_v42, 2  ;;  %v3409_v1 = vadd.f32 %v3408_v46, %v3407_v20  ;;  %v8688_v44 = vpop.f32.mrf.mxu3 }
 0x784   :  { %9575 = vst [vmem:[#allocation89_spill] sm:$0xff] %v8688_v44  ;;  %v3280_v5 = vadd.f32 %v3279_v59, %v8688_v44  ;;  %v3350_v25 = vmul.f32 %v8688_v44, %v8688_v44 }
 0x785   :  { %v3263_v36 = vadd.f32 %v3262_v32, %v3261_v42  ;;  %v3410_v2 = vrot.slane %v3409_v1, 2 }
 0x786   :  { %v3281_v48 = vrot.slane %v3280_v5, 4  ;;  %v3428_v47 = vadd.f32 %v3427_v24, %v3350_v25  ;;  %v3677_v25 = vld [vmem:[%s9307_s13] sm:$0xff] }
 0x787   :  { %v3264_v56 = vrot.slane %v3263_v36, 1  ;;  %v3411_v61 = vadd.f32 %v3410_v2, %v3409_v1  ;;  %v3679_v2 = vld [vmem:[%s9307_s13 + $0x10] sm:$0xff]  ;;  %3700 = vmatpush.msra.mxu0 %v3677_v25 }
 0x788   :  { %v3282_v26 = vadd.f32 %v3281_v48, %v3280_v5  ;;  %v3429_v17 = vrot.slane %v3428_v47, 4 }
 0x789   :  { %v3265_v57 = vadd.f32 %v3264_v56, %v3263_v36  ;;  %v3412_v20 = vrot.slane %v3411_v61, 1  ;;  %v3678_v36 = vld [vmem:[%s9307_s13 + $0x8] sm:$0xff]  ;;  %3783 = vmatpush.msrb.mxu0 %v3677_v25  ;;  %v3674_v25 = vld [vmem:[%s9309_s15] sm:$0x1] }
 0x78a   :  { %v3283_v53 = vrot.slane %v3282_v26, 2  ;;  %v3430_v8 = vadd.f32 %v3429_v17, %v3428_v47  ;;  %3720 = vmatpush.msra.mxu1 %v3678_v36  ;;  %v3680_v47 = vld [vmem:[%s9307_s13 + $0x18] sm:$0xff] }
 0x78b   :  { %3555 = vmatmul.f32.vlgmr.msra.gmra.mxu2 %v3265_v57  ;;  %v3413_v46 = vadd.f32 %v3412_v20, %v3411_v61 }
 0x78c   :  { %v3284_v38 = vadd.f32 %v3283_v53, %v3282_v26  ;;  %v3431_v58 = vrot.slane %v3430_v8, 2  ;;  %3740 = vmatpush.msra.mxu2 %v3679_v2  ;;  %3803 = vmatpush.msrb.mxu1 %v3678_v36 }
 0x78e   :  { %v3285_v14 = vrot.slane %v3284_v38, 1  ;;  %v3432_v4 = vadd.f32 %v3431_v58, %v3430_v8 }
 0x790   :  { %v3286_v13 = vadd.f32 %v3285_v14, %v3284_v38  ;;  %v3433_v42 = vrot.slane %v3432_v4, 1 }
 0x792   :  { %3575 = vmatmul.f32.vlgmr.msra.gmra.mxu3 %v3286_v13  ;;  %v3434_v28 = vadd.f32 %v3433_v42, %v3432_v4 }
 0x793   :  { %3635 = vmatmul.f32.vlgmr.msrb.gmra.mxu2 %v3413_v46  ;;  %3760 = vmatpush.msra.mxu3 %v3680_v47 }
 0x794   :  { %3823 = vmatpush.msrb.mxu2 %v3679_v2 }
 0x79a   :  { %3655 = vmatmul.f32.vlgmr.msrb.gmra.mxu3 %v3434_v28 }
 0x79b   :  { %3843 = vmatpush.msrb.mxu3 %v3680_v47 }
 0x7c3   :  { %v3516_v32 = vpop.f32.mrf.mxu0 }
 0x7c9   :  { %v3536_v59 = vpop.f32.mrf.mxu1 }
 0x7ca   :  { %v3537_v1 = vadd.f32 %v3536_v59, %v3516_v32  ;;  %v3661_v59 = vld [vmem:[%s9308_s14] sm:$0x1] }
 0x7cb   :  { %v3596_v26 = vpop.f32.mrf.mxu0 }
 0x7d1   :  { %v3616_v48 = vpop.f32.mrf.mxu1 }
 0x7d2   :  { %v3617_v57 = vadd.f32 %v3616_v48, %v3596_v26 }
 0x80e   :  { %v3556_v24 = vpop.f32.mrf.mxu2 }
 0x80f   :  { %v3557_v56 = vadd.f32 %v3556_v24, %v3537_v1 }
 0x815   :  { %v3576_v5 = vpop.f32.mrf.mxu3 }
 0x816   :  { %v3636_v17 = vpop.f32.mrf.mxu2  ;;  %v3577_v61 = vadd.f32 %v3576_v5, %v3557_v56 }
 0x817   :  { %v3637_v53 = vadd.f32 %v3636_v17, %v3617_v57 }
 0x818   :  { %v3659_v38 = vmul.f32 %v3577_v61, %v3577_v61 }
 0x81d   :  { %v3656_v8 = vpop.f32.mrf.mxu3 }
 0x81e   :  { %v3657_v58 = vadd.f32 %v3656_v8, %v3637_v53  ;;  %v9577_v8 = vld [vmem:[#allocation76_spill] sm:$0xff] }
 0x820   :  { %v3660_v20 = vsub.f32 %v3657_v58, %v3659_v38 }
 0x822   :  { %v3662_v14 = vadd.f32 1e-05, %v3660_v20 }
 0x824   :  { %5488 = vrsqrt.f32 %v3662_v14  ;;  %vm3669_vm7 = vweird.f32 %v3662_v14 }
 0x82a   :  { %v5489_v13 = vpop.eup %5488 }
 0x82b   :  { %v3664_v4 = vmul.f32 %v5489_v13, %v3662_v14  ;;  %vm3670_vm6 = vweird.f32 %v5489_v13  ;;  %v9578_v14 = vld [vmem:[#allocation74_spill] sm:$0xff] }
 0x82c   :  { %vm3671_vm8 = vmor %vm3669_vm7, %vm3670_vm6 }
 0x82d   :  { %v3665_v46 = vmul.f32 %v5489_v13, %v3664_v4  ;;  %v9579_v4 = vld [vmem:[#allocation101_spill] sm:$0xff] }
 0x82f   :  { %v3666_v42 = vmul.f32 0.5, %v3665_v46 }
 0x831   :  { %v3667_v28 = vsub.f32 1.5, %v3666_v42 }
 0x833   :  { %v3668_v32 = vmul.f32 %v5489_v13, %v3667_v28 }
 0x835   :  { %v3672_v24 = vsel %vm3671_vm8, %v5489_v13, %v3668_v32 }
 0x836   :  { %v3673_v5 = vmul.f32 %v3672_v24, %v3661_v59  ;;  %v9582_v59 = vld [vmem:[#allocation40_spill] sm:$0xff] }
 0x838   :  { %5434 = vmatmul.msk.f32.vlgmr.msra.gmra.mxu0 %vm3681_vm9, %v3673_v5  ;;  %5435 = vmatmul.msk.f32.vlgmr.msra.gmra.mxu1 %vm3681_vm9, %v3673_v5  ;;  %v3675_v1 = vmul.f32 %v3673_v5, %v3577_v61  ;;  %v9576_v61 = vld [vmem:[#allocation27_spill] sm:$0xff] }
 0x839   :  { %5436 = vmatmul.msk.f32.vlgmr.msra.gmra.mxu2 %vm3681_vm9, %v3673_v5  ;;  %5437 = vmatmul.msk.f32.vlgmr.msra.gmra.mxu3 %vm3681_vm9, %v3673_v5 }
 0x83a   :  { %v3676_v36 = vsub.f32 %v3674_v25, %v3675_v1  ;;  %v9585_v1 = vld [vmem:[#allocation77_spill] sm:$0xff] }
 0x840   :  { %5438 = vmatmul.msk.f32.vlgmr.msrb.gmra.mxu0 %vm3681_vm9, %v3676_v36  ;;  %5439 = vmatmul.msk.f32.vlgmr.msrb.gmra.mxu1 %vm3681_vm9, %v3676_v36 }
 0x841   :  { %5440 = vmatmul.msk.f32.vlgmr.msrb.gmra.mxu2 %vm3681_vm9, %v3676_v36  ;;  %5441 = vmatmul.msk.f32.vlgmr.msrb.gmra.mxu3 %vm3681_vm9, %v3676_v36  ;;  %v9586_v36 = vld [vmem:[#allocation94_spill] sm:$0xff] }
 0x8b5   :  { %v3702_v2 = vpop.f32.mrf.mxu0  ;;  %v3722_v47 = vpop.f32.mrf.mxu1 }
 0x8b6   :  { %v3848_v48 = vperm.slane %v3702_v2, 0  ;;  %v3849_v17 = vperm.slane %v3722_v47, 0  ;;  %v9588_v47 = vld [vmem:[#allocation44_spill] sm:$0xff] }
 0x8b8   :  { %v8712_v56 = vmul.f32 %v3848_v48, %v7903_v60  ;;  %v8715_v26 = vmul.f32 %v3848_v48, %v7912_v63  ;;  %v8718_v57 = vmul.f32 %v3848_v48, %v7918_v31  ;;  %v8721_v53 = vmul.f32 %v3848_v48, %v9576_v61 }
 0x8b9   :  { %v8724_v38 = vmul.f32 %v3848_v48, %v9577_v8  ;;  %v8727_v58 = vmul.f32 %v3848_v48, %v7936_v43  ;;  %v8730_v20 = vmul.f32 %v3848_v48, %v7942_v51  ;;  %v8733_v60 = vmul.f32 %v3848_v48, %v7976_v45  ;;  %v9580_v43 = vld [vmem:[#allocation58_spill] sm:$0xff]  ;;  %v9581_v51 = vld [vmem:[#allocation91_spill] sm:$0xff] }
 0x8ba   :  { %v8736_v63 = vmul.f32 %v3848_v48, %v8032_v50  ;;  %v8739_v31 = vmul.f32 %v3848_v48, %v8094_v22  ;;  %v8742_v13 = vmul.f32 %v3848_v48, %v9578_v14  ;;  %v8745_v46 = vmul.f32 %v3848_v48, %v9579_v4  ;;  %v9583_v50 = vld [vmem:[#allocation72_spill] sm:$0xff]  ;;  %v9584_v22 = vld [vmem:[#allocation98_spill] sm:$0xff]  ;;  %v9590_v8 = vld [vmem:[#allocation95_spill] sm:$0xff] }
 0x8bb   :  { %v8748_v42 = vmul.f32 %v3848_v48, %v9580_v43  ;;  %v8751_v28 = vmul.f32 %v3848_v48, %v9581_v51  ;;  %v8754_v32 = vmul.f32 %v3848_v48, %v9582_v59  ;;  %v8757_v24 = vmul.f32 %v3848_v48, %v9583_v50  ;;  %v9592_v4 = vld [vmem:[#allocation96_spill] sm:$0xff]  ;;  %v9594_v51 = vld [vmem:[#allocation43_spill] sm:$0xff] }
 0x8bc   :  { %v3742_v45 = vpop.f32.mrf.mxu2  ;;  %v8760_v5 = vmul.f32 %v3849_v17, %v9584_v22  ;;  %v8763_v25 = vmul.f32 %v3849_v17, %v9585_v1  ;;  %v8766_v2 = vmul.f32 %v3849_v17, %v9586_v36  ;;  %v8769_v61 = vmul.f32 %v3849_v17, %v9588_v47  ;;  %v3762_v48 = vpop.f32.mrf.mxu3  ;;  %v9596_v50 = vld [vmem:[#allocation60_spill] sm:$0xff]  ;;  %v9598_v1 = vld [vmem:[#allocation93_spill] sm:$0xff] }
 0x8bd   :  { %v8772_v14 = vmul.f32 %v3849_v17, %v9590_v8  ;;  %v8775_v43 = vmul.f32 %v3849_v17, %v9592_v4  ;;  %v8778_v59 = vmul.f32 %v3849_v17, %v9594_v51  ;;  %v8781_v22 = vmul.f32 %v3849_v17, %v9596_v50  ;;  %v3785_v12 = vpop.f32.mrf.mxu0  ;;  %v3805_v47 = vpop.f32.mrf.mxu1  ;;  %v9601_v8 = vld [vmem:[#allocation92_spill] sm:$0xff]  ;;  %v9605_v51 = vld [vmem:[#allocation102_spill] sm:$0xff]  ;;  %v9606_v50 = vld [vmem:[#allocation57_spill] sm:$0xff] }
 0x8be   :  { %9587 = vst [vmem:[#allocation38_spill] sm:$0xff] %v8766_v2  ;;  %v8784_v44 = vmul.f32 %v3849_v17, %v9598_v1  ;;  %v3850_v36 = vperm.slane %v3742_v45, 0  ;;  %v3889_v10 = vmul.f32 %v3849_v17, %v9600_v21  ;;  %v3893_v54 = vmul.f32 %v3849_v17, %v9601_v8  ;;  %v9607_v1 = vld [vmem:[#allocation90_spill] sm:$0xff] }
 0x8bf   :  { %9589 = vst [vmem:[#allocation55_spill] sm:$0xff] %v8769_v61  ;;  %v3897_v4 = vmul.f32 %v3849_v17, %v9602_v11  ;;  %v8801_v45 = vperm.slane %v3762_v48, 0  ;;  %v9608_v61 = vld [vmem:[#allocation75_spill] sm:$0xff]  ;;  %v9609_v8 = vld [vmem:[#allocation42_spill] sm:$0xff]  ;;  %v3916_v11 = vperm.slane %v3785_v12, 0 }
 0x8c0   :  { %9591 = vst [vmem:[#allocation70_spill] sm:$0xff] %v8772_v14  ;;  %v8804_v21 = vmul.f32 %v3850_v36, %v9608_v61  ;;  %v8807_v2 = vmul.f32 %v3850_v36, %v9609_v8  ;;  %v8822_v61 = vmul.f32 %v3850_v36, %v8335_v23  ;;  %v8825_v48 = vmul.f32 %v3850_v36, %v8373_v7 }
 0x8c1   :  { %9593 = vst [vmem:[#allocation88_spill] sm:$0xff] %v8775_v43  ;;  %v9603_v43 = vld [vmem:[#allocation73_spill] sm:$0xff]  ;;  %v8828_v12 = vmul.f32 %v3850_v36, %v8407_v30  ;;  %v8843_v23 = vmul.f32 %v3850_v36, %v8609_v3  ;;  %v8846_v7 = vmul.f32 %v3850_v36, %v8645_v35  ;;  %v8849_v30 = vmul.f32 %v3850_v36, %v8676_v37 }
 0x8c2   :  { %9595 = vst [vmem:[#allocation37_spill] sm:$0xff] %v8778_v59  ;;  %v8790_v14 = vmul.f32 %v3849_v17, %v9603_v43  ;;  %v8793_v59 = vmul.f32 %v3849_v17, %v9605_v51  ;;  %v3917_v43 = vperm.slane %v3805_v47, 0  ;;  %v8813_v51 = vmul.f32 %v3850_v36, %v8223_v41 }
 0x8c3   :  { %9597 = vst [vmem:[#allocation54_spill] sm:$0xff] %v8781_v22  ;;  %v8796_v22 = vmul.f32 %v3849_v17, %v9606_v50  ;;  %v8816_v50 = vmul.f32 %v3850_v36, %v8257_v27  ;;  %v8834_v41 = vmul.f32 %v3850_v36, %v8510_v15  ;;  %v8837_v27 = vmul.f32 %v3850_v36, %v8547_v62 }
 0x8c4   :  { %9599 = vst [vmem:[#allocation69_spill] sm:$0xff] %v8784_v44  ;;  %v8799_v44 = vmul.f32 %v3849_v17, %v9607_v1  ;;  %v8819_v17 = vmul.f32 %v3850_v36, %v8295_v33  ;;  %v8840_v33 = vmul.f32 %v3850_v36, %v8571_v0  ;;  %v8857_v62 = vmul.f32 %v8801_v45, %v8185_v52 }
 0x8c5   :  { %9604 = vst [vmem:[#allocation87_spill] sm:$0xff] %v8790_v14  ;;  %v8810_v14 = vmul.f32 %v3850_v36, %v8194_v19  ;;  %v8831_v19 = vmul.f32 %v3850_v36, %v8459_v49  ;;  %v8853_v49 = vmul.f32 %v8801_v45, %v8123_v55  ;;  %v8861_v0 = vmul.f32 %v8801_v45, %v8218_v29 }
 0x8c6   :  { %v8865_v15 = vmul.f32 %v8801_v45, %v8252_v18  ;;  %v8869_v3 = vmul.f32 %v8801_v45, %v8292_v40  ;;  %v8873_v55 = vmul.f32 %v8801_v45, %v8332_v34  ;;  %v8877_v52 = vmul.f32 %v8801_v45, %v8369_v39 }
 0x8c7   :  { %v8881_v29 = vmul.f32 %v8801_v45, %v8404_v16  ;;  %v8885_v18 = vmul.f32 %v8801_v45, %v8455_v6  ;;  %v8889_v40 = vmul.f32 %v8801_v45, %v8507_v9  ;;  %v8892_v35 = vadd.f32 %v3916_v11, %v8712_v56 }
 0x8c8   :  { %v8895_v34 = vadd.f32 %v3916_v11, %v8715_v26  ;;  %v8898_v39 = vadd.f32 %v3916_v11, %v8718_v57  ;;  %v8901_v16 = vadd.f32 %v3916_v11, %v8721_v53  ;;  %v8904_v37 = vadd.f32 %v3916_v11, %v8724_v38 }
 0x8c9   :  { %v8907_v6 = vadd.f32 %v3916_v11, %v8727_v58  ;;  %v8910_v9 = vadd.f32 %v3916_v11, %v8730_v20  ;;  %v8913_v56 = vadd.f32 %v3916_v11, %v8733_v60  ;;  %v8916_v26 = vadd.f32 %v3916_v11, %v8736_v63 }
 0x8ca   :  { %v8919_v57 = vadd.f32 %v3916_v11, %v8739_v31  ;;  %v8922_v53 = vadd.f32 %v3916_v11, %v8742_v13  ;;  %v8925_v38 = vadd.f32 %v3916_v11, %v8745_v46  ;;  %v8928_v58 = vadd.f32 %v3916_v11, %v8748_v42  ;;  %v9616_v46 = vld [vmem:[#allocation38_spill] sm:$0xff]  ;;  %v9617_v42 = vld [vmem:[#allocation55_spill] sm:$0xff] }
 0x8cb   :  { %v8931_v20 = vadd.f32 %v3916_v11, %v8751_v28  ;;  %v8934_v60 = vadd.f32 %v3916_v11, %v8754_v32  ;;  %v8937_v63 = vadd.f32 %v3916_v11, %v8757_v24  ;;  %v8940_v31 = vadd.f32 %v3917_v43, %v8760_v5  ;;  %v9618_v28 = vld [vmem:[#allocation70_spill] sm:$0xff]  ;;  %v9619_v32 = vld [vmem:[#allocation88_spill] sm:$0xff]  ;;  %v9620_v24 = vld [vmem:[#allocation37_spill] sm:$0xff] }
 0x8cc   :  { %9610 = vst [vmem:[#allocation105_spill] sm:$0xff] %v8922_v53  ;;  %v8943_v13 = vadd.f32 %v3917_v43, %v8763_v25  ;;  %v8946_v36 = vadd.f32 %v3917_v43, %v9616_v46  ;;  %v8949_v47 = vadd.f32 %v3917_v43, %v9617_v42  ;;  %v8952_v1 = vadd.f32 %v3917_v43, %v9618_v28  ;;  %v9621_v5 = vld [vmem:[#allocation54_spill] sm:$0xff]  ;;  %v3825_v25 = vpop.f32.mrf.mxu2  ;;  %v3845_v28 = vpop.f32.mrf.mxu3 }
 0x8cd   :  { %9611 = vst [vmem:[#allocation36_spill] sm:$0xff] %v8925_v38  ;;  %v8955_v8 = vadd.f32 %v3917_v43, %v9619_v32  ;;  %v8958_v11 = vadd.f32 %v3917_v43, %v9620_v24  ;;  %v8966_v46 = vadd.f32 %v3917_v43, %v3889_v10  ;;  %v8968_v42 = vadd.f32 %v3917_v43, %v3893_v54  ;;  %v9625_v38 = vld [vmem:[#allocation87_spill] sm:$0xff]  ;;  %v9631_v54 = vld [vmem:[#allocation100_spill] sm:$0xff] }
 0x8ce   :  { %9612 = vst [vmem:[#allocation53_spill] sm:$0xff] %v8928_v58  ;;  %v8970_v58 = vadd.f32 %v3917_v43, %v3897_v4  ;;  %v8973_v32 = vadd.f32 %v3917_v43, %v9625_v38  ;;  %v8976_v24 = vadd.f32 %v3917_v43, %v8793_v59  ;;  %v8982_v53 = vadd.f32 %v3917_v43, %v8799_v44 }
 0x8cf   :  { %9613 = vst [vmem:[#allocation68_spill] sm:$0xff] %v8931_v20  ;;  %v3899_v4 = vmul.f32 %v8801_v45, %v9631_v54  ;;  %v3918_v38 = vperm.slane %v3825_v25, 0 }
 0x8d0   :  { %9614 = vst [vmem:[#allocation86_spill] sm:$0xff] %v8934_v60  ;;  %v9622_v60 = vld [vmem:[#allocation69_spill] sm:$0xff] }
 0x8d1   :  { %9615 = vst [vmem:[#allocation103_spill] sm:$0xff] %v8937_v63  ;;  %v8961_v63 = vadd.f32 %v3917_v43, %v9621_v5  ;;  %v8964_v20 = vadd.f32 %v3917_v43, %v9622_v60  ;;  %v8979_v5 = vadd.f32 %v3917_v43, %v8796_v22  ;;  %v9630_v60 = vld [vmem:[#allocation99_spill] sm:$0xff]  ;;  %v3919_v43 = vperm.slane %v3845_v28, 0 }
 0x8d2   :  { %9623 = vst [vmem:[#allocation104_spill] sm:$0xff] %v8968_v42  ;;  %v3895_v10 = vmul.f32 %v8801_v45, %v9630_v60  ;;  %v9000_v60 = vadd.f32 %v3918_v38, %v8807_v2  ;;  %v9003_v54 = vadd.f32 %v3918_v38, %v8810_v14  ;;  %v9009_v25 = vadd.f32 %v3918_v38, %v8816_v50 }
 0x8d3   :  { %9624 = vst [vmem:[#allocation35_spill] sm:$0xff] %v8970_v58  ;;  %v9632_v58 = vld [vmem:[#allocation39_spill] sm:$0xff]  ;;  %v9021_v2 = vadd.f32 %v3918_v38, %v8828_v12  ;;  %v9024_v14 = vadd.f32 %v3918_v38, %v8831_v19  ;;  %v9030_v50 = vadd.f32 %v3918_v38, %v8837_v27  ;;  %v9042_v12 = vadd.f32 %v3918_v38, %v8849_v30 }
 0x8d4   :  { %9626 = vst [vmem:[#allocation52_spill] sm:$0xff] %v8973_v32  ;;  %v3903_v42 = vmul.f32 %v8801_v45, %v9632_v58  ;;  %v9633_v32 = vld [vmem:[#allocation56_spill] sm:$0xff]  ;;  %v9006_v58 = vadd.f32 %v3918_v38, %v8813_v51  ;;  %v9027_v51 = vadd.f32 %v3918_v38, %v8834_v41  ;;  %v9045_v19 = vadd.f32 %v3919_v43, %v8853_v49 }
 0x8d5   :  { %9627 = vst [vmem:[#allocation67_spill] sm:$0xff] %v8976_v24  ;;  %v3907_v59 = vmul.f32 %v8801_v45, %v9633_v32  ;;  %v9634_v24 = vld [vmem:[#allocation71_spill] sm:$0xff]  ;;  %v9012_v32 = vadd.f32 %v3918_v38, %v8819_v17  ;;  %v9033_v17 = vadd.f32 %v3918_v38, %v8840_v33  ;;  %v9048_v41 = vadd.f32 %v3919_v43, %v8857_v62 }
 0x8d6   :  { %9628 = vst [vmem:[#allocation85_spill] sm:$0xff] %v8979_v5  ;;  %v3911_v22 = vmul.f32 %v8801_v45, %v9634_v24  ;;  %v9635_v5 = vld [vmem:[#allocation89_spill] sm:$0xff]  ;;  %v9051_v27 = vadd.f32 %v3919_v43, %v8861_v0  ;;  %v9054_v33 = vadd.f32 %v3919_v43, %v8865_v15  ;;  %v9063_v30 = vadd.f32 %v3919_v43, %v8877_v52 }
 0x8d7   :  { %9629 = vst [vmem:[#allocation34_spill] sm:$0xff] %v8982_v53  ;;  %v3915_v44 = vmul.f32 %v8801_v45, %v9635_v5  ;;  %v8997_v53 = vadd.f32 %v3918_v38, %v8804_v21  ;;  %v9015_v45 = vadd.f32 %v3918_v38, %v8822_v61  ;;  %v9018_v21 = vadd.f32 %v3918_v38, %v8825_v48 }
 0x8d8   :  { %v9036_v61 = vadd.f32 %v3918_v38, %v8843_v23  ;;  %v9039_v48 = vadd.f32 %v3918_v38, %v8846_v7  ;;  %9637 = vst [vmem:[#allocation66_spill] sm:$0xff] %v9042_v12  ;;  %v9057_v23 = vadd.f32 %v3919_v43, %v8869_v3  ;;  %v9060_v7 = vadd.f32 %v3919_v43, %v8873_v55 }
 0x8d9   :  { %v9066_v49 = vadd.f32 %v3919_v43, %v8881_v29  ;;  %v9069_v62 = vadd.f32 %v3919_v43, %v8885_v18  ;;  %v9072_v0 = vadd.f32 %v3919_v43, %v8889_v40  ;;  %v9074_v15 = vadd.f32 %v3919_v43, %v3895_v10 }
 0x8da   :  { %9636 = vst [vmem:[#allocation51_spill] sm:$0xff] %v9039_v48  ;;  %v9076_v28 = vadd.f32 %v3919_v43, %v3899_v4  ;;  %v9078_v3 = vadd.f32 %v3919_v43, %v3903_v42  ;;  %v9080_v55 = vadd.f32 %v3919_v43, %v3907_v59  ;;  %v9082_v24 = vadd.f32 %v3919_v43, %v3911_v22 }
 0x8db   :  { %v9084_v52 = vadd.f32 %v3919_v43, %v3915_v44 }
 0x8dc   :  { %9638 = vst [vmem:[#allocation84_spill] sm:$0xff] %v9080_v55 }
 0x8dd   :  { %9639 = vst [vmem:[#allocation33_spill] sm:$0xff] %v9082_v24 }
 0x8de   :  { %9640 = vst [vmem:[#allocation50_spill] sm:$0xff] %v9084_v52 }
 0x8df   :  { %5746 = dma.done.wait [#allocation7 + $0x4], 16384 }
 0x8e0   :  { %5747 = vsyncadd [#allocation7 + $0x4], 4294950912  ;;  %v4080_v29 = vld [vmem:[#allocation6 + $0x2f0] sm:$0xff]  ;;  %v4078_v18 = vld [vmem:[#allocation6 + $0x2e0] sm:$0xff]  ;;  %s5754_s14 = smov [#allocation8]   ;;  %s5280_s1 = sshll.u32 %s9310_s16, 4  ;;  %s5281_s1 = int_to_ptr.hbm [resolvable:$true] %s5280_s1 }
 0x8e1   :  { %v4112_v5 = vld [vmem:[#allocation6 + $0x3f0] sm:$0xff]  ;;  %4244 = vmatpush.msra.mxu2 %v4080_v29  ;;  %v4110_v42 = vld [vmem:[#allocation6 + $0x3e0] sm:$0xff]  ;;  %s5278_s15 = sshll.u32 %s5754_s14, 4  ;;  %s5755_s17 = smov 256   ;;  %s5279_s15 = int_to_ptr.vmem [resolvable:$true] %s5278_s15 }
 0x8e2   :  { %4309 = vmatpush.msra.mxu3 %v4112_v5  ;;  %v4016_v40 = vld [vmem:[#allocation6 + $0xf0] sm:$0xff]  ;;  %v4014_v4 = vld [vmem:[#allocation6 + $0xe0] sm:$0xff]  ;;  %s5756_s18 = smov 16  }
 0x8e3   :  { %v4048_v10 = vld [vmem:[#allocation6 + $0x1f0] sm:$0xff]  ;;  %4114 = vmatpush.msra.mxu0 %v4016_v40  ;;  %v4046_v59 = vld [vmem:[#allocation6 + $0x1e0] sm:$0xff]  ;;  %4245 = vmatpush.msra.mxu2 %v4078_v18 }
 0x8e4   :  { %v4076_v38 = vld [vmem:[#allocation6 + $0x2d0] sm:$0xff]  ;;  %4179 = vmatpush.msra.mxu1 %v4048_v10  ;;  %4310 = vmatpush.msra.mxu3 %v4110_v42  ;;  %v4074_v43 = vld [vmem:[#allocation6 + $0x2c0] sm:$0xff] }
 0x8e5   :  { %v4108_v22 = vld [vmem:[#allocation6 + $0x3d0] sm:$0xff]  ;;  %4115 = vmatpush.msra.mxu0 %v4014_v4  ;;  %v4106_v12 = vld [vmem:[#allocation6 + $0x3c0] sm:$0xff]  ;;  %4246 = vmatpush.msra.mxu2 %v4076_v38 }
 0x8e6   :  { %v4012_v44 = vld [vmem:[#allocation6 + $0xd0] sm:$0xff]  ;;  %4180 = vmatpush.msra.mxu1 %v4046_v59  ;;  %4311 = vmatpush.msra.mxu3 %v4108_v22  ;;  %v4010_v29 = vld [vmem:[#allocation6 + $0xc0] sm:$0xff] }
 0x8e7   :  { %v4044_v52 = vld [vmem:[#allocation6 + $0x1d0] sm:$0xff]  ;;  %v4042_v5 = vld [vmem:[#allocation6 + $0x1c0] sm:$0xff]  ;;  %4116 = vmatpush.msra.mxu0 %v4012_v44  ;;  %4247 = vmatpush.msra.mxu2 %v4074_v43 }
 0x8e8   :  { %4181 = vmatpush.msra.mxu1 %v4044_v52  ;;  %v4072_v40 = vld [vmem:[#allocation6 + $0x2b0] sm:$0xff]  ;;  %4312 = vmatpush.msra.mxu3 %v4106_v12  ;;  %v4070_v42 = vld [vmem:[#allocation6 + $0x2a0] sm:$0xff] }
 0x8e9   :  { %v4104_v10 = vld [vmem:[#allocation6 + $0x3b0] sm:$0xff]  ;;  %4117 = vmatpush.msra.mxu0 %v4010_v29  ;;  %v4102_v4 = vld [vmem:[#allocation6 + $0x3a0] sm:$0xff]  ;;  %4248 = vmatpush.msra.mxu2 %v4072_v40 }
 0x8ea   :  { %v4008_v24 = vld [vmem:[#allocation6 + $0xb0] sm:$0xff]  ;;  %4182 = vmatpush.msra.mxu1 %v4042_v5  ;;  %4313 = vmatpush.msra.mxu3 %v4104_v10  ;;  %v4006_v59 = vld [vmem:[#allocation6 + $0xa0] sm:$0xff] }
 0x8eb   :  { %v4040_v18 = vld [vmem:[#allocation6 + $0x1b0] sm:$0xff]  ;;  %v4038_v48 = vld [vmem:[#allocation6 + $0x1a0] sm:$0xff]  ;;  %4118 = vmatpush.msra.mxu0 %v4008_v24  ;;  %4249 = vmatpush.msra.mxu2 %v4070_v42 }
 0x8ec   :  { %4183 = vmatpush.msra.mxu1 %v4040_v18  ;;  %v4068_v38 = vld [vmem:[#allocation6 + $0x290] sm:$0xff]  ;;  %4314 = vmatpush.msra.mxu3 %v4102_v4  ;;  %v4066_v12 = vld [vmem:[#allocation6 + $0x280] sm:$0xff] }
 0x8ed   :  { %v4100_v22 = vld [vmem:[#allocation6 + $0x390] sm:$0xff]  ;;  %4119 = vmatpush.msra.mxu0 %v4006_v59  ;;  %v4098_v43 = vld [vmem:[#allocation6 + $0x380] sm:$0xff]  ;;  %4250 = vmatpush.msra.mxu2 %v4068_v38 }
 0x8ee   :  { %v4004_v52 = vld [vmem:[#allocation6 + $0x90] sm:$0xff]  ;;  %4184 = vmatpush.msra.mxu1 %v4038_v48  ;;  %4315 = vmatpush.msra.mxu3 %v4100_v22  ;;  %v4002_v29 = vld [vmem:[#allocation6 + $0x80] sm:$0xff] }
 0x8ef   :  { %v4036_v44 = vld [vmem:[#allocation6 + $0x190] sm:$0xff]  ;;  %v4034_v5 = vld [vmem:[#allocation6 + $0x180] sm:$0xff]  ;;  %4120 = vmatpush.msra.mxu0 %v4004_v52  ;;  %4251 = vmatpush.msra.mxu2 %v4066_v12 }
 0x8f0   :  { %4185 = vmatpush.msra.mxu1 %v4036_v44  ;;  %v4064_v40 = vld [vmem:[#allocation6 + $0x270] sm:$0xff]  ;;  %4316 = vmatpush.msra.mxu3 %v4098_v43  ;;  %v4062_v42 = vld [vmem:[#allocation6 + $0x260] sm:$0xff] }
 0x8f1   :  { %v4096_v10 = vld [vmem:[#allocation6 + $0x370] sm:$0xff]  ;;  %4121 = vmatpush.msra.mxu0 %v4002_v29  ;;  %v4094_v4 = vld [vmem:[#allocation6 + $0x360] sm:$0xff]  ;;  %4252 = vmatpush.msra.mxu2 %v4064_v40 }
 0x8f2   :  { %v4000_v24 = vld [vmem:[#allocation6 + $0x70] sm:$0xff]  ;;  %4186 = vmatpush.msra.mxu1 %v4034_v5  ;;  %4317 = vmatpush.msra.mxu3 %v4096_v10  ;;  %v3998_v48 = vld [vmem:[#allocation6 + $0x60] sm:$0xff] }
 0x8f3   :  { %v4032_v18 = vld [vmem:[#allocation6 + $0x170] sm:$0xff]  ;;  %v4030_v59 = vld [vmem:[#allocation6 + $0x160] sm:$0xff]  ;;  %4122 = vmatpush.msra.mxu0 %v4000_v24  ;;  %4253 = vmatpush.msra.mxu2 %v4062_v42 }
 0x8f4   :  { %4187 = vmatpush.msra.mxu1 %v4032_v18  ;;  %v4060_v38 = vld [vmem:[#allocation6 + $0x250] sm:$0xff]  ;;  %4318 = vmatpush.msra.mxu3 %v4094_v4  ;;  %v4058_v12 = vld [vmem:[#allocation6 + $0x240] sm:$0xff] }
 0x8f5   :  { %v4092_v22 = vld [vmem:[#allocation6 + $0x350] sm:$0xff]  ;;  %4123 = vmatpush.msra.mxu0 %v3998_v48  ;;  %v4090_v43 = vld [vmem:[#allocation6 + $0x340] sm:$0xff]  ;;  %4254 = vmatpush.msra.mxu2 %v4060_v38 }
 0x8f6   :  { %v3996_v52 = vld [vmem:[#allocation6 + $0x50] sm:$0xff]  ;;  %4188 = vmatpush.msra.mxu1 %v4030_v59  ;;  %4319 = vmatpush.msra.mxu3 %v4092_v22  ;;  %v3994_v29 = vld [vmem:[#allocation6 + $0x40] sm:$0xff] }
 0x8f7   :  { %v4028_v44 = vld [vmem:[#allocation6 + $0x150] sm:$0xff]  ;;  %v4026_v5 = vld [vmem:[#allocation6 + $0x140] sm:$0xff]  ;;  %4124 = vmatpush.msra.mxu0 %v3996_v52  ;;  %4255 = vmatpush.msra.mxu2 %v4058_v12 }
 0x8f8   :  { %4189 = vmatpush.msra.mxu1 %v4028_v44  ;;  %v4056_v40 = vld [vmem:[#allocation6 + $0x230] sm:$0xff]  ;;  %4320 = vmatpush.msra.mxu3 %v4090_v43  ;;  %v4054_v42 = vld [vmem:[#allocation6 + $0x220] sm:$0xff] }
 0x8f9   :  { %v4088_v10 = vld [vmem:[#allocation6 + $0x330] sm:$0xff]  ;;  %4125 = vmatpush.msra.mxu0 %v3994_v29  ;;  %v4086_v4 = vld [vmem:[#allocation6 + $0x320] sm:$0xff]  ;;  %4256 = vmatpush.msra.mxu2 %v4056_v40  ;;  %v4081_v29 = vld [vmem:[#allocation6 + $0x2f8] sm:$0xff] }
 0x8fa   :  { %v3992_v24 = vld [vmem:[#allocation6 + $0x30] sm:$0xff]  ;;  %4190 = vmatpush.msra.mxu1 %v4026_v5  ;;  %4321 = vmatpush.msra.mxu3 %v4088_v10  ;;  %v3990_v48 = vld [vmem:[#allocation6 + $0x20] sm:$0xff]  ;;  %v4113_v5 = vld [vmem:[#allocation6 + $0x3f8] sm:$0xff] }
 0x8fb   :  { %v4024_v18 = vld [vmem:[#allocation6 + $0x130] sm:$0xff]  ;;  %v4022_v59 = vld [vmem:[#allocation6 + $0x120] sm:$0xff]  ;;  %4126 = vmatpush.msra.mxu0 %v3992_v24  ;;  %4257 = vmatpush.msra.mxu2 %v4054_v42  ;;  %v4017_v24 = vld [vmem:[#allocation6 + $0xf8] sm:$0xff] }
 0x8fc   :  { %4191 = vmatpush.msra.mxu1 %v4024_v18  ;;  %v4052_v38 = vld [vmem:[#allocation6 + $0x210] sm:$0xff]  ;;  %4322 = vmatpush.msra.mxu3 %v4086_v4  ;;  %v4050_v12 = vld [vmem:[#allocation6 + $0x200] sm:$0xff]  ;;  %v4049_v18 = vld [vmem:[#allocation6 + $0x1f8] sm:$0xff] }
 0x8fd   :  { %v4084_v22 = vld [vmem:[#allocation6 + $0x310] sm:$0xff]  ;;  %4127 = vmatpush.msra.mxu0 %v3990_v48  ;;  %v4082_v43 = vld [vmem:[#allocation6 + $0x300] sm:$0xff]  ;;  %4258 = vmatpush.msra.mxu2 %v4052_v38  ;;  %v4079_v42 = vld [vmem:[#allocation6 + $0x2e8] sm:$0xff] }
 0x8fe   :  { %v3988_v52 = vld [vmem:[#allocation6 + $0x10] sm:$0xff]  ;;  %4192 = vmatpush.msra.mxu1 %v4022_v59  ;;  %4323 = vmatpush.msra.mxu3 %v4084_v22  ;;  %v3986_v40 = vld [vmem:[#allocation6] sm:$0xff]  ;;  %v4111_v4 = vld [vmem:[#allocation6 + $0x3e8] sm:$0xff] }
 0x8ff   :  { %v4020_v44 = vld [vmem:[#allocation6 + $0x110] sm:$0xff]  ;;  %4128 = vmatpush.msra.mxu0 %v3988_v52  ;;  %4259 = vmatpush.msra.mxu2 %v4050_v12  ;;  %v4018_v10 = vld [vmem:[#allocation6 + $0x100] sm:$0xff]  ;;  %v4015_v48 = vld [vmem:[#allocation6 + $0xe8] sm:$0xff] }
 0x900   :  { %4193 = vmatpush.msra.mxu1 %v4020_v44  ;;  %4324 = vmatpush.msra.mxu3 %v4082_v43  ;;  %v4047_v59 = vld [vmem:[#allocation6 + $0x1e8] sm:$0xff]  ;;  %v4077_v38 = vld [vmem:[#allocation6 + $0x2d8] sm:$0xff] }
 0x901   :  { %4260 = vmatmul.f32.vlgmr.msra.gmra.mxu2 %v8997_v53  ;;  %4325 = vmatmul.f32.vlgmr.msra.gmra.mxu3 %v9045_v19  ;;  %v4109_v22 = vld [vmem:[#allocation6 + $0x3d8] sm:$0xff]  ;;  %v4075_v12 = vld [vmem:[#allocation6 + $0x2c8] sm:$0xff] }
 0x902   :  { %4504 = vmatpush.msrb.mxu2 %v4081_v29  ;;  %4569 = vmatpush.msrb.mxu3 %v4113_v5  ;;  %v4013_v52 = vld [vmem:[#allocation6 + $0xd8] sm:$0xff]  ;;  %v4107_v43 = vld [vmem:[#allocation6 + $0x3c8] sm:$0xff] }
 0x903   :  { %4129 = vmatpush.msra.mxu0 %v3986_v40  ;;  %4194 = vmatpush.msra.mxu1 %v4018_v10  ;;  %v4045_v44 = vld [vmem:[#allocation6 + $0x1d8] sm:$0xff]  ;;  %v4011_v29 = vld [vmem:[#allocation6 + $0xc8] sm:$0xff] }
 0x904   :  { %4130 = vmatmul.f32.vlgmr.msra.gmra.mxu0 %v8892_v35  ;;  %4195 = vmatmul.f32.vlgmr.msra.gmra.mxu1 %v8940_v31  ;;  %v4043_v5 = vld [vmem:[#allocation6 + $0x1c8] sm:$0xff]  ;;  %v4073_v40 = vld [vmem:[#allocation6 + $0x2b8] sm:$0xff] }
 0x905   :  { %4374 = vmatpush.msrb.mxu0 %v4017_v24  ;;  %4439 = vmatpush.msrb.mxu1 %v4049_v18  ;;  %v4105_v10 = vld [vmem:[#allocation6 + $0x3b8] sm:$0xff] }
 0x906   :  { %4505 = vmatpush.msrb.mxu2 %v4079_v42  ;;  %4570 = vmatpush.msrb.mxu3 %v4111_v4  ;;  %v4009_v24 = vld [vmem:[#allocation6 + $0xb8] sm:$0xff]  ;;  %v4071_v42 = vld [vmem:[#allocation6 + $0x2a8] sm:$0xff] }
 0x907   :  { %4375 = vmatpush.msrb.mxu0 %v4015_v48  ;;  %4440 = vmatpush.msrb.mxu1 %v4047_v59  ;;  %v4041_v18 = vld [vmem:[#allocation6 + $0x1b8] sm:$0xff]  ;;  %v4103_v4 = vld [vmem:[#allocation6 + $0x3a8] sm:$0xff] }
 0x908   :  { %4506 = vmatpush.msrb.mxu2 %v4077_v38  ;;  %4571 = vmatpush.msrb.mxu3 %v4109_v22  ;;  %v4007_v48 = vld [vmem:[#allocation6 + $0xa8] sm:$0xff]  ;;  %v4069_v38 = vld [vmem:[#allocation6 + $0x298] sm:$0xff] }
 0x909   :  { %4263 = vmatmul.f32.gmra.mxu2 %v9000_v60  ;;  %4328 = vmatmul.f32.gmra.mxu3 %v9048_v41  ;;  %v4039_v59 = vld [vmem:[#allocation6 + $0x1a8] sm:$0xff]  ;;  %v4101_v22 = vld [vmem:[#allocation6 + $0x398] sm:$0xff] }
 0x90a   :  { %4376 = vmatpush.msrb.mxu0 %v4013_v52  ;;  %4441 = vmatpush.msrb.mxu1 %v4045_v44  ;;  %v4005_v52 = vld [vmem:[#allocation6 + $0x98] sm:$0xff] }
 0x90b   :  { %4507 = vmatpush.msrb.mxu2 %v4075_v12  ;;  %4572 = vmatpush.msrb.mxu3 %v4107_v43  ;;  %v4037_v44 = vld [vmem:[#allocation6 + $0x198] sm:$0xff]  ;;  %v4067_v12 = vld [vmem:[#allocation6 + $0x288] sm:$0xff] }
 0x90c   :  { %4133 = vmatmul.f32.gmra.mxu0 %v8895_v34  ;;  %4198 = vmatmul.f32.gmra.mxu1 %v8943_v13  ;;  %v4099_v43 = vld [vmem:[#allocation6 + $0x388] sm:$0xff] }
 0x90d   :  { %4377 = vmatpush.msrb.mxu0 %v4011_v29  ;;  %4442 = vmatpush.msrb.mxu1 %v4043_v5  ;;  %v4003_v29 = vld [vmem:[#allocation6 + $0x88] sm:$0xff] }
 0x90e   :  { %4508 = vmatpush.msrb.mxu2 %v4073_v40  ;;  %4573 = vmatpush.msrb.mxu3 %v4105_v10  ;;  %v4035_v5 = vld [vmem:[#allocation6 + $0x188] sm:$0xff]  ;;  %v4065_v40 = vld [vmem:[#allocation6 + $0x278] sm:$0xff] }
 0x90f   :  { %4378 = vmatpush.msrb.mxu0 %v4009_v24  ;;  %4443 = vmatpush.msrb.mxu1 %v4041_v18  ;;  %v4097_v10 = vld [vmem:[#allocation6 + $0x378] sm:$0xff] }
 0x910   :  { %4509 = vmatpush.msrb.mxu2 %v4071_v42  ;;  %4574 = vmatpush.msrb.mxu3 %v4103_v4  ;;  %v4001_v24 = vld [vmem:[#allocation6 + $0x78] sm:$0xff]  ;;  %v4063_v42 = vld [vmem:[#allocation6 + $0x268] sm:$0xff] }
 0x911   :  { %4266 = vmatmul.f32.gmra.mxu2 %v9003_v54  ;;  %4331 = vmatmul.f32.gmra.mxu3 %v9051_v27  ;;  %v4033_v18 = vld [vmem:[#allocation6 + $0x178] sm:$0xff]  ;;  %v4095_v4 = vld [vmem:[#allocation6 + $0x368] sm:$0xff] }
 0x912   :  { %4379 = vmatpush.msrb.mxu0 %v4007_v48  ;;  %4444 = vmatpush.msrb.mxu1 %v4039_v59  ;;  %v3999_v48 = vld [vmem:[#allocation6 + $0x68] sm:$0xff] }
 0x913   :  { %4510 = vmatpush.msrb.mxu2 %v4069_v38  ;;  %4575 = vmatpush.msrb.mxu3 %v4101_v22  ;;  %v4031_v59 = vld [vmem:[#allocation6 + $0x168] sm:$0xff]  ;;  %v4061_v38 = vld [vmem:[#allocation6 + $0x258] sm:$0xff] }
 0x914   :  { %4136 = vmatmul.f32.gmra.mxu0 %v8898_v39  ;;  %4201 = vmatmul.f32.gmra.mxu1 %v8946_v36  ;;  %v4093_v22 = vld [vmem:[#allocation6 + $0x358] sm:$0xff] }
 0x915   :  { %4380 = vmatpush.msrb.mxu0 %v4005_v52  ;;  %4445 = vmatpush.msrb.mxu1 %v4037_v44  ;;  %v3997_v52 = vld [vmem:[#allocation6 + $0x58] sm:$0xff] }
 0x916   :  { %4511 = vmatpush.msrb.mxu2 %v4067_v12  ;;  %4576 = vmatpush.msrb.mxu3 %v4099_v43  ;;  %v4029_v44 = vld [vmem:[#allocation6 + $0x158] sm:$0xff]  ;;  %v4059_v12 = vld [vmem:[#allocation6 + $0x248] sm:$0xff] }
 0x917   :  { %4381 = vmatpush.msrb.mxu0 %v4003_v29  ;;  %4446 = vmatpush.msrb.mxu1 %v4035_v5  ;;  %v4091_v43 = vld [vmem:[#allocation6 + $0x348] sm:$0xff] }
 0x918   :  { %4512 = vmatpush.msrb.mxu2 %v4065_v40  ;;  %4577 = vmatpush.msrb.mxu3 %v4097_v10  ;;  %v3995_v29 = vld [vmem:[#allocation6 + $0x48] sm:$0xff]  ;;  %v4057_v40 = vld [vmem:[#allocation6 + $0x238] sm:$0xff] }
 0x919   :  { %4269 = vmatmul.f32.gmra.mxu2 %v9006_v58  ;;  %4334 = vmatmul.f32.gmra.mxu3 %v9054_v33  ;;  %v4027_v5 = vld [vmem:[#allocation6 + $0x148] sm:$0xff]  ;;  %v4089_v10 = vld [vmem:[#allocation6 + $0x338] sm:$0xff] }
 0x91a   :  { %4382 = vmatpush.msrb.mxu0 %v4001_v24  ;;  %4447 = vmatpush.msrb.mxu1 %v4033_v18  ;;  %v3993_v24 = vld [vmem:[#allocation6 + $0x38] sm:$0xff] }
 0x91b   :  { %4513 = vmatpush.msrb.mxu2 %v4063_v42  ;;  %4578 = vmatpush.msrb.mxu3 %v4095_v4  ;;  %v4025_v18 = vld [vmem:[#allocation6 + $0x138] sm:$0xff]  ;;  %v4055_v42 = vld [vmem:[#allocation6 + $0x228] sm:$0xff] }
 0x91c   :  { %4139 = vmatmul.f32.gmra.mxu0 %v8901_v16  ;;  %4204 = vmatmul.f32.gmra.mxu1 %v8949_v47  ;;  %v4087_v4 = vld [vmem:[#allocation6 + $0x328] sm:$0xff] }
 0x91d   :  { %4383 = vmatpush.msrb.mxu0 %v3999_v48  ;;  %4448 = vmatpush.msrb.mxu1 %v4031_v59  ;;  %v3991_v48 = vld [vmem:[#allocation6 + $0x28] sm:$0xff] }
 0x91e   :  { %4514 = vmatpush.msrb.mxu2 %v4061_v38  ;;  %4579 = vmatpush.msrb.mxu3 %v4093_v22  ;;  %v4023_v59 = vld [vmem:[#allocation6 + $0x128] sm:$0xff]  ;;  %v4053_v38 = vld [vmem:[#allocation6 + $0x218] sm:$0xff] }
 0x91f   :  { %4384 = vmatpush.msrb.mxu0 %v3997_v52  ;;  %4449 = vmatpush.msrb.mxu1 %v4029_v44  ;;  %v4085_v22 = vld [vmem:[#allocation6 + $0x318] sm:$0xff]  ;;  %v9641_v52 = vld [vmem:[#allocation105_spill] sm:$0xff]  ;;  %v9642_v44 = vld [vmem:[#allocation104_spill] sm:$0xff] }
 0x920   :  { %4515 = vmatpush.msrb.mxu2 %v4059_v12  ;;  %4580 = vmatpush.msrb.mxu3 %v4091_v43  ;;  %v3989_v12 = vld [vmem:[#allocation6 + $0x18] sm:$0xff] }
 0x921   :  { %4272 = vmatmul.f32.gmra.mxu2 %v9009_v25  ;;  %4337 = vmatmul.f32.gmra.mxu3 %v9057_v23  ;;  %v4021_v43 = vld [vmem:[#allocation6 + $0x118] sm:$0xff] }
 0x922   :  { %4385 = vmatpush.msrb.mxu0 %v3995_v29  ;;  %4450 = vmatpush.msrb.mxu1 %v4027_v5  ;;  %v4051_v29 = vld [vmem:[#allocation6 + $0x208] sm:$0xff] }
 0x923   :  { %4516 = vmatpush.msrb.mxu2 %v4057_v40  ;;  %4581 = vmatpush.msrb.mxu3 %v4089_v10  ;;  %v4083_v5 = vld [vmem:[#allocation6 + $0x308] sm:$0xff]  ;;  %v9644_v10 = vld [vmem:[#allocation35_spill] sm:$0xff] }
 0x924   :  { %4142 = vmatmul.f32.gmra.mxu0 %v8904_v37  ;;  %4207 = vmatmul.f32.gmra.mxu1 %v8952_v1  ;;  %v9643_v40 = vld [vmem:[#allocation36_spill] sm:$0xff] }
 0x925   :  { %4386 = vmatpush.msrb.mxu0 %v3993_v24  ;;  %4451 = vmatpush.msrb.mxu1 %v4025_v18  ;;  %v3987_v24 = vld [vmem:[#allocation6 + $0x8] sm:$0xff] }
 0x926   :  { %4517 = vmatpush.msrb.mxu2 %v4055_v42  ;;  %4582 = vmatpush.msrb.mxu3 %v4087_v4  ;;  %v4019_v18 = vld [vmem:[#allocation6 + $0x108] sm:$0xff]  ;;  %v9645_v42 = vld [vmem:[#allocation53_spill] sm:$0xff] }
 0x927   :  { %4387 = vmatpush.msrb.mxu0 %v3991_v48  ;;  %4452 = vmatpush.msrb.mxu1 %v4023_v59  ;;  %v9646_v4 = vld [vmem:[#allocation52_spill] sm:$0xff]  ;;  %v9648_v59 = vld [vmem:[#allocation67_spill] sm:$0xff] }
 0x928   :  { %4518 = vmatpush.msrb.mxu2 %v4053_v38  ;;  %4583 = vmatpush.msrb.mxu3 %v4085_v22  ;;  %v9647_v48 = vld [vmem:[#allocation68_spill] sm:$0xff]  ;;  %v9649_v38 = vld [vmem:[#allocation51_spill] sm:$0xff]  ;;  %v9650_v22 = vld [vmem:[#allocation33_spill] sm:$0xff] }
 0x929   :  { %4275 = vmatmul.f32.gmra.mxu2 %v9012_v32  ;;  %4340 = vmatmul.f32.gmra.mxu3 %v9060_v7 }
 0x92a   :  { %4388 = vmatpush.msrb.mxu0 %v3989_v12  ;;  %4453 = vmatpush.msrb.mxu1 %v4021_v43  ;;  %v9651_v12 = vld [vmem:[#allocation86_spill] sm:$0xff]  ;;  %v9652_v43 = vld [vmem:[#allocation85_spill] sm:$0xff] }
 0x92b   :  { %4519 = vmatpush.msrb.mxu2 %v4051_v29  ;;  %4584 = vmatpush.msrb.mxu3 %v4083_v5  ;;  %v9653_v29 = vld [vmem:[#allocation66_spill] sm:$0xff] }
 0x92c   :  { %4145 = vmatmul.f32.gmra.mxu0 %v8907_v6  ;;  %4210 = vmatmul.f32.gmra.mxu1 %v8955_v8  ;;  %v9654_v5 = vld [vmem:[#allocation50_spill] sm:$0xff] }
 0x92d   :  { %4389 = vmatpush.msrb.mxu0 %v3987_v24  ;;  %4454 = vmatpush.msrb.mxu1 %v4019_v18  ;;  %v9655_v24 = vld [vmem:[#allocation103_spill] sm:$0xff]  ;;  %v9656_v18 = vld [vmem:[#allocation34_spill] sm:$0xff] }
 0x931   :  { %4278 = vmatmul.f32.gmra.mxu2 %v9015_v45  ;;  %4343 = vmatmul.f32.gmra.mxu3 %v9063_v30 }
 0x934   :  { %4148 = vmatmul.f32.gmra.mxu0 %v8910_v9  ;;  %4213 = vmatmul.f32.gmra.mxu1 %v8958_v11 }
 0x939   :  { %4281 = vmatmul.f32.gmra.mxu2 %v9018_v21  ;;  %4346 = vmatmul.f32.gmra.mxu3 %v9066_v49 }
 0x93c   :  { %4151 = vmatmul.f32.gmra.mxu0 %v8913_v56  ;;  %4216 = vmatmul.f32.gmra.mxu1 %v8961_v63 }
 0x941   :  { %4284 = vmatmul.f32.gmra.mxu2 %v9021_v2  ;;  %4349 = vmatmul.f32.gmra.mxu3 %v9069_v62 }
 0x944   :  { %4154 = vmatmul.f32.gmra.mxu0 %v8916_v26  ;;  %4219 = vmatmul.f32.gmra.mxu1 %v8964_v20 }
 0x949   :  { %4287 = vmatmul.f32.gmra.mxu2 %v9024_v14  ;;  %4352 = vmatmul.f32.gmra.mxu3 %v9072_v0 }
 0x94c   :  { %4157 = vmatmul.f32.gmra.mxu0 %v8919_v57  ;;  %4222 = vmatmul.f32.gmra.mxu1 %v8966_v46 }
 0x951   :  { %4290 = vmatmul.f32.gmra.mxu2 %v9027_v51  ;;  %4355 = vmatmul.f32.gmra.mxu3 %v9074_v15 }
 0x954   :  { %4160 = vmatmul.f32.gmra.mxu0 %v9641_v52  ;;  %4225 = vmatmul.f32.gmra.mxu1 %v9642_v44 }
 0x959   :  { %4293 = vmatmul.f32.gmra.mxu2 %v9030_v50  ;;  %4358 = vmatmul.f32.gmra.mxu3 %v9076_v28 }
 0x95c   :  { %4163 = vmatmul.f32.gmra.mxu0 %v9643_v40  ;;  %4228 = vmatmul.f32.gmra.mxu1 %v9644_v10 }
 0x961   :  { %4296 = vmatmul.f32.gmra.mxu2 %v9033_v17  ;;  %4361 = vmatmul.f32.gmra.mxu3 %v9078_v3 }
 0x964   :  { %4166 = vmatmul.f32.gmra.mxu0 %v9645_v42  ;;  %4231 = vmatmul.f32.gmra.mxu1 %v9646_v4 }
 0x969   :  { %4299 = vmatmul.f32.gmra.mxu2 %v9036_v61  ;;  %4364 = vmatmul.f32.gmra.mxu3 %v9080_v55 }
 0x96c   :  { %4169 = vmatmul.f32.gmra.mxu0 %v9647_v48  ;;  %4234 = vmatmul.f32.gmra.mxu1 %v9648_v59 }
 0x971   :  { %4302 = vmatmul.f32.gmra.mxu2 %v9649_v38  ;;  %4367 = vmatmul.f32.gmra.mxu3 %v9650_v22 }
 0x974   :  { %4172 = vmatmul.f32.gmra.mxu0 %v9651_v12  ;;  %4237 = vmatmul.f32.gmra.mxu1 %v9652_v43 }
 0x979   :  { %4305 = vmatmul.f32.gmra.mxu2 %v9653_v29  ;;  %4370 = vmatmul.f32.gmra.mxu3 %v9654_v5 }
 0x97c   :  { %4175 = vmatmul.f32.gmra.mxu0 %v9655_v24  ;;  %4240 = vmatmul.f32.gmra.mxu1 %v9656_v18 }
 0x981   :  { %4520 = vmatmul.f32.vlgmr.msrb.gmra.mxu2 %v8997_v53  ;;  %v4131_v48 = vpop.f32.mrf.mxu0  ;;  %v4196_v59 = vpop.f32.mrf.mxu1  ;;  %4585 = vmatmul.f32.vlgmr.msrb.gmra.mxu3 %v9045_v19 }
 0x982   :  { %v4197_v38 = vadd.f32 %v4196_v59, %v4131_v48 }
 0x984   :  { %v4261_v22 = vpop.f32.mrf.mxu2  ;;  %4390 = vmatmul.f32.vlgmr.msrb.gmra.mxu0 %v8892_v35  ;;  %4455 = vmatmul.f32.vlgmr.msrb.gmra.mxu1 %v8940_v31  ;;  %v4326_v43 = vpop.f32.mrf.mxu3 }
 0x985   :  { %v4262_v29 = vadd.f32 %v4261_v22, %v4197_v38 }
 0x987   :  { %v4327_v12 = vadd.f32 %v4326_v43, %v4262_v29 }
 0x989   :  { %v5442_v5 = vmul.f32 -1.442695, %v4327_v12  ;;  %4523 = vmatmul.f32.gmra.mxu2 %v9000_v60  ;;  %v4134_v24 = vpop.f32.mrf.mxu0  ;;  %v4199_v18 = vpop.f32.mrf.mxu1  ;;  %4588 = vmatmul.f32.gmra.mxu3 %v9048_v41 }
 0x98a   :  { %v4200_v53 = vadd.f32 %v4199_v18, %v4134_v24 }
 0x98b   :  { %5490 = vpow2.f32 %v5442_v5 }
 0x98c   :  { %v4264_v55 = vpop.f32.mrf.mxu2  ;;  %4393 = vmatmul.f32.gmra.mxu0 %v8895_v34  ;;  %4458 = vmatmul.f32.gmra.mxu1 %v8943_v13  ;;  %v4329_v35 = vpop.f32.mrf.mxu3 }
 0x98d   :  { %v4265_v19 = vadd.f32 %v4264_v55, %v4200_v53 }
 0x98f   :  { %v4330_v31 = vadd.f32 %v4329_v35, %v4265_v19 }
 0x991   :  { %v5491_v48 = vpop.eup %5490  ;;  %v5444_v59 = vmul.f32 -1.442695, %v4330_v31  ;;  %4526 = vmatmul.f32.gmra.mxu2 %v9003_v54  ;;  %v4137_v38 = vpop.f32.mrf.mxu0  ;;  %4591 = vmatmul.f32.gmra.mxu3 %v9051_v27 }
 0x992   :  { %v4202_v60 = vpop.f32.mrf.mxu1  ;;  %v4730_v22 = vadd.f32 1.0, %v5491_v48 }
 0x993   :  { %v4203_v41 = vadd.f32 %v4202_v60, %v4137_v38  ;;  %5492 = vpow2.f32 %v5444_v59 }
 0x994   :  { %5494 = vrcp.f32 %v4730_v22  ;;  %v4267_v12 = vpop.f32.mrf.mxu2  ;;  %4396 = vmatmul.f32.gmra.mxu0 %v8898_v39  ;;  %4461 = vmatmul.f32.gmra.mxu1 %v8946_v36  ;;  %v4332_v34 = vpop.f32.mrf.mxu3  ;;  %v4773_v31 = vand.u32 2147483648, %v4730_v22  ;;  %v4771_v48 = vand.u32 2147483647, %v4730_v22  ;;  %vm4767_vm11 = vweird.f32 %v4730_v22 }
 0x995   :  { %v4268_v13 = vadd.f32 %v4267_v12, %v4203_v41 }
 0x996   :  { %vm4772_vm13 = vcmp.eq.f32.partialorder %v4771_v48, 8.507059e+37 }
 0x997   :  { %v4333_v55 = vadd.f32 %v4332_v34, %v4268_v13 }
 0x999   :  { %v5493_v43 = vpop.eup %5492  ;;  %v5446_v29 = vmul.f32 -1.442695, %v4333_v55  ;;  %4529 = vmatmul.f32.gmra.mxu2 %v9006_v58  ;;  %v4140_v54 = vpop.f32.mrf.mxu0  ;;  %4594 = vmatmul.f32.gmra.mxu3 %v9054_v33 }
 0x99a   :  { %v4205_v5 = vpop.f32.mrf.mxu1  ;;  %v5495_v27 = vpop.eup %5494  ;;  %v4732_v24 = vadd.f32 1.0, %v5493_v43 }
 0x99b   :  { %v4206_v18 = vadd.f32 %v4205_v5, %v4140_v54  ;;  %v4763_v53 = vmul.f32 %v5495_v27, %v4730_v22  ;;  %5496 = vpow2.f32 %v5446_v29  ;;  %vm4768_vm10 = vweird.f32 %v5495_v27 }
 0x99c   :  { %5498 = vrcp.f32 %v4732_v24  ;;  %v4270_v39 = vpop.f32.mrf.mxu2  ;;  %4399 = vmatmul.f32.gmra.mxu0 %v8901_v16  ;;  %4464 = vmatmul.f32.gmra.mxu1 %v8949_v47  ;;  %v4335_v36 = vpop.f32.mrf.mxu3  ;;  %vm4769_vm12 = vmor %vm4767_vm11, %vm4768_vm10  ;;  %v4774_v47 = vor.u32 1.1754944e-38, %v4773_v31  ;;  %v4803_v5 = vand.u32 2147483648, %v4732_v24  ;;  %vm4797_vm15 = vweird.f32 %v4732_v24 }
 0x99d   :  { %v4764_v35 = vsub.f32 1.0, %v4763_v53  ;;  %v4271_v19 = vadd.f32 %v4270_v39, %v4206_v18  ;;  %v4801_v53 = vand.u32 2147483647, %v4732_v24 }
 0x99f   :  { %v4765_v58 = vmul.f32 %v5495_v27, %v4764_v35  ;;  %v4336_v59 = vadd.f32 %v4335_v36, %v4271_v19  ;;  %vm4802_vm1 = vcmp.eq.f32.partialorder %v4801_v53, 8.507059e+37 }
 0x9a1   :  { %v5497_v33 = vpop.eup %5496  ;;  %v4766_v38 = vadd.f32 %v5495_v27, %v4765_v58  ;;  %v5448_v60 = vmul.f32 -1.442695, %v4336_v59  ;;  %4532 = vmatmul.f32.gmra.mxu2 %v9009_v25  ;;  %v4143_v41 = vpop.f32.mrf.mxu0  ;;  %4597 = vmatmul.f32.gmra.mxu3 %v9057_v23 }
 0x9a2   :  { %v4208_v12 = vpop.f32.mrf.mxu1  ;;  %v5499_v16 = vpop.eup %5498  ;;  %v9168_v34 = vadd.f32 1.0, %v5497_v33 }
 0x9a3   :  { %v4209_v13 = vadd.f32 %v4208_v12, %v4143_v41  ;;  %v4770_v55 = vsel %vm4769_vm12, %v5495_v27, %v4766_v38  ;;  %v4793_v43 = vmul.f32 %v5499_v16, %v4732_v24  ;;  %5500 = vpow2.f32 %v5448_v60 }
 0x9a4   :  { %v4775_v29 = vsel %vm4772_vm13, %v4774_v47, %v4770_v55  ;;  %5502 = vrcp.f32 %v9168_v34  ;;  %v4273_v22 = vpop.f32.mrf.mxu2  ;;  %4402 = vmatmul.f32.gmra.mxu0 %v8904_v37  ;;  %4467 = vmatmul.f32.gmra.mxu1 %v8952_v1  ;;  %v4338_v25 = vpop.f32.mrf.mxu3  ;;  %vm4798_vm14 = vweird.f32 %v5499_v16  ;;  %v4804_v1 = vor.u32 1.1754944e-38, %v4803_v5 }
 0x9a5   :  { %5242 = vst [vmem:[#allocation8] sm:$0xff] %v4775_v29  ;;  %v4794_v23 = vsub.f32 1.0, %v4793_v43  ;;  %v4274_v54 = vadd.f32 %v4273_v22, %v4209_v13  ;;  %vm4799_vm0 = vmor %vm4797_vm15, %vm4798_vm14  ;;  %v4833_v41 = vand.u32 2147483648, %v9168_v34  ;;  %vm4827_vm3 = vweird.f32 %v9168_v34 }
 0x9a7   :  { %v4795_v18 = vmul.f32 %v5499_v16, %v4794_v23  ;;  %v4339_v27 = vadd.f32 %v4338_v25, %v4274_v54  ;;  %v4834_v22 = vor.u32 1.1754944e-38, %v4833_v41 }
 0x9a9   :  { %v5501_v39 = vpop.eup %5500  ;;  %v4796_v36 = vadd.f32 %v5499_v16, %v4795_v18  ;;  %v5450_v35 = vmul.f32 -1.442695, %v4339_v27  ;;  %4535 = vmatmul.f32.gmra.mxu2 %v9012_v32  ;;  %v4146_v19 = vpop.f32.mrf.mxu0  ;;  %4600 = vmatmul.f32.gmra.mxu3 %v9060_v7 }
 0x9aa   :  { %v4211_v31 = vpop.f32.mrf.mxu1  ;;  %v5503_v37 = vpop.eup %5502  ;;  %v9175_v58 = vadd.f32 1.0, %v5501_v39 }
 0x9ab   :  { %v4212_v48 = vadd.f32 %v4211_v31, %v4146_v19  ;;  %v4800_v59 = vsel %vm4799_vm0, %v5499_v16, %v4796_v36  ;;  %v4823_v33 = vmul.f32 %v5503_v37, %v9168_v34  ;;  %5504 = vpow2.f32 %v5450_v35 }
 0x9ac   :  { %v4805_v38 = vsel %vm4802_vm1, %v4804_v1, %v4800_v59  ;;  %5506 = vrcp.f32 %v9175_v58  ;;  %v4276_v24 = vpop.f32.mrf.mxu2  ;;  %4405 = vmatmul.f32.gmra.mxu0 %v8907_v6  ;;  %4470 = vmatmul.f32.gmra.mxu1 %v8955_v8  ;;  %v4341_v32 = vpop.f32.mrf.mxu3  ;;  %vm4828_vm2 = vweird.f32 %v5503_v37  ;;  %v4831_v16 = vand.u32 2147483647, %v9168_v34 }
 0x9ad   :  { %5244 = vst [vmem:[#allocation8 + $0x10] sm:$0xff] %v4805_v38  ;;  %v4824_v7 = vsub.f32 1.0, %v4823_v33  ;;  %v4277_v60 = vadd.f32 %v4276_v24, %v4212_v48  ;;  %vm4829_vm4 = vmor %vm4827_vm3, %vm4828_vm2  ;;  %v4863_v27 = vand.u32 2147483648, %v9175_v58  ;;  %v4861_v36 = vand.u32 2147483647, %v9175_v58 }
 0x9ae   :  { %vm4832_vm5 = vcmp.eq.f32.partialorder %v4831_v16, 8.507059e+37  ;;  %vm4857_vm7 = vweird.f32 %v9175_v58 }
 0x9af   :  { %v4825_v12 = vmul.f32 %v5503_v37, %v4824_v7  ;;  %v4342_v47 = vadd.f32 %v4341_v32, %v4277_v60  ;;  %v4864_v48 = vor.u32 1.1754944e-38, %v4863_v27  ;;  %vm4862_vm9 = vcmp.eq.f32.partialorder %v4861_v36, 8.507059e+37 }
 0x9b1   :  { %v5505_v13 = vpop.eup %5504  ;;  %v4826_v55 = vadd.f32 %v5503_v37, %v4825_v12  ;;  %v5452_v43 = vmul.f32 -1.442695, %v4342_v47  ;;  %4538 = vmatmul.f32.gmra.mxu2 %v9015_v45  ;;  %v4149_v6 = vpop.f32.mrf.mxu0  ;;  %4603 = vmatmul.f32.gmra.mxu3 %v9063_v30 }
 0x9b2   :  { %v4214_v8 = vpop.f32.mrf.mxu1  ;;  %v5507_v29 = vpop.eup %5506  ;;  %v9186_v25 = vadd.f32 1.0, %v5505_v13 }
 0x9b3   :  { %v4215_v23 = vadd.f32 %v4214_v8, %v4149_v6  ;;  %v4830_v54 = vsel %vm4829_vm4, %v5503_v37, %v4826_v55  ;;  %v4853_v5 = vmul.f32 %v5507_v29, %v9175_v58  ;;  %5508 = vpow2.f32 %v5452_v43 }
 0x9b4   :  { %v4835_v18 = vsel %vm4832_vm5, %v4834_v22, %v4830_v54  ;;  %5510 = vrcp.f32 %v9186_v25  ;;  %v4279_v34 = vpop.f32.mrf.mxu2  ;;  %4408 = vmatmul.f32.gmra.mxu0 %v8910_v9  ;;  %4473 = vmatmul.f32.gmra.mxu1 %v8958_v11  ;;  %v4344_v45 = vpop.f32.mrf.mxu3  ;;  %vm4858_vm6 = vweird.f32 %v5507_v29  ;;  %v4893_v60 = vand.u32 2147483648, %v9186_v25 }
 0x9b5   :  { %5246 = vst [vmem:[#allocation8 + $0x20] sm:$0xff] %v4835_v18  ;;  %v4854_v30 = vsub.f32 1.0, %v4853_v5  ;;  %v4280_v53 = vadd.f32 %v4279_v34, %v4215_v23  ;;  %vm4859_vm8 = vmor %vm4857_vm7, %vm4858_vm6  ;;  %v4891_v12 = vand.u32 2147483647, %v9186_v25  ;;  %vm4887_vm11 = vweird.f32 %v9186_v25 }
 0x9b6   :  { %v4894_v6 = vor.u32 1.1754944e-38, %v4893_v60 }
 0x9b7   :  { %v4855_v39 = vmul.f32 %v5507_v29, %v4854_v30  ;;  %v4345_v35 = vadd.f32 %v4344_v45, %v4280_v53  ;;  %vm4892_vm13 = vcmp.eq.f32.partialorder %v4891_v12, 8.507059e+37 }
 0x9b9   :  { %v5509_v19 = vpop.eup %5508  ;;  %v4856_v31 = vadd.f32 %v5507_v29, %v4855_v39  ;;  %v5454_v37 = vmul.f32 -1.442695, %v4345_v35  ;;  %4541 = vmatmul.f32.gmra.mxu2 %v9018_v21  ;;  %v4152_v9 = vpop.f32.mrf.mxu0  ;;  %4606 = vmatmul.f32.gmra.mxu3 %v9066_v49 }
 0x9ba   :  { %v4217_v11 = vpop.f32.mrf.mxu1  ;;  %v5511_v1 = vpop.eup %5510  ;;  %v9197_v59 = vadd.f32 1.0, %v5509_v19 }
 0x9bb   :  { %v4218_v33 = vadd.f32 %v4217_v11, %v4152_v9  ;;  %v4860_v38 = vsel %vm4859_vm8, %v5507_v29, %v4856_v31  ;;  %v4883_v24 = vmul.f32 %v5511_v1, %v9186_v25  ;;  %5512 = vpow2.f32 %v5454_v37 }
 0x9bc   :  { %v4865_v32 = vsel %vm4862_vm9, %v4864_v48, %v4860_v38  ;;  %5514 = vrcp.f32 %v9197_v59  ;;  %v4282_v58 = vpop.f32.mrf.mxu2  ;;  %4411 = vmatmul.f32.gmra.mxu0 %v8913_v56  ;;  %4476 = vmatmul.f32.gmra.mxu1 %v8961_v63  ;;  %v4347_v21 = vpop.f32.mrf.mxu3  ;;  %vm4888_vm10 = vweird.f32 %v5511_v1  ;;  %v4923_v18 = vand.u32 2147483648, %v9197_v59 }
 0x9bd   :  { %5248 = vst [vmem:[#allocation8 + $0x30] sm:$0xff] %v4865_v32  ;;  %v4884_v49 = vsub.f32 1.0, %v4883_v24  ;;  %v4283_v7 = vadd.f32 %v4282_v58, %v4218_v33  ;;  %vm4889_vm12 = vmor %vm4887_vm11, %vm4888_vm10  ;;  %v4921_v45 = vand.u32 2147483647, %v9197_v59  ;;  %vm4917_vm15 = vweird.f32 %v9197_v59 }
 0x9be   :  { %v4924_v35 = vor.u32 1.1754944e-38, %v4923_v18 }
 0x9bf   :  { %v4885_v41 = vmul.f32 %v5511_v1, %v4884_v49  ;;  %v4348_v16 = vadd.f32 %v4347_v21, %v4283_v7  ;;  %vm4922_vm1 = vcmp.eq.f32.partialorder %v4921_v45, 8.507059e+37 }
 0x9c1   :  { %v5513_v47 = vpop.eup %5512  ;;  %v4886_v13 = vadd.f32 %v5511_v1, %v4885_v41  ;;  %v5456_v55 = vmul.f32 -1.442695, %v4348_v16  ;;  %4544 = vmatmul.f32.gmra.mxu2 %v9021_v2  ;;  %v4155_v56 = vpop.f32.mrf.mxu0  ;;  %4609 = vmatmul.f32.gmra.mxu3 %v9069_v62 }
 0x9c2   :  { %v4220_v63 = vpop.f32.mrf.mxu1  ;;  %v5515_v43 = vpop.eup %5514  ;;  %v9208_v8 = vadd.f32 1.0, %v5513_v47 }
 0x9c3   :  { %v4221_v29 = vadd.f32 %v4220_v63, %v4155_v56  ;;  %v4890_v22 = vsel %vm4889_vm12, %v5511_v1, %v4886_v13  ;;  %v4913_v23 = vmul.f32 %v5515_v43, %v9197_v59  ;;  %5516 = vpow2.f32 %v5456_v55 }
 0x9c4   :  { %v4895_v54 = vsel %vm4892_vm13, %v4894_v6, %v4890_v22  ;;  %5518 = vrcp.f32 %v9208_v8  ;;  %v4285_v25 = vpop.f32.mrf.mxu2  ;;  %4414 = vmatmul.f32.gmra.mxu0 %v8916_v26  ;;  %4479 = vmatmul.f32.gmra.mxu1 %v8964_v20  ;;  %v4350_v2 = vpop.f32.mrf.mxu3  ;;  %vm4918_vm14 = vweird.f32 %v5515_v43  ;;  %v4953_v59 = vand.u32 2147483648, %v9208_v8 }
 0x9c5   :  { %5250 = vst [vmem:[#allocation8 + $0x40] sm:$0xff] %v4895_v54  ;;  %v4914_v62 = vsub.f32 1.0, %v4913_v23  ;;  %v4286_v5 = vadd.f32 %v4285_v25, %v4221_v29  ;;  %vm4919_vm0 = vmor %vm4917_vm15, %vm4918_vm14  ;;  %v4951_v38 = vand.u32 2147483647, %v9208_v8  ;;  %vm4947_vm3 = vweird.f32 %v9208_v8 }
 0x9c6   :  { %v4954_v7 = vor.u32 1.1754944e-38, %v4953_v59 }
 0x9c7   :  { %v4915_v34 = vmul.f32 %v5515_v43, %v4914_v62  ;;  %v4351_v30 = vadd.f32 %v4350_v2, %v4286_v5  ;;  %vm4952_vm5 = vcmp.eq.f32.partialorder %v4951_v38, 8.507059e+37 }
 0x9c9   :  { %v5517_v53 = vpop.eup %5516  ;;  %v4916_v27 = vadd.f32 %v5515_v43, %v4915_v34  ;;  %v5458_v39 = vmul.f32 -1.442695, %v4351_v30  ;;  %4547 = vmatmul.f32.gmra.mxu2 %v9024_v14  ;;  %v4158_v26 = vpop.f32.mrf.mxu0  ;;  %4612 = vmatmul.f32.gmra.mxu3 %v9072_v0 }
 0x9ca   :  { %v4223_v20 = vpop.f32.mrf.mxu1  ;;  %v5519_v36 = vpop.eup %5518  ;;  %v9219_v19 = vadd.f32 1.0, %v5517_v53 }
 0x9cb   :  { %v4224_v31 = vadd.f32 %v4223_v20, %v4158_v26  ;;  %v4920_v37 = vsel %vm4919_vm0, %v5515_v43, %v4916_v27  ;;  %v4943_v9 = vmul.f32 %v5519_v36, %v9208_v8  ;;  %5520 = vpow2.f32 %v5458_v39 }
 0x9cc   :  { %v4925_v11 = vsel %vm4922_vm1, %v4924_v35, %v4920_v37  ;;  %5522 = vrcp.f32 %v9219_v19  ;;  %v4288_v1 = vpop.f32.mrf.mxu2  ;;  %4417 = vmatmul.f32.gmra.mxu0 %v8919_v57  ;;  %4482 = vmatmul.f32.gmra.mxu1 %v8966_v46  ;;  %v4353_v14 = vpop.f32.mrf.mxu3  ;;  %vm4948_vm2 = vweird.f32 %v5519_v36  ;;  %v4983_v56 = vand.u32 2147483648, %v9219_v19 }
 0x9cd   :  { %5252 = vst [vmem:[#allocation8 + $0x50] sm:$0xff] %v4925_v11  ;;  %v4944_v0 = vsub.f32 1.0, %v4943_v9  ;;  %v4289_v48 = vadd.f32 %v4288_v1, %v4224_v31  ;;  %vm4949_vm4 = vmor %vm4947_vm3, %vm4948_vm2  ;;  %v4981_v43 = vand.u32 2147483647, %v9219_v19  ;;  %vm4977_vm7 = vweird.f32 %v9219_v19 }
 0x9ce   :  { %v4984_v54 = vor.u32 1.1754944e-38, %v4983_v56 }
 0x9cf   :  { %v4945_v33 = vmul.f32 %v5519_v36, %v4944_v0  ;;  %v4354_v24 = vadd.f32 %v4353_v14, %v4289_v48  ;;  %vm4982_vm9 = vcmp.eq.f32.partialorder %v4981_v43, 8.507059e+37 }
 0x9d1   :  { %v5521_v32 = vpop.eup %5520  ;;  %v4946_v58 = vadd.f32 %v5519_v36, %v4945_v33  ;;  %v5460_v21 = vmul.f32 -1.442695, %v4354_v24  ;;  %4550 = vmatmul.f32.gmra.mxu2 %v9027_v51  ;;  %v4161_v57 = vpop.f32.mrf.mxu0  ;;  %4615 = vmatmul.f32.gmra.mxu3 %v9074_v15 }
 0x9d2   :  { %v4226_v46 = vpop.f32.mrf.mxu1  ;;  %v5523_v49 = vpop.eup %5522  ;;  %v9230_v60 = vadd.f32 1.0, %v5521_v32 }
 0x9d3   :  { %v4227_v41 = vadd.f32 %v4226_v46, %v4161_v57  ;;  %v4950_v12 = vsel %vm4949_vm4, %v5519_v36, %v4946_v58  ;;  %v4973_v16 = vmul.f32 %v5523_v49, %v9219_v19  ;;  %5524 = vpow2.f32 %v5460_v21  ;;  %v9657_v21 = vld [vmem:[#allocation84_spill] sm:$0xff] }
 0x9d4   :  { %v4955_v47 = vsel %vm4952_vm5, %v4954_v7, %v4950_v12  ;;  %5526 = vrcp.f32 %v9230_v60  ;;  %v4291_v13 = vpop.f32.mrf.mxu2  ;;  %4420 = vmatmul.f32.gmra.mxu0 %v9641_v52  ;;  %4485 = vmatmul.f32.gmra.mxu1 %v9642_v44  ;;  %v4356_v51 = vpop.f32.mrf.mxu3  ;;  %vm4978_vm6 = vweird.f32 %v5523_v49  ;;  %v5013_v30 = vand.u32 2147483648, %v9230_v60 }
 0x9d5   :  { %5254 = vst [vmem:[#allocation8 + $0x60] sm:$0xff] %v4955_v47  ;;  %v4974_v15 = vsub.f32 1.0, %v4973_v16  ;;  %v4292_v55 = vadd.f32 %v4291_v13, %v4227_v41  ;;  %vm4979_vm8 = vmor %vm4977_vm7, %vm4978_vm6  ;;  %v5011_v27 = vand.u32 2147483647, %v9230_v60  ;;  %vm5007_vm11 = vweird.f32 %v9230_v60  ;;  %v9659_v47 = vld [vmem:[#allocation67_spill] sm:$0xff] }
 0x9d6   :  { %v5014_v19 = vor.u32 1.1754944e-38, %v5013_v30 }
 0x9d7   :  { %v4975_v63 = vmul.f32 %v5523_v49, %v4974_v15  ;;  %v4357_v6 = vadd.f32 %v4356_v51, %v4292_v55  ;;  %vm5012_vm13 = vcmp.eq.f32.partialorder %v5011_v27, 8.507059e+37 }
 0x9d9   :  { %v5525_v8 = vpop.eup %5524  ;;  %v4976_v29 = vadd.f32 %v5523_v49, %v4975_v63  ;;  %v5462_v22 = vmul.f32 -1.442695, %v4357_v6  ;;  %4553 = vmatmul.f32.gmra.mxu2 %v9030_v50  ;;  %v4164_v52 = vpop.f32.mrf.mxu0  ;;  %4618 = vmatmul.f32.gmra.mxu3 %v9076_v28 }
 0x9da   :  { %v4229_v44 = vpop.f32.mrf.mxu1  ;;  %v5527_v23 = vpop.eup %5526  ;;  %v9241_v25 = vadd.f32 1.0, %v5525_v8 }
 0x9db   :  { %v4230_v2 = vadd.f32 %v4229_v44, %v4164_v52  ;;  %v4980_v62 = vsel %vm4979_vm8, %v5523_v49, %v4976_v29  ;;  %v5003_v5 = vmul.f32 %v5527_v23, %v9230_v60  ;;  %5528 = vpow2.f32 %v5462_v22  ;;  %v9660_v22 = vld [vmem:[#allocation51_spill] sm:$0xff] }
 0x9dc   :  { %v4985_v18 = vsel %vm4982_vm9, %v4984_v54, %v4980_v62  ;;  %5530 = vrcp.f32 %v9241_v25  ;;  %v4294_v34 = vpop.f32.mrf.mxu2  ;;  %4423 = vmatmul.f32.gmra.mxu0 %v9643_v40  ;;  %4488 = vmatmul.f32.gmra.mxu1 %v9644_v10  ;;  %v4359_v50 = vpop.f32.mrf.mxu3  ;;  %vm5008_vm10 = vweird.f32 %v5527_v23  ;;  %v5043_v48 = vand.u32 2147483648, %v9241_v25 }
 0x9dd   :  { %5256 = vst [vmem:[#allocation8 + $0x70] sm:$0xff] %v4985_v18  ;;  %v5004_v28 = vsub.f32 1.0, %v5003_v5  ;;  %v4295_v45 = vadd.f32 %v4294_v34, %v4230_v2  ;;  %vm5009_vm12 = vmor %vm5007_vm11, %vm5008_vm10  ;;  %v5041_v33 = vand.u32 2147483647, %v9241_v25  ;;  %vm5037_vm15 = vweird.f32 %v9241_v25 }
 0x9de   :  { %v5044_v46 = vor.u32 1.1754944e-38, %v5043_v48 }
 0x9df   :  { %v5005_v53 = vmul.f32 %v5527_v23, %v5004_v28  ;;  %v4360_v39 = vadd.f32 %v4359_v50, %v4295_v45  ;;  %vm5042_vm1 = vcmp.eq.f32.partialorder %v5041_v33, 8.507059e+37  ;;  %v9662_v28 = vld [vmem:[#allocation86_spill] sm:$0xff]  ;;  %v9663_v45 = vld [vmem:[#allocation85_spill] sm:$0xff]  ;;  %v9666_v33 = vld [vmem:[#allocation103_spill] sm:$0xff] }
 0x9e1   :  { %v5529_v26 = vpop.eup %5528  ;;  %v5006_v20 = vadd.f32 %v5527_v23, %v5005_v53  ;;  %v5464_v36 = vmul.f32 -1.442695, %v4360_v39  ;;  %4556 = vmatmul.f32.gmra.mxu2 %v9033_v17  ;;  %v4167_v40 = vpop.f32.mrf.mxu0  ;;  %4621 = vmatmul.f32.gmra.mxu3 %v9078_v3 }
 0x9e2   :  { %v4232_v10 = vpop.f32.mrf.mxu1  ;;  %v5531_v35 = vpop.eup %5530  ;;  %v9252_v31 = vadd.f32 1.0, %v5529_v26 }
 0x9e3   :  { %v4233_v37 = vadd.f32 %v4232_v10, %v4167_v40  ;;  %v5010_v9 = vsel %vm5009_vm12, %v5527_v23, %v5006_v20  ;;  %v5033_v11 = vmul.f32 %v5531_v35, %v9241_v25  ;;  %5532 = vpow2.f32 %v5464_v36  ;;  %v9661_v23 = vld [vmem:[#allocation33_spill] sm:$0xff] }
 0x9e4   :  { %v5015_v1 = vsel %vm5012_vm13, %v5014_v19, %v5010_v9  ;;  %5534 = vrcp.f32 %v9252_v31  ;;  %v4297_v14 = vpop.f32.mrf.mxu2  ;;  %4426 = vmatmul.f32.gmra.mxu0 %v9645_v42  ;;  %4491 = vmatmul.f32.gmra.mxu1 %v9646_v4  ;;  %v4362_v17 = vpop.f32.mrf.mxu3  ;;  %vm5038_vm14 = vweird.f32 %v5531_v35  ;;  %v5073_v55 = vand.u32 2147483648, %v9252_v31  ;;  %v9664_v19 = vld [vmem:[#allocation66_spill] sm:$0xff] }
 0x9e5   :  { %5258 = vst [vmem:[#allocation8 + $0x80] sm:$0xff] %v5015_v1  ;;  %v5034_v3 = vsub.f32 1.0, %v5033_v11  ;;  %v4298_v0 = vadd.f32 %v4297_v14, %v4233_v37  ;;  %vm5039_vm0 = vmor %vm5037_vm15, %vm5038_vm14  ;;  %v5071_v63 = vand.u32 2147483647, %v9252_v31  ;;  %vm5067_vm3 = vweird.f32 %v9252_v31  ;;  %v9665_v9 = vld [vmem:[#allocation50_spill] sm:$0xff] }
 0x9e6   :  { %v5074_v25 = vor.u32 1.1754944e-38, %v5073_v55 }
 0x9e7   :  { %v5035_v59 = vmul.f32 %v5531_v35, %v5034_v3  ;;  %v4363_v38 = vadd.f32 %v4362_v17, %v4298_v0  ;;  %vm5072_vm5 = vcmp.eq.f32.partialorder %v5071_v63, 8.507059e+37 }
 0x9e9   :  { %v5533_v24 = vpop.eup %5532  ;;  %v5036_v32 = vadd.f32 %v5531_v35, %v5035_v59  ;;  %v5466_v58 = vmul.f32 -1.442695, %v4363_v38  ;;  %4559 = vmatmul.f32.gmra.mxu2 %v9036_v61  ;;  %v4170_v42 = vpop.f32.mrf.mxu0  ;;  %4624 = vmatmul.f32.gmra.mxu3 %v9657_v21  ;;  %v9658_v61 = vld [vmem:[#allocation68_spill] sm:$0xff]  ;;  %v9667_v38 = vld [vmem:[#allocation34_spill] sm:$0xff] }
 0x9ea   :  { %v4235_v4 = vpop.f32.mrf.mxu1  ;;  %v5535_v57 = vpop.eup %5534  ;;  %v9263_v49 = vadd.f32 1.0, %v5533_v24 }
 0x9eb   :  { %v4236_v7 = vadd.f32 %v4235_v4, %v4170_v42  ;;  %v5040_v60 = vsel %vm5039_vm0, %v5531_v35, %v5036_v32  ;;  %v5063_v41 = vmul.f32 %v5535_v57, %v9252_v31  ;;  %5536 = vpow2.f32 %v5466_v58 }
 0x9ec   :  { %v5045_v12 = vsel %vm5042_vm1, %v5044_v46, %v5040_v60  ;;  %5538 = vrcp.f32 %v9263_v49  ;;  %v4300_v16 = vpop.f32.mrf.mxu2  ;;  %4429 = vmatmul.f32.gmra.mxu0 %v9658_v61  ;;  %4494 = vmatmul.f32.gmra.mxu1 %v9659_v47  ;;  %v4365_v13 = vpop.f32.mrf.mxu3  ;;  %vm5068_vm2 = vweird.f32 %v5535_v57  ;;  %v5103_v39 = vand.u32 2147483648, %v9263_v49 }
 0x9ed   :  { %5260 = vst [vmem:[#allocation8 + $0x90] sm:$0xff] %v5045_v12  ;;  %v5064_v51 = vsub.f32 1.0, %v5063_v41  ;;  %v4301_v15 = vadd.f32 %v4300_v16, %v4236_v7  ;;  %vm5069_vm4 = vmor %vm5067_vm3, %vm5068_vm2  ;;  %v5101_v20 = vand.u32 2147483647, %v9263_v49  ;;  %vm5097_vm7 = vweird.f32 %v9263_v49 }
 0x9ee   :  { %v5104_v1 = vor.u32 1.1754944e-38, %v5103_v39 }
 0x9ef   :  { %v5065_v56 = vmul.f32 %v5535_v57, %v5064_v51  ;;  %v4366_v43 = vadd.f32 %v4365_v13, %v4301_v15  ;;  %vm5102_vm9 = vcmp.eq.f32.partialorder %v5101_v20, 8.507059e+37 }
 0x9f1   :  { %v5537_v6 = vpop.eup %5536  ;;  %v5066_v8 = vadd.f32 %v5535_v57, %v5065_v56  ;;  %v5468_v29 = vmul.f32 -1.442695, %v4366_v43  ;;  %4562 = vmatmul.f32.gmra.mxu2 %v9660_v22  ;;  %v4173_v52 = vpop.f32.mrf.mxu0  ;;  %4627 = vmatmul.f32.gmra.mxu3 %v9661_v23 }
 0x9f2   :  { %v4238_v44 = vpop.f32.mrf.mxu1  ;;  %v5539_v54 = vpop.eup %5538  ;;  %v9274_v2 = vadd.f32 1.0, %v5537_v6 }
 0x9f3   :  { %v4239_v62 = vadd.f32 %v4238_v44, %v4173_v52  ;;  %v5070_v5 = vsel %vm5069_vm4, %v5535_v57, %v5066_v8  ;;  %v5093_v18 = vmul.f32 %v5539_v54, %v9263_v49  ;;  %5540 = vpow2.f32 %v5468_v29 }
 0x9f4   :  { %v5075_v34 = vsel %vm5072_vm5, %v5074_v25, %v5070_v5  ;;  %5542 = vrcp.f32 %v9274_v2  ;;  %v4303_v50 = vpop.f32.mrf.mxu2  ;;  %4432 = vmatmul.f32.gmra.mxu0 %v9662_v28  ;;  %4497 = vmatmul.f32.gmra.mxu1 %v9663_v45  ;;  %v4368_v30 = vpop.f32.mrf.mxu3  ;;  %vm5098_vm6 = vweird.f32 %v5539_v54  ;;  %v5133_v42 = vand.u32 2147483648, %v9274_v2 }
 0x9f5   :  { %5262 = vst [vmem:[#allocation8 + $0xa0] sm:$0xff] %v5075_v34  ;;  %v5094_v53 = vsub.f32 1.0, %v5093_v18  ;;  %v4304_v27 = vadd.f32 %v4303_v50, %v4239_v62  ;;  %vm5099_vm8 = vmor %vm5097_vm7, %vm5098_vm6  ;;  %v5131_v21 = vand.u32 2147483647, %v9274_v2  ;;  %vm5127_vm11 = vweird.f32 %v9274_v2 }
 0x9f6   :  { %v5134_v16 = vor.u32 1.1754944e-38, %v5133_v42 }
 0x9f7   :  { %v5095_v26 = vmul.f32 %v5539_v54, %v5094_v53  ;;  %v4369_v36 = vadd.f32 %v4368_v30, %v4304_v27  ;;  %vm5132_vm13 = vcmp.eq.f32.partialorder %v5131_v21, 8.507059e+37 }
 0x9f9   :  { %v5541_v40 = vpop.eup %5540  ;;  %v5096_v10 = vadd.f32 %v5539_v54, %v5095_v26  ;;  %v5470_v35 = vmul.f32 -1.442695, %v4369_v36  ;;  %4565 = vmatmul.f32.gmra.mxu2 %v9664_v19  ;;  %v4176_v31 = vpop.f32.mrf.mxu0  ;;  %4630 = vmatmul.f32.gmra.mxu3 %v9665_v9 }
 0x9fa   :  { %v4241_v37 = vpop.f32.mrf.mxu1  ;;  %v5543_v11 = vpop.eup %5542  ;;  %v4756_v14 = vadd.f32 1.0, %v5541_v40 }
 0x9fb   :  { %v4242_v17 = vadd.f32 %v4241_v37, %v4176_v31  ;;  %v5100_v3 = vsel %vm5099_vm8, %v5539_v54, %v5096_v10  ;;  %v5123_v0 = vmul.f32 %v5543_v11, %v9274_v2  ;;  %5544 = vpow2.f32 %v5470_v35 }
 0x9fc   :  { %v5105_v48 = vsel %vm5102_vm9, %v5104_v1, %v5100_v3  ;;  %5546 = vrcp.f32 %v4756_v14  ;;  %v4306_v59 = vpop.f32.mrf.mxu2  ;;  %4435 = vmatmul.f32.gmra.mxu0 %v9666_v33  ;;  %4500 = vmatmul.f32.gmra.mxu1 %v9667_v38  ;;  %v4371_v24 = vpop.f32.mrf.mxu3  ;;  %vm5128_vm10 = vweird.f32 %v5543_v11  ;;  %v5163_v6 = vand.u32 2147483648, %v4756_v14 }
 0x9fd   :  { %5264 = vst [vmem:[#allocation8 + $0xb0] sm:$0xff] %v5105_v48  ;;  %v5124_v32 = vsub.f32 1.0, %v5123_v0  ;;  %v4307_v58 = vadd.f32 %v4306_v59, %v4242_v17  ;;  %vm5129_vm12 = vmor %vm5127_vm11, %vm5128_vm10  ;;  %v5161_v29 = vand.u32 2147483647, %v4756_v14  ;;  %vm5157_vm15 = vweird.f32 %v4756_v14 }
 0x9fe   :  { %v5164_v62 = vor.u32 1.1754944e-38, %v5163_v6 }
 0x9ff   :  { %v5125_v4 = vmul.f32 %v5543_v11, %v5124_v32  ;;  %v4372_v57 = vadd.f32 %v4371_v24, %v4307_v58  ;;  %vm5162_vm1 = vcmp.eq.f32.partialorder %v5161_v29, 8.507059e+37 }
 0xa01   :  { %v5545_v46 = vpop.eup %5544  ;;  %v5126_v49 = vadd.f32 %v5543_v11, %v5125_v4  ;;  %v5472_v7 = vmul.f32 -1.442695, %v4372_v57  ;;  %v4391_v60 = vpop.f32.mrf.mxu0 }
 0xa02   :  { %v4456_v41 = vpop.f32.mrf.mxu1  ;;  %v5547_v12 = vpop.eup %5546  ;;  %v4758_v61 = vadd.f32 1.0, %v5545_v46 }
 0xa03   :  { %v4457_v47 = vadd.f32 %v4456_v41, %v4391_v60  ;;  %v5130_v13 = vsel %vm5129_vm12, %v5543_v11, %v5126_v49  ;;  %v5153_v51 = vmul.f32 %v5547_v12, %v4756_v14  ;;  %5548 = vpow2.f32 %v5472_v7 }
 0xa04   :  { %v5135_v15 = vsel %vm5132_vm13, %v5134_v16, %v5130_v13  ;;  %5550 = vrcp.f32 %v4758_v61  ;;  %v4521_v55 = vpop.f32.mrf.mxu2  ;;  %v4586_v56 = vpop.f32.mrf.mxu3  ;;  %vm5158_vm14 = vweird.f32 %v5547_v12  ;;  %v5193_v39 = vand.u32 2147483648, %v4758_v61 }
 0xa05   :  { %5266 = vst [vmem:[#allocation8 + $0xc0] sm:$0xff] %v5135_v15  ;;  %v5154_v63 = vsub.f32 1.0, %v5153_v51  ;;  %v4522_v43 = vadd.f32 %v4521_v55, %v4457_v47  ;;  %vm5159_vm0 = vmor %vm5157_vm15, %vm5158_vm14  ;;  %v5191_v20 = vand.u32 2147483647, %v4758_v61  ;;  %vm5187_vm3 = vweird.f32 %v4758_v61 }
 0xa06   :  { %v5194_v9 = vor.u32 1.1754944e-38, %v5193_v39 }
 0xa07   :  { %v5155_v8 = vmul.f32 %v5547_v12, %v5154_v63  ;;  %v4587_v22 = vadd.f32 %v4586_v56, %v4522_v43  ;;  %vm5192_vm5 = vcmp.eq.f32.partialorder %v5191_v20, 8.507059e+37 }
 0xa09   :  { %v5549_v52 = vpop.eup %5548  ;;  %v5156_v44 = vadd.f32 %v5547_v12, %v5155_v8  ;;  %v5443_v23 = vmul.f32 -1.442695, %v4587_v22  ;;  %v4394_v54 = vpop.f32.mrf.mxu0 }
 0xa0a   :  { %v4459_v25 = vpop.f32.mrf.mxu1  ;;  %v5551_v2 = vpop.eup %5550  ;;  %v4760_v5 = vadd.f32 1.0, %v5549_v52 }
 0xa0b   :  { %v4460_v18 = vadd.f32 %v4459_v25, %v4394_v54  ;;  %v5160_v34 = vsel %vm5159_vm0, %v5547_v12, %v5156_v44  ;;  %v5183_v50 = vmul.f32 %v5551_v2, %v4758_v61  ;;  %5552 = vpow2.f32 %v5443_v23 }
 0xa0c   :  { %v5165_v28 = vsel %vm5162_vm1, %v5164_v62, %v5160_v34  ;;  %5554 = vrcp.f32 %v4760_v5  ;;  %v4524_v45 = vpop.f32.mrf.mxu2  ;;  %v4589_v30 = vpop.f32.mrf.mxu3  ;;  %vm5188_vm2 = vweird.f32 %v5551_v2  ;;  %v5223_v38 = vand.u32 2147483648, %v4760_v5 }
 0xa0d   :  { %5268 = vst [vmem:[#allocation8 + $0xd0] sm:$0xff] %v5165_v28  ;;  %v5184_v53 = vsub.f32 1.0, %v5183_v50  ;;  %v4525_v27 = vadd.f32 %v4524_v45, %v4460_v18  ;;  %vm5189_vm4 = vmor %vm5187_vm3, %vm5188_vm2  ;;  %v5221_v32 = vand.u32 2147483647, %v4760_v5  ;;  %vm5217_vm7 = vweird.f32 %v4760_v5 }
 0xa0e   :  { %v5224_v7 = vor.u32 1.1754944e-38, %v5223_v38 }
 0xa0f   :  { %v5185_v26 = vmul.f32 %v5551_v2, %v5184_v53  ;;  %v4590_v36 = vadd.f32 %v4589_v30, %v4525_v27  ;;  %vm5222_vm9 = vcmp.eq.f32.partialorder %v5221_v32, 8.507059e+37 }
 0xa11   :  { %v5553_v40 = vpop.eup %5552  ;;  %v5186_v10 = vadd.f32 %v5551_v2, %v5185_v26  ;;  %v5445_v35 = vmul.f32 -1.442695, %v4590_v36  ;;  %v4397_v19 = vpop.f32.mrf.mxu0 }
 0xa12   :  { %v4462_v31 = vpop.f32.mrf.mxu1  ;;  %v5555_v37 = vpop.eup %5554  ;;  %v4731_v11 = vadd.f32 1.0, %v5553_v40 }
 0xa13   :  { %v4463_v1 = vadd.f32 %v4462_v31, %v4397_v19  ;;  %v5190_v14 = vsel %vm5189_vm4, %v5551_v2, %v5186_v10  ;;  %v5213_v17 = vmul.f32 %v5555_v37, %v4760_v5  ;;  %5556 = vpow2.f32 %v5445_v35 }
 0xa14   :  { %v5195_v3 = vsel %vm5192_vm5, %v5194_v9, %v5190_v14  ;;  %5558 = vrcp.f32 %v4731_v11  ;;  %v4527_v0 = vpop.f32.mrf.mxu2  ;;  %v4592_v48 = vpop.f32.mrf.mxu3  ;;  %vm5218_vm6 = vweird.f32 %v5555_v37  ;;  %v4788_v55 = vand.u32 2147483648, %v4731_v11 }
 0xa15   :  { %5270 = vst [vmem:[#allocation8 + $0xe0] sm:$0xff] %v5195_v3  ;;  %v5214_v59 = vsub.f32 1.0, %v5213_v17  ;;  %v4528_v33 = vadd.f32 %v4527_v0, %v4463_v1  ;;  %vm5219_vm8 = vmor %vm5217_vm7, %vm5218_vm6  ;;  %v4786_v63 = vand.u32 2147483647, %v4731_v11  ;;  %vm4782_vm11 = vweird.f32 %v4731_v11 }
 0xa16   :  { %v4789_v23 = vor.u32 1.1754944e-38, %v4788_v55 }
 0xa17   :  { %v5215_v24 = vmul.f32 %v5555_v37, %v5214_v59  ;;  %v4593_v58 = vadd.f32 %v4592_v48, %v4528_v33  ;;  %vm4787_vm13 = vcmp.eq.f32.partialorder %v4786_v63, 8.507059e+37 }
 0xa19   :  { %v5557_v42 = vpop.eup %5556  ;;  %v5216_v4 = vadd.f32 %v5555_v37, %v5215_v24  ;;  %v5447_v21 = vmul.f32 -1.442695, %v4593_v58  ;;  %v4400_v57 = vpop.f32.mrf.mxu0 }
 0xa1a   :  { %v4465_v46 = vpop.f32.mrf.mxu1  ;;  %v5559_v49 = vpop.eup %5558  ;;  %v4733_v60 = vadd.f32 1.0, %v5557_v42 }
 0xa1b   :  { %v4466_v41 = vadd.f32 %v4465_v46, %v4400_v57  ;;  %v5220_v12 = vsel %vm5219_vm8, %v5555_v37, %v5216_v4  ;;  %v4778_v16 = vmul.f32 %v5559_v49, %v4731_v11  ;;  %5560 = vpow2.f32 %v5447_v21 }
 0xa1c   :  { %v5225_v61 = vsel %vm5222_vm9, %v5224_v7, %v5220_v12  ;;  %5562 = vrcp.f32 %v4733_v60  ;;  %v4530_v47 = vpop.f32.mrf.mxu2  ;;  %v4595_v13 = vpop.f32.mrf.mxu3  ;;  %vm4783_vm10 = vweird.f32 %v5559_v49  ;;  %v4818_v45 = vand.u32 2147483648, %v4733_v60 }
 0xa1d   :  { %5272 = vst [vmem:[#allocation8 + $0xf0] sm:$0xff] %v5225_v61  ;;  %v4779_v51 = vsub.f32 1.0, %v4778_v16  ;;  %v4531_v15 = vadd.f32 %v4530_v47, %v4466_v41  ;;  %vm4784_vm12 = vmor %vm4782_vm11, %vm4783_vm10  ;;  %v4816_v53 = vand.u32 2147483647, %v4733_v60  ;;  %vm4812_vm15 = vweird.f32 %v4733_v60 }
 0xa1e   :  { %v4819_v35 = vor.u32 1.1754944e-38, %v4818_v45 }
 0xa1f   :  { %v4780_v56 = vmul.f32 %v5559_v49, %v4779_v51  ;;  %v4596_v43 = vadd.f32 %v4595_v13, %v4531_v15  ;;  %vm4817_vm1 = vcmp.eq.f32.partialorder %v4816_v53, 8.507059e+37 }
 0xa21   :  { %v5561_v6 = vpop.eup %5560  ;;  %v4781_v8 = vadd.f32 %v5559_v49, %v4780_v56  ;;  %v5449_v29 = vmul.f32 -1.442695, %v4596_v43  ;;  %v4403_v22 = vpop.f32.mrf.mxu0 }
 0xa22   :  { %v4468_v52 = vpop.f32.mrf.mxu1  ;;  %v5563_v44 = vpop.eup %5562  ;;  %v4735_v54 = vadd.f32 1.0, %v5561_v6 }
 0xa23   :  { %v4469_v25 = vadd.f32 %v4468_v52, %v4403_v22  ;;  %v4785_v2 = vsel %vm4784_vm12, %v5559_v49, %v4781_v8  ;;  %v4808_v62 = vmul.f32 %v5563_v44, %v4733_v60  ;;  %5564 = vpow2.f32 %v5449_v29 }
 0xa24   :  { %v4790_v5 = vsel %vm4787_vm13, %v4789_v23, %v4785_v2  ;;  %5566 = vrcp.f32 %v4735_v54  ;;  %v4533_v18 = vpop.f32.mrf.mxu2  ;;  %v4598_v34 = vpop.f32.mrf.mxu3  ;;  %vm4813_vm14 = vweird.f32 %v5563_v44  ;;  %v4848_v0 = vand.u32 2147483648, %v4735_v54 }
 0xa25   :  { %5243 = vst [vmem:[#allocation8 + $0x8] sm:$0xff] %v4790_v5  ;;  %v4809_v50 = vsub.f32 1.0, %v4808_v62  ;;  %v4534_v28 = vadd.f32 %v4533_v18, %v4469_v25  ;;  %vm4814_vm0 = vmor %vm4812_vm15, %vm4813_vm14  ;;  %v4846_v59 = vand.u32 2147483647, %v4735_v54  ;;  %vm4842_vm3 = vweird.f32 %v4735_v54 }
 0xa26   :  { %v4849_v21 = vor.u32 1.1754944e-38, %v4848_v0 }
 0xa27   :  { %v4810_v30 = vmul.f32 %v5563_v44, %v4809_v50  ;;  %v4599_v27 = vadd.f32 %v4598_v34, %v4534_v28  ;;  %vm4847_vm5 = vcmp.eq.f32.partialorder %v4846_v59, 8.507059e+37 }
 0xa29   :  { %v5565_v39 = vpop.eup %5564  ;;  %v4811_v26 = vadd.f32 %v5563_v44, %v4810_v30  ;;  %v5451_v20 = vmul.f32 -1.442695, %v4599_v27  ;;  %v4406_v36 = vpop.f32.mrf.mxu0 }
 0xa2a   :  { %v4471_v40 = vpop.f32.mrf.mxu1  ;;  %v5567_v10 = vpop.eup %5566  ;;  %v4737_v19 = vadd.f32 1.0, %v5565_v39 }
 0xa2b   :  { %v4472_v31 = vadd.f32 %v4471_v40, %v4406_v36  ;;  %v4815_v37 = vsel %vm4814_vm0, %v5563_v44, %v4811_v26  ;;  %v4838_v9 = vmul.f32 %v5567_v10, %v4735_v54  ;;  %5568 = vpow2.f32 %v5451_v20 }
 0xa2c   :  { %v4820_v11 = vsel %vm4817_vm1, %v4819_v35, %v4815_v37  ;;  %5570 = vrcp.f32 %v4737_v19  ;;  %v4536_v1 = vpop.f32.mrf.mxu2  ;;  %v4601_v14 = vpop.f32.mrf.mxu3  ;;  %vm4843_vm2 = vweird.f32 %v5567_v10  ;;  %v4878_v47 = vand.u32 2147483648, %v4737_v19 }
 0xa2d   :  { %5245 = vst [vmem:[#allocation8 + $0x18] sm:$0xff] %v4820_v11  ;;  %v4839_v17 = vsub.f32 1.0, %v4838_v9  ;;  %v4537_v3 = vadd.f32 %v4536_v1, %v4472_v31  ;;  %vm4844_vm4 = vmor %vm4842_vm3, %vm4843_vm2  ;;  %v4876_v51 = vand.u32 2147483647, %v4737_v19  ;;  %vm4872_vm7 = vweird.f32 %v4737_v19 }
 0xa2e   :  { %v4879_v29 = vor.u32 1.1754944e-38, %v4878_v47 }
 0xa2f   :  { %v4840_v48 = vmul.f32 %v5567_v10, %v4839_v17  ;;  %v4602_v33 = vadd.f32 %v4601_v14, %v4537_v3  ;;  %vm4877_vm9 = vcmp.eq.f32.partialorder %v4876_v51, 8.507059e+37 }
 0xa31   :  { %v5569_v38 = vpop.eup %5568  ;;  %v4841_v24 = vadd.f32 %v5567_v10, %v4840_v48  ;;  %v5453_v32 = vmul.f32 -1.442695, %v4602_v33  ;;  %v4409_v58 = vpop.f32.mrf.mxu0 }
 0xa32   :  { %v4474_v42 = vpop.f32.mrf.mxu1  ;;  %v5571_v4 = vpop.eup %5570  ;;  %v4739_v57 = vadd.f32 1.0, %v5569_v38 }
 0xa33   :  { %v4475_v46 = vadd.f32 %v4474_v42, %v4409_v58  ;;  %v4845_v49 = vsel %vm4844_vm4, %v5567_v10, %v4841_v24  ;;  %v4868_v7 = vmul.f32 %v5571_v4, %v4737_v19  ;;  %5572 = vpow2.f32 %v5453_v32 }
 0xa34   :  { %v4850_v60 = vsel %vm4847_vm5, %v4849_v21, %v4845_v49  ;;  %5574 = vrcp.f32 %v4739_v57  ;;  %v4539_v41 = vpop.f32.mrf.mxu2  ;;  %v4604_v12 = vpop.f32.mrf.mxu3  ;;  %vm4873_vm6 = vweird.f32 %v5571_v4  ;;  %v4908_v18 = vand.u32 2147483648, %v4739_v57 }
 0xa35   :  { %5247 = vst [vmem:[#allocation8 + $0x28] sm:$0xff] %v4850_v60  ;;  %v4869_v16 = vsub.f32 1.0, %v4868_v7  ;;  %v4540_v61 = vadd.f32 %v4539_v41, %v4475_v46  ;;  %vm4874_vm8 = vmor %vm4872_vm7, %vm4873_vm6  ;;  %v4906_v50 = vand.u32 2147483647, %v4739_v57  ;;  %vm4902_vm11 = vweird.f32 %v4739_v57 }
 0xa36   :  { %v4909_v20 = vor.u32 1.1754944e-38, %v4908_v18 }
 0xa37   :  { %v4870_v13 = vmul.f32 %v5571_v4, %v4869_v16  ;;  %v4605_v15 = vadd.f32 %v4604_v12, %v4540_v61  ;;  %vm4907_vm13 = vcmp.eq.f32.partialorder %v4906_v50, 8.507059e+37 }
 0xa39   :  { %v5573_v55 = vpop.eup %5572  ;;  %v4871_v56 = vadd.f32 %v5571_v4, %v4870_v13  ;;  %v5455_v63 = vmul.f32 -1.442695, %v4605_v15  ;;  %v4412_v43 = vpop.f32.mrf.mxu0 }
 0xa3a   :  { %v4477_v6 = vpop.f32.mrf.mxu1  ;;  %v5575_v8 = vpop.eup %5574  ;;  %v4741_v22 = vadd.f32 1.0, %v5573_v55 }
 0xa3b   :  { %v4478_v52 = vadd.f32 %v4477_v6, %v4412_v43  ;;  %v4875_v44 = vsel %vm4874_vm8, %v5571_v4, %v4871_v56  ;;  %v4898_v23 = vmul.f32 %v5575_v8, %v4739_v57  ;;  %5576 = vpow2.f32 %v5455_v63 }
 0xa3c   :  { %v4880_v54 = vsel %vm4877_vm9, %v4879_v29, %v4875_v44  ;;  %5578 = vrcp.f32 %v4741_v22  ;;  %v4542_v25 = vpop.f32.mrf.mxu2  ;;  %v4607_v2 = vpop.f32.mrf.mxu3  ;;  %vm4903_vm10 = vweird.f32 %v5575_v8  ;;  %v4938_v1 = vand.u32 2147483648, %v4741_v22 }
 0xa3d   :  { %5249 = vst [vmem:[#allocation8 + $0x38] sm:$0xff] %v4880_v54  ;;  %v4899_v62 = vsub.f32 1.0, %v4898_v23  ;;  %v4543_v5 = vadd.f32 %v4542_v25, %v4478_v52  ;;  %vm4904_vm12 = vmor %vm4902_vm11, %vm4903_vm10  ;;  %v4936_v17 = vand.u32 2147483647, %v4741_v22  ;;  %vm4932_vm15 = vweird.f32 %v4741_v22 }
 0xa3e   :  { %v4939_v32 = vor.u32 1.1754944e-38, %v4938_v1 }
 0xa3f   :  { %v4900_v34 = vmul.f32 %v5575_v8, %v4899_v62  ;;  %v4608_v28 = vadd.f32 %v4607_v2, %v4543_v5  ;;  %vm4937_vm1 = vcmp.eq.f32.partialorder %v4936_v17, 8.507059e+37 }
 0xa41   :  { %v5577_v45 = vpop.eup %5576  ;;  %v4901_v30 = vadd.f32 %v5575_v8, %v4900_v34  ;;  %v5457_v53 = vmul.f32 -1.442695, %v4608_v28  ;;  %v4415_v27 = vpop.f32.mrf.mxu0 }
 0xa42   :  { %v4480_v39 = vpop.f32.mrf.mxu1  ;;  %v5579_v26 = vpop.eup %5578  ;;  %v4743_v36 = vadd.f32 1.0, %v5577_v45 }
 0xa43   :  { %v4481_v40 = vadd.f32 %v4480_v39, %v4415_v27  ;;  %v4905_v10 = vsel %vm4904_vm12, %v5575_v8, %v4901_v30  ;;  %v4928_v35 = vmul.f32 %v5579_v26, %v4741_v22  ;;  %5580 = vpow2.f32 %v5457_v53 }
 0xa44   :  { %v4910_v19 = vsel %vm4907_vm13, %v4909_v20, %v4905_v10  ;;  %5582 = vrcp.f32 %v4743_v36  ;;  %v4545_v31 = vpop.f32.mrf.mxu2  ;;  %v4610_v37 = vpop.f32.mrf.mxu3  ;;  %vm4933_vm14 = vweird.f32 %v5579_v26  ;;  %v4968_v41 = vand.u32 2147483648, %v4743_v36 }
 0xa45   :  { %5251 = vst [vmem:[#allocation8 + $0x48] sm:$0xff] %v4910_v19  ;;  %v4929_v9 = vsub.f32 1.0, %v4928_v35  ;;  %v4546_v11 = vadd.f32 %v4545_v31, %v4481_v40  ;;  %vm4934_vm0 = vmor %vm4932_vm15, %vm4933_vm14  ;;  %v4966_v16 = vand.u32 2147483647, %v4743_v36  ;;  %vm4962_vm3 = vweird.f32 %v4743_v36 }
 0xa46   :  { %v4969_v63 = vor.u32 1.1754944e-38, %v4968_v41 }
 0xa47   :  { %v4930_v14 = vmul.f32 %v5579_v26, %v4929_v9  ;;  %v4611_v3 = vadd.f32 %v4610_v37, %v4546_v11  ;;  %vm4967_vm5 = vcmp.eq.f32.partialorder %v4966_v16, 8.507059e+37 }
 0xa49   :  { %v5581_v0 = vpop.eup %5580  ;;  %v4931_v48 = vadd.f32 %v5579_v26, %v4930_v14  ;;  %v5459_v59 = vmul.f32 -1.442695, %v4611_v3  ;;  %v4418_v33 = vpop.f32.mrf.mxu0 }
 0xa4a   :  { %v4483_v38 = vpop.f32.mrf.mxu1  ;;  %v5583_v24 = vpop.eup %5582  ;;  %v4745_v58 = vadd.f32 1.0, %v5581_v0 }
 0xa4b   :  { %v4484_v42 = vadd.f32 %v4483_v38, %v4418_v33  ;;  %v4935_v4 = vsel %vm4934_vm0, %v5579_v26, %v4931_v48  ;;  %v4958_v21 = vmul.f32 %v5583_v24, %v4743_v36  ;;  %5584 = vpow2.f32 %v5459_v59 }
 0xa4c   :  { %v4940_v57 = vsel %vm4937_vm1, %v4939_v32, %v4935_v4  ;;  %5586 = vrcp.f32 %v4745_v58  ;;  %v4548_v46 = vpop.f32.mrf.mxu2  ;;  %v4613_v49 = vpop.f32.mrf.mxu3  ;;  %vm4963_vm2 = vweird.f32 %v5583_v24  ;;  %v4998_v25 = vand.u32 2147483648, %v4745_v58 }
 0xa4d   :  { %5253 = vst [vmem:[#allocation8 + $0x58] sm:$0xff] %v4940_v57  ;;  %v4959_v7 = vsub.f32 1.0, %v4958_v21  ;;  %v4549_v60 = vadd.f32 %v4548_v46, %v4484_v42  ;;  %vm4964_vm4 = vmor %vm4962_vm3, %vm4963_vm2  ;;  %v4996_v62 = vand.u32 2147483647, %v4745_v58  ;;  %vm4992_vm7 = vweird.f32 %v4745_v58 }
 0xa4e   :  { %v4999_v53 = vor.u32 1.1754944e-38, %v4998_v25 }
 0xa4f   :  { %v4960_v12 = vmul.f32 %v5583_v24, %v4959_v7  ;;  %v4614_v61 = vadd.f32 %v4613_v49, %v4549_v60  ;;  %vm4997_vm9 = vcmp.eq.f32.partialorder %v4996_v62, 8.507059e+37 }
 0xa51   :  { %v5585_v47 = vpop.eup %5584  ;;  %v4961_v13 = vadd.f32 %v5583_v24, %v4960_v12  ;;  %v5461_v51 = vmul.f32 -1.442695, %v4614_v61  ;;  %v4421_v15 = vpop.f32.mrf.mxu0 }
 0xa52   :  { %v4486_v55 = vpop.f32.mrf.mxu1  ;;  %v5587_v56 = vpop.eup %5586  ;;  %v4747_v43 = vadd.f32 1.0, %v5585_v47 }
 0xa53   :  { %v4487_v6 = vadd.f32 %v4486_v55, %v4421_v15  ;;  %v4965_v8 = vsel %vm4964_vm4, %v5583_v24, %v4961_v13  ;;  %v4988_v29 = vmul.f32 %v5587_v56, %v4745_v58  ;;  %5588 = vpow2.f32 %v5461_v51 }
 0xa54   :  { %v4970_v22 = vsel %vm4967_vm5, %v4969_v63, %v4965_v8  ;;  %5590 = vrcp.f32 %v4747_v43  ;;  %v4551_v52 = vpop.f32.mrf.mxu2  ;;  %v4616_v44 = vpop.f32.mrf.mxu3  ;;  %vm4993_vm6 = vweird.f32 %v5587_v56  ;;  %v5028_v31 = vand.u32 2147483648, %v4747_v43 }
 0xa55   :  { %5255 = vst [vmem:[#allocation8 + $0x68] sm:$0xff] %v4970_v22  ;;  %v4989_v23 = vsub.f32 1.0, %v4988_v29  ;;  %v4552_v54 = vadd.f32 %v4551_v52, %v4487_v6  ;;  %vm4994_vm8 = vmor %vm4992_vm7, %vm4993_vm6  ;;  %v5026_v9 = vand.u32 2147483647, %v4747_v43  ;;  %vm5022_vm11 = vweird.f32 %v4747_v43 }
 0xa56   :  { %v5029_v59 = vor.u32 1.1754944e-38, %v5028_v31 }
 0xa57   :  { %v4990_v2 = vmul.f32 %v5587_v56, %v4989_v23  ;;  %v4617_v5 = vadd.f32 %v4616_v44, %v4552_v54  ;;  %vm5027_vm13 = vcmp.eq.f32.partialorder %v5026_v9, 8.507059e+37 }
 0xa59   :  { %v5589_v18 = vpop.eup %5588  ;;  %v4991_v34 = vadd.f32 %v5587_v56, %v4990_v2  ;;  %v5463_v50 = vmul.f32 -1.442695, %v4617_v5  ;;  %v4424_v28 = vpop.f32.mrf.mxu0 }
 0xa5a   :  { %v4489_v45 = vpop.f32.mrf.mxu1  ;;  %v5591_v30 = vpop.eup %5590  ;;  %v4749_v27 = vadd.f32 1.0, %v5589_v18 }
 0xa5b   :  { %v4490_v39 = vadd.f32 %v4489_v45, %v4424_v28  ;;  %v4995_v26 = vsel %vm4994_vm8, %v5587_v56, %v4991_v34  ;;  %v5018_v20 = vmul.f32 %v5591_v30, %v4747_v43  ;;  %5592 = vpow2.f32 %v5463_v50 }
 0xa5c   :  { %v5000_v36 = vsel %vm4997_vm9, %v4999_v53, %v4995_v26  ;;  %5594 = vrcp.f32 %v4749_v27  ;;  %v4554_v40 = vpop.f32.mrf.mxu2  ;;  %v4619_v10 = vpop.f32.mrf.mxu3  ;;  %vm5023_vm10 = vweird.f32 %v5591_v30  ;;  %v5058_v46 = vand.u32 2147483648, %v4749_v27 }
 0xa5d   :  { %5257 = vst [vmem:[#allocation8 + $0x78] sm:$0xff] %v5000_v36  ;;  %v5019_v35 = vsub.f32 1.0, %v5018_v20  ;;  %v4555_v19 = vadd.f32 %v4554_v40, %v4490_v39  ;;  %vm5024_vm12 = vmor %vm5022_vm11, %vm5023_vm10  ;;  %v5056_v7 = vand.u32 2147483647, %v4749_v27  ;;  %vm5052_vm15 = vweird.f32 %v4749_v27 }
 0xa5e   :  { %v5059_v51 = vor.u32 1.1754944e-38, %v5058_v46 }
 0xa5f   :  { %v5020_v37 = vmul.f32 %v5591_v30, %v5019_v35  ;;  %v4620_v11 = vadd.f32 %v4619_v10, %v4555_v19  ;;  %vm5057_vm1 = vcmp.eq.f32.partialorder %v5056_v7, 8.507059e+37 }
 0xa61   :  { %v5593_v1 = vpop.eup %5592  ;;  %v5021_v14 = vadd.f32 %v5591_v30, %v5020_v37  ;;  %v5465_v17 = vmul.f32 -1.442695, %v4620_v11  ;;  %v4427_v3 = vpop.f32.mrf.mxu0 }
 0xa62   :  { %v4492_v0 = vpop.f32.mrf.mxu1  ;;  %v5595_v48 = vpop.eup %5594  ;;  %v4751_v33 = vadd.f32 1.0, %v5593_v1 }
 0xa63   :  { %v4493_v38 = vadd.f32 %v4492_v0, %v4427_v3  ;;  %v5025_v24 = vsel %vm5024_vm12, %v5591_v30, %v5021_v14  ;;  %v5048_v32 = vmul.f32 %v5595_v48, %v4749_v27  ;;  %5596 = vpow2.f32 %v5465_v17 }
 0xa64   :  { %v5030_v58 = vsel %vm5027_vm13, %v5029_v59, %v5025_v24  ;;  %5598 = vrcp.f32 %v4751_v33  ;;  %v4557_v42 = vpop.f32.mrf.mxu2  ;;  %v4622_v4 = vpop.f32.mrf.mxu3  ;;  %vm5053_vm14 = vweird.f32 %v5595_v48  ;;  %v5088_v52 = vand.u32 2147483648, %v4751_v33 }
 0xa65   :  { %5259 = vst [vmem:[#allocation8 + $0x88] sm:$0xff] %v5030_v58  ;;  %v5049_v21 = vsub.f32 1.0, %v5048_v32  ;;  %v4558_v57 = vadd.f32 %v4557_v42, %v4493_v38  ;;  %vm5054_vm0 = vmor %vm5052_vm15, %vm5053_vm14  ;;  %v5086_v23 = vand.u32 2147483647, %v4751_v33  ;;  %vm5082_vm3 = vweird.f32 %v4751_v33 }
 0xa66   :  { %v5089_v50 = vor.u32 1.1754944e-38, %v5088_v52 }
 0xa67   :  { %v5050_v49 = vmul.f32 %v5595_v48, %v5049_v21  ;;  %v4623_v60 = vadd.f32 %v4622_v4, %v4558_v57  ;;  %vm5087_vm5 = vcmp.eq.f32.partialorder %v5086_v23, 8.507059e+37 }
 0xa69   :  { %v5597_v41 = vpop.eup %5596  ;;  %v5051_v12 = vadd.f32 %v5595_v48, %v5050_v49  ;;  %v5467_v16 = vmul.f32 -1.442695, %v4623_v60  ;;  %v4430_v61 = vpop.f32.mrf.mxu0 }
 0xa6a   :  { %v4495_v47 = vpop.f32.mrf.mxu1  ;;  %v5599_v13 = vpop.eup %5598  ;;  %v4753_v15 = vadd.f32 1.0, %v5597_v41 }
 0xa6b   :  { %v4496_v55 = vadd.f32 %v4495_v47, %v4430_v61  ;;  %v5055_v56 = vsel %vm5054_vm0, %v5595_v48, %v5051_v12  ;;  %v5078_v63 = vmul.f32 %v5599_v13, %v4751_v33  ;;  %5600 = vpow2.f32 %v5467_v16 }
 0xa6c   :  { %v5060_v43 = vsel %vm5057_vm1, %v5059_v51, %v5055_v56  ;;  %5602 = vrcp.f32 %v4753_v15  ;;  %v4560_v6 = vpop.f32.mrf.mxu2  ;;  %v4625_v8 = vpop.f32.mrf.mxu3  ;;  %vm5083_vm2 = vweird.f32 %v5599_v13  ;;  %v5118_v40 = vand.u32 2147483648, %v4753_v15 }
 0xa6d   :  { %5261 = vst [vmem:[#allocation8 + $0x98] sm:$0xff] %v5060_v43  ;;  %v5079_v29 = vsub.f32 1.0, %v5078_v63  ;;  %v4561_v22 = vadd.f32 %v4560_v6, %v4496_v55  ;;  %vm5084_vm4 = vmor %vm5082_vm3, %vm5083_vm2  ;;  %v5116_v35 = vand.u32 2147483647, %v4753_v15  ;;  %vm5112_vm7 = vweird.f32 %v4753_v15 }
 0xa6e   :  { %v5119_v17 = vor.u32 1.1754944e-38, %v5118_v40 }
 0xa6f   :  { %v5080_v44 = vmul.f32 %v5599_v13, %v5079_v29  ;;  %v4626_v54 = vadd.f32 %v4625_v8, %v4561_v22  ;;  %vm5117_vm9 = vcmp.eq.f32.partialorder %v5116_v35, 8.507059e+37 }
 0xa71   :  { %v5601_v25 = vpop.eup %5600  ;;  %v5081_v2 = vadd.f32 %v5599_v13, %v5080_v44  ;;  %v5469_v62 = vmul.f32 -1.442695, %v4626_v54  ;;  %v4433_v5 = vpop.f32.mrf.mxu0 }
 0xa72   :  { %v4498_v18 = vpop.f32.mrf.mxu1  ;;  %v5603_v34 = vpop.eup %5602  ;;  %v4755_v28 = vadd.f32 1.0, %v5601_v25 }
 0xa73   :  { %v4499_v45 = vadd.f32 %v4498_v18, %v4433_v5  ;;  %v5085_v30 = vsel %vm5084_vm4, %v5599_v13, %v5081_v2  ;;  %v5108_v53 = vmul.f32 %v5603_v34, %v4753_v15  ;;  %5604 = vpow2.f32 %v5469_v62 }
 0xa74   :  { %v5090_v27 = vsel %vm5087_vm5, %v5089_v50, %v5085_v30  ;;  %5606 = vrcp.f32 %v4755_v28  ;;  %v4563_v39 = vpop.f32.mrf.mxu2  ;;  %v4628_v26 = vpop.f32.mrf.mxu3  ;;  %vm5113_vm6 = vweird.f32 %v5603_v34  ;;  %v5148_v42 = vand.u32 2147483648, %v4755_v28 }
 0xa75   :  { %5263 = vst [vmem:[#allocation8 + $0xa8] sm:$0xff] %v5090_v27  ;;  %v5109_v20 = vsub.f32 1.0, %v5108_v53  ;;  %v4564_v36 = vadd.f32 %v4563_v39, %v4499_v45  ;;  %vm5114_vm8 = vmor %vm5112_vm7, %vm5113_vm6  ;;  %v5146_v21 = vand.u32 2147483647, %v4755_v28  ;;  %vm5142_vm11 = vweird.f32 %v4755_v28 }
 0xa76   :  { %v5149_v41 = vor.u32 1.1754944e-38, %v5148_v42 }
 0xa77   :  { %v5110_v10 = vmul.f32 %v5603_v34, %v5109_v20  ;;  %v4629_v19 = vadd.f32 %v4628_v26, %v4564_v36  ;;  %vm5147_vm13 = vcmp.eq.f32.partialorder %v5146_v21, 8.507059e+37 }
 0xa79   :  { %v5605_v31 = vpop.eup %5604  ;;  %v5111_v37 = vadd.f32 %v5603_v34, %v5110_v10  ;;  %v5471_v9 = vmul.f32 -1.442695, %v4629_v19  ;;  %v4436_v11 = vpop.f32.mrf.mxu0 }
 0xa7a   :  { %v4501_v1 = vpop.f32.mrf.mxu1  ;;  %v5607_v14 = vpop.eup %5606  ;;  %v4757_v3 = vadd.f32 1.0, %v5605_v31 }
 0xa7b   :  { %v4502_v0 = vadd.f32 %v4501_v1, %v4436_v11  ;;  %v5115_v48 = vsel %vm5114_vm8, %v5603_v34, %v5111_v37  ;;  %v5138_v59 = vmul.f32 %v5607_v14, %v4755_v28  ;;  %5608 = vpow2.f32 %v5471_v9 }
 0xa7c   :  { %v5120_v33 = vsel %vm5117_vm9, %v5119_v17, %v5115_v48  ;;  %5610 = vrcp.f32 %v4757_v3  ;;  %v4566_v38 = vpop.f32.mrf.mxu2  ;;  %v4631_v24 = vpop.f32.mrf.mxu3  ;;  %vm5143_vm10 = vweird.f32 %v5607_v14  ;;  %v5178_v51 = vand.u32 2147483648, %v4757_v3 }
 0xa7d   :  { %5265 = vst [vmem:[#allocation8 + $0xb8] sm:$0xff] %v5120_v33  ;;  %v5139_v32 = vsub.f32 1.0, %v5138_v59  ;;  %v4567_v58 = vadd.f32 %v4566_v38, %v4502_v0  ;;  %vm5144_vm12 = vmor %vm5142_vm11, %vm5143_vm10  ;;  %v5176_v55 = vand.u32 2147483647, %v4757_v3  ;;  %vm5172_vm15 = vweird.f32 %v4757_v3 }
 0xa7e   :  { %v5179_v6 = vor.u32 1.1754944e-38, %v5178_v51 }
 0xa7f   :  { %v5140_v4 = vmul.f32 %v5607_v14, %v5139_v32  ;;  %v4632_v57 = vadd.f32 %v4631_v24, %v4567_v58  ;;  %vm5177_vm1 = vcmp.eq.f32.partialorder %v5176_v55, 8.507059e+37 }
 0xa81   :  { %v5609_v46 = vpop.eup %5608  ;;  %v5141_v49 = vadd.f32 %v5607_v14, %v5140_v4  ;;  %v5473_v7 = vmul.f32 -1.442695, %v4632_v57 }
 0xa82   :  { %v5611_v60 = vpop.eup %5610  ;;  %v4759_v12 = vadd.f32 1.0, %v5609_v46 }
 0xa83   :  { %v5145_v16 = vsel %vm5144_vm12, %v5607_v14, %v5141_v49  ;;  %v5168_v61 = vmul.f32 %v5611_v60, %v4757_v3  ;;  %5612 = vpow2.f32 %v5473_v7  ;;  %vm5173_vm14 = vweird.f32 %v5611_v60 }
 0xa84   :  { %v5150_v47 = vsel %vm5147_vm13, %v5149_v41, %v5145_v16  ;;  %5614 = vrcp.f32 %v4759_v12  ;;  %vm5174_vm0 = vmor %vm5172_vm15, %vm5173_vm14  ;;  %v5208_v23 = vand.u32 2147483648, %v4759_v12  ;;  %v5206_v25 = vand.u32 2147483647, %v4759_v12 }
 0xa85   :  { %5267 = vst [vmem:[#allocation8 + $0xc8] sm:$0xff] %v5150_v47  ;;  %v5169_v13 = vsub.f32 1.0, %v5168_v61  ;;  %vm5202_vm3 = vweird.f32 %v4759_v12 }
 0xa86   :  { %v5209_v5 = vor.u32 1.1754944e-38, %v5208_v23  ;;  %vm5207_vm5 = vcmp.eq.f32.partialorder %v5206_v25, 8.507059e+37 }
 0xa87   :  { %v5170_v15 = vmul.f32 %v5611_v60, %v5169_v13 }
 0xa89   :  { %v5613_v56 = vpop.eup %5612  ;;  %v5171_v63 = vadd.f32 %v5611_v60, %v5170_v15 }
 0xa8a   :  { %v5615_v43 = vpop.eup %5614  ;;  %v4761_v8 = vadd.f32 1.0, %v5613_v56 }
 0xa8b   :  { %v5175_v29 = vsel %vm5174_vm0, %v5611_v60, %v5171_v63  ;;  %v5198_v22 = vmul.f32 %v5615_v43, %v4759_v12  ;;  %vm5203_vm2 = vweird.f32 %v5615_v43 }
 0xa8c   :  { %v5180_v52 = vsel %vm5177_vm1, %v5179_v6, %v5175_v29  ;;  %5616 = vrcp.f32 %v4761_v8  ;;  %vm5204_vm4 = vmor %vm5202_vm3, %vm5203_vm2  ;;  %v5238_v45 = vand.u32 2147483648, %v4761_v8  ;;  %v5236_v53 = vand.u32 2147483647, %v4761_v8 }
 0xa8d   :  { %5269 = vst [vmem:[#allocation8 + $0xd8] sm:$0xff] %v5180_v52  ;;  %v5199_v44 = vsub.f32 1.0, %v5198_v22  ;;  %vm5232_vm7 = vweird.f32 %v4761_v8 }
 0xa8e   :  { %v5239_v39 = vor.u32 1.1754944e-38, %v5238_v45  ;;  %vm5237_vm9 = vcmp.eq.f32.partialorder %v5236_v53, 8.507059e+37 }
 0xa8f   :  { %v5200_v54 = vmul.f32 %v5615_v43, %v5199_v44 }
 0xa91   :  { %v5201_v2 = vadd.f32 %v5615_v43, %v5200_v54 }
 0xa92   :  { %v5617_v62 = vpop.eup %5616 }
 0xa93   :  { %v5205_v18 = vsel %vm5204_vm4, %v5615_v43, %v5201_v2  ;;  %v5228_v34 = vmul.f32 %v5617_v62, %v4761_v8  ;;  %vm5233_vm6 = vweird.f32 %v5617_v62 }
 0xa94   :  { %v5210_v50 = vsel %vm5207_vm5, %v5209_v5, %v5205_v18  ;;  %vm5234_vm8 = vmor %vm5232_vm7, %vm5233_vm6 }
 0xa95   :  { %5271 = vst [vmem:[#allocation8 + $0xe8] sm:$0xff] %v5210_v50  ;;  %v5229_v28 = vsub.f32 1.0, %v5228_v34 }
 0xa97   :  { %v5230_v30 = vmul.f32 %v5617_v62, %v5229_v28 }
 0xa99   :  { %v5231_v27 = vadd.f32 %v5617_v62, %v5230_v30 }
 0xa9b   :  { %v5235_v26 = vsel %vm5234_vm8, %v5617_v62, %v5231_v27 }
 0xa9c   :  { %v5240_v20 = vsel %vm5237_vm9, %v5239_v39, %v5235_v26 }
 0xa9d   :  { %5273 = vst [vmem:[#allocation8 + $0xf8] sm:$0xff] %v5240_v20 }
 0xa9e   :  { %5286 = dma.vmem_to_hbm [thread:$0]  %s5279_s15, 4096, %s5281_s1, [#allocation9], %s5755_s17, %s5755_s17, %s5756_s18  }
 0xa9f   :  { %5748 = dma.done.wait [#allocation9], 4096  }
 0xaa0   :  { %5749 = vsyncadd [#allocation9], 4294963200 }
 0xaa1   :  { %5291 = vsyncpa [#allocation9], 1 }
 0xaa2   :  { %5292 = vsyncmov [#allocation7] }
 0xaa5   :  { %s5293_s3 = vpop.sfrf %5292 }
 0xaa6   :  { %p5474_p0 = scmp.ne.s32.totalorder %s5293_s3, 0 }
 0xaa8   :  { %5297 = shalt.err (%p5474_p0)  }
 0xaa9   :  { %5299 = vsyncmov [#allocation7 + $0x1] }
 0xaac   :  { %s5300_s16 = vpop.sfrf %5299 }
 0xaad   :  { %p5475_p1 = scmp.ne.s32.totalorder %s5300_s16, 0 }
 0xaaf   :  { %5304 = shalt.err (%p5475_p1)  }
 0xab0   :  { %5306 = vsyncmov [#allocation7 + $0x2] }
 0xab3   :  { %s5307_s2 = vpop.sfrf %5306 }
 0xab4   :  { %p5476_p2 = scmp.ne.s32.totalorder %s5307_s2, 0 }
 0xab6   :  { %5311 = shalt.err (%p5476_p2)  }
 0xab7   :  { %5313 = vsyncmov [#allocation7 + $0x3] }
 0xaba   :  { %s5314_s8 = vpop.sfrf %5313 }
 0xabb   :  { %p5477_p3 = scmp.ne.s32.totalorder %s5314_s8, 0 }
 0xabd   :  { %5318 = shalt.err (%p5477_p3)  }
 0xabe   :  { %5320 = vsyncmov [#allocation7 + $0x4] }
 0xac1   :  { %s5321_s19 = vpop.sfrf %5320 }
 0xac2   :  { %p5478_p4 = scmp.ne.s32.totalorder %s5321_s19, 0 }
 0xac4   :  { %5325 = shalt.err (%p5478_p4)  }

</bundles_post_ra>
